<compile_context>
chip_gen: v5e
topology: v5e:2x2
jax: 0.10.0
libtpu: 0.0.40
codegen_flags: <defaults>
</compile_context>

<pallas_src>
import functools

import jax
import jax.numpy as jnp
from jax import lax
from jax.experimental import pallas as pl
from jax.experimental.pallas import tpu as pltpu

K = 7       # SpatialAttention kernel_size
PAD = 3     # "same" padding for kernel_size == 7
RATIO = 16  # ChannelAttention reduction ratio (hard-coded 16 in the module)


def _crash_kernel(x_ref,       # VMEM (Bt, C, HW)
                  w1t_ref,     # VMEM (C, Ch)      fc1 weight^T, f32
                  w2_ref,      # VMEM (C, Ch)      fc2 weight,   f32
                  wstack_ref,  # VMEM (2*Cout, C)  [wc1; wc2] final conv weight, bf16
                  b_ref,       # VMEM (Cout, 1)    final conv bias, f32
                  wsa_ref,     # VMEM (16, K)      packed 7x7 conv weight, f32
                  cmask_ref,   # VMEM (16, N)      column-validity masks (tiled per b)
                  rmask_ref,   # VMEM (8, N)       row-validity masks    (tiled per b)
                  o_ref,       # VMEM (Bt, Cout, HW)
                  *, H, W, Bt, Cout):
    HW = H * W
    N = Bt * HW

    w1t = w1t_ref[...]                                     # (C, Ch) f32
    w2 = w2_ref[...]                                       # (C, Ch) f32

    # ------------------------- ChannelAttention gate -------------------------
    # fc2(relu(fc1(avg))) + fc2(relu(fc1(max))) == fc2(relu(fc1(avg)) + relu(fc1(max)))
    x_ca_parts = []
    for bt in range(Bt):
        xb = x_ref[bt].astype(jnp.float32)                 # (C, HW)
        avg_c = jnp.mean(xb, axis=1, keepdims=True)        # (C, 1)
        max_c = jnp.max(xb, axis=1, keepdims=True)         # (C, 1)
        h = (jnp.maximum(jnp.sum(w1t * avg_c, axis=0, keepdims=True), 0.0)
             + jnp.maximum(jnp.sum(w1t * max_c, axis=0, keepdims=True), 0.0))  # (1, Ch)
        ca = jax.nn.sigmoid(jnp.sum(w2 * h, axis=1, keepdims=True))            # (C, 1)
        x_ca_parts.append(ca * xb)
    x_ca = x_ca_parts[0] if Bt == 1 else jnp.concatenate(x_ca_parts, axis=1)   # (C, N)

    # ---------------- stacked final 1x1 conv (bf16 MXU, f32 accumulate) ----------------
    # y[:Cout]  = wc1 @ x_ca   (un-gated half)
    # y[Cout:]  = wc2 @ x_ca   (spatial gate applied afterwards, see refactor note)
    y = jnp.dot(wstack_ref[...], x_ca.astype(jnp.bfloat16),
                preferred_element_type=jnp.float32)        # (2*Cout, N)

    # ------------------------- SpatialAttention gate -------------------------
    avg_s = jnp.mean(x_ca, axis=0, keepdims=True)          # (1, N)
    max_s = jnp.max(x_ca, axis=0, keepdims=True)           # (1, N)

    # Sublane-pack the 7 column shifts of each map into one (16, N) slab.
    # roll convention (verified): out[p] = in[(p + d) mod N]  for shift (-d) % N.
    rows = []
    for src in (avg_s, max_s):
        for kw in range(K):
            dj = kw - PAD
            rows.append(src if dj == 0 else pltpu.roll(src, (-dj) % N, axis=1))
    rows.append(jnp.zeros_like(avg_s))
    rows.append(jnp.zeros_like(avg_s))
    S = jnp.concatenate(rows, axis=0) * cmask_ref[...]      # (16, N), column-masked

    acc = jnp.zeros((1, N), jnp.float32)
    for kh in range(K):
        dh = kh - PAD
        wcol = wsa_ref[:, kh:kh + 1]                        # (16, 1)
        s = jnp.sum(S * wcol, axis=0, keepdims=True)        # (1, N) sublane reduce
        if dh != 0:
            s = pltpu.roll(s, (-dh * W) % N, axis=1)        # row shift in flat domain
        acc = acc + rmask_ref[kh:kh + 1, :] * s
    sa = jax.nn.sigmoid(acc)                                # (1, N)

    # ---------------- out = wc1@x_ca + sa*(wc2@x_ca) + bias ----------------
    out = y[:Cout] + sa * y[Cout:] + b_ref[...]             # (Cout, N) f32
    for bt in range(Bt):
        o_ref[bt] = out[:, bt * HW:(bt + 1) * HW].astype(o_ref.dtype)


def _pick_bt(B, C, Cout, HW):
    """Largest divisor of B whose per-step slab stays small and whose matmul
    N = Bt*HW is reasonably wide (amortizes grid overhead at toy sizes)."""
    for bt in range(B, 0, -1):
        if B % bt:
            continue
        n = bt * HW
        slab_bytes = (C + 2 * Cout + 64) * n * 4
        if n <= 2048 and slab_bytes <= (8 << 20):
            return bt
    return 1


def _build_pallas_call(B, Bt, C, Ch, Cout, H, W, out_dtype, single_buffer_weights):
    HW = H * W
    N = Bt * HW
    kernel = functools.partial(_crash_kernel, H=H, W=W, Bt=Bt, Cout=Cout)

    def const_spec(shape):
        # Grid-invariant input: constant index_map; request a single pipeline
        # buffer (the second buffer is pure VMEM waste for these).
        kwargs = {}
        if single_buffer_weights:
            kwargs["pipeline_mode"] = pl.Buffered(buffer_count=1)
        return pl.BlockSpec(shape, lambda i: (0,) * len(shape), **kwargs)

    return pl.pallas_call(
        kernel,
        out_shape=jax.ShapeDtypeStruct((B, Cout, HW), out_dtype),
        grid=(B // Bt,),
        in_specs=[
            pl.BlockSpec((Bt, C, HW), lambda i: (i, 0, 0)),   # x (streamed per step)
            const_spec((C, Ch)),                              # w1^T
            const_spec((C, Ch)),                              # w2
            const_spec((2 * Cout, C)),                        # [wc1; wc2] bf16
            const_spec((Cout, 1)),                            # bias
            const_spec((16, K)),                              # packed 7x7 weights
            const_spec((16, N)),                              # column masks
            const_spec((8, N)),                               # row masks
        ],
        out_specs=pl.BlockSpec((Bt, Cout, HW), lambda i: (i, 0, 0)),
        compiler_params=pltpu.CompilerParams(
            dimension_semantics=("parallel",)),
    )


def crash_attention(x, w1, w2, w_sa, wc, bc):
    """Fused Crashattention forward.

    x:    (B, C, H, W)
    w1:   (C // RATIO, C)  ChannelAttention.fc1 weight (1x1 conv, no bias)
    w2:   (C, C // RATIO)  ChannelAttention.fc2 weight (1x1 conv, no bias)
    w_sa: (1, 2, K, K)     SpatialAttention.conv1 weight (no bias)
    wc:   (Cout, 2*C)      final 1x1 conv weight (original: 4096 -> 2048)
    bc:   (Cout,)          final 1x1 conv bias
    """
    B, C, H, W = x.shape
    HW = H * W
    Ch = w1.shape[0]
    Cout = wc.shape[0]
    assert HW % 128 == 0, "flat-domain rolls/reductions assume lane-aligned H*W"
    assert wc.shape[1] == 2 * C

    Bt = _pick_bt(B, C, Cout, HW)
    N = Bt * HW

    # Lane-dense input / operands.
    x2 = x.reshape(B, C, HW)
    w1t = jnp.transpose(w1).astype(jnp.float32)                         # (C, Ch)
    w2f = w2.astype(jnp.float32)                                        # (C, Ch)
    wstack = jnp.concatenate([wc[:, :C], wc[:, C:]], axis=0).astype(jnp.bfloat16)  # (2Cout, C)
    bc2 = bc.reshape(Cout, 1).astype(jnp.float32)

    # Packed 7x7 conv weight: row r<7 -> avg map shifted by kw=r, row 7..13 -> max map.
    w_sa_r = w_sa.reshape(2, K, K).astype(jnp.float32)
    wsa_mat = jnp.concatenate(
        [jnp.transpose(w_sa_r[0]), jnp.transpose(w_sa_r[1]),
         jnp.zeros((2, K), jnp.float32)], axis=0)                       # (16, K)

    # Zero-padding validity masks, precomputed and tiled across the Bt segments.
    p = jnp.arange(HW, dtype=jnp.int32)
    col = p % W
    row = p // W
    colmask = jnp.stack(
        [((col + (kw - PAD) >= 0) & (col + (kw - PAD) < W)).astype(jnp.float32)
         for kw in range(K)], axis=0)                                   # (7, HW)
    rowmask = jnp.stack(
        [((row + (kh - PAD) >= 0) & (row + (kh - PAD) < H)).astype(jnp.float32)
         for kh in range(K)], axis=0)                                   # (7, HW)
    cmask = jnp.tile(
        jnp.concatenate([colmask, colmask, jnp.zeros((2, HW), jnp.float32)], axis=0),
        (1, Bt))                                                        # (16, N)
    rmask = jnp.tile(
        jnp.concatenate([rowmask, jnp.zeros((1, HW), jnp.float32)], axis=0),
        (1, Bt))                                                        # (8, N)

    args = (x2, w1t, w2f, wstack, bc2, wsa_mat, cmask, rmask)
    try:
        out = _build_pallas_call(B, Bt, C, Ch, Cout, H, W, x.dtype, True)(*args)
    except Exception:
        # Fallback if this JAX build rejects pipeline_mode=pl.Buffered(1);
        # identical semantics, just default double-buffered weight inputs.
        out = _build_pallas_call(B, Bt, C, Ch, Cout, H, W, x.dtype, False)(*args)
    return out.reshape(B, Cout, H, W)


def crash_attention_ref(x, w1, w2, w_sa, wc, bc):
    """Pure-JAX reference matching the PyTorch forward."""
    with jax.default_matmul_precision("float32"):
        # ChannelAttention
        avg = jnp.mean(x, axis=(2, 3), keepdims=True)
        mx = jnp.max(x, axis=(2, 3), keepdims=True)

        def mlp(v):                                          # v: (B, C, 1, 1)
            h = jnp.einsum('hc,bcij->bhij', w1, v)
            h = jax.nn.relu(h)
            return jnp.einsum('ch,bhij->bcij', w2, h)

        ca = jax.nn.sigmoid(mlp(avg) + mlp(mx))
        x_ca = ca * x

        # SpatialAttention
        avg_s = jnp.mean(x_ca, axis=1, keepdims=True)
        max_s = jnp.max(x_ca, axis=1, keepdims=True)
        m = jnp.concatenate([avg_s, max_s], axis=1)
        m = lax.conv_general_dilated(
            m, w_sa, window_strides=(1, 1),
            padding=[(PAD, PAD), (PAD, PAD)],
            dimension_numbers=("NCHW", "OIHW", "NCHW"),
            precision=lax.Precision.HIGHEST)
        sa = jax.nn.sigmoid(m)
        x_sa = sa * x_ca

        # final 1x1 conv (with bias) on cat([x_ca, x_sa], dim=1)
        cat = jnp.concatenate([x_ca, x_sa], axis=1)          # (B, 2C, H, W)
        out = jnp.einsum('oc,bchw->bohw', wc, cat) + bc.reshape(1, -1, 1, 1)
    return out


if __name__ == "__main__":
    key = jax.random.PRNGKey(0)
    kx, k1, k2, k3, k4, k5 = jax.random.split(key, 6)

    # Small shapes consistent with the module: in_planes divisible by 16
    # (ratio) and the final conv is 2*C -> C (originally 4096 -> 2048).
    B, C, H, W = 2, 128, 16, 16
    Ch = C // RATIO
    Cout = C

    x = jax.random.normal(kx, (B, C, H, W), dtype=jnp.float32)
    w1 = 0.1 * jax.random.normal(k1, (Ch, C), dtype=jnp.float32)
    w2 = 0.1 * jax.random.normal(k2, (C, Ch), dtype=jnp.float32)
    w_sa = 0.1 * jax.random.normal(k3, (1, 2, K, K), dtype=jnp.float32)
    wc = 0.05 * jax.random.normal(k4, (Cout, 2 * C), dtype=jnp.float32)
    bc = 0.1 * jax.random.normal(k5, (Cout,), dtype=jnp.float32)

    out = crash_attention(x, w1, w2, w_sa, wc, bc)
    out = jax.block_until_ready(out)

    ref = crash_attention_ref(x, w1, w2, w_sa, wc, bc)
    assert out.shape == (B, Cout, H, W)
    # Final-conv dots run on the MXU in bf16 with f32 accumulation (perf
    # feedback), so compare against the f32 reference with a relaxed tolerance;
    # all gating math is still f32.
    assert jnp.allclose(out, ref, atol=2e-2, rtol=2e-2), "mismatch vs reference"

    print("KERNEL_OK")
</pallas_src>

<mosaic_0001>
module attributes {stable_mosaic.version = 11 : i64} {
  func.func @_crash_kernel(%arg0: i32, %arg1: memref<2x128x256xf32, #tpu.memory_space<vmem>>, %arg2: memref<128x8xf32, #tpu.memory_space<vmem>>, %arg3: memref<128x8xf32, #tpu.memory_space<vmem>>, %arg4: memref<256x128xbf16, #tpu.memory_space<vmem>>, %arg5: memref<128x1xf32, #tpu.memory_space<vmem>>, %arg6: memref<16x7xf32, #tpu.memory_space<vmem>>, %arg7: memref<16x512xf32, #tpu.memory_space<vmem>>, %arg8: memref<8x512xf32, #tpu.memory_space<vmem>>, %arg9: memref<2x128x256xf32, #tpu.memory_space<vmem>>) attributes {dimension_semantics = [#tpu.dimension_semantics<parallel>], iteration_bounds = array<i64: 1>, scalar_prefetch = 0 : i64, scratch_operands = 0 : i64, tpu.core_type = #tpu.core_type<tc>, window_params = [{transform_indices = @transform_0, window_bounds = array<i64: 2, 128, 256>}, {pipeline_mode = #tpu.pipeline_mode<synchronous>, transform_indices = @transform_1, window_bounds = array<i64: 128, 8>}, {pipeline_mode = #tpu.pipeline_mode<synchronous>, transform_indices = @transform_2, window_bounds = array<i64: 128, 8>}, {pipeline_mode = #tpu.pipeline_mode<synchronous>, transform_indices = @transform_3, window_bounds = array<i64: 256, 128>}, {pipeline_mode = #tpu.pipeline_mode<synchronous>, transform_indices = @transform_4, window_bounds = array<i64: 128, 1>}, {pipeline_mode = #tpu.pipeline_mode<synchronous>, transform_indices = @transform_5, window_bounds = array<i64: 16, 7>}, {pipeline_mode = #tpu.pipeline_mode<synchronous>, transform_indices = @transform_6, window_bounds = array<i64: 16, 512>}, {pipeline_mode = #tpu.pipeline_mode<synchronous>, transform_indices = @transform_7, window_bounds = array<i64: 8, 512>}, {transform_indices = @transform_8, window_bounds = array<i64: 2, 128, 256>}]} {
    %c0 = arith.constant 0 : index
    %c0_0 = arith.constant 0 : index
    %0 = vector.load %arg2[%c0, %c0_0] : memref<128x8xf32, #tpu.memory_space<vmem>>, vector<128x8xf32>
    %c0_1 = arith.constant 0 : index
    %c0_2 = arith.constant 0 : index
    %1 = vector.load %arg3[%c0_1, %c0_2] : memref<128x8xf32, #tpu.memory_space<vmem>>, vector<128x8xf32>
    %c0_3 = arith.constant 0 : index
    %c0_4 = arith.constant 0 : index
    %c0_5 = arith.constant 0 : index
    %2 = vector.load %arg1[%c0_3, %c0_4, %c0_5] : memref<2x128x256xf32, #tpu.memory_space<vmem>>, vector<1x128x256xf32>
    %3 = vector.shape_cast %2 : vector<1x128x256xf32> to vector<128x256xf32>
    %cst = arith.constant dense<0.000000e+00> : vector<128xf32>
    %4 = vector.multi_reduction <add>, %3, %cst [1] : vector<128x256xf32> to vector<128xf32>
    %5 = vector.shape_cast %4 : vector<128xf32> to vector<128x1xf32>
    %cst_6 = arith.constant 2.560000e+02 : f32
    %6 = vector.broadcast %cst_6 : f32 to vector<128x1xf32>
    %7 = arith.divf %5, %6 : vector<128x1xf32>
    %cst_7 = arith.constant dense<0xFF800000> : vector<128xf32>
    %8 = vector.multi_reduction <maximumf>, %3, %cst_7 [1] : vector<128x256xf32> to vector<128xf32>
    %9 = vector.shape_cast %8 : vector<128xf32> to vector<128x1xf32>
    %10 = vector.broadcast %7 : vector<128x1xf32> to vector<128x8xf32>
    %11 = arith.mulf %0, %10 : vector<128x8xf32>
    %cst_8 = arith.constant dense<0.000000e+00> : vector<8xf32>
    %12 = vector.multi_reduction <add>, %11, %cst_8 [0] : vector<128x8xf32> to vector<8xf32>
    %13 = vector.shape_cast %12 : vector<8xf32> to vector<1x8xf32>
    %cst_9 = arith.constant 0.000000e+00 : f32
    %14 = vector.broadcast %cst_9 : f32 to vector<1x8xf32>
    %15 = arith.maximumf %13, %14 : vector<1x8xf32>
    %16 = vector.broadcast %9 : vector<128x1xf32> to vector<128x8xf32>
    %17 = arith.mulf %0, %16 : vector<128x8xf32>
    %cst_10 = arith.constant dense<0.000000e+00> : vector<8xf32>
    %18 = vector.multi_reduction <add>, %17, %cst_10 [0] : vector<128x8xf32> to vector<8xf32>
    %19 = vector.shape_cast %18 : vector<8xf32> to vector<1x8xf32>
    %cst_11 = arith.constant 0.000000e+00 : f32
    %20 = vector.broadcast %cst_11 : f32 to vector<1x8xf32>
    %21 = arith.maximumf %19, %20 : vector<1x8xf32>
    %22 = arith.addf %15, %21 : vector<1x8xf32>
    %23 = vector.broadcast %22 : vector<1x8xf32> to vector<128x8xf32>
    %24 = arith.mulf %1, %23 : vector<128x8xf32>
    %cst_12 = arith.constant dense<0.000000e+00> : vector<128xf32>
    %25 = vector.multi_reduction <add>, %24, %cst_12 [1] : vector<128x8xf32> to vector<128xf32>
    %26 = vector.shape_cast %25 : vector<128xf32> to vector<128x1xf32>
    %27 = arith.negf %26 : vector<128x1xf32>
    %28 = math.exp %27 : vector<128x1xf32>
    %cst_13 = arith.constant 1.000000e+00 : f32
    %29 = vector.broadcast %cst_13 : f32 to vector<128x1xf32>
    %30 = arith.addf %29, %28 : vector<128x1xf32>
    %31 = arith.divf %29, %30 : vector<128x1xf32>
    %32 = vector.broadcast %31 : vector<128x1xf32> to vector<128x256xf32>
    %33 = arith.mulf %32, %3 : vector<128x256xf32>
    %c1 = arith.constant 1 : index
    %c0_14 = arith.constant 0 : index
    %c0_15 = arith.constant 0 : index
    %34 = vector.load %arg1[%c1, %c0_14, %c0_15] : memref<2x128x256xf32, #tpu.memory_space<vmem>>, vector<1x128x256xf32>
    %35 = vector.shape_cast %34 : vector<1x128x256xf32> to vector<128x256xf32>
    %cst_16 = arith.constant dense<0.000000e+00> : vector<128xf32>
    %36 = vector.multi_reduction <add>, %35, %cst_16 [1] : vector<128x256xf32> to vector<128xf32>
    %37 = vector.shape_cast %36 : vector<128xf32> to vector<128x1xf32>
    %cst_17 = arith.constant 2.560000e+02 : f32
    %38 = vector.broadcast %cst_17 : f32 to vector<128x1xf32>
    %39 = arith.divf %37, %38 : vector<128x1xf32>
    %cst_18 = arith.constant dense<0xFF800000> : vector<128xf32>
    %40 = vector.multi_reduction <maximumf>, %35, %cst_18 [1] : vector<128x256xf32> to vector<128xf32>
    %41 = vector.shape_cast %40 : vector<128xf32> to vector<128x1xf32>
    %42 = vector.broadcast %39 : vector<128x1xf32> to vector<128x8xf32>
    %43 = arith.mulf %0, %42 : vector<128x8xf32>
    %cst_19 = arith.constant dense<0.000000e+00> : vector<8xf32>
    %44 = vector.multi_reduction <add>, %43, %cst_19 [0] : vector<128x8xf32> to vector<8xf32>
    %45 = vector.shape_cast %44 : vector<8xf32> to vector<1x8xf32>
    %cst_20 = arith.constant 0.000000e+00 : f32
    %46 = vector.broadcast %cst_20 : f32 to vector<1x8xf32>
    %47 = arith.maximumf %45, %46 : vector<1x8xf32>
    %48 = vector.broadcast %41 : vector<128x1xf32> to vector<128x8xf32>
    %49 = arith.mulf %0, %48 : vector<128x8xf32>
    %cst_21 = arith.constant dense<0.000000e+00> : vector<8xf32>
    %50 = vector.multi_reduction <add>, %49, %cst_21 [0] : vector<128x8xf32> to vector<8xf32>
    %51 = vector.shape_cast %50 : vector<8xf32> to vector<1x8xf32>
    %cst_22 = arith.constant 0.000000e+00 : f32
    %52 = vector.broadcast %cst_22 : f32 to vector<1x8xf32>
    %53 = arith.maximumf %51, %52 : vector<1x8xf32>
    %54 = arith.addf %47, %53 : vector<1x8xf32>
    %55 = vector.broadcast %54 : vector<1x8xf32> to vector<128x8xf32>
    %56 = arith.mulf %1, %55 : vector<128x8xf32>
    %cst_23 = arith.constant dense<0.000000e+00> : vector<128xf32>
    %57 = vector.multi_reduction <add>, %56, %cst_23 [1] : vector<128x8xf32> to vector<128xf32>
    %58 = vector.shape_cast %57 : vector<128xf32> to vector<128x1xf32>
    %59 = arith.negf %58 : vector<128x1xf32>
    %60 = math.exp %59 : vector<128x1xf32>
    %cst_24 = arith.constant 1.000000e+00 : f32
    %61 = vector.broadcast %cst_24 : f32 to vector<128x1xf32>
    %62 = arith.addf %61, %60 : vector<128x1xf32>
    %63 = arith.divf %61, %62 : vector<128x1xf32>
    %64 = vector.broadcast %63 : vector<128x1xf32> to vector<128x256xf32>
    %65 = arith.mulf %64, %35 : vector<128x256xf32>
    %66 = tpu.concatenate %33, %65 in 1 : vector<128x256xf32>, vector<128x256xf32> -> vector<128x512xf32>
    %c0_25 = arith.constant 0 : index
    %c0_26 = arith.constant 0 : index
    %67 = vector.load %arg4[%c0_25, %c0_26] : memref<256x128xbf16, #tpu.memory_space<vmem>>, vector<256x128xbf16>
    %68 = arith.truncf %66 : vector<128x512xf32> to vector<128x512xbf16>
    %cst_27 = arith.constant dense<0.000000e+00> : vector<256x512xf32>
    %69 = tpu.matmul %67, %68, %cst_27 {dimension_numbers = #tpu.dot_dimension_numbers<[1], [0], [0], [1], [0, 0, 1, 1], [], []>} : vector<256x128xbf16>, vector<128x512xbf16>, vector<256x512xf32> -> vector<256x512xf32>
    %cst_28 = arith.constant dense<0.000000e+00> : vector<512xf32>
    %70 = vector.multi_reduction <add>, %66, %cst_28 [0] : vector<128x512xf32> to vector<512xf32>
    %71 = vector.shape_cast %70 : vector<512xf32> to vector<1x512xf32>
    %cst_29 = arith.constant 1.280000e+02 : f32
    %72 = vector.broadcast %cst_29 : f32 to vector<1x512xf32>
    %73 = arith.divf %71, %72 : vector<1x512xf32>
    %cst_30 = arith.constant dense<0xFF800000> : vector<512xf32>
    %74 = vector.multi_reduction <maximumf>, %66, %cst_30 [0] : vector<128x512xf32> to vector<512xf32>
    %75 = vector.shape_cast %74 : vector<512xf32> to vector<1x512xf32>
    %c3_i32 = arith.constant 3 : i32
    %76 = tpu.dynamic_rotate %73 by %c3_i32 dim 1 : vector<1x512xf32>, i32 -> vector<1x512xf32>
    %c2_i32 = arith.constant 2 : i32
    %77 = tpu.dynamic_rotate %73 by %c2_i32 dim 1 : vector<1x512xf32>, i32 -> vector<1x512xf32>
    %c1_i32 = arith.constant 1 : i32
    %78 = tpu.dynamic_rotate %73 by %c1_i32 dim 1 : vector<1x512xf32>, i32 -> vector<1x512xf32>
    %c511_i32 = arith.constant 511 : i32
    %79 = tpu.dynamic_rotate %73 by %c511_i32 dim 1 : vector<1x512xf32>, i32 -> vector<1x512xf32>
    %c510_i32 = arith.constant 510 : i32
    %80 = tpu.dynamic_rotate %73 by %c510_i32 dim 1 : vector<1x512xf32>, i32 -> vector<1x512xf32>
    %c509_i32 = arith.constant 509 : i32
    %81 = tpu.dynamic_rotate %73 by %c509_i32 dim 1 : vector<1x512xf32>, i32 -> vector<1x512xf32>
    %c3_i32_31 = arith.constant 3 : i32
    %82 = tpu.dynamic_rotate %75 by %c3_i32_31 dim 1 : vector<1x512xf32>, i32 -> vector<1x512xf32>
    %c2_i32_32 = arith.constant 2 : i32
    %83 = tpu.dynamic_rotate %75 by %c2_i32_32 dim 1 : vector<1x512xf32>, i32 -> vector<1x512xf32>
    %c1_i32_33 = arith.constant 1 : i32
    %84 = tpu.dynamic_rotate %75 by %c1_i32_33 dim 1 : vector<1x512xf32>, i32 -> vector<1x512xf32>
    %c511_i32_34 = arith.constant 511 : i32
    %85 = tpu.dynamic_rotate %75 by %c511_i32_34 dim 1 : vector<1x512xf32>, i32 -> vector<1x512xf32>
    %c510_i32_35 = arith.constant 510 : i32
    %86 = tpu.dynamic_rotate %75 by %c510_i32_35 dim 1 : vector<1x512xf32>, i32 -> vector<1x512xf32>
    %c509_i32_36 = arith.constant 509 : i32
    %87 = tpu.dynamic_rotate %75 by %c509_i32_36 dim 1 : vector<1x512xf32>, i32 -> vector<1x512xf32>
    %cst_37 = arith.constant 0.000000e+00 : f32
    %88 = vector.broadcast %cst_37 : f32 to vector<1x512xf32>
    %cst_38 = arith.constant 0.000000e+00 : f32
    %89 = vector.broadcast %cst_38 : f32 to vector<1x512xf32>
    %90 = tpu.concatenate %76, %77, %78, %73, %79, %80, %81, %82, %83, %84, %75, %85, %86, %87, %88, %89 in 0 : vector<1x512xf32>, vector<1x512xf32>, vector<1x512xf32>, vector<1x512xf32>, vector<1x512xf32>, vector<1x512xf32>, vector<1x512xf32>, vector<1x512xf32>, vector<1x512xf32>, vector<1x512xf32>, vector<1x512xf32>, vector<1x512xf32>, vector<1x512xf32>, vector<1x512xf32>, vector<1x512xf32>, vector<1x512xf32> -> vector<16x512xf32>
    %c0_39 = arith.constant 0 : index
    %c0_40 = arith.constant 0 : index
    %91 = vector.load %arg7[%c0_39, %c0_40] : memref<16x512xf32, #tpu.memory_space<vmem>>, vector<16x512xf32>
    %92 = arith.mulf %90, %91 : vector<16x512xf32>
    %cst_41 = arith.constant 0.000000e+00 : f32
    %93 = vector.broadcast %cst_41 : f32 to vector<1x512xf32>
    %c0_42 = arith.constant 0 : index
    %c0_43 = arith.constant 0 : index
    %94 = vector.load %arg6[%c0_42, %c0_43] : memref<16x7xf32, #tpu.memory_space<vmem>>, vector<16x1xf32>
    %95 = vector.broadcast %94 : vector<16x1xf32> to vector<16x512xf32>
    %96 = arith.mulf %92, %95 : vector<16x512xf32>
    %cst_44 = arith.constant dense<0.000000e+00> : vector<512xf32>
    %97 = vector.multi_reduction <add>, %96, %cst_44 [0] : vector<16x512xf32> to vector<512xf32>
    %98 = vector.shape_cast %97 : vector<512xf32> to vector<1x512xf32>
    %c48_i32 = arith.constant 48 : i32
    %99 = tpu.dynamic_rotate %98 by %c48_i32 dim 1 : vector<1x512xf32>, i32 -> vector<1x512xf32>
    %c0_45 = arith.constant 0 : index
    %c0_46 = arith.constant 0 : index
    %100 = vector.load %arg8[%c0_45, %c0_46] : memref<8x512xf32, #tpu.memory_space<vmem>>, vector<1x512xf32>
    %101 = arith.mulf %100, %99 : vector<1x512xf32>
    %102 = arith.addf %93, %101 : vector<1x512xf32>
    %c0_47 = arith.constant 0 : index
    %c1_48 = arith.constant 1 : index
    %103 = vector.load %arg6[%c0_47, %c1_48] : memref<16x7xf32, #tpu.memory_space<vmem>>, vector<16x1xf32>
    %104 = vector.broadcast %103 : vector<16x1xf32> to vector<16x512xf32>
    %105 = arith.mulf %92, %104 : vector<16x512xf32>
    %cst_49 = arith.constant dense<0.000000e+00> : vector<512xf32>
    %106 = vector.multi_reduction <add>, %105, %cst_49 [0] : vector<16x512xf32> to vector<512xf32>
    %107 = vector.shape_cast %106 : vector<512xf32> to vector<1x512xf32>
    %c32_i32 = arith.constant 32 : i32
    %108 = tpu.dynamic_rotate %107 by %c32_i32 dim 1 : vector<1x512xf32>, i32 -> vector<1x512xf32>
    %c1_50 = arith.constant 1 : index
    %c0_51 = arith.constant 0 : index
    %109 = vector.load %arg8[%c1_50, %c0_51] : memref<8x512xf32, #tpu.memory_space<vmem>>, vector<1x512xf32>
    %110 = arith.mulf %109, %108 : vector<1x512xf32>
    %111 = arith.addf %102, %110 : vector<1x512xf32>
    %c0_52 = arith.constant 0 : index
    %c2 = arith.constant 2 : index
    %112 = vector.load %arg6[%c0_52, %c2] : memref<16x7xf32, #tpu.memory_space<vmem>>, vector<16x1xf32>
    %113 = vector.broadcast %112 : vector<16x1xf32> to vector<16x512xf32>
    %114 = arith.mulf %92, %113 : vector<16x512xf32>
    %cst_53 = arith.constant dense<0.000000e+00> : vector<512xf32>
    %115 = vector.multi_reduction <add>, %114, %cst_53 [0] : vector<16x512xf32> to vector<512xf32>
    %116 = vector.shape_cast %115 : vector<512xf32> to vector<1x512xf32>
    %c16_i32 = arith.constant 16 : i32
    %117 = tpu.dynamic_rotate %116 by %c16_i32 dim 1 : vector<1x512xf32>, i32 -> vector<1x512xf32>
    %c2_54 = arith.constant 2 : index
    %c0_55 = arith.constant 0 : index
    %118 = vector.load %arg8[%c2_54, %c0_55] : memref<8x512xf32, #tpu.memory_space<vmem>>, vector<1x512xf32>
    %119 = arith.mulf %118, %117 : vector<1x512xf32>
    %120 = arith.addf %111, %119 : vector<1x512xf32>
    %c0_56 = arith.constant 0 : index
    %c3 = arith.constant 3 : index
    %121 = vector.load %arg6[%c0_56, %c3] : memref<16x7xf32, #tpu.memory_space<vmem>>, vector<16x1xf32>
    %122 = vector.broadcast %121 : vector<16x1xf32> to vector<16x512xf32>
    %123 = arith.mulf %92, %122 : vector<16x512xf32>
    %cst_57 = arith.constant dense<0.000000e+00> : vector<512xf32>
    %124 = vector.multi_reduction <add>, %123, %cst_57 [0] : vector<16x512xf32> to vector<512xf32>
    %125 = vector.shape_cast %124 : vector<512xf32> to vector<1x512xf32>
    %c3_58 = arith.constant 3 : index
    %c0_59 = arith.constant 0 : index
    %126 = vector.load %arg8[%c3_58, %c0_59] : memref<8x512xf32, #tpu.memory_space<vmem>>, vector<1x512xf32>
    %127 = arith.mulf %126, %125 : vector<1x512xf32>
    %128 = arith.addf %120, %127 : vector<1x512xf32>
    %c0_60 = arith.constant 0 : index
    %c4 = arith.constant 4 : index
    %129 = vector.load %arg6[%c0_60, %c4] : memref<16x7xf32, #tpu.memory_space<vmem>>, vector<16x1xf32>
    %130 = vector.broadcast %129 : vector<16x1xf32> to vector<16x512xf32>
    %131 = arith.mulf %92, %130 : vector<16x512xf32>
    %cst_61 = arith.constant dense<0.000000e+00> : vector<512xf32>
    %132 = vector.multi_reduction <add>, %131, %cst_61 [0] : vector<16x512xf32> to vector<512xf32>
    %133 = vector.shape_cast %132 : vector<512xf32> to vector<1x512xf32>
    %c496_i32 = arith.constant 496 : i32
    %134 = tpu.dynamic_rotate %133 by %c496_i32 dim 1 : vector<1x512xf32>, i32 -> vector<1x512xf32>
    %c4_62 = arith.constant 4 : index
    %c0_63 = arith.constant 0 : index
    %135 = vector.load %arg8[%c4_62, %c0_63] : memref<8x512xf32, #tpu.memory_space<vmem>>, vector<1x512xf32>
    %136 = arith.mulf %135, %134 : vector<1x512xf32>
    %137 = arith.addf %128, %136 : vector<1x512xf32>
    %c0_64 = arith.constant 0 : index
    %c5 = arith.constant 5 : index
    %138 = vector.load %arg6[%c0_64, %c5] : memref<16x7xf32, #tpu.memory_space<vmem>>, vector<16x1xf32>
    %139 = vector.broadcast %138 : vector<16x1xf32> to vector<16x512xf32>
    %140 = arith.mulf %92, %139 : vector<16x512xf32>
    %cst_65 = arith.constant dense<0.000000e+00> : vector<512xf32>
    %141 = vector.multi_reduction <add>, %140, %cst_65 [0] : vector<16x512xf32> to vector<512xf32>
    %142 = vector.shape_cast %141 : vector<512xf32> to vector<1x512xf32>
    %c480_i32 = arith.constant 480 : i32
    %143 = tpu.dynamic_rotate %142 by %c480_i32 dim 1 : vector<1x512xf32>, i32 -> vector<1x512xf32>
    %c5_66 = arith.constant 5 : index
    %c0_67 = arith.constant 0 : index
    %144 = vector.load %arg8[%c5_66, %c0_67] : memref<8x512xf32, #tpu.memory_space<vmem>>, vector<1x512xf32>
    %145 = arith.mulf %144, %143 : vector<1x512xf32>
    %146 = arith.addf %137, %145 : vector<1x512xf32>
    %c0_68 = arith.constant 0 : index
    %c6 = arith.constant 6 : index
    %147 = vector.load %arg6[%c0_68, %c6] : memref<16x7xf32, #tpu.memory_space<vmem>>, vector<16x1xf32>
    %148 = vector.broadcast %147 : vector<16x1xf32> to vector<16x512xf32>
    %149 = arith.mulf %92, %148 : vector<16x512xf32>
    %cst_69 = arith.constant dense<0.000000e+00> : vector<512xf32>
    %150 = vector.multi_reduction <add>, %149, %cst_69 [0] : vector<16x512xf32> to vector<512xf32>
    %151 = vector.shape_cast %150 : vector<512xf32> to vector<1x512xf32>
    %c464_i32 = arith.constant 464 : i32
    %152 = tpu.dynamic_rotate %151 by %c464_i32 dim 1 : vector<1x512xf32>, i32 -> vector<1x512xf32>
    %c6_70 = arith.constant 6 : index
    %c0_71 = arith.constant 0 : index
    %153 = vector.load %arg8[%c6_70, %c0_71] : memref<8x512xf32, #tpu.memory_space<vmem>>, vector<1x512xf32>
    %154 = arith.mulf %153, %152 : vector<1x512xf32>
    %155 = arith.addf %146, %154 : vector<1x512xf32>
    %156 = arith.negf %155 : vector<1x512xf32>
    %157 = math.exp %156 : vector<1x512xf32>
    %cst_72 = arith.constant 1.000000e+00 : f32
    %158 = vector.broadcast %cst_72 : f32 to vector<1x512xf32>
    %159 = arith.addf %158, %157 : vector<1x512xf32>
    %160 = arith.divf %158, %159 : vector<1x512xf32>
    %161 = vector.extract_strided_slice %69 {offsets = [0, 0], sizes = [128, 512], strides = [1, 1]} : vector<256x512xf32> to vector<128x512xf32>
    %162 = vector.extract_strided_slice %69 {offsets = [128, 0], sizes = [128, 512], strides = [1, 1]} : vector<256x512xf32> to vector<128x512xf32>
    %163 = vector.broadcast %160 : vector<1x512xf32> to vector<128x512xf32>
    %164 = arith.mulf %163, %162 : vector<128x512xf32>
    %165 = arith.addf %161, %164 : vector<128x512xf32>
    %c0_73 = arith.constant 0 : index
    %c0_74 = arith.constant 0 : index
    %166 = vector.load %arg5[%c0_73, %c0_74] : memref<128x1xf32, #tpu.memory_space<vmem>>, vector<128x1xf32>
    %167 = vector.broadcast %166 : vector<128x1xf32> to vector<128x512xf32>
    %168 = arith.addf %165, %167 : vector<128x512xf32>
    %169 = vector.extract_strided_slice %168 {offsets = [0, 0], sizes = [128, 256], strides = [1, 1]} : vector<128x512xf32> to vector<128x256xf32>
    %c0_75 = arith.constant 0 : index
    %c0_76 = arith.constant 0 : index
    %c0_77 = arith.constant 0 : index
    %170 = vector.load %arg9[%c0_75, %c0_76, %c0_77] : memref<2x128x256xf32, #tpu.memory_space<vmem>>, vector<1x128x256xf32>
    %171 = vector.shape_cast %170 : vector<1x128x256xf32> to vector<128x256xf32>
    %172 = vector.shape_cast %169 : vector<128x256xf32> to vector<1x128x256xf32>
    tpu.vector_store %arg9[%c0_75, %c0_76, %c0_77], %172 {strides = array<i32>} : memref<2x128x256xf32, #tpu.memory_space<vmem>>, vector<1x128x256xf32>,
    %173 = vector.extract_strided_slice %168 {offsets = [0, 256], sizes = [128, 256], strides = [1, 1]} : vector<128x512xf32> to vector<128x256xf32>
    %c1_78 = arith.constant 1 : index
    %c0_79 = arith.constant 0 : index
    %c0_80 = arith.constant 0 : index
    %174 = vector.load %arg9[%c1_78, %c0_79, %c0_80] : memref<2x128x256xf32, #tpu.memory_space<vmem>>, vector<1x128x256xf32>
    %175 = vector.shape_cast %174 : vector<1x128x256xf32> to vector<128x256xf32>
    %176 = vector.shape_cast %173 : vector<128x256xf32> to vector<1x128x256xf32>
    tpu.vector_store %arg9[%c1_78, %c0_79, %c0_80], %176 {strides = array<i32>} : memref<2x128x256xf32, #tpu.memory_space<vmem>>, vector<1x128x256xf32>,
    return
  }
  func.func @transform_0(%arg0: i32) -> (i32, i32, i32) {
    %c0_i32 = arith.constant 0 : i32
    %c0_i32_0 = arith.constant 0 : i32
    %c0_i32_1 = arith.constant 0 : i32
    return %arg0, %c0_i32, %c0_i32_0 : i32, i32, i32
  }
  func.func @transform_1(%arg0: i32) -> (i32, i32) {
    %c0_i32 = arith.constant 0 : i32
    %c0_i32_0 = arith.constant 0 : i32
    %c0_i32_1 = arith.constant 0 : i32
    return %c0_i32, %c0_i32_0 : i32, i32
  }
  func.func @transform_2(%arg0: i32) -> (i32, i32) {
    %c0_i32 = arith.constant 0 : i32
    %c0_i32_0 = arith.constant 0 : i32
    %c0_i32_1 = arith.constant 0 : i32
    return %c0_i32, %c0_i32_0 : i32, i32
  }
  func.func @transform_3(%arg0: i32) -> (i32, i32) {
    %c0_i32 = arith.constant 0 : i32
    %c0_i32_0 = arith.constant 0 : i32
    %c0_i32_1 = arith.constant 0 : i32
    return %c0_i32, %c0_i32_0 : i32, i32
  }
  func.func @transform_4(%arg0: i32) -> (i32, i32) {
    %c0_i32 = arith.constant 0 : i32
    %c0_i32_0 = arith.constant 0 : i32
    %c0_i32_1 = arith.constant 0 : i32
    return %c0_i32, %c0_i32_0 : i32, i32
  }
  func.func @transform_5(%arg0: i32) -> (i32, i32) {
    %c0_i32 = arith.constant 0 : i32
    %c0_i32_0 = arith.constant 0 : i32
    %c0_i32_1 = arith.constant 0 : i32
    return %c0_i32, %c0_i32_0 : i32, i32
  }
  func.func @transform_6(%arg0: i32) -> (i32, i32) {
    %c0_i32 = arith.constant 0 : i32
    %c0_i32_0 = arith.constant 0 : i32
    %c0_i32_1 = arith.constant 0 : i32
    return %c0_i32, %c0_i32_0 : i32, i32
  }
  func.func @transform_7(%arg0: i32) -> (i32, i32) {
    %c0_i32 = arith.constant 0 : i32
    %c0_i32_0 = arith.constant 0 : i32
    %c0_i32_1 = arith.constant 0 : i32
    return %c0_i32, %c0_i32_0 : i32, i32
  }
  func.func @transform_8(%arg0: i32) -> (i32, i32, i32) {
    %c0_i32 = arith.constant 0 : i32
    %c0_i32_0 = arith.constant 0 : i32
    %c0_i32_1 = arith.constant 0 : i32
    return %arg0, %c0_i32, %c0_i32_0 : i32, i32, i32
  }
}

module attributes {stable_mosaic.version = 11 : i64} {
  func.func @_crash_kernel(%arg0: i32, %arg1: memref<2x128x256xf32, #tpu.memory_space<vmem>>, %arg2: memref<128x8xf32, #tpu.memory_space<vmem>>, %arg3: memref<128x8xf32, #tpu.memory_space<vmem>>, %arg4: memref<256x128xbf16, #tpu.memory_space<vmem>>, %arg5: memref<128x1xf32, #tpu.memory_space<vmem>>, %arg6: memref<16x7xf32, #tpu.memory_space<vmem>>, %arg7: memref<16x512xf32, #tpu.memory_space<vmem>>, %arg8: memref<8x512xf32, #tpu.memory_space<vmem>>, %arg9: memref<2x128x256xf32, #tpu.memory_space<vmem>>) attributes {dimension_semantics = [#tpu.dimension_semantics<parallel>], iteration_bounds = array<i64: 1>, scalar_prefetch = 0 : i64, scratch_operands = 0 : i64, tpu.core_type = #tpu.core_type<tc>, window_params = [{transform_indices = @transform_0, window_bounds = array<i64: 2, 128, 256>}, {pipeline_mode = #tpu.pipeline_mode<synchronous>, transform_indices = @transform_1, window_bounds = array<i64: 128, 8>}, {pipeline_mode = #tpu.pipeline_mode<synchronous>, transform_indices = @transform_2, window_bounds = array<i64: 128, 8>}, {pipeline_mode = #tpu.pipeline_mode<synchronous>, transform_indices = @transform_3, window_bounds = array<i64: 256, 128>}, {pipeline_mode = #tpu.pipeline_mode<synchronous>, transform_indices = @transform_4, window_bounds = array<i64: 128, 1>}, {pipeline_mode = #tpu.pipeline_mode<synchronous>, transform_indices = @transform_5, window_bounds = array<i64: 16, 7>}, {pipeline_mode = #tpu.pipeline_mode<synchronous>, transform_indices = @transform_6, window_bounds = array<i64: 16, 512>}, {pipeline_mode = #tpu.pipeline_mode<synchronous>, transform_indices = @transform_7, window_bounds = array<i64: 8, 512>}, {transform_indices = @transform_8, window_bounds = array<i64: 2, 128, 256>}]} {
    %c0 = arith.constant 0 : index
    %c0_0 = arith.constant 0 : index
    %0 = vector.load %arg2[%c0, %c0_0] : memref<128x8xf32, #tpu.memory_space<vmem>>, vector<128x8xf32>
    %c0_1 = arith.constant 0 : index
    %c0_2 = arith.constant 0 : index
    %1 = vector.load %arg3[%c0_1, %c0_2] : memref<128x8xf32, #tpu.memory_space<vmem>>, vector<128x8xf32>
    %c0_3 = arith.constant 0 : index
    %c0_4 = arith.constant 0 : index
    %c0_5 = arith.constant 0 : index
    %2 = vector.load %arg1[%c0_3, %c0_4, %c0_5] : memref<2x128x256xf32, #tpu.memory_space<vmem>>, vector<1x128x256xf32>
    %3 = vector.shape_cast %2 : vector<1x128x256xf32> to vector<128x256xf32>
    %cst = arith.constant dense<0.000000e+00> : vector<128xf32>
    %4 = vector.multi_reduction <add>, %3, %cst [1] : vector<128x256xf32> to vector<128xf32>
    %5 = vector.shape_cast %4 : vector<128xf32> to vector<128x1xf32>
    %cst_6 = arith.constant 2.560000e+02 : f32
    %6 = vector.broadcast %cst_6 : f32 to vector<128x1xf32>
    %7 = arith.divf %5, %6 : vector<128x1xf32>
    %cst_7 = arith.constant dense<0xFF800000> : vector<128xf32>
    %8 = vector.multi_reduction <maximumf>, %3, %cst_7 [1] : vector<128x256xf32> to vector<128xf32>
    %9 = vector.shape_cast %8 : vector<128xf32> to vector<128x1xf32>
    %10 = vector.broadcast %7 : vector<128x1xf32> to vector<128x8xf32>
    %11 = arith.mulf %0, %10 : vector<128x8xf32>
    %cst_8 = arith.constant dense<0.000000e+00> : vector<8xf32>
    %12 = vector.multi_reduction <add>, %11, %cst_8 [0] : vector<128x8xf32> to vector<8xf32>
    %13 = vector.shape_cast %12 : vector<8xf32> to vector<1x8xf32>
    %cst_9 = arith.constant 0.000000e+00 : f32
    %14 = vector.broadcast %cst_9 : f32 to vector<1x8xf32>
    %15 = arith.maximumf %13, %14 : vector<1x8xf32>
    %16 = vector.broadcast %9 : vector<128x1xf32> to vector<128x8xf32>
    %17 = arith.mulf %0, %16 : vector<128x8xf32>
    %cst_10 = arith.constant dense<0.000000e+00> : vector<8xf32>
    %18 = vector.multi_reduction <add>, %17, %cst_10 [0] : vector<128x8xf32> to vector<8xf32>
    %19 = vector.shape_cast %18 : vector<8xf32> to vector<1x8xf32>
    %cst_11 = arith.constant 0.000000e+00 : f32
    %20 = vector.broadcast %cst_11 : f32 to vector<1x8xf32>
    %21 = arith.maximumf %19, %20 : vector<1x8xf32>
    %22 = arith.addf %15, %21 : vector<1x8xf32>
    %23 = vector.broadcast %22 : vector<1x8xf32> to vector<128x8xf32>
    %24 = arith.mulf %1, %23 : vector<128x8xf32>
    %cst_12 = arith.constant dense<0.000000e+00> : vector<128xf32>
    %25 = vector.multi_reduction <add>, %24, %cst_12 [1] : vector<128x8xf32> to vector<128xf32>
    %26 = vector.shape_cast %25 : vector<128xf32> to vector<128x1xf32>
    %27 = arith.negf %26 : vector<128x1xf32>
    %28 = math.exp %27 : vector<128x1xf32>
    %cst_13 = arith.constant 1.000000e+00 : f32
    %29 = vector.broadcast %cst_13 : f32 to vector<128x1xf32>
    %30 = arith.addf %29, %28 : vector<128x1xf32>
    %31 = arith.divf %29, %30 : vector<128x1xf32>
    %32 = vector.broadcast %31 : vector<128x1xf32> to vector<128x256xf32>
    %33 = arith.mulf %32, %3 : vector<128x256xf32>
    %c1 = arith.constant 1 : index
    %c0_14 = arith.constant 0 : index
    %c0_15 = arith.constant 0 : index
    %34 = vector.load %arg1[%c1, %c0_14, %c0_15] : memref<2x128x256xf32, #tpu.memory_space<vmem>>, vector<1x128x256xf32>
    %35 = vector.shape_cast %34 : vector<1x128x256xf32> to vector<128x256xf32>
    %cst_16 = arith.constant dense<0.000000e+00> : vector<128xf32>
    %36 = vector.multi_reduction <add>, %35, %cst_16 [1] : vector<128x256xf32> to vector<128xf32>
    %37 = vector.shape_cast %36 : vector<128xf32> to vector<128x1xf32>
    %cst_17 = arith.constant 2.560000e+02 : f32
    %38 = vector.broadcast %cst_17 : f32 to vector<128x1xf32>
    %39 = arith.divf %37, %38 : vector<128x1xf32>
    %cst_18 = arith.constant dense<0xFF800000> : vector<128xf32>
    %40 = vector.multi_reduction <maximumf>, %35, %cst_18 [1] : vector<128x256xf32> to vector<128xf32>
    %41 = vector.shape_cast %40 : vector<128xf32> to vector<128x1xf32>
    %42 = vector.broadcast %39 : vector<128x1xf32> to vector<128x8xf32>
    %43 = arith.mulf %0, %42 : vector<128x8xf32>
    %cst_19 = arith.constant dense<0.000000e+00> : vector<8xf32>
    %44 = vector.multi_reduction <add>, %43, %cst_19 [0] : vector<128x8xf32> to vector<8xf32>
    %45 = vector.shape_cast %44 : vector<8xf32> to vector<1x8xf32>
    %cst_20 = arith.constant 0.000000e+00 : f32
    %46 = vector.broadcast %cst_20 : f32 to vector<1x8xf32>
    %47 = arith.maximumf %45, %46 : vector<1x8xf32>
    %48 = vector.broadcast %41 : vector<128x1xf32> to vector<128x8xf32>
    %49 = arith.mulf %0, %48 : vector<128x8xf32>
    %cst_21 = arith.constant dense<0.000000e+00> : vector<8xf32>
    %50 = vector.multi_reduction <add>, %49, %cst_21 [0] : vector<128x8xf32> to vector<8xf32>
    %51 = vector.shape_cast %50 : vector<8xf32> to vector<1x8xf32>
    %cst_22 = arith.constant 0.000000e+00 : f32
    %52 = vector.broadcast %cst_22 : f32 to vector<1x8xf32>
    %53 = arith.maximumf %51, %52 : vector<1x8xf32>
    %54 = arith.addf %47, %53 : vector<1x8xf32>
    %55 = vector.broadcast %54 : vector<1x8xf32> to vector<128x8xf32>
    %56 = arith.mulf %1, %55 : vector<128x8xf32>
    %cst_23 = arith.constant dense<0.000000e+00> : vector<128xf32>
    %57 = vector.multi_reduction <add>, %56, %cst_23 [1] : vector<128x8xf32> to vector<128xf32>
    %58 = vector.shape_cast %57 : vector<128xf32> to vector<128x1xf32>
    %59 = arith.negf %58 : vector<128x1xf32>
    %60 = math.exp %59 : vector<128x1xf32>
    %cst_24 = arith.constant 1.000000e+00 : f32
    %61 = vector.broadcast %cst_24 : f32 to vector<128x1xf32>
    %62 = arith.addf %61, %60 : vector<128x1xf32>
    %63 = arith.divf %61, %62 : vector<128x1xf32>
    %64 = vector.broadcast %63 : vector<128x1xf32> to vector<128x256xf32>
    %65 = arith.mulf %64, %35 : vector<128x256xf32>
    %66 = tpu.concatenate %33, %65 in 1 : vector<128x256xf32>, vector<128x256xf32> -> vector<128x512xf32>
    %c0_25 = arith.constant 0 : index
    %c0_26 = arith.constant 0 : index
    %67 = vector.load %arg4[%c0_25, %c0_26] : memref<256x128xbf16, #tpu.memory_space<vmem>>, vector<256x128xbf16>
    %68 = arith.truncf %66 : vector<128x512xf32> to vector<128x512xbf16>
    %cst_27 = arith.constant dense<0.000000e+00> : vector<256x512xf32>
    %69 = tpu.matmul %67, %68, %cst_27 {dimension_numbers = #tpu.dot_dimension_numbers<[1], [0], [0], [1], [0, 0, 1, 1], [], []>} : vector<256x128xbf16>, vector<128x512xbf16>, vector<256x512xf32> -> vector<256x512xf32>
    %cst_28 = arith.constant dense<0.000000e+00> : vector<512xf32>
    %70 = vector.multi_reduction <add>, %66, %cst_28 [0] : vector<128x512xf32> to vector<512xf32>
    %71 = vector.shape_cast %70 : vector<512xf32> to vector<1x512xf32>
    %cst_29 = arith.constant 1.280000e+02 : f32
    %72 = vector.broadcast %cst_29 : f32 to vector<1x512xf32>
    %73 = arith.divf %71, %72 : vector<1x512xf32>
    %cst_30 = arith.constant dense<0xFF800000> : vector<512xf32>
    %74 = vector.multi_reduction <maximumf>, %66, %cst_30 [0] : vector<128x512xf32> to vector<512xf32>
    %75 = vector.shape_cast %74 : vector<512xf32> to vector<1x512xf32>
    %c3_i32 = arith.constant 3 : i32
    %76 = tpu.dynamic_rotate %73 by %c3_i32 dim 1 : vector<1x512xf32>, i32 -> vector<1x512xf32>
    %c2_i32 = arith.constant 2 : i32
    %77 = tpu.dynamic_rotate %73 by %c2_i32 dim 1 : vector<1x512xf32>, i32 -> vector<1x512xf32>
    %c1_i32 = arith.constant 1 : i32
    %78 = tpu.dynamic_rotate %73 by %c1_i32 dim 1 : vector<1x512xf32>, i32 -> vector<1x512xf32>
    %c511_i32 = arith.constant 511 : i32
    %79 = tpu.dynamic_rotate %73 by %c511_i32 dim 1 : vector<1x512xf32>, i32 -> vector<1x512xf32>
    %c510_i32 = arith.constant 510 : i32
    %80 = tpu.dynamic_rotate %73 by %c510_i32 dim 1 : vector<1x512xf32>, i32 -> vector<1x512xf32>
    %c509_i32 = arith.constant 509 : i32
    %81 = tpu.dynamic_rotate %73 by %c509_i32 dim 1 : vector<1x512xf32>, i32 -> vector<1x512xf32>
    %c3_i32_31 = arith.constant 3 : i32
    %82 = tpu.dynamic_rotate %75 by %c3_i32_31 dim 1 : vector<1x512xf32>, i32 -> vector<1x512xf32>
    %c2_i32_32 = arith.constant 2 : i32
    %83 = tpu.dynamic_rotate %75 by %c2_i32_32 dim 1 : vector<1x512xf32>, i32 -> vector<1x512xf32>
    %c1_i32_33 = arith.constant 1 : i32
    %84 = tpu.dynamic_rotate %75 by %c1_i32_33 dim 1 : vector<1x512xf32>, i32 -> vector<1x512xf32>
    %c511_i32_34 = arith.constant 511 : i32
    %85 = tpu.dynamic_rotate %75 by %c511_i32_34 dim 1 : vector<1x512xf32>, i32 -> vector<1x512xf32>
    %c510_i32_35 = arith.constant 510 : i32
    %86 = tpu.dynamic_rotate %75 by %c510_i32_35 dim 1 : vector<1x512xf32>, i32 -> vector<1x512xf32>
    %c509_i32_36 = arith.constant 509 : i32
    %87 = tpu.dynamic_rotate %75 by %c509_i32_36 dim 1 : vector<1x512xf32>, i32 -> vector<1x512xf32>
    %cst_37 = arith.constant 0.000000e+00 : f32
    %88 = vector.broadcast %cst_37 : f32 to vector<1x512xf32>
    %cst_38 = arith.constant 0.000000e+00 : f32
    %89 = vector.broadcast %cst_38 : f32 to vector<1x512xf32>
    %90 = tpu.concatenate %76, %77, %78, %73, %79, %80, %81, %82, %83, %84, %75, %85, %86, %87, %88, %89 in 0 : vector<1x512xf32>, vector<1x512xf32>, vector<1x512xf32>, vector<1x512xf32>, vector<1x512xf32>, vector<1x512xf32>, vector<1x512xf32>, vector<1x512xf32>, vector<1x512xf32>, vector<1x512xf32>, vector<1x512xf32>, vector<1x512xf32>, vector<1x512xf32>, vector<1x512xf32>, vector<1x512xf32>, vector<1x512xf32> -> vector<16x512xf32>
    %c0_39 = arith.constant 0 : index
    %c0_40 = arith.constant 0 : index
    %91 = vector.load %arg7[%c0_39, %c0_40] : memref<16x512xf32, #tpu.memory_space<vmem>>, vector<16x512xf32>
    %92 = arith.mulf %90, %91 : vector<16x512xf32>
    %cst_41 = arith.constant 0.000000e+00 : f32
    %93 = vector.broadcast %cst_41 : f32 to vector<1x512xf32>
    %c0_42 = arith.constant 0 : index
    %c0_43 = arith.constant 0 : index
    %94 = vector.load %arg6[%c0_42, %c0_43] : memref<16x7xf32, #tpu.memory_space<vmem>>, vector<16x1xf32>
    %95 = vector.broadcast %94 : vector<16x1xf32> to vector<16x512xf32>
    %96 = arith.mulf %92, %95 : vector<16x512xf32>
    %cst_44 = arith.constant dense<0.000000e+00> : vector<512xf32>
    %97 = vector.multi_reduction <add>, %96, %cst_44 [0] : vector<16x512xf32> to vector<512xf32>
    %98 = vector.shape_cast %97 : vector<512xf32> to vector<1x512xf32>
    %c48_i32 = arith.constant 48 : i32
    %99 = tpu.dynamic_rotate %98 by %c48_i32 dim 1 : vector<1x512xf32>, i32 -> vector<1x512xf32>
    %c0_45 = arith.constant 0 : index
    %c0_46 = arith.constant 0 : index
    %100 = vector.load %arg8[%c0_45, %c0_46] : memref<8x512xf32, #tpu.memory_space<vmem>>, vector<1x512xf32>
    %101 = arith.mulf %100, %99 : vector<1x512xf32>
    %102 = arith.addf %93, %101 : vector<1x512xf32>
    %c0_47 = arith.constant 0 : index
    %c1_48 = arith.constant 1 : index
    %103 = vector.load %arg6[%c0_47, %c1_48] : memref<16x7xf32, #tpu.memory_space<vmem>>, vector<16x1xf32>
    %104 = vector.broadcast %103 : vector<16x1xf32> to vector<16x512xf32>
    %105 = arith.mulf %92, %104 : vector<16x512xf32>
    %cst_49 = arith.constant dense<0.000000e+00> : vector<512xf32>
    %106 = vector.multi_reduction <add>, %105, %cst_49 [0] : vector<16x512xf32> to vector<512xf32>
    %107 = vector.shape_cast %106 : vector<512xf32> to vector<1x512xf32>
    %c32_i32 = arith.constant 32 : i32
    %108 = tpu.dynamic_rotate %107 by %c32_i32 dim 1 : vector<1x512xf32>, i32 -> vector<1x512xf32>
    %c1_50 = arith.constant 1 : index
    %c0_51 = arith.constant 0 : index
    %109 = vector.load %arg8[%c1_50, %c0_51] : memref<8x512xf32, #tpu.memory_space<vmem>>, vector<1x512xf32>
    %110 = arith.mulf %109, %108 : vector<1x512xf32>
    %111 = arith.addf %102, %110 : vector<1x512xf32>
    %c0_52 = arith.constant 0 : index
    %c2 = arith.constant 2 : index
    %112 = vector.load %arg6[%c0_52, %c2] : memref<16x7xf32, #tpu.memory_space<vmem>>, vector<16x1xf32>
    %113 = vector.broadcast %112 : vector<16x1xf32> to vector<16x512xf32>
    %114 = arith.mulf %92, %113 : vector<16x512xf32>
    %cst_53 = arith.constant dense<0.000000e+00> : vector<512xf32>
    %115 = vector.multi_reduction <add>, %114, %cst_53 [0] : vector<16x512xf32> to vector<512xf32>
    %116 = vector.shape_cast %115 : vector<512xf32> to vector<1x512xf32>
    %c16_i32 = arith.constant 16 : i32
    %117 = tpu.dynamic_rotate %116 by %c16_i32 dim 1 : vector<1x512xf32>, i32 -> vector<1x512xf32>
    %c2_54 = arith.constant 2 : index
    %c0_55 = arith.constant 0 : index
    %118 = vector.load %arg8[%c2_54, %c0_55] : memref<8x512xf32, #tpu.memory_space<vmem>>, vector<1x512xf32>
    %119 = arith.mulf %118, %117 : vector<1x512xf32>
    %120 = arith.addf %111, %119 : vector<1x512xf32>
    %c0_56 = arith.constant 0 : index
    %c3 = arith.constant 3 : index
    %121 = vector.load %arg6[%c0_56, %c3] : memref<16x7xf32, #tpu.memory_space<vmem>>, vector<16x1xf32>
    %122 = vector.broadcast %121 : vector<16x1xf32> to vector<16x512xf32>
    %123 = arith.mulf %92, %122 : vector<16x512xf32>
    %cst_57 = arith.constant dense<0.000000e+00> : vector<512xf32>
    %124 = vector.multi_reduction <add>, %123, %cst_57 [0] : vector<16x512xf32> to vector<512xf32>
    %125 = vector.shape_cast %124 : vector<512xf32> to vector<1x512xf32>
    %c3_58 = arith.constant 3 : index
    %c0_59 = arith.constant 0 : index
    %126 = vector.load %arg8[%c3_58, %c0_59] : memref<8x512xf32, #tpu.memory_space<vmem>>, vector<1x512xf32>
    %127 = arith.mulf %126, %125 : vector<1x512xf32>
    %128 = arith.addf %120, %127 : vector<1x512xf32>
    %c0_60 = arith.constant 0 : index
    %c4 = arith.constant 4 : index
    %129 = vector.load %arg6[%c0_60, %c4] : memref<16x7xf32, #tpu.memory_space<vmem>>, vector<16x1xf32>
    %130 = vector.broadcast %129 : vector<16x1xf32> to vector<16x512xf32>
    %131 = arith.mulf %92, %130 : vector<16x512xf32>
    %cst_61 = arith.constant dense<0.000000e+00> : vector<512xf32>
    %132 = vector.multi_reduction <add>, %131, %cst_61 [0] : vector<16x512xf32> to vector<512xf32>
    %133 = vector.shape_cast %132 : vector<512xf32> to vector<1x512xf32>
    %c496_i32 = arith.constant 496 : i32
    %134 = tpu.dynamic_rotate %133 by %c496_i32 dim 1 : vector<1x512xf32>, i32 -> vector<1x512xf32>
    %c4_62 = arith.constant 4 : index
    %c0_63 = arith.constant 0 : index
    %135 = vector.load %arg8[%c4_62, %c0_63] : memref<8x512xf32, #tpu.memory_space<vmem>>, vector<1x512xf32>
    %136 = arith.mulf %135, %134 : vector<1x512xf32>
    %137 = arith.addf %128, %136 : vector<1x512xf32>
    %c0_64 = arith.constant 0 : index
    %c5 = arith.constant 5 : index
    %138 = vector.load %arg6[%c0_64, %c5] : memref<16x7xf32, #tpu.memory_space<vmem>>, vector<16x1xf32>
    %139 = vector.broadcast %138 : vector<16x1xf32> to vector<16x512xf32>
    %140 = arith.mulf %92, %139 : vector<16x512xf32>
    %cst_65 = arith.constant dense<0.000000e+00> : vector<512xf32>
    %141 = vector.multi_reduction <add>, %140, %cst_65 [0] : vector<16x512xf32> to vector<512xf32>
    %142 = vector.shape_cast %141 : vector<512xf32> to vector<1x512xf32>
    %c480_i32 = arith.constant 480 : i32
    %143 = tpu.dynamic_rotate %142 by %c480_i32 dim 1 : vector<1x512xf32>, i32 -> vector<1x512xf32>
    %c5_66 = arith.constant 5 : index
    %c0_67 = arith.constant 0 : index
    %144 = vector.load %arg8[%c5_66, %c0_67] : memref<8x512xf32, #tpu.memory_space<vmem>>, vector<1x512xf32>
    %145 = arith.mulf %144, %143 : vector<1x512xf32>
    %146 = arith.addf %137, %145 : vector<1x512xf32>
    %c0_68 = arith.constant 0 : index
    %c6 = arith.constant 6 : index
    %147 = vector.load %arg6[%c0_68, %c6] : memref<16x7xf32, #tpu.memory_space<vmem>>, vector<16x1xf32>
    %148 = vector.broadcast %147 : vector<16x1xf32> to vector<16x512xf32>
    %149 = arith.mulf %92, %148 : vector<16x512xf32>
    %cst_69 = arith.constant dense<0.000000e+00> : vector<512xf32>
    %150 = vector.multi_reduction <add>, %149, %cst_69 [0] : vector<16x512xf32> to vector<512xf32>
    %151 = vector.shape_cast %150 : vector<512xf32> to vector<1x512xf32>
    %c464_i32 = arith.constant 464 : i32
    %152 = tpu.dynamic_rotate %151 by %c464_i32 dim 1 : vector<1x512xf32>, i32 -> vector<1x512xf32>
    %c6_70 = arith.constant 6 : index
    %c0_71 = arith.constant 0 : index
    %153 = vector.load %arg8[%c6_70, %c0_71] : memref<8x512xf32, #tpu.memory_space<vmem>>, vector<1x512xf32>
    %154 = arith.mulf %153, %152 : vector<1x512xf32>
    %155 = arith.addf %146, %154 : vector<1x512xf32>
    %156 = arith.negf %155 : vector<1x512xf32>
    %157 = math.exp %156 : vector<1x512xf32>
    %cst_72 = arith.constant 1.000000e+00 : f32
    %158 = vector.broadcast %cst_72 : f32 to vector<1x512xf32>
    %159 = arith.addf %158, %157 : vector<1x512xf32>
    %160 = arith.divf %158, %159 : vector<1x512xf32>
    %161 = vector.extract_strided_slice %69 {offsets = [0, 0], sizes = [128, 512], strides = [1, 1]} : vector<256x512xf32> to vector<128x512xf32>
    %162 = vector.extract_strided_slice %69 {offsets = [128, 0], sizes = [128, 512], strides = [1, 1]} : vector<256x512xf32> to vector<128x512xf32>
    %163 = vector.broadcast %160 : vector<1x512xf32> to vector<128x512xf32>
    %164 = arith.mulf %163, %162 : vector<128x512xf32>
    %165 = arith.addf %161, %164 : vector<128x512xf32>
    %c0_73 = arith.constant 0 : index
    %c0_74 = arith.constant 0 : index
    %166 = vector.load %arg5[%c0_73, %c0_74] : memref<128x1xf32, #tpu.memory_space<vmem>>, vector<128x1xf32>
    %167 = vector.broadcast %166 : vector<128x1xf32> to vector<128x512xf32>
    %168 = arith.addf %165, %167 : vector<128x512xf32>
    %169 = vector.extract_strided_slice %168 {offsets = [0, 0], sizes = [128, 256], strides = [1, 1]} : vector<128x512xf32> to vector<128x256xf32>
    %c0_75 = arith.constant 0 : index
    %c0_76 = arith.constant 0 : index
    %c0_77 = arith.constant 0 : index
    %170 = vector.load %arg9[%c0_75, %c0_76, %c0_77] : memref<2x128x256xf32, #tpu.memory_space<vmem>>, vector<1x128x256xf32>
    %171 = vector.shape_cast %170 : vector<1x128x256xf32> to vector<128x256xf32>
    %172 = vector.shape_cast %169 : vector<128x256xf32> to vector<1x128x256xf32>
    tpu.vector_store %arg9[%c0_75, %c0_76, %c0_77], %172 {strides = array<i32>} : memref<2x128x256xf32, #tpu.memory_space<vmem>>, vector<1x128x256xf32>,
    %173 = vector.extract_strided_slice %168 {offsets = [0, 256], sizes = [128, 256], strides = [1, 1]} : vector<128x512xf32> to vector<128x256xf32>
    %c1_78 = arith.constant 1 : index
    %c0_79 = arith.constant 0 : index
    %c0_80 = arith.constant 0 : index
    %174 = vector.load %arg9[%c1_78, %c0_79, %c0_80] : memref<2x128x256xf32, #tpu.memory_space<vmem>>, vector<1x128x256xf32>
    %175 = vector.shape_cast %174 : vector<1x128x256xf32> to vector<128x256xf32>
    %176 = vector.shape_cast %173 : vector<128x256xf32> to vector<1x128x256xf32>
    tpu.vector_store %arg9[%c1_78, %c0_79, %c0_80], %176 {strides = array<i32>} : memref<2x128x256xf32, #tpu.memory_space<vmem>>, vector<1x128x256xf32>,
    return
  }
  func.func @transform_0(%arg0: i32) -> (i32, i32, i32) {
    %c0_i32 = arith.constant 0 : i32
    %c0_i32_0 = arith.constant 0 : i32
    %c0_i32_1 = arith.constant 0 : i32
    return %arg0, %c0_i32, %c0_i32_0 : i32, i32, i32
  }
  func.func @transform_1(%arg0: i32) -> (i32, i32) {
    %c0_i32 = arith.constant 0 : i32
    %c0_i32_0 = arith.constant 0 : i32
    %c0_i32_1 = arith.constant 0 : i32
    return %c0_i32, %c0_i32_0 : i32, i32
  }
  func.func @transform_2(%arg0: i32) -> (i32, i32) {
    %c0_i32 = arith.constant 0 : i32
    %c0_i32_0 = arith.constant 0 : i32
    %c0_i32_1 = arith.constant 0 : i32
    return %c0_i32, %c0_i32_0 : i32, i32
  }
  func.func @transform_3(%arg0: i32) -> (i32, i32) {
    %c0_i32 = arith.constant 0 : i32
    %c0_i32_0 = arith.constant 0 : i32
    %c0_i32_1 = arith.constant 0 : i32
    return %c0_i32, %c0_i32_0 : i32, i32
  }
  func.func @transform_4(%arg0: i32) -> (i32, i32) {
    %c0_i32 = arith.constant 0 : i32
    %c0_i32_0 = arith.constant 0 : i32
    %c0_i32_1 = arith.constant 0 : i32
    return %c0_i32, %c0_i32_0 : i32, i32
  }
  func.func @transform_5(%arg0: i32) -> (i32, i32) {
    %c0_i32 = arith.constant 0 : i32
    %c0_i32_0 = arith.constant 0 : i32
    %c0_i32_1 = arith.constant 0 : i32
    return %c0_i32, %c0_i32_0 : i32, i32
  }
  func.func @transform_6(%arg0: i32) -> (i32, i32) {
    %c0_i32 = arith.constant 0 : i32
    %c0_i32_0 = arith.constant 0 : i32
    %c0_i32_1 = arith.constant 0 : i32
    return %c0_i32, %c0_i32_0 : i32, i32
  }
  func.func @transform_7(%arg0: i32) -> (i32, i32) {
    %c0_i32 = arith.constant 0 : i32
    %c0_i32_0 = arith.constant 0 : i32
    %c0_i32_1 = arith.constant 0 : i32
    return %c0_i32, %c0_i32_0 : i32, i32
  }
  func.func @transform_8(%arg0: i32) -> (i32, i32, i32) {
    %c0_i32 = arith.constant 0 : i32
    %c0_i32_0 = arith.constant 0 : i32
    %c0_i32_1 = arith.constant 0 : i32
    return %arg0, %c0_i32, %c0_i32_0 : i32, i32, i32
  }
}

</mosaic_0001>

<bundles_post_ra>
// kernel: tpu_custom_call.1
= control target key start
LH: loop header
LB: loop body
LE: loop exit
PB: predicated region body
PF: predicated region fallthrough
CT: control target
= control target key end

     0   :  { %13 = vsyncpa [#allocation3], 0  ;;  %s6636_s0 = inlined_call_operand.hbm [shape: f32[2,128,256], index: 0, kind: input, shape index: {}]   ;;  %s6637_s1 = inlined_call_operand.vmem [shape: f32[128,8], index: 1, kind: input, shape index: {}]   ;;  %s6638_s2 = inlined_call_operand.vmem [shape: f32[128,8], index: 2, kind: input, shape index: {}]   ;;  %s6639_s3 = inlined_call_operand.vmem [shape: bf16[256,128], index: 3, kind: input, shape index: {}]   ;;  %s6640_s4 = inlined_call_operand.vmem [shape: f32[128,1], index: 4, kind: input, shape index: {}]   ;;  %s6641_s5 = inlined_call_operand.vmem [shape: f32[16,7], index: 5, kind: input, shape index: {}]   ;;  %s6642_s6 = inlined_call_operand.vmem [shape: f32[16,512], index: 6, kind: input, shape index: {}]   ;;  %s6643_s7 = inlined_call_operand.vmem [shape: f32[8,512], index: 7, kind: input, shape index: {}]   ;;  %s6644_s8 = inlined_call_operand.hbm [shape: f32[2,128,256], index: 8, kind: output, shape index: {}]  }
   0x1   :  { %14 = vsyncpa [#allocation4], 0  ;;  %s19_s29 = sshll.u32 %s6636_s0, 4  ;;  %s3746_s30 = smov [#allocation2]   ;;  %s20_s29 = int_to_ptr.hbm [resolvable:$true] %s19_s29 }
   0x2   :  { %s21_s9 = sshll.u32 %s3746_s30, 4  ;;  %s3747_s10 = smov 256   ;;  %s22_s9 = int_to_ptr.vmem [resolvable:$true] %s21_s9 }
   0x3   :  { %s3748_s11 = smov 16  }
   0x4   :  { %27 = dma.hbm_to_vmem [thread:$0]  %s20_s29, 8192, %s22_s9, [#allocation3], %s3747_s10, %s3747_s10, %s3748_s11  }
   0x5   :  { %3742 = dma.done.wait [#allocation3], 8192  }
   0x6   :  { %3743 = vsyncadd [#allocation3], 4294959104  ;;  %v3821_v0 = vld [vmem:[#allocation2 + $0x20] sm:$0xff]  ;;  %v3823_v1 = vld [vmem:[#allocation2 + $0x28] sm:$0xff]  ;;  %vm245_vm1 = vcmask 64512   ;;  %s3751_s9 = smov 2  }
   0x7   :  { %v3825_v2 = vld [vmem:[#allocation2] sm:$0xff]  ;;  %v116_v3 = vadd.f32 %v3823_v1, %v3821_v0  ;;  %v79_v4 = vld [vmem:[#allocation2 + $0x8] sm:$0xff]  ;;  %v84_v9 = vld [vmem:[#allocation2 + $0x30] sm:$0xff]  ;;  %v187_v51 = vmax.f32 %v3821_v0, %v3823_v1  ;;  %s3753_s0 = smov 1   ;;  %s3754_s12 = smov 127  }
   0x8   :  { %v3829_v5 = vld [vmem:[#allocation2 + $0x40] sm:$0xff]  ;;  %v3831_v6 = vld [vmem:[#allocation2 + $0x48] sm:$0xff]  ;;  %v110_v7 = vadd.f32 %v79_v4, %v3825_v2  ;;  %v85_v10 = vld [vmem:[#allocation2 + $0x38] sm:$0xff]  ;;  %v181_v47 = vmax.f32 %v3825_v2, %v79_v4  ;;  %s3755_s17 = smov 126   ;;  %s3756_s18 = smov 125  }
   0x9   :  { %v122_v8 = vadd.f32 %v3831_v6, %v3829_v5  ;;  %117 = vadd.xlane.f32.xlu1 %v116_v3  ;;  %v80_v11 = vld [vmem:[#allocation2 + $0x10] sm:$0xff]  ;;  %v81_v12 = vld [vmem:[#allocation2 + $0x18] sm:$0xff]  ;;  %v119_v15 = vadd.f32 %v85_v10, %v84_v9  ;;  %v90_v20 = vld [vmem:[#allocation2 + $0x60] sm:$0xff]  ;;  %v190_v50 = vmax.f32 %v84_v9, %v85_v10  ;;  %v193_v52 = vmax.f32 %v3829_v5, %v3831_v6  ;;  %s3765_s13 = smov 32   ;;  %s3767_s19 = smov 96  }
   0xa   :  { %111 = vadd.xlane.f32.xlu0 %v110_v7  ;;  %v88_v13 = vld [vmem:[#allocation2 + $0x50] sm:$0xff]  ;;  %v89_v14 = vld [vmem:[#allocation2 + $0x58] sm:$0xff]  ;;  %v113_v16 = vadd.f32 %v81_v12, %v80_v11  ;;  %v91_v21 = vld [vmem:[#allocation2 + $0x68] sm:$0xff]  ;;  %v184_v49 = vmax.f32 %v80_v11, %v81_v12 }
   0xb   :  { %123 = vadd.xlane.f32.xlu2 %v122_v8  ;;  %v125_v17 = vadd.f32 %v89_v14, %v88_v13  ;;  %v92_v18 = vld [vmem:[#allocation2 + $0x70] sm:$0xff]  ;;  %v93_v19 = vld [vmem:[#allocation2 + $0x78] sm:$0xff]  ;;  %v94_v22 = vld [vmem:[#allocation2 + $0x80] sm:$0xff]  ;;  %v128_v25 = vadd.f32 %v91_v21, %v90_v20  ;;  %v199_v53 = vmax.f32 %v90_v20, %v91_v21  ;;  %v196_v54 = vmax.f32 %v88_v13, %v89_v14 }
   0xc   :  { %v95_v23 = vld [vmem:[#allocation2 + $0x88] sm:$0xff]  ;;  %v131_v24 = vadd.f32 %v93_v19, %v92_v18  ;;  %v98_v27 = vld [vmem:[#allocation2 + $0xa0] sm:$0xff]  ;;  %v96_v29 = vld [vmem:[#allocation2 + $0x90] sm:$0xff]  ;;  %v202_v55 = vmax.f32 %v92_v18, %v93_v19  ;;  %v3749_v19 = vmov 256.0  }
   0xd   :  { %v134_v26 = vadd.f32 %v95_v23, %v94_v22  ;;  %v99_v28 = vld [vmem:[#allocation2 + $0xa8] sm:$0xff]  ;;  %v97_v30 = vld [vmem:[#allocation2 + $0x98] sm:$0xff]  ;;  %v100_v31 = vld [vmem:[#allocation2 + $0xb0] sm:$0xff]  ;;  %v205_v57 = vmax.f32 %v94_v22, %v95_v23  ;;  %3494 = vrcp.f32 %v3749_v19 }
   0xe   :  { %v101_v32 = vld [vmem:[#allocation2 + $0xb8] sm:$0xff]  ;;  %v140_v33 = vadd.f32 %v99_v28, %v98_v27  ;;  %v137_v34 = vadd.f32 %v97_v30, %v96_v29  ;;  %v104_v36 = vld [vmem:[#allocation2 + $0xd0] sm:$0xff]  ;;  %v102_v38 = vld [vmem:[#allocation2 + $0xc0] sm:$0xff]  ;;  %v208_v56 = vmax.f32 %v96_v29, %v97_v30  ;;  %v211_v58 = vmax.f32 %v98_v27, %v99_v28 }
   0xf   :  { %v143_v35 = vadd.f32 %v101_v32, %v100_v31  ;;  %v105_v37 = vld [vmem:[#allocation2 + $0xd8] sm:$0xff]  ;;  %v103_v39 = vld [vmem:[#allocation2 + $0xc8] sm:$0xff]  ;;  %v106_v40 = vld [vmem:[#allocation2 + $0xe0] sm:$0xff]  ;;  %v214_v60 = vmax.f32 %v100_v31, %v101_v32 }
  0x10   :  { %v107_v41 = vld [vmem:[#allocation2 + $0xe8] sm:$0xff]  ;;  %v149_v42 = vadd.f32 %v105_v37, %v104_v36  ;;  %v146_v43 = vadd.f32 %v103_v39, %v102_v38  ;;  %v108_v45 = vld [vmem:[#allocation2 + $0xf0] sm:$0xff]  ;;  %v109_v46 = vld [vmem:[#allocation2 + $0xf8] sm:$0xff]  ;;  %v217_v59 = vmax.f32 %v102_v38, %v103_v39  ;;  %v220_v61 = vmax.f32 %v104_v36, %v105_v37 }
  0x11   :  { %120 = vadd.xlane.f32.xlu1 %v119_v15  ;;  %v152_v44 = vadd.f32 %v107_v41, %v106_v40  ;;  %v155_v48 = vadd.f32 %v109_v46, %v108_v45  ;;  %v740_v62 = vld [vmem:[#allocation2 + $0x100] sm:$0xff]  ;;  %v741_v63 = vld [vmem:[#allocation2 + $0x108] sm:$0xff]  ;;  %v226_v0 = vmax.f32 %v108_v45, %v109_v46  ;;  %v223_v1 = vmax.f32 %v106_v40, %v107_v41  ;;  %v742_v5 = vld [vmem:[#allocation2 + $0x110] sm:$0xff] }
  0x12   :  { %114 = vadd.xlane.f32.xlu0 %v113_v16  ;;  %v772_v2 = vadd.f32 %v741_v63, %v740_v62  ;;  %v744_v3 = vld [vmem:[#allocation2 + $0x120] sm:$0xff]  ;;  %v745_v4 = vld [vmem:[#allocation2 + $0x128] sm:$0xff]  ;;  %v743_v6 = vld [vmem:[#allocation2 + $0x118] sm:$0xff]  ;;  %v836_v9 = vmax.f32 %v740_v62, %v741_v63 }
  0x13   :  { %126 = vadd.xlane.f32.xlu2 %v125_v17  ;;  %v778_v7 = vadd.f32 %v745_v4, %v744_v3  ;;  %v775_v8 = vadd.f32 %v743_v6, %v742_v5  ;;  %v746_v10 = vld [vmem:[#allocation2 + $0x130] sm:$0xff]  ;;  %v747_v11 = vld [vmem:[#allocation2 + $0x138] sm:$0xff]  ;;  %v839_v13 = vmax.f32 %v742_v5, %v743_v6  ;;  %v842_v14 = vmax.f32 %v744_v3, %v745_v4  ;;  %v748_v15 = vld [vmem:[#allocation2 + $0x140] sm:$0xff]  ;;  %v3495_v23 = vpop.eup %3494 }
  0x14   :  { %v781_v12 = vadd.f32 %v747_v11, %v746_v10  ;;  %v749_v16 = vld [vmem:[#allocation2 + $0x148] sm:$0xff]  ;;  %v750_v17 = vld [vmem:[#allocation2 + $0x150] sm:$0xff]  ;;  %v751_v18 = vld [vmem:[#allocation2 + $0x158] sm:$0xff]  ;;  %v845_v20 = vmax.f32 %v746_v10, %v747_v11  ;;  %v159_v27 = vmul.f32 256.0, %v3495_v23  ;;  %vm163_vm0 = vweird.f32 %v3495_v23 }
  0x15   :  { %v784_v21 = vadd.f32 %v749_v16, %v748_v15  ;;  %v787_v22 = vadd.f32 %v751_v18, %v750_v17  ;;  %v848_v28 = vmax.f32 %v748_v15, %v749_v16  ;;  %v851_v29 = vmax.f32 %v750_v17, %v751_v18  ;;  %v754_v31 = vld [vmem:[#allocation2 + $0x170] sm:$0xff]  ;;  %v755_v32 = vld [vmem:[#allocation2 + $0x178] sm:$0xff]  ;;  %v3878_v18 = vld [vmem:[%s6637_s1 + $0x20] sm:$0xff] }
  0x16   :  { %v160_v30 = vsub.f32 1.0, %v159_v27  ;;  %v793_v40 = vadd.f32 %v755_v32, %v754_v31 }
  0x18   :  { %v161_v36 = vmul.f32 %v3495_v23, %v160_v30  ;;  %v766_v30 = vld [vmem:[#allocation2 + $0x1d0] sm:$0xff] }
  0x19   :  { %132 = vadd.xlane.f32.xlu1 %v131_v24  ;;  %v752_v24 = vld [vmem:[#allocation2 + $0x160] sm:$0xff] }
  0x1a   :  { %129 = vadd.xlane.f32.xlu0 %v128_v25  ;;  %v753_v25 = vld [vmem:[#allocation2 + $0x168] sm:$0xff] }
  0x1b   :  { %135 = vadd.xlane.f32.xlu2 %v134_v26  ;;  %v790_v26 = vadd.f32 %v753_v25, %v752_v24  ;;  %v854_v39 = vmax.f32 %v752_v24, %v753_v25 }
  0x21   :  { %141 = vadd.xlane.f32.xlu1 %v140_v33  ;;  %v756_v33 = vld [vmem:[#allocation2 + $0x180] sm:$0xff] }
  0x22   :  { %138 = vadd.xlane.f32.xlu0 %v137_v34  ;;  %v757_v34 = vld [vmem:[#allocation2 + $0x188] sm:$0xff] }
  0x23   :  { %144 = vadd.xlane.f32.xlu2 %v143_v35  ;;  %v796_v41 = vadd.f32 %v757_v34, %v756_v33 }
  0x29   :  { %150 = vadd.xlane.f32.xlu1 %v149_v42  ;;  %v162_v42 = vadd.f32 %v3495_v23, %v161_v36 }
  0x2a   :  { %147 = vadd.xlane.f32.xlu0 %v146_v43  ;;  %v758_v43 = vld [vmem:[#allocation2 + $0x190] sm:$0xff] }
  0x2b   :  { %153 = vadd.xlane.f32.xlu2 %v152_v44  ;;  %v759_v44 = vld [vmem:[#allocation2 + $0x198] sm:$0xff]  ;;  %v3841_v46 = vsel %vm163_vm0, %v3495_v23, %v162_v42 }
  0x2c   :  { %v863_v3 = vmax.f32 %v758_v43, %v759_v44 }
  0x31   :  { %182 = vmax.xlane.f32.xlu1 %v181_v47 }
  0x32   :  { %156 = vadd.xlane.f32.xlu0 %v155_v48 }
  0x33   :  { %185 = vmax.xlane.f32.xlu2 %v184_v49  ;;  %v799_v49 = vadd.f32 %v759_v44, %v758_v43 }
  0x39   :  { %191 = vmax.xlane.f32.xlu1 %v190_v50 }
  0x3a   :  { %188 = vmax.xlane.f32.xlu0 %v187_v51  ;;  %v857_v51 = vmax.f32 %v754_v31, %v755_v32  ;;  %v767_v31 = vld [vmem:[#allocation2 + $0x1d8] sm:$0xff]  ;;  %v768_v32 = vld [vmem:[#allocation2 + $0x1e0] sm:$0xff] }
  0x3b   :  { %194 = vmax.xlane.f32.xlu2 %v193_v52  ;;  %v860_v52 = vmax.f32 %v756_v33, %v757_v34  ;;  %v769_v33 = vld [vmem:[#allocation2 + $0x1e8] sm:$0xff]  ;;  %v811_v44 = vadd.f32 %v767_v31, %v766_v30 }
  0x41   :  { %200 = vmax.xlane.f32.xlu1 %v199_v53  ;;  %v3847_v53 = vld [vmem:[%s6637_s1 + $0x8] sm:$0xff] }
  0x42   :  { %197 = vmax.xlane.f32.xlu0 %v196_v54 }
  0x43   :  { %203 = vmax.xlane.f32.xlu2 %v202_v55  ;;  %v3853_v55 = vld [vmem:[%s6637_s1] sm:$0xff] }
  0x49   :  { %209 = vmax.xlane.f32.xlu1 %v208_v56 }
  0x4a   :  { %206 = vmax.xlane.f32.xlu0 %v205_v57  ;;  %v760_v57 = vld [vmem:[#allocation2 + $0x1a0] sm:$0xff] }
  0x4b   :  { %212 = vmax.xlane.f32.xlu2 %v211_v58  ;;  %v761_v58 = vld [vmem:[#allocation2 + $0x1a8] sm:$0xff] }
  0x4c   :  { %v802_v6 = vadd.f32 %v761_v58, %v760_v57  ;;  %v866_v24 = vmax.f32 %v760_v57, %v761_v58  ;;  %v3915_v57 = vld [vmem:[%s6637_s1 + $0x40] sm:$0xff] }
  0x51   :  { %218 = vmax.xlane.f32.xlu1 %v217_v59  ;;  %v762_v59 = vld [vmem:[#allocation2 + $0x1b0] sm:$0xff] }
  0x52   :  { %215 = vmax.xlane.f32.xlu0 %v214_v60  ;;  %v763_v60 = vld [vmem:[#allocation2 + $0x1b8] sm:$0xff] }
  0x53   :  { %221 = vmax.xlane.f32.xlu2 %v220_v61  ;;  %v869_v25 = vmax.f32 %v762_v59, %v763_v60 }
  0x59   :  { %227 = vmax.xlane.f32.xlu1 %v226_v0  ;;  %v3861_v0 = vld [vmem:[%s6637_s1 + $0x10] sm:$0xff] }
  0x5a   :  { %224 = vmax.xlane.f32.xlu0 %v223_v1 }
  0x5b   :  { %773 = vadd.xlane.f32.xlu2 %v772_v2 }
  0x61   :  { %779 = vadd.xlane.f32.xlu1 %v778_v7  ;;  %v805_v7 = vadd.f32 %v763_v60, %v762_v59 }
  0x62   :  { %776 = vadd.xlane.f32.xlu0 %v775_v8  ;;  %v3868_v8 = vld [vmem:[%s6637_s1 + $0x18] sm:$0xff] }
  0x63   :  { %837 = vmax.xlane.f32.xlu2 %v836_v9 }
  0x69   :  { %782 = vadd.xlane.f32.xlu1 %v781_v12 }
  0x6a   :  { %840 = vmax.xlane.f32.xlu0 %v839_v13  ;;  %v764_v13 = vld [vmem:[#allocation2 + $0x1c0] sm:$0xff] }
  0x6b   :  { %843 = vmax.xlane.f32.xlu2 %v842_v14  ;;  %v765_v14 = vld [vmem:[#allocation2 + $0x1c8] sm:$0xff] }
  0x6c   :  { %v872_v42 = vmax.f32 %v764_v13, %v765_v14 }
  0x71   :  { %846 = vmax.xlane.f32.xlu1 %v845_v20 }
  0x72   :  { %785 = vadd.xlane.f32.xlu0 %v784_v21 }
  0x73   :  { %788 = vadd.xlane.f32.xlu2 %v787_v22  ;;  %v808_v22 = vadd.f32 %v765_v14, %v764_v13 }
  0x79   :  { %791 = vadd.xlane.f32.xlu1 %v790_v26 }
  0x7a   :  { %849 = vmax.xlane.f32.xlu0 %v848_v28  ;;  %v3888_v28 = vld [vmem:[%s6637_s1 + $0x28] sm:$0xff] }
  0x7b   :  { %852 = vmax.xlane.f32.xlu2 %v851_v29 }
  0x7c   :  { %v118_v35 = vpop.xlane.xlu1 %117 }
  0x7d   :  { %v112_v37 = vpop.xlane.xlu0 %111  ;;  %v167_v61 = vmul.f32 %v3841_v46, %v118_v35 }
  0x7e   :  { %v124_v38 = vpop.xlane.xlu2 %123  ;;  %v165_v54 = vmul.f32 %v3841_v46, %v112_v37 }
  0x7f   :  { %v231_v9 = vmul.f32 %v167_v61, %v3861_v0  ;;  %v169_v16 = vmul.f32 %v3841_v46, %v124_v38 }
  0x80   :  { %v229_v62 = vmul.f32 %v165_v54, %v3853_v55  ;;  %v771_v54 = vld [vmem:[#allocation2 + $0x1f8] sm:$0xff] }
  0x81   :  { %855 = vmax.xlane.f32.xlu1 %v854_v39  ;;  %v249_v15 = vsel %vm245_vm1, %v231_v9, 0.0  ;;  %v233_v26 = vmul.f32 %v169_v16, %v3878_v18  ;;  %v3898_v39 = vld [vmem:[%s6637_s1 + $0x30] sm:$0xff]  ;;  %v3928_v9 = vld [vmem:[%s6637_s1 + $0x48] sm:$0xff] }
  0x82   :  { %794 = vadd.xlane.f32.xlu0 %v793_v40  ;;  %v246_v10 = vsel %vm245_vm1, %v229_v62, 0.0  ;;  %v3938_v16 = vld [vmem:[%s6637_s1 + $0x50] sm:$0xff] }
  0x83   :  { %797 = vadd.xlane.f32.xlu2 %v796_v41  ;;  %v253_v34 = vsel %vm245_vm1, %v233_v26, 0.0 }
  0x84   :  { %v121_v45 = vpop.xlane.xlu1 %120 }
  0x85   :  { %v115_v47 = vpop.xlane.xlu0 %114  ;;  %v168_v4 = vmul.f32 %v3841_v46, %v121_v45  ;;  %v814_v45 = vadd.f32 %v769_v33, %v768_v32 }
  0x86   :  { %v127_v48 = vpop.xlane.xlu2 %126  ;;  %v166_v50 = vmul.f32 %v3841_v46, %v115_v47  ;;  %v3906_v47 = vld [vmem:[%s6637_s1 + $0x38] sm:$0xff] }
  0x87   :  { %v232_v12 = vmul.f32 %v168_v4, %v3868_v8  ;;  %v170_v27 = vmul.f32 %v3841_v46, %v127_v48 }
  0x88   :  { %v230_v56 = vmul.f32 %v166_v50, %v3847_v53 }
  0x89   :  { %800 = vadd.xlane.f32.xlu1 %v799_v49  ;;  %v251_v23 = vsel %vm245_vm1, %v232_v12, 0.0  ;;  %v234_v35 = vmul.f32 %v170_v27, %v3888_v28 }
  0x8a   :  { %858 = vmax.xlane.f32.xlu0 %v857_v51  ;;  %v247_v5 = vsel %vm245_vm1, %v230_v56, 0.0 }
  0x8b   :  { %861 = vmax.xlane.f32.xlu2 %v860_v52  ;;  %v248_v11 = vadd.f32 %v247_v5, %v246_v10  ;;  %v255_v48 = vsel %vm245_vm1, %v234_v35, 0.0  ;;  %v770_v52 = vld [vmem:[#allocation2 + $0x1f0] sm:$0xff] }
  0x8c   :  { %v133_v63 = vpop.xlane.xlu1 %132  ;;  %v817_v60 = vadd.f32 %v771_v54, %v770_v52 }
  0x8d   :  { %v130_v1 = vpop.xlane.xlu0 %129  ;;  %v250_v19 = vadd.f32 %v249_v15, %v248_v11  ;;  %v172_v43 = vmul.f32 %v3841_v46, %v133_v63 }
  0x8e   :  { %v136_v2 = vpop.xlane.xlu2 %135  ;;  %v171_v36 = vmul.f32 %v3841_v46, %v130_v1 }
  0x8f   :  { %v252_v29 = vadd.f32 %v251_v23, %v250_v19  ;;  %v173_v51 = vmul.f32 %v3841_v46, %v136_v2  ;;  %v236_v56 = vmul.f32 %v172_v43, %v3906_v47  ;;  %v875_v2 = vmax.f32 %v766_v30, %v767_v31  ;;  %v3949_v31 = vld [vmem:[%s6637_s1 + $0x58] sm:$0xff] }
  0x90   :  { %v235_v49 = vmul.f32 %v171_v36, %v3898_v39 }
  0x91   :  { %864 = vmax.xlane.f32.xlu1 %v863_v3  ;;  %v254_v38 = vadd.f32 %v253_v34, %v252_v29  ;;  %v237_v62 = vmul.f32 %v173_v51, %v3915_v57  ;;  %v878_v3 = vmax.f32 %v768_v32, %v769_v33  ;;  %v259_v4 = vsel %vm245_vm1, %v236_v56, 0.0 }
  0x92   :  { %803 = vadd.xlane.f32.xlu0 %v802_v6  ;;  %v257_v58 = vsel %vm245_vm1, %v235_v49, 0.0 }
  0x93   :  { %806 = vadd.xlane.f32.xlu2 %v805_v7  ;;  %v256_v50 = vadd.f32 %v255_v48, %v254_v38  ;;  %v261_v11 = vsel %vm245_vm1, %v237_v62, 0.0 }
  0x94   :  { %v142_v17 = vpop.xlane.xlu1 %141 }
  0x95   :  { %v139_v20 = vpop.xlane.xlu0 %138  ;;  %v258_v61 = vadd.f32 %v257_v58, %v256_v50  ;;  %v175_v12 = vmul.f32 %v3841_v46, %v142_v17 }
  0x96   :  { %v3880_v21 = vpop.xlane.xlu2 %144  ;;  %v174_v5 = vmul.f32 %v3841_v46, %v139_v20 }
  0x97   :  { %v260_v10 = vadd.f32 %v259_v4, %v258_v61  ;;  %v239_v26 = vmul.f32 %v175_v12, %v3938_v16  ;;  %v176_v29 = vmul.f32 %v3841_v46, %v3880_v21  ;;  %v3958_v21 = vld [vmem:[%s6637_s1 + $0x60] sm:$0xff] }
  0x98   :  { %v238_v13 = vmul.f32 %v174_v5, %v3928_v9  ;;  %v3984_v5 = vld [vmem:[%s6637_s1 + $0x70] sm:$0xff] }
  0x99   :  { %809 = vadd.xlane.f32.xlu1 %v808_v22  ;;  %v262_v20 = vadd.f32 %v261_v11, %v260_v10  ;;  %v240_v43 = vmul.f32 %v176_v29, %v3949_v31  ;;  %v3991_v10 = vld [vmem:[%s6637_s1 + $0x78] sm:$0xff] }
  0x9a   :  { %867 = vmax.xlane.f32.xlu0 %v866_v24  ;;  %v263_v27 = vsel %vm245_vm1, %v238_v13, 0.0 }
  0x9b   :  { %870 = vmax.xlane.f32.xlu2 %v869_v25  ;;  %v881_v25 = vmax.f32 %v770_v52, %v771_v54  ;;  %v264_v36 = vadd.f32 %v263_v27, %v262_v20  ;;  %v267_v58 = vsel %vm245_vm1, %v240_v43, 0.0 }
  0x9c   :  { %v3893_v37 = vpop.xlane.xlu1 %150 }
  0x9d   :  { %v148_v40 = vpop.xlane.xlu0 %147 }
  0x9e   :  { %v3900_v41 = vpop.xlane.xlu2 %153  ;;  %v177_v32 = vmul.f32 %v3841_v46, %v148_v40  ;;  %v178_v40 = vmul.f32 %v3841_v46, %v3893_v37 }
  0xa0   :  { %v241_v48 = vmul.f32 %v177_v32, %v3958_v21 }
  0xa1   :  { %873 = vmax.xlane.f32.xlu1 %v872_v42  ;;  %v265_v42 = vsel %vm245_vm1, %v239_v26, 0.0 }
  0xa2   :  { %812 = vadd.xlane.f32.xlu0 %v811_v44  ;;  %v266_v51 = vadd.f32 %v265_v42, %v264_v36  ;;  %v269_v62 = vsel %vm245_vm1, %v241_v48, 0.0 }
  0xa3   :  { %815 = vadd.xlane.f32.xlu2 %v814_v45  ;;  %v3967_v45 = vld [vmem:[%s6637_s1 + $0x68] sm:$0xff]  ;;  %s3768_s1 = smov 80  }
  0xa4   :  { %v183_v59 = vpop.xlane.xlu1 %182  ;;  %v268_v4 = vadd.f32 %v267_v58, %v266_v51 }
  0xa5   :  { %v3919_v63 = vpop.xlane.xlu0 %156  ;;  %v284_v6 = vmul.f32 %v183_v59, %v3853_v55  ;;  %v242_v59 = vmul.f32 %v178_v40, %v3967_v45 }
  0xa6   :  { %v186_v1 = vpop.xlane.xlu2 %185 }
  0xa7   :  { %v285_v7 = vmul.f32 %v186_v1, %v3847_v53  ;;  %v300_v14 = vsel %vm245_vm1, %v284_v6, 0.0  ;;  %v271_v12 = vsel %vm245_vm1, %v242_v59, 0.0 }
  0xa9   :  { %818 = vadd.xlane.f32.xlu1 %v817_v60  ;;  %v301_v15 = vsel %vm245_vm1, %v285_v7, 0.0  ;;  %v179_v60 = vmul.f32 %v3841_v46, %v3900_v41  ;;  %v180_v7 = vmul.f32 %v3841_v46, %v3919_v63  ;;  %v270_v41 = vadd.f32 %v269_v62, %v268_v4 }
  0xaa   :  { %876 = vmax.xlane.f32.xlu0 %v875_v2  ;;  %v302_v22 = vadd.f32 %v301_v15, %v300_v14 }
  0xab   :  { %879 = vmax.xlane.f32.xlu2 %v878_v3  ;;  %v243_v13 = vmul.f32 %v179_v60, %v3984_v5  ;;  %v244_v63 = vmul.f32 %v180_v7, %v3991_v10 }
  0xac   :  { %v192_v19 = vpop.xlane.xlu1 %191 }
  0xad   :  { %v287_v23 = vmul.f32 %v192_v19, %v3868_v8  ;;  %v189_v24 = vpop.xlane.xlu0 %188  ;;  %v275_v32 = vsel %vm245_vm1, %v244_v63, 0.0 }
  0xae   :  { %v195_v17 = vpop.xlane.xlu2 %194  ;;  %v286_v30 = vmul.f32 %v189_v24, %v3861_v0  ;;  %v272_v24 = vadd.f32 %v271_v12, %v270_v41 }
  0xaf   :  { %v305_v33 = vsel %vm245_vm1, %v287_v23, 0.0  ;;  %v288_v35 = vmul.f32 %v195_v17, %v3878_v18 }
  0xb0   :  { %v303_v34 = vsel %vm245_vm1, %v286_v30, 0.0 }
  0xb1   :  { %v304_v38 = vadd.f32 %v303_v34, %v302_v22  ;;  %v307_v49 = vsel %vm245_vm1, %v288_v35, 0.0 }
  0xb2   :  { %882 = vmax.xlane.f32.xlu0 %v881_v25  ;;  %v273_v25 = vsel %vm245_vm1, %v243_v13, 0.0 }
  0xb3   :  { %v306_v44 = vadd.f32 %v305_v33, %v304_v38  ;;  %v274_v33 = vadd.f32 %v273_v25, %v272_v24 }
  0xb4   :  { %v201_v50 = vpop.xlane.xlu1 %200 }
  0xb5   :  { %v290_v52 = vmul.f32 %v201_v50, %v3898_v39  ;;  %v198_v54 = vpop.xlane.xlu0 %197  ;;  %v308_v61 = vadd.f32 %v307_v49, %v306_v44  ;;  %v276_v38 = vadd.f32 %v275_v32, %v274_v33  ;;  %v4018_v32 = vld [vmem:[%s6638_s2 + $0x10] sm:$0xff]  ;;  %v4023_v33 = vld [vmem:[%s6638_s2 + $0x8] sm:$0xff] }
  0xb6   :  { %v204_v56 = vpop.xlane.xlu2 %203  ;;  %v289_v37 = vmul.f32 %v198_v54, %v3888_v28 }
  0xb7   :  { %v311_v1 = vsel %vm245_vm1, %v290_v52, 0.0  ;;  %v291_v3 = vmul.f32 %v204_v56, %v3906_v47  ;;  %v277_v52 = vrot.slane %v276_v38, 4 }
  0xb8   :  { %v309_v2 = vsel %vm245_vm1, %v289_v37, 0.0 }
  0xb9   :  { %v310_v6 = vadd.f32 %v309_v2, %v308_v61  ;;  %v313_v14 = vsel %vm245_vm1, %v291_v3, 0.0  ;;  %v278_v59 = vadd.f32 %v277_v52, %v276_v38 }
  0xbb   :  { %v312_v11 = vadd.f32 %v311_v1, %v310_v6  ;;  %v279_v6 = vrot.slane %v278_v59, 2 }
  0xbc   :  { %v210_v15 = vpop.xlane.xlu1 %209 }
  0xbd   :  { %v293_v19 = vmul.f32 %v210_v15, %v3928_v9  ;;  %v207_v20 = vpop.xlane.xlu0 %206  ;;  %v314_v17 = vadd.f32 %v313_v14, %v312_v11  ;;  %v280_v12 = vadd.f32 %v279_v6, %v278_v59 }
  0xbe   :  { %v213_v22 = vpop.xlane.xlu2 %212  ;;  %v292_v23 = vmul.f32 %v207_v20, %v3915_v57 }
  0xbf   :  { %v317_v26 = vsel %vm245_vm1, %v293_v19, 0.0  ;;  %v294_v29 = vmul.f32 %v213_v22, %v3938_v16  ;;  %v281_v20 = vrot.slane %v280_v12, 1 }
  0xc0   :  { %v315_v27 = vsel %vm245_vm1, %v292_v23, 0.0 }
  0xc1   :  { %v316_v30 = vadd.f32 %v315_v27, %v314_v17  ;;  %v319_v35 = vsel %vm245_vm1, %v294_v29, 0.0  ;;  %v282_v24 = vadd.f32 %v281_v20, %v280_v12 }
  0xc3   :  { %v318_v34 = vadd.f32 %v317_v26, %v316_v30  ;;  %v283_v29 = vmax.f32 %v282_v24, 0.0 }
  0xc4   :  { %v219_v36 = vpop.xlane.xlu1 %218 }
  0xc5   :  { %v296_v42 = vmul.f32 %v219_v36, %v3958_v21  ;;  %v216_v43 = vpop.xlane.xlu0 %215  ;;  %v320_v48 = vadd.f32 %v319_v35, %v318_v34  ;;  %v4028_v34 = vld [vmem:[%s6638_s2] sm:$0xff] }
  0xc6   :  { %v222_v40 = vpop.xlane.xlu2 %221  ;;  %v295_v44 = vmul.f32 %v216_v43, %v3949_v31 }
  0xc7   :  { %v323_v49 = vsel %vm245_vm1, %v296_v42, 0.0  ;;  %v297_v51 = vmul.f32 %v222_v40, %v3967_v45 }
  0xc8   :  { %v321_v50 = vsel %vm245_vm1, %v295_v44, 0.0 }
  0xc9   :  { %v322_v54 = vadd.f32 %v321_v50, %v320_v48  ;;  %v325_v58 = vsel %vm245_vm1, %v297_v51, 0.0 }
  0xcb   :  { %v324_v56 = vadd.f32 %v323_v49, %v322_v54 }
  0xcc   :  { %v228_v37 = vpop.xlane.xlu1 %227 }
  0xcd   :  { %v299_v60 = vmul.f32 %v228_v37, %v3991_v10  ;;  %v225_v61 = vpop.xlane.xlu0 %224  ;;  %v326_v2 = vadd.f32 %v325_v58, %v324_v56 }
  0xce   :  { %v774_v62 = vpop.xlane.xlu2 %773  ;;  %v298_v1 = vmul.f32 %v225_v61, %v3984_v5 }
  0xcf   :  { %v329_v3 = vsel %vm245_vm1, %v299_v60, 0.0  ;;  %v820_v58 = vmul.f32 %v774_v62, %v3841_v46 }
  0xd0   :  { %v327_v4 = vsel %vm245_vm1, %v298_v1, 0.0 }
  0xd1   :  { %v328_v7 = vadd.f32 %v327_v4, %v326_v2  ;;  %v884_v2 = vmul.f32 %v820_v58, %v3853_v55 }
  0xd3   :  { %v330_v41 = vadd.f32 %v329_v3, %v328_v7 }
  0xd4   :  { %v780_v11 = vpop.xlane.xlu1 %779 }
  0xd5   :  { %v331_v13 = vrot.slane %v330_v41, 4  ;;  %v777_v14 = vpop.xlane.xlu0 %776  ;;  %v822_v59 = vmul.f32 %v780_v11, %v3841_v46 }
  0xd6   :  { %v838_v15 = vpop.xlane.xlu2 %837  ;;  %v821_v56 = vmul.f32 %v777_v14, %v3841_v46 }
  0xd7   :  { %v332_v19 = vadd.f32 %v331_v13, %v330_v41  ;;  %v886_v4 = vmul.f32 %v822_v59, %v3861_v0  ;;  %v900_v41 = vsel %vm245_vm1, %v884_v2, 0.0 }
  0xd8   :  { %v885_v60 = vmul.f32 %v821_v56, %v3847_v53 }
  0xd9   :  { %v333_v22 = vrot.slane %v332_v19, 2  ;;  %v903_v14 = vsel %vm245_vm1, %v886_v4, 0.0 }
  0xda   :  { %v901_v6 = vsel %vm245_vm1, %v885_v60, 0.0 }
  0xdb   :  { %v334_v63 = vadd.f32 %v333_v22, %v332_v19  ;;  %v902_v12 = vadd.f32 %v901_v6, %v900_v41 }
  0xdc   :  { %v783_v23 = vpop.xlane.xlu1 %782 }
  0xdd   :  { %v335_v17 = vrot.slane %v334_v63, 1  ;;  %v841_v25 = vpop.xlane.xlu0 %840  ;;  %v823_v3 = vmul.f32 %v783_v23, %v3841_v46  ;;  %v938_v23 = vmul.f32 %v838_v15, %v3853_v55 }
  0xde   :  { %v844_v26 = vpop.xlane.xlu2 %843  ;;  %v939_v11 = vmul.f32 %v841_v25, %v3847_v53 }
  0xdf   :  { %v336_v27 = vadd.f32 %v335_v17, %v334_v63  ;;  %v887_v62 = vmul.f32 %v823_v3, %v3868_v8  ;;  %v940_v53 = vmul.f32 %v844_v26, %v3861_v0 }
  0xe1   :  { %v337_v30 = vmax.f32 %v336_v27, 0.0  ;;  %v905_v24 = vsel %vm245_vm1, %v887_v62, 0.0  ;;  %v904_v27 = vadd.f32 %v903_v14, %v902_v12 }
  0xe3   :  { %v4030_v35 = vadd.f32 %v337_v30, %v283_v29  ;;  %v955_v29 = vsel %vm245_vm1, %v939_v11, 0.0 }
  0xe4   :  { %v847_v36 = vpop.xlane.xlu1 %846 }
  0xe5   :  { %v786_v38 = vpop.xlane.xlu0 %785  ;;  %v341_v43 = vmul.f32 %v4030_v35, %v4018_v32  ;;  %v340_v40 = vmul.f32 %v4030_v35, %v4023_v33  ;;  %v339_v44 = vmul.f32 %v4030_v35, %v4028_v34  ;;  %v941_v55 = vmul.f32 %v847_v36, %v3868_v8 }
  0xe6   :  { %v789_v42 = vpop.xlane.xlu2 %788  ;;  %v824_v7 = vmul.f32 %v786_v38, %v3841_v46 }
  0xe7   :  { %v361_v48 = vsel %vm245_vm1, %v341_v43, 0.0  ;;  %v358_v49 = vsel %vm245_vm1, %v340_v40, 0.0  ;;  %v355_v50 = vsel %vm245_vm1, %v339_v44, 0.0  ;;  %v825_v20 = vmul.f32 %v789_v42, %v3841_v46 }
  0xe8   :  { %362 = vadd.xlane.f32.xlu1 %v361_v48  ;;  %359 = vadd.xlane.f32.xlu0 %v358_v49  ;;  %v888_v19 = vmul.f32 %v824_v7, %v3878_v18  ;;  %v954_v42 = vsel %vm245_vm1, %v938_v23, 0.0  ;;  %v906_v43 = vadd.f32 %v905_v24, %v904_v27  ;;  %v957_v44 = vsel %vm245_vm1, %v940_v53, 0.0 }
  0xe9   :  { %356 = vadd.xlane.f32.xlu2 %v355_v50  ;;  %v889_v30 = vmul.f32 %v825_v20, %v3888_v28  ;;  %v956_v15 = vadd.f32 %v955_v29, %v954_v42  ;;  %v959_v59 = vsel %vm245_vm1, %v941_v55, 0.0 }
  0xea   :  { %v907_v25 = vsel %vm245_vm1, %v888_v19, 0.0 }
  0xeb   :  { %v908_v48 = vadd.f32 %v907_v25, %v906_v43  ;;  %v909_v26 = vsel %vm245_vm1, %v889_v30, 0.0  ;;  %v958_v8 = vadd.f32 %v957_v44, %v956_v15 }
  0xec   :  { %v792_v51 = vpop.xlane.xlu1 %791 }
  0xed   :  { %v850_v52 = vpop.xlane.xlu0 %849  ;;  %v826_v17 = vmul.f32 %v792_v51, %v3841_v46 }
  0xee   :  { %v853_v54 = vpop.xlane.xlu2 %852  ;;  %v942_v49 = vmul.f32 %v850_v52, %v3878_v18  ;;  %v960_v52 = vadd.f32 %v959_v59, %v958_v8 }
  0xef   :  { %v890_v40 = vmul.f32 %v826_v17, %v3898_v39  ;;  %v943_v18 = vmul.f32 %v853_v54, %v3888_v28 }
  0xf0   :  { %v961_v2 = vsel %vm245_vm1, %v942_v49, 0.0 }
  0xf1   :  { %v911_v36 = vsel %vm245_vm1, %v890_v40, 0.0  ;;  %v962_v41 = vadd.f32 %v961_v2, %v960_v52  ;;  %v963_v12 = vsel %vm245_vm1, %v943_v18, 0.0 }
  0xf4   :  { %v856_v37 = vpop.xlane.xlu1 %855 }
  0xf5   :  { %v795_v61 = vpop.xlane.xlu0 %794  ;;  %v944_v7 = vmul.f32 %v856_v37, %v3898_v39  ;;  %v964_v39 = vadd.f32 %v963_v12, %v962_v41 }
  0xf6   :  { %v798_v1 = vpop.xlane.xlu2 %797  ;;  %v827_v38 = vmul.f32 %v795_v61, %v3841_v46  ;;  %v910_v61 = vadd.f32 %v909_v26, %v908_v48 }
  0xf7   :  { %v828_v51 = vmul.f32 %v798_v1, %v3841_v46  ;;  %v965_v24 = vsel %vm245_vm1, %v944_v7, 0.0 }
  0xf8   :  { %v891_v50 = vmul.f32 %v827_v38, %v3906_v47  ;;  %v912_v6 = vadd.f32 %v911_v36, %v910_v61 }
  0xf9   :  { %v892_v4 = vmul.f32 %v828_v51, %v3915_v57 }
  0xfa   :  { %v913_v3 = vsel %vm245_vm1, %v891_v50, 0.0 }
  0xfb   :  { %v914_v11 = vadd.f32 %v913_v3, %v912_v6  ;;  %v915_v28 = vsel %vm245_vm1, %v892_v4, 0.0 }
  0xfc   :  { %v801_v13 = vpop.xlane.xlu1 %800 }
  0xfd   :  { %v859_v22 = vpop.xlane.xlu0 %858  ;;  %v829_v60 = vmul.f32 %v801_v13, %v3841_v46  ;;  %v916_v27 = vadd.f32 %v915_v28, %v914_v11 }
  0xfe   :  { %v862_v63 = vpop.xlane.xlu2 %861  ;;  %v945_v13 = vmul.f32 %v859_v22, %v3906_v47  ;;  %v966_v22 = vadd.f32 %v965_v24, %v964_v39 }
  0xff   :  { %v893_v62 = vmul.f32 %v829_v60, %v3928_v9  ;;  %v946_v47 = vmul.f32 %v862_v63, %v3915_v57 }
 0x100   :  { %v967_v29 = vsel %vm245_vm1, %v945_v13, 0.0 }
 0x101   :  { %v917_v37 = vsel %vm245_vm1, %v893_v62, 0.0  ;;  %v968_v42 = vadd.f32 %v967_v29, %v966_v22  ;;  %v969_v55 = vsel %vm245_vm1, %v946_v47, 0.0 }
 0x102   :  { %v918_v30 = vadd.f32 %v917_v37, %v916_v27 }
 0x104   :  { %v865_v0 = vpop.xlane.xlu1 %864 }
 0x105   :  { %v804_v56 = vpop.xlane.xlu0 %803  ;;  %v947_v38 = vmul.f32 %v865_v0, %v3928_v9  ;;  %v970_v9 = vadd.f32 %v969_v55, %v968_v42 }
 0x106   :  { %v807_v58 = vpop.xlane.xlu2 %806  ;;  %v830_v1 = vmul.f32 %v804_v56, %v3841_v46 }
 0x107   :  { %v831_v19 = vmul.f32 %v807_v58, %v3841_v46  ;;  %v971_v49 = vsel %vm245_vm1, %v947_v38, 0.0 }
 0x108   :  { %v894_v54 = vmul.f32 %v830_v1, %v3938_v16  ;;  %v972_v59 = vadd.f32 %v971_v49, %v970_v9  ;;  %v75_v9 = vld [vmem:[%s6638_s2 + $0x68] sm:$0xff] }
 0x109   :  { %v895_v25 = vmul.f32 %v831_v19, %v3949_v31 }
 0x10a   :  { %v919_v53 = vsel %vm245_vm1, %v894_v54, 0.0 }
 0x10b   :  { %v920_v15 = vadd.f32 %v919_v53, %v918_v30  ;;  %v921_v48 = vsel %vm245_vm1, %v895_v25, 0.0 }
 0x10c   :  { %v810_v14 = vpop.xlane.xlu1 %809 }
 0x10d   :  { %v868_v20 = vpop.xlane.xlu0 %867  ;;  %v832_v17 = vmul.f32 %v810_v14, %v3841_v46  ;;  %v922_v51 = vadd.f32 %v921_v48, %v920_v15 }
 0x10e   :  { %v871_v23 = vpop.xlane.xlu2 %870  ;;  %v948_v40 = vmul.f32 %v868_v20, %v3938_v16 }
 0x10f   :  { %v896_v43 = vmul.f32 %v832_v17, %v3958_v21  ;;  %v949_v58 = vmul.f32 %v871_v23, %v3949_v31 }
 0x110   :  { %v973_v56 = vsel %vm245_vm1, %v948_v40, 0.0  ;;  %v74_v40 = vld [vmem:[%s6638_s2 + $0x60] sm:$0xff] }
 0x111   :  { %v923_v0 = vsel %vm245_vm1, %v896_v43, 0.0  ;;  %v974_v2 = vadd.f32 %v973_v56, %v972_v59  ;;  %v975_v18 = vsel %vm245_vm1, %v949_v58, 0.0 }
 0x112   :  { %v924_v36 = vadd.f32 %v923_v0, %v922_v51 }
 0x113   :  { %v976_v62 = vadd.f32 %v975_v18, %v974_v2 }
 0x114   :  { %v874_v44 = vpop.xlane.xlu1 %873 }
 0x115   :  { %v813_v57 = vpop.xlane.xlu0 %812  ;;  %v950_v60 = vmul.f32 %v874_v44, %v3958_v21  ;;  %v77_v44 = vld [vmem:[%s6638_s2 + $0x78] sm:$0xff] }
 0x116   :  { %v816_v63 = vpop.xlane.xlu2 %815  ;;  %v833_v26 = vmul.f32 %v813_v57, %v3841_v46  ;;  %v354_v51 = vmul.f32 %v4030_v35, %v77_v44 }
 0x117   :  { %v834_v50 = vmul.f32 %v816_v63, %v3841_v46  ;;  %v977_v7 = vsel %vm245_vm1, %v950_v60, 0.0  ;;  %v351_v60 = vmul.f32 %v4030_v35, %v74_v40 }
 0x118   :  { %v897_v16 = vmul.f32 %v833_v26, %v3967_v45  ;;  %v978_v14 = vadd.f32 %v977_v7, %v976_v62 }
 0x119   :  { %v898_v8 = vmul.f32 %v834_v50, %v3984_v5 }
 0x11a   :  { %v925_v61 = vsel %vm245_vm1, %v897_v16, 0.0  ;;  %v400_v16 = vsel %vm245_vm1, %v354_v51, 0.0 }
 0x11b   :  { %v926_v52 = vadd.f32 %v925_v61, %v924_v36  ;;  %v927_v4 = vsel %vm245_vm1, %v898_v8, 0.0  ;;  %v72_v8 = vld [vmem:[%s6638_s2 + $0x50] sm:$0xff]  ;;  %v73_v61 = vld [vmem:[%s6638_s2 + $0x58] sm:$0xff] }
 0x11c   :  { %v819_v3 = vpop.xlane.xlu1 %818 }
 0x11d   :  { %v835_v1 = vmul.f32 %v819_v3, %v3841_v46  ;;  %v877_v31 = vpop.xlane.xlu0 %876  ;;  %v928_v12 = vadd.f32 %v927_v4, %v926_v52  ;;  %v391_v52 = vsel %vm245_vm1, %v351_v60, 0.0  ;;  %v71_v4 = vld [vmem:[%s6638_s2 + $0x48] sm:$0xff] }
 0x11e   :  { %v880_v6 = vpop.xlane.xlu2 %879  ;;  %v951_v41 = vmul.f32 %v877_v31, %v3967_v45 }
 0x11f   :  { %v899_v21 = vmul.f32 %v835_v1, %v3991_v10  ;;  %v952_v13 = vmul.f32 %v880_v6, %v3984_v5  ;;  %v352_v1 = vmul.f32 %v4030_v35, %v75_v9  ;;  %v70_v6 = vld [vmem:[%s6638_s2 + $0x40] sm:$0xff] }
 0x120   :  { %v979_v11 = vsel %vm245_vm1, %v951_v41, 0.0 }
 0x121   :  { %v929_v28 = vsel %vm245_vm1, %v899_v21, 0.0  ;;  %v980_v19 = vadd.f32 %v979_v11, %v978_v14  ;;  %v981_v20 = vsel %vm245_vm1, %v952_v13, 0.0  ;;  %v394_v41 = vsel %vm245_vm1, %v352_v1, 0.0 }
 0x122   :  { %v930_v54 = vadd.f32 %v929_v28, %v928_v12  ;;  %v68_v12 = vld [vmem:[%s6638_s2 + $0x30] sm:$0xff]  ;;  %v349_v11 = vmul.f32 %v4030_v35, %v72_v8  ;;  %v350_v14 = vmul.f32 %v4030_v35, %v73_v61 }
 0x123   :  { %v982_v39 = vadd.f32 %v981_v20, %v980_v19 }
 0x124   :  { %v931_v46 = vrot.slane %v930_v54, 4  ;;  %v385_v28 = vsel %vm245_vm1, %v349_v11, 0.0  ;;  %v388_v19 = vsel %vm245_vm1, %v350_v14, 0.0 }
 0x125   :  { %v883_v23 = vpop.xlane.xlu0 %882 }
 0x126   :  { %v932_v24 = vadd.f32 %v931_v46, %v930_v54  ;;  %v953_v45 = vmul.f32 %v883_v23, %v3991_v10  ;;  %v76_v10 = vld [vmem:[%s6638_s2 + $0x70] sm:$0xff]  ;;  %v69_v46 = vld [vmem:[%s6638_s2 + $0x38] sm:$0xff]  ;;  %v348_v23 = vmul.f32 %v4030_v35, %v71_v4 }
 0x127   :  { %v353_v56 = vmul.f32 %v4030_v35, %v76_v10 }
 0x128   :  { %v933_v37 = vrot.slane %v932_v24, 2  ;;  %v983_v17 = vsel %vm245_vm1, %v953_v45, 0.0 }
 0x129   :  { %v984_v27 = vadd.f32 %v983_v17, %v982_v39  ;;  %v397_v59 = vsel %vm245_vm1, %v353_v56, 0.0  ;;  %v382_v39 = vsel %vm245_vm1, %v348_v23, 0.0  ;;  %v66_v17 = vld [vmem:[%s6638_s2 + $0x20] sm:$0xff] }
 0x12a   :  { %v934_v29 = vadd.f32 %v933_v37, %v932_v24  ;;  %v347_v24 = vmul.f32 %v4030_v35, %v70_v6 }
 0x12b   :  { %v985_v47 = vrot.slane %v984_v27, 4 }
 0x12c   :  { %v935_v22 = vrot.slane %v934_v29, 1  ;;  %v379_v37 = vsel %vm245_vm1, %v347_v24, 0.0 }
 0x12d   :  { %v986_v5 = vadd.f32 %v985_v47, %v984_v27  ;;  %v67_v47 = vld [vmem:[%s6638_s2 + $0x28] sm:$0xff] }
 0x12e   :  { %v936_v30 = vadd.f32 %v935_v22, %v934_v29  ;;  %v345_v29 = vmul.f32 %v4030_v35, %v68_v12 }
 0x12f   :  { %v987_v53 = vrot.slane %v986_v5, 2 }
 0x130   :  { %v937_v43 = vmax.f32 %v936_v30, 0.0  ;;  %v65_v30 = vld [vmem:[%s6638_s2 + $0x18] sm:$0xff]  ;;  %s3750_s2 = smov 3  }
 0x131   :  { %v988_v25 = vadd.f32 %v987_v53, %v986_v5  ;;  %v373_v53 = vsel %vm245_vm1, %v345_v29, 0.0 }
 0x133   :  { %v989_v38 = vrot.slane %v988_v25, 1 }
 0x135   :  { %v990_v42 = vadd.f32 %v989_v38, %v988_v25  ;;  %v346_v38 = vmul.f32 %v4030_v35, %v69_v46 }
 0x137   :  { %v991_v55 = vmax.f32 %v990_v42, 0.0 }
 0x139   :  { %v4121_v15 = vadd.f32 %v991_v55, %v937_v43  ;;  %v376_v55 = vsel %vm245_vm1, %v346_v38, 0.0 }
 0x13b   :  { %v1007_v48 = vmul.f32 %v4121_v15, %v76_v10  ;;  %v1005_v57 = vmul.f32 %v4121_v15, %v74_v40  ;;  %v1008_v63 = vmul.f32 %v4121_v15, %v77_v44  ;;  %v1006_v0 = vmul.f32 %v4121_v15, %v75_v9 }
 0x13c   :  { %v1003_v36 = vmul.f32 %v4121_v15, %v72_v8  ;;  %v1004_v2 = vmul.f32 %v4121_v15, %v73_v61  ;;  %v1002_v31 = vmul.f32 %v4121_v15, %v71_v4  ;;  %v1001_v7 = vmul.f32 %v4121_v15, %v70_v6 }
 0x13d   :  { %v1051_v49 = vsel %vm245_vm1, %v1007_v48, 0.0  ;;  %v1045_v26 = vsel %vm245_vm1, %v1005_v57, 0.0  ;;  %v1054_v50 = vsel %vm245_vm1, %v1008_v63, 0.0  ;;  %v1048_v58 = vsel %vm245_vm1, %v1006_v0, 0.0 }
 0x13e   :  { %1052 = vadd.xlane.f32.xlu1 %v1051_v49  ;;  %1046 = vadd.xlane.f32.xlu0 %v1045_v26  ;;  %v1039_v18 = vsel %vm245_vm1, %v1003_v36, 0.0  ;;  %v1042_v3 = vsel %vm245_vm1, %v1004_v2, 0.0  ;;  %v1036_v62 = vsel %vm245_vm1, %v1002_v31, 0.0  ;;  %v1033_v21 = vsel %vm245_vm1, %v1001_v7, 0.0 }
 0x13f   :  { %1055 = vadd.xlane.f32.xlu2 %v1054_v50  ;;  %v999_v13 = vmul.f32 %v4121_v15, %v68_v12  ;;  %v1000_v20 = vmul.f32 %v4121_v15, %v69_v46  ;;  %v997_v27 = vmul.f32 %v4121_v15, %v66_v17  ;;  %v998_v5 = vmul.f32 %v4121_v15, %v67_v47 }
 0x140   :  { %v996_v42 = vmul.f32 %v4121_v15, %v65_v30  ;;  %v995_v43 = vmul.f32 %v4121_v15, %v4018_v32  ;;  %v343_v44 = vmul.f32 %v4030_v35, %v66_v17  ;;  %v993_v48 = vmul.f32 %v4121_v15, %v4028_v34 }
 0x141   :  { %v1027_v54 = vsel %vm245_vm1, %v999_v13, 0.0  ;;  %v1030_v45 = vsel %vm245_vm1, %v1000_v20, 0.0  ;;  %v1021_v22 = vsel %vm245_vm1, %v997_v27, 0.0  ;;  %v1024_v25 = vsel %vm245_vm1, %v998_v5, 0.0 }
 0x142   :  { %v1018_v10 = vsel %vm245_vm1, %v996_v42, 0.0  ;;  %v1015_v40 = vsel %vm245_vm1, %v995_v43, 0.0  ;;  %v344_v57 = vmul.f32 %v4030_v35, %v67_v47  ;;  %v367_v63 = vsel %vm245_vm1, %v343_v44, 0.0 }
 0x143   :  { %v1009_v32 = vsel %vm245_vm1, %v993_v48, 0.0  ;;  %v994_v26 = vmul.f32 %v4121_v15, %v4023_v33  ;;  %v342_v50 = vmul.f32 %v4030_v35, %v65_v30  ;;  %v3630_v48 = vld [vmem:[#allocation2] sm:$0xff] }
 0x144   :  { %v370_v49 = vsel %vm245_vm1, %v344_v57, 0.0 }
 0x145   :  { %v1012_v9 = vsel %vm245_vm1, %v994_v26, 0.0  ;;  %v364_v34 = vsel %vm245_vm1, %v342_v50, 0.0  ;;  %v3632_v50 = vld [vmem:[#allocation2 + $0x8] sm:$0xff] }
 0x146   :  { %1049 = vadd.xlane.f32.xlu1 %v1048_v58  ;;  %401 = vadd.xlane.f32.xlu0 %v400_v16 }
 0x147   :  { %398 = vadd.xlane.f32.xlu2 %v397_v59 }
 0x14e   :  { %1040 = vadd.xlane.f32.xlu1 %v1039_v18  ;;  %392 = vadd.xlane.f32.xlu0 %v391_v52 }
 0x14f   :  { %1043 = vadd.xlane.f32.xlu2 %v1042_v3 }
 0x156   :  { %395 = vadd.xlane.f32.xlu1 %v394_v41  ;;  %1037 = vadd.xlane.f32.xlu0 %v1036_v62 }
 0x157   :  { %1034 = vadd.xlane.f32.xlu2 %v1033_v21 }
 0x15b   :  { %v360_v0 = vpop.xlane.xlu0 %359  ;;  %v363_v16 = vpop.xlane.xlu1 %362 }
 0x15c   :  { %v357_v51 = vpop.xlane.xlu2 %356  ;;  %v3335_v56 = vmul.f32 -1.442695, %v360_v0  ;;  %v3336_v59 = vmul.f32 -1.442695, %v363_v16  ;;  %v3633_v0 = vld [vmem:[#allocation2 + $0x18] sm:$0xff] }
 0x15d   :  { %v3334_v58 = vmul.f32 -1.442695, %v357_v51 }
 0x15e   :  { %386 = vadd.xlane.f32.xlu1 %v385_v28  ;;  %1028 = vadd.xlane.f32.xlu0 %v1027_v54  ;;  %3496 = vpow2.f32 %v3335_v56 }
 0x15f   :  { %389 = vadd.xlane.f32.xlu2 %v388_v19  ;;  %3498 = vpow2.f32 %v3334_v58 }
 0x160   :  { %3500 = vpow2.f32 %v3336_v59 }
 0x164   :  { %v3497_v8 = vpop.eup %3496 }
 0x165   :  { %v3499_v36 = vpop.eup %3498  ;;  %v452_v33 = vadd.f32 1.0, %v3497_v8 }
 0x166   :  { %1031 = vadd.xlane.f32.xlu1 %v1030_v45  ;;  %383 = vadd.xlane.f32.xlu0 %v382_v39  ;;  %v451_v15 = vadd.f32 1.0, %v3499_v36  ;;  %v3501_v35 = vpop.eup %3500 }
 0x167   :  { %380 = vadd.xlane.f32.xlu2 %v379_v37  ;;  %3502 = vrcp.f32 %v452_v33  ;;  %v453_v60 = vadd.f32 1.0, %v3501_v35  ;;  %v493_v54 = vand.u32 2147483648, %v452_v33  ;;  %vm487_vm6 = vweird.f32 %v452_v33 }
 0x168   :  { %3504 = vrcp.f32 %v451_v15  ;;  %vm472_vm3 = vweird.f32 %v451_v15  ;;  %v476_v14 = vand.u32 2147483647, %v451_v15  ;;  %v478_v28 = vand.u32 2147483648, %v451_v15 }
 0x169   :  { %3506 = vrcp.f32 %v453_v60  ;;  %v491_v24 = vand.u32 2147483647, %v452_v33  ;;  %v494_v47 = vor.u32 1.1754944e-38, %v493_v54  ;;  %v508_v5 = vand.u32 2147483648, %v453_v60 }
 0x16a   :  { %v479_v29 = vor.u32 1.1754944e-38, %v478_v28  ;;  %vm477_vm9 = vcmp.eq.f32.partialorder %v476_v14, 8.507059e+37  ;;  %vm502_vm11 = vweird.f32 %v453_v60 }
 0x16b   :  { %vm492_vm10 = vcmp.eq.f32.partialorder %v491_v24, 8.507059e+37  ;;  %v509_v44 = vor.u32 1.1754944e-38, %v508_v5 }
 0x16d   :  { %v3503_v61 = vpop.eup %3502 }
 0x16e   :  { %1022 = vadd.xlane.f32.xlu1 %v1021_v22  ;;  %374 = vadd.xlane.f32.xlu0 %v373_v53  ;;  %v3505_v2 = vpop.eup %3504  ;;  %v483_v18 = vmul.f32 %v3503_v61, %v452_v33  ;;  %vm488_vm4 = vweird.f32 %v3503_v61  ;;  %v506_v22 = vand.u32 2147483647, %v453_v60  ;;  %v3634_v33 = vld [vmem:[#allocation2 + $0x20] sm:$0xff] }
 0x16f   :  { %1025 = vadd.xlane.f32.xlu2 %v1024_v25  ;;  %v468_v52 = vmul.f32 %v3505_v2, %v451_v15  ;;  %v4223_v3 = vpop.eup %3506  ;;  %vm473_vm2 = vweird.f32 %v3505_v2  ;;  %vm4231_vm7 = vmor %vm487_vm6, %vm488_vm4 }
 0x170   :  { %v484_v4 = vsub.f32 1.0, %v483_v18  ;;  %v498_v31 = vmul.f32 %v4223_v3, %v453_v60  ;;  %vm4227_vm5 = vmor %vm472_vm3, %vm473_vm2  ;;  %vm503_vm8 = vweird.f32 %v4223_v3  ;;  %vm507_vm13 = vcmp.eq.f32.partialorder %v506_v22, 8.507059e+37  ;;  %v3635_v60 = vld [vmem:[#allocation2 + $0x28] sm:$0xff]  ;;  %v3644_v18 = vld [vmem:[#allocation2 + $0x1c0] sm:$0xff] }
 0x171   :  { %v469_v1 = vsub.f32 1.0, %v468_v52  ;;  %vm4243_vm12 = vmor %vm502_vm11, %vm503_vm8 }
 0x172   :  { %v485_v7 = vmul.f32 %v3503_v61, %v484_v4  ;;  %v499_v41 = vsub.f32 1.0, %v498_v31 }
 0x173   :  { %v470_v6 = vmul.f32 %v3505_v2, %v469_v1 }
 0x174   :  { %v486_v21 = vadd.f32 %v3503_v61, %v485_v7  ;;  %v500_v13 = vmul.f32 %v4223_v3, %v499_v41 }
 0x175   :  { %v471_v62 = vadd.f32 %v3505_v2, %v470_v6 }
 0x176   :  { %377 = vadd.xlane.f32.xlu1 %v376_v55  ;;  %1019 = vadd.xlane.f32.xlu0 %v1018_v10  ;;  %v490_v17 = vsel %vm4231_vm7, %v3503_v61, %v486_v21  ;;  %v501_v27 = vadd.f32 %v4223_v3, %v500_v13 }
 0x177   :  { %1016 = vadd.xlane.f32.xlu2 %v1015_v40  ;;  %v475_v37 = vsel %vm4227_vm5, %v3505_v2, %v471_v62  ;;  %v495_v25 = vsel %vm492_vm10, %v494_v47, %v490_v17 }
 0x178   :  { %v480_v53 = vsel %vm477_vm9, %v479_v29, %v475_v37  ;;  %v505_v43 = vsel %vm4243_vm12, %v4223_v3, %v501_v27 }
 0x179   :  { %v4250_v57 = vmul.f32 %v3630_v48, %v480_v53  ;;  %v510_v16 = vsel %vm507_vm13, %v509_v44, %v505_v43 }
 0x17a   :  { %v4269_v15 = vmul.f32 %v3634_v33, %v510_v16  ;;  %v4273_v61 = vmul.f32 %v3635_v60, %v510_v16 }
 0x17b   :  { %6682 = vst [vmem:[#allocation8_spill] sm:$0xff] %v4250_v57 }
 0x17e   :  { %368 = vadd.xlane.f32.xlu1 %v367_v63  ;;  %1010 = vadd.xlane.f32.xlu0 %v1009_v32  ;;  %v3631_v63 = vld [vmem:[#allocation2 + $0x10] sm:$0xff] }
 0x17f   :  { %371 = vadd.xlane.f32.xlu2 %v370_v49  ;;  %v4252_v32 = vmul.f32 %v3631_v63, %v495_v25 }
 0x181   :  { %6683 = vst [vmem:[#allocation9_spill] sm:$0xff] %v4252_v32  ;;  %v1909_v36 = vadd.f32 %v4252_v32, %v4250_v57 }
 0x186   :  { %1013 = vadd.xlane.f32.xlu1 %v1012_v9  ;;  %v4256_v9 = vmul.f32 %v3632_v50, %v480_v53 }
 0x187   :  { %365 = vadd.xlane.f32.xlu2 %v364_v34  ;;  %v4258_v34 = vmul.f32 %v3633_v0, %v495_v25 }
 0x188   :  { %6684 = vst [vmem:[#allocation10_spill] sm:$0xff] %v4256_v9 }
 0x189   :  { %6685 = vst [vmem:[#allocation11_spill] sm:$0xff] %v4258_v34  ;;  %v1930_v35 = vadd.f32 %v4258_v34, %v4256_v9  ;;  %v3652_v34 = vld [vmem:[#allocation2 + $0xc0] sm:$0xff] }
 0x18b   :  { %v4291_v28 = vadd.f32 %v1930_v35, %v4273_v61 }
 0x18d   :  { %6687 = vst [vmem:[#allocation13_spill] sm:$0xff] %v4291_v28 }
 0x1b1   :  { %v1053_v12 = vpop.xlane.xlu1 %1052  ;;  %v1047_v11 = vpop.xlane.xlu0 %1046 }
 0x1b2   :  { %v3364_v19 = vmul.f32 -1.442695, %v1053_v12  ;;  %v3362_v46 = vmul.f32 -1.442695, %v1047_v11  ;;  %v1056_v20 = vpop.xlane.xlu2 %1055  ;;  %v4286_v12 = vadd.f32 %v1909_v36, %v4269_v15 }
 0x1b3   :  { %v3365_v45 = vmul.f32 -1.442695, %v1056_v20 }
 0x1b4   :  { %3508 = vpow2.f32 %v3364_v19  ;;  %6686 = vst [vmem:[#allocation12_spill] sm:$0xff] %v4286_v12 }
 0x1b5   :  { %3510 = vpow2.f32 %v3362_v46 }
 0x1b6   :  { %3512 = vpow2.f32 %v3365_v45 }
 0x1b9   :  { %v1050_v38 = vpop.xlane.xlu1 %1049  ;;  %v402_v42 = vpop.xlane.xlu0 %401 }
 0x1ba   :  { %v3509_v55 = vpop.eup %3508  ;;  %v3363_v10 = vmul.f32 -1.442695, %v1050_v38  ;;  %v399_v40 = vpop.xlane.xlu2 %398  ;;  %v3349_v58 = vmul.f32 -1.442695, %v402_v42 }
 0x1bb   :  { %v3511_v49 = vpop.eup %3510  ;;  %v4254_v26 = vadd.f32 1.0, %v3509_v55  ;;  %v3348_v8 = vmul.f32 -1.442695, %v399_v40 }
 0x1bc   :  { %v3513_v51 = vpop.eup %3512  ;;  %v4260_v56 = vadd.f32 1.0, %v3511_v49  ;;  %3514 = vpow2.f32 %v3363_v10 }
 0x1bd   :  { %3516 = vrcp.f32 %v4254_v26  ;;  %v4263_v59 = vadd.f32 1.0, %v3513_v51  ;;  %v1340_v4 = vand.u32 2147483647, %v4254_v26  ;;  %v1342_v21 = vand.u32 2147483648, %v4254_v26 }
 0x1be   :  { %3518 = vrcp.f32 %v4260_v56  ;;  %vm1336_vm14 = vweird.f32 %v4254_v26  ;;  %v1310_v20 = vand.u32 2147483647, %v4260_v56  ;;  %v1312_v39 = vand.u32 2147483648, %v4260_v56 }
 0x1bf   :  { %3520 = vrcp.f32 %v4263_v59  ;;  %v1355_v14 = vand.u32 2147483647, %v4263_v59  ;;  %vm4301_vm15 = vcmp.eq.f32.partialorder %v1340_v4, 8.507059e+37  ;;  %vm1351_vm0 = vweird.f32 %v4263_v59 }
 0x1c0   :  { %3522 = vpow2.f32 %v3349_v58  ;;  %v1357_v45 = vand.u32 2147483648, %v4263_v59  ;;  %v1343_v29 = vor.u32 1.1754944e-38, %v1342_v21  ;;  %v4325_v10 = vor.u32 1.1754944e-38, %v1312_v39  ;;  %v3636_v21 = vld [vmem:[#allocation2 + $0x1e0] sm:$0xff] }
 0x1c1   :  { %3524 = vpow2.f32 %v3348_v8  ;;  %v1041_v52 = vpop.xlane.xlu1 %1040  ;;  %v393_v3 = vpop.xlane.xlu0 %392  ;;  %vm4316_vm2 = vcmp.eq.f32.partialorder %v1355_v14, 8.507059e+37  ;;  %vm1306_vm13 = vweird.f32 %v4260_v56 }
 0x1c2   :  { %v3515_v6 = vpop.eup %3514  ;;  %v3360_v7 = vmul.f32 -1.442695, %v1041_v52  ;;  %v3346_v41 = vmul.f32 -1.442695, %v393_v3  ;;  %v1044_v62 = vpop.xlane.xlu2 %1043  ;;  %v1358_v55 = vor.u32 1.1754944e-38, %v1357_v45 }
 0x1c3   :  { %v3517_v11 = vpop.eup %3516  ;;  %v3361_v13 = vmul.f32 -1.442695, %v1044_v62  ;;  %v4296_v46 = vadd.f32 1.0, %v3515_v6 }
 0x1c4   :  { %v4293_v54 = vpop.eup %3518  ;;  %v1332_v19 = vmul.f32 %v3517_v11, %v4254_v26  ;;  %3526 = vpow2.f32 %v3360_v7  ;;  %vm1337_vm1 = vweird.f32 %v3517_v11 }
 0x1c5   :  { %v4299_v23 = vpop.eup %3520  ;;  %3528 = vpow2.f32 %v3346_v41  ;;  %v4312_v5 = vmul.f32 %v4293_v54, %v4260_v56  ;;  %vm1338_vm4 = vmor %vm1336_vm14, %vm1337_vm1  ;;  %v1325_v58 = vand.u32 2147483647, %v4296_v46  ;;  %v1327_v33 = vand.u32 2147483648, %v4296_v46 }
 0x1c6   :  { %v3523_v37 = vpop.eup %3522  ;;  %v1333_v17 = vsub.f32 1.0, %v1332_v19  ;;  %v1347_v27 = vmul.f32 %v4299_v23, %v4263_v59  ;;  %3530 = vpow2.f32 %v3361_v13  ;;  %vm1352_vm3 = vweird.f32 %v4299_v23  ;;  %v3637_v19 = vld [vmem:[#allocation2 + $0x1e8] sm:$0xff] }
 0x1c7   :  { %v3525_v47 = vpop.eup %3524  ;;  %v4314_v22 = vadd.f32 1.0, %v3523_v37  ;;  %3532 = vrcp.f32 %v4296_v46  ;;  %v1303_v50 = vsub.f32 1.0, %v4312_v5  ;;  %vm1353_vm5 = vmor %vm1351_vm0, %vm1352_vm3  ;;  %v3638_v37 = vld [vmem:[#allocation2 + $0x1f0] sm:$0xff]  ;;  %vm1307_vm10 = vweird.f32 %v4293_v54 }
 0x1c8   :  { %v1348_v25 = vsub.f32 1.0, %v1347_v27  ;;  %v4321_v30 = vadd.f32 1.0, %v3525_v47  ;;  %v1334_v38 = vmul.f32 %v3517_v11, %v1333_v17  ;;  %v3639_v27 = vld [vmem:[#allocation2 + $0x1f8] sm:$0xff]  ;;  %vm4453_vm0 = vcmp.eq.f32.partialorder %v1310_v20, 8.507059e+37  ;;  %v3640_v20 = vld [vmem:[#allocation2 + $0xe0] sm:$0xff] }
 0x1c9   :  { %3534 = vrcp.f32 %v4314_v22  ;;  %v396_v42 = vpop.xlane.xlu1 %395  ;;  %v1038_v43 = vpop.xlane.xlu0 %1037  ;;  %v701_v6 = vand.u32 2147483647, %v4314_v22  ;;  %v703_v7 = vand.u32 2147483648, %v4314_v22  ;;  %vm697_vm7 = vweird.f32 %v4314_v22 }
 0x1ca   :  { %v3527_v40 = vpop.eup %3526  ;;  %3536 = vrcp.f32 %v4321_v30  ;;  %v3347_v44 = vmul.f32 -1.442695, %v396_v42  ;;  %v3359_v48 = vmul.f32 -1.442695, %v1038_v43  ;;  %v1035_v63 = vpop.xlane.xlu2 %1034  ;;  %v1335_v49 = vadd.f32 %v3517_v11, %v1334_v38 }
 0x1cb   :  { %v4329_v0 = vadd.f32 1.0, %v3527_v40  ;;  %v1349_v51 = vmul.f32 %v4299_v23, %v1348_v25  ;;  %v3529_v16 = vpop.eup %3528  ;;  %v3358_v8 = vmul.f32 -1.442695, %v1035_v63  ;;  %vm682_vm6 = vweird.f32 %v4321_v30 }
 0x1cc   :  { %3538 = vpow2.f32 %v3347_v44  ;;  %v1339_v36 = vsel %vm1338_vm4, %v3517_v11, %v1335_v49  ;;  %v3531_v35 = vpop.eup %3530  ;;  %v4338_v60 = vadd.f32 1.0, %v3529_v16  ;;  %v686_v43 = vand.u32 2147483647, %v4321_v30 }
 0x1cd   :  { %3540 = vrcp.f32 %v4329_v0  ;;  %v1344_v52 = vsel %vm4301_vm15, %v1343_v29, %v1339_v36  ;;  %v1350_v26 = vadd.f32 %v4299_v23, %v1349_v51  ;;  %v4343_v3 = vpop.eup %3532  ;;  %v4345_v4 = vadd.f32 1.0, %v3531_v35 }
 0x1ce   :  { %3542 = vpow2.f32 %v3359_v48  ;;  %v4357_v11 = vmul.f32 %v3636_v21, %v1344_v52  ;;  %v4367_v24 = vmul.f32 %v3637_v19, %v1344_v52  ;;  %v4378_v53 = vmul.f32 %v4343_v3, %v4296_v46 }
 0x1cf   :  { %v4353_v41 = vpop.eup %3534  ;;  %3544 = vrcp.f32 %v4338_v60  ;;  %v1354_v62 = vsel %vm1353_vm5, %v4299_v23, %v1350_v26  ;;  %v688_v63 = vand.u32 2147483648, %v4321_v30  ;;  %vm4404_vm9 = vcmp.eq.f32.partialorder %v686_v43, 8.507059e+37 }
 0x1d0   :  { %6692 = vst [vmem:[#allocation14_spill] sm:$0xff] %v4357_v11  ;;  %v4360_v13 = vpop.eup %3536  ;;  %v693_v59 = vmul.f32 %v4353_v41, %v4314_v22  ;;  %3546 = vrcp.f32 %v4345_v4  ;;  %v1359_v14 = vsel %vm4316_vm2, %v1358_v55, %v1354_v62  ;;  %v1318_v62 = vsub.f32 1.0, %v4378_v53  ;;  %vm1308_vm2 = vmor %vm1306_vm13, %vm1307_vm10 }
 0x1d1   :  { %6693 = vst [vmem:[#allocation15_spill] sm:$0xff] %v4367_v24  ;;  %v678_v23 = vmul.f32 %v4360_v13, %v4321_v30  ;;  %3548 = vpow2.f32 %v3358_v8  ;;  %v387_v45 = vpop.xlane.xlu1 %386  ;;  %v1029_v39 = vpop.xlane.xlu0 %1028  ;;  %v4371_v17 = vmul.f32 %v3638_v37, %v1359_v14  ;;  %v4373_v29 = vmul.f32 %v3639_v27, %v1359_v14 }
 0x1d2   :  { %v3539_v47 = vpop.eup %3538  ;;  %v3344_v25 = vmul.f32 -1.442695, %v387_v45  ;;  %v3356_v38 = vmul.f32 -1.442695, %v1029_v39  ;;  %v390_v42 = vpop.xlane.xlu2 %389  ;;  %v694_v40 = vsub.f32 1.0, %v693_v59  ;;  %vm683_vm8 = vweird.f32 %v4360_v13 }
 0x1d3   :  { %6694 = vst [vmem:[#allocation16_spill] sm:$0xff] %v4371_v17  ;;  %v4381_v55 = vpop.eup %3540  ;;  %v679_v44 = vsub.f32 1.0, %v678_v23  ;;  %v4383_v48 = vadd.f32 1.0, %v3539_v47  ;;  %v3345_v51 = vmul.f32 -1.442695, %v390_v42  ;;  %v1455_v16 = vpack.c.bf16 %v4371_v17, %v4357_v11  ;;  %vm4422_vm11 = vmor %vm682_vm6, %vm683_vm8 }
 0x1d4   :  { %6695 = vst [vmem:[#allocation17_spill] sm:$0xff] %v4373_v29  ;;  %v3543_v49 = vpop.eup %3542  ;;  %3550 = vpow2.f32 %v3344_v25  ;;  %v1456_v35 = vpack.c.bf16 %v4373_v29, %v4367_v24  ;;  %v4402_v21 = vmul.f32 %v4381_v55, %v4329_v0  ;;  %v695_v45 = vmul.f32 %v4353_v41, %v694_v40 }
 0x1d5   :  { %v4389_v8 = vpop.eup %3544  ;;  %3552 = vrcp.f32 %v4383_v48  ;;  %v4392_v36 = vadd.f32 1.0, %v3543_v49  ;;  %v680_v52 = vmul.f32 %v4360_v13, %v679_v44  ;;  %1731 = vmatpush.bf16.msra.mxu2 %v1455_v16  ;;  %v689_v27 = vor.u32 1.1754944e-38, %v688_v63 }
 0x1d6   :  { %v4397_v26 = vpop.eup %3546  ;;  %3554 = vpow2.f32 %v3356_v38  ;;  %v4411_v19 = vmul.f32 %v4389_v8, %v4338_v60  ;;  %1820 = vmatpush.bf16.msra.mxu3 %v1456_v35  ;;  %vm698_vm12 = vweird.f32 %v4353_v41  ;;  %v696_v30 = vadd.f32 %v4353_v41, %v695_v45 }
 0x1d7   :  { %v3549_v14 = vpop.eup %3548  ;;  %3556 = vrcp.f32 %v4392_v36  ;;  %v681_v23 = vadd.f32 %v4360_v13, %v680_v52  ;;  %v4430_v47 = vmul.f32 %v4397_v26, %v4345_v4  ;;  %vm4438_vm14 = vcmp.eq.f32.partialorder %v701_v6, 8.507059e+37  ;;  %vm4447_vm15 = vmor %vm697_vm7, %vm698_vm12 }
 0x1d8   :  { %v4416_v39 = vadd.f32 1.0, %v3549_v14  ;;  %3558 = vpow2.f32 %v3345_v51  ;;  %v700_v59 = vsel %vm4447_vm15, %v4353_v41, %v696_v30  ;;  %v704_v14 = vor.u32 1.1754944e-38, %v703_v7 }
 0x1d9   :  { %v1032_v25 = vpop.xlane.xlu1 %1031  ;;  %v384_v38 = vpop.xlane.xlu0 %383  ;;  %v685_v42 = vsel %vm4422_vm11, %v4360_v13, %v681_v23  ;;  %vm1321_vm1 = vweird.f32 %v4296_v46  ;;  %v1304_v41 = vmul.f32 %v4293_v54, %v1303_v50  ;;  %vm1322_vm3 = vweird.f32 %v4343_v3 }
 0x1da   :  { %v3551_v40 = vpop.eup %3550  ;;  %3560 = vrcp.f32 %v4416_v39  ;;  %v3357_v44 = vmul.f32 -1.442695, %v1032_v25  ;;  %v3343_v63 = vmul.f32 -1.442695, %v384_v38  ;;  %v381_v49 = vpop.xlane.xlu2 %380  ;;  %v690_v51 = vsel %vm4404_vm9, %v689_v27, %v685_v42  ;;  %v3641_v27 = vld [vmem:[#allocation2 + $0xe8] sm:$0xff]  ;;  %vm1323_vm4 = vmor %vm1321_vm1, %vm1322_vm3 }
 0x1db   :  { %v4457_v16 = vpop.eup %3552  ;;  %v4459_v35 = vadd.f32 1.0, %v3551_v40  ;;  %v3342_v52 = vmul.f32 -1.442695, %v381_v49  ;;  %v4470_v37 = vmul.f32 %v3640_v20, %v690_v51  ;;  %v4472_v25 = vmul.f32 %v3641_v27, %v690_v51  ;;  %v3643_v51 = vld [vmem:[#allocation2 + $0xf8] sm:$0xff] }
 0x1dc   :  { %v3555_v23 = vpop.eup %3554  ;;  %v4468_v45 = vmul.f32 %v4457_v16, %v4383_v48  ;;  %3562 = vpow2.f32 %v3357_v44  ;;  %v705_v7 = vsel %vm4438_vm14, %v704_v14, %v700_v59  ;;  %v2047_v40 = vmax.f32 %v4371_v17, %v4357_v11  ;;  %v3642_v44 = vld [vmem:[#allocation2 + $0xf0] sm:$0xff] }
 0x1dd   :  { %6706 = vst [vmem:[#allocation18_spill] sm:$0xff] %v4470_v37  ;;  %v4475_v38 = vpop.eup %3556  ;;  %3564 = vrcp.f32 %v4459_v35  ;;  %v4478_v22 = vadd.f32 1.0, %v3555_v23  ;;  %v4491_v49 = vmul.f32 %v3642_v44, %v705_v7  ;;  %v4496_v5 = vmul.f32 %v3643_v51, %v705_v7 }
 0x1de   :  { %6707 = vst [vmem:[#allocation19_spill] sm:$0xff] %v4472_v25  ;;  %v3559_v42 = vpop.eup %3558  ;;  %v4487_v30 = vmul.f32 %v4475_v38, %v4392_v36  ;;  %3566 = vpow2.f32 %v3343_v63  ;;  %v1305_v50 = vadd.f32 %v4293_v54, %v1304_v41  ;;  %v1273_v59 = vsub.f32 1.0, %v4402_v21 }
 0x1df   :  { %6708 = vst [vmem:[#allocation20_spill] sm:$0xff] %v4491_v49  ;;  %3568 = vrcp.f32 %v4478_v22  ;;  %v4494_v43 = vadd.f32 1.0, %v3559_v42  ;;  %v2068_v14 = vmax.f32 %v4373_v29, %v4367_v24  ;;  %v1453_v63 = vpack.c.bf16 %v4491_v49, %v4470_v37 }
 0x1e0   :  { %6709 = vst [vmem:[#allocation21_spill] sm:$0xff] %v4496_v5  ;;  %v4499_v13 = vpop.eup %3560  ;;  %3570 = vpow2.f32 %v3342_v52  ;;  %v1454_v7 = vpack.c.bf16 %v4496_v5, %v4472_v25  ;;  %v1309_v41 = vsel %vm1308_vm2, %v4293_v54, %v1305_v50  ;;  %v1319_v42 = vmul.f32 %v4343_v3, %v1318_v62 }
 0x1e1   :  { %v4517_v52 = vmul.f32 %v4499_v13, %v4416_v39  ;;  %1553 = vmatpush.bf16.msra.mxu0 %v1453_v63  ;;  %3572 = vrcp.f32 %v4494_v43  ;;  %v1314_v63 = vsel %vm4453_vm0, %v4325_v10, %v1309_v41  ;;  %v1023_v54 = vpop.xlane.xlu1 %1022  ;;  %v375_v2 = vpop.xlane.xlu0 %374  ;;  %vm1326_vm5 = vcmp.eq.f32.partialorder %v1325_v58, 8.507059e+37 }
 0x1e2   :  { %v3563_v21 = vpop.eup %3562  ;;  %1642 = vmatpush.bf16.msra.mxu1 %v1454_v7  ;;  %v1328_v6 = vor.u32 1.1754944e-38, %v1327_v33  ;;  %v4557_v51 = vmul.f32 %v3644_v18, %v1314_v63  ;;  %v1026_v62 = vpop.xlane.xlu2 %1025  ;;  %v3354_v20 = vmul.f32 -1.442695, %v1023_v54  ;;  %v3340_v58 = vmul.f32 -1.442695, %v375_v2  ;;  %v3647_v18 = vld [vmem:[#allocation2 + $0x1d8] sm:$0xff] }
 0x1e3   :  { %v4524_v44 = vpop.eup %3564  ;;  %v4528_v56 = vadd.f32 1.0, %v3563_v21  ;;  %v1320_v21 = vadd.f32 %v4343_v3, %v1319_v42  ;;  %v3646_v42 = vld [vmem:[#allocation2 + $0x1d0] sm:$0xff]  ;;  %v1274_v54 = vmul.f32 %v4381_v55, %v1273_v59  ;;  %vm1276_vm6 = vweird.f32 %v4329_v0 }
 0x1e4   :  { %v3567_v50 = vpop.eup %3566  ;;  %v4535_v53 = vmul.f32 %v4524_v44, %v4459_v35  ;;  %6710 = vst [vmem:[#allocation22_spill] sm:$0xff] %v4557_v51  ;;  %v4579_v2 = vmax.f32 %v2047_v40, %v4557_v51  ;;  %vm1277_vm7 = vweird.f32 %v4381_v55  ;;  %vm1291_vm10 = vweird.f32 %v4345_v4 }
 0x1e5   :  { %v4542_v7 = vpop.eup %3568  ;;  %3574 = vrcp.f32 %v4528_v56  ;;  %v4545_v10 = vadd.f32 1.0, %v3567_v50  ;;  %v1324_v31 = vsel %vm1323_vm4, %v4343_v3, %v1320_v21  ;;  %v3645_v50 = vld [vmem:[#allocation2 + $0x1c8] sm:$0xff]  ;;  %v1275_v40 = vadd.f32 %v4381_v55, %v1274_v54  ;;  %vm4599_vm8 = vmor %vm1276_vm6, %vm1277_vm7 }
 0x1e6   :  { %v3571_v41 = vpop.eup %3570  ;;  %v4559_v1 = vmul.f32 %v3645_v50, %v1314_v63  ;;  %v1329_v23 = vsel %vm1326_vm5, %v1328_v6, %v1324_v31  ;;  %v4566_v33 = vmul.f32 %v4542_v7, %v4478_v22  ;;  %v3355_v31 = vmul.f32 -1.442695, %v1026_v62 }
 0x1e7   :  { %v4561_v27 = vadd.f32 1.0, %v3571_v41  ;;  %v4568_v3 = vmul.f32 %v3646_v42, %v1329_v23  ;;  %v4570_v21 = vmul.f32 %v3647_v18, %v1329_v23  ;;  %v4572_v63 = vpop.eup %3572  ;;  %3576 = vrcp.f32 %v4545_v10 }
 0x1e8   :  { %6711 = vst [vmem:[#allocation23_spill] sm:$0xff] %v4559_v1  ;;  %v4586_v23 = vmax.f32 %v2068_v14, %v4559_v1  ;;  %v4597_v59 = vmul.f32 %v4572_v63, %v4494_v43  ;;  %v1280_v62 = vand.u32 2147483647, %v4329_v0  ;;  %v1282_v50 = vand.u32 2147483648, %v4329_v0 }
 0x1e9   :  { %6712 = vst [vmem:[#allocation24_spill] sm:$0xff] %v4568_v3  ;;  %3578 = vrcp.f32 %v4561_v27  ;;  %v1451_v6 = vpack.c.bf16 %v4568_v3, %v4557_v51  ;;  %v1452_v42 = vpack.c.bf16 %v4570_v21, %v4559_v1  ;;  %v1279_v18 = vsel %vm4599_vm8, %v4381_v55, %v1275_v40  ;;  %v3649_v51 = vld [vmem:[#allocation2 + $0x1a8] sm:$0xff] }
 0x1ea   :  { %6713 = vst [vmem:[#allocation25_spill] sm:$0xff] %v4570_v21  ;;  %3580 = vpow2.f32 %v3354_v20  ;;  %vm1281_vm9 = vcmp.eq.f32.partialorder %v1280_v62, 8.507059e+37  ;;  %v1283_v29 = vor.u32 1.1754944e-38, %v1282_v50  ;;  %vm1292_vm11 = vweird.f32 %v4397_v26 }
 0x1eb   :  { %v4589_v41 = vpop.eup %3574  ;;  %1732 = vmatpush.bf16.msra.mxu2 %v1451_v6  ;;  %3582 = vpow2.f32 %v3340_v58  ;;  %1821 = vmatpush.bf16.msra.mxu3 %v1452_v42  ;;  %v6716_v58 = vsub.f32 1.0, %v4430_v47  ;;  %v378_v6 = vpop.xlane.xlu1 %377  ;;  %v1297_v55 = vand.u32 2147483648, %v4345_v4  ;;  %v2049_v14 = vmax.f32 %v4579_v2, %v4568_v3  ;;  %vm4628_vm12 = vmor %vm1291_vm10, %vm1292_vm11 }
 0x1ec   :  { %v4607_v20 = vmul.f32 %v4589_v41, %v4528_v56  ;;  %3584 = vpow2.f32 %v3355_v31  ;;  %v1295_v31 = vand.u32 2147483647, %v4345_v4  ;;  %v1284_v62 = vsel %vm1281_vm9, %v1283_v29, %v1279_v18  ;;  %v3648_v29 = vld [vmem:[#allocation2 + $0x1a0] sm:$0xff] }
 0x1ed   :  { %v1289_v54 = vmul.f32 %v4397_v26, %v6716_v58  ;;  %v4617_v0 = vpop.eup %3576  ;;  %v3341_v58 = vmul.f32 -1.442695, %v378_v6  ;;  %v2070_v4 = vmax.f32 %v4586_v23, %v4570_v21  ;;  %v1298_v17 = vor.u32 1.1754944e-38, %v1297_v55  ;;  %v1017_v6 = vpop.xlane.xlu2 %1016 }
 0x1ee   :  { %vm1296_vm13 = vcmp.eq.f32.partialorder %v1295_v31, 8.507059e+37  ;;  %v4640_v18 = vmul.f32 %v3648_v29, %v1284_v62  ;;  %v4644_v23 = vmul.f32 %v3649_v51, %v1284_v62  ;;  %v6723_v51 = vsub.f32 1.0, %v4411_v19 }
 0x1ef   :  { %v1290_v42 = vadd.f32 %v4397_v26, %v1289_v54  ;;  %v4623_v47 = vpop.eup %3578  ;;  %v1020_v54 = vpop.xlane.xlu0 %1019  ;;  %3586 = vpow2.f32 %v3341_v58  ;;  %vm652_vm14 = vweird.f32 %v4338_v60  ;;  %vm653_vm15 = vweird.f32 %v4389_v8 }
 0x1f0   :  { %v3581_v46 = vpop.eup %3580  ;;  %6719 = vst [vmem:[#allocation26_spill] sm:$0xff] %v4640_v18  ;;  %v3353_v21 = vmul.f32 -1.442695, %v1020_v54  ;;  %v4663_v62 = vmul.f32 %v4623_v47, %v4561_v27  ;;  %v656_v54 = vand.u32 2147483647, %v4338_v60  ;;  %v4679_v29 = vmax.f32 %v2070_v4, %v4644_v23  ;;  %vm4683_vm0 = vmor %vm652_vm14, %vm653_vm15 }
 0x1f1   :  { %v1294_v40 = vsel %vm4628_vm12, %v4397_v26, %v1290_v42  ;;  %v3583_v11 = vpop.eup %3582  ;;  %v4638_v2 = vadd.f32 1.0, %v3581_v46  ;;  %6720 = vst [vmem:[#allocation27_spill] sm:$0xff] %v4644_v23  ;;  %v4648_v26 = vmul.f32 %v4617_v0, %v4545_v10  ;;  %v3650_v42 = vld [vmem:[#allocation2 + $0x1b0] sm:$0xff]  ;;  %vm668_vm1 = vweird.f32 %v4457_v16 }
 0x1f2   :  { %v3585_v3 = vpop.eup %3584  ;;  %v4642_v1 = vadd.f32 1.0, %v3583_v11  ;;  %v1299_v24 = vsel %vm1296_vm13, %v1298_v17, %v1294_v40  ;;  %v3651_v11 = vld [vmem:[#allocation2 + $0x1b8] sm:$0xff]  ;;  %v3352_v17 = vmul.f32 -1.442695, %v1017_v6  ;;  %v650_v40 = vmul.f32 %v4389_v8, %v6723_v51 }
 0x1f3   :  { %3588 = vrcp.f32 %v4638_v2  ;;  %v4651_v46 = vadd.f32 1.0, %v3585_v3  ;;  %v4653_v31 = vmul.f32 %v3650_v42, %v1299_v24  ;;  %v4656_v55 = vmul.f32 %v3651_v11, %v1299_v24  ;;  %v369_v9 = vpop.xlane.xlu1 %368 }
 0x1f4   :  { %3590 = vrcp.f32 %v4642_v1  ;;  %v4667_v3 = vmax.f32 %v2049_v14, %v4640_v18  ;;  %v651_v19 = vadd.f32 %v4389_v8, %v650_v40  ;;  %v658_v14 = vand.u32 2147483648, %v4338_v60 }
 0x1f5   :  { %6721 = vst [vmem:[#allocation28_spill] sm:$0xff] %v4653_v31  ;;  %3592 = vrcp.f32 %v4651_v46  ;;  %v1447_v50 = vpack.c.bf16 %v4653_v31, %v4640_v18  ;;  %v1448_v24 = vpack.c.bf16 %v4656_v55, %v4644_v23  ;;  %v3587_v58 = vpop.eup %3586  ;;  %v6726_v42 = vsub.f32 1.0, %v4468_v45  ;;  %v372_v28 = vpop.xlane.xlu2 %371 }
 0x1f6   :  { %6722 = vst [vmem:[#allocation29_spill] sm:$0xff] %v4656_v55  ;;  %3594 = vpow2.f32 %v3353_v21  ;;  %v4681_v6 = vadd.f32 1.0, %v3587_v58  ;;  %v655_v60 = vsel %vm4683_vm0, %v4389_v8, %v651_v19  ;;  %v659_v4 = vor.u32 1.1754944e-38, %v658_v14 }
 0x1f7   :  { %1733 = vmatpush.bf16.msra.mxu2 %v1447_v50  ;;  %3596 = vpow2.f32 %v3352_v17  ;;  %1822 = vmatpush.bf16.msra.mxu3 %v1448_v24  ;;  %v665_v11 = vmul.f32 %v4457_v16, %v6726_v42  ;;  %vm667_vm2 = vweird.f32 %v4383_v48  ;;  %v671_v51 = vand.u32 2147483647, %v4383_v48  ;;  %v1011_v32 = vpop.xlane.xlu0 %1010 }
 0x1f8   :  { %3598 = vrcp.f32 %v4681_v6  ;;  %vm657_vm3 = vcmp.eq.f32.partialorder %v656_v54, 8.507059e+37  ;;  %v673_v50 = vand.u32 2147483648, %v4383_v48  ;;  %vm669_vm4 = vmor %vm667_vm2, %vm668_vm1  ;;  %v6727_v14 = vsub.f32 1.0, %v4517_v52 }
 0x1f9   :  { %v4691_v17 = vpop.eup %3588  ;;  %v666_v45 = vadd.f32 %v4457_v16, %v665_v11  ;;  %v660_v19 = vsel %vm657_vm3, %v659_v4, %v655_v60  ;;  %vm672_vm5 = vcmp.eq.f32.partialorder %v671_v51, 8.507059e+37  ;;  %v3654_v4 = vld [vmem:[#allocation2 + $0xc8] sm:$0xff]  ;;  %vm1247_vm6 = vweird.f32 %v4499_v13 }
 0x1fa   :  { %v4698_v40 = vpop.eup %3590  ;;  %v1244_v21 = vmul.f32 %v4499_v13, %v6727_v14  ;;  %v4714_v54 = vmul.f32 %v4691_v17, %v4638_v2  ;;  %v674_v58 = vor.u32 1.1754944e-38, %v673_v50  ;;  %v4738_v52 = vmul.f32 %v3654_v4, %v660_v19 }
 0x1fb   :  { %v4703_v24 = vpop.eup %3592  ;;  %v4718_v48 = vmul.f32 %v4698_v40, %v4642_v1  ;;  %v670_v11 = vsel %vm669_vm4, %v4457_v16, %v666_v45  ;;  %v4733_v16 = vmul.f32 %v3652_v34, %v660_v19  ;;  %v3653_v45 = vld [vmem:[#allocation2 + $0xd0] sm:$0xff]  ;;  %vm1246_vm7 = vweird.f32 %v4416_v39 }
 0x1fc   :  { %v3595_v42 = vpop.eup %3594  ;;  %v4729_v8 = vmul.f32 %v4703_v24, %v4651_v46  ;;  %v675_v18 = vsel %vm672_vm5, %v674_v58, %v670_v11  ;;  %6730 = vst [vmem:[#allocation32_spill] sm:$0xff] %v4738_v52  ;;  %v1245_v51 = vadd.f32 %v4499_v13, %v1244_v21  ;;  %v3655_v58 = vld [vmem:[#allocation2 + $0xd8] sm:$0xff]  ;;  %v1250_v19 = vand.u32 2147483647, %v4416_v39  ;;  %vm4762_vm8 = vmor %vm1246_vm7, %vm1247_vm6 }
 0x1fd   :  { %v3597_v60 = vpop.eup %3596  ;;  %v4725_v14 = vadd.f32 1.0, %v3595_v42  ;;  %6728 = vst [vmem:[#allocation30_spill] sm:$0xff] %v4733_v16  ;;  %v4736_v50 = vmul.f32 %v3653_v45, %v675_v18  ;;  %v4745_v11 = vmul.f32 %v3655_v58, %v675_v18  ;;  %v6732_v4 = vmax.f32 %v4491_v49, %v4470_v37 }
 0x1fe   :  { %v4731_v23 = vadd.f32 1.0, %v3597_v60  ;;  %v4741_v42 = vpop.eup %3598  ;;  %v1252_v60 = vand.u32 2147483648, %v4416_v39  ;;  %v1249_v37 = vsel %vm4762_vm8, %v4499_v13, %v1245_v51  ;;  %vm1262_vm9 = vweird.f32 %v4475_v38 }
 0x1ff   :  { %3600 = vrcp.f32 %v4725_v14  ;;  %6729 = vst [vmem:[#allocation31_spill] sm:$0xff] %v4736_v50  ;;  %v1449_v34 = vpack.c.bf16 %v4736_v50, %v4733_v16  ;;  %v4758_v45 = vmax.f32 %v6732_v4, %v4733_v16  ;;  %v1450_v18 = vpack.c.bf16 %v4745_v11, %v4738_v52 }
 0x200   :  { %6731 = vst [vmem:[#allocation33_spill] sm:$0xff] %v4745_v11  ;;  %3602 = vrcp.f32 %v4731_v23  ;;  %v4769_v21 = vmul.f32 %v4741_v42, %v4681_v6  ;;  %v6735_v4 = vmax.f32 %v4496_v5, %v4472_v25  ;;  %v6736_v16 = vsub.f32 1.0, %v4487_v30 }
 0x201   :  { %1554 = vmatpush.bf16.msra.mxu0 %v1449_v34  ;;  %1643 = vmatpush.bf16.msra.mxu1 %v1450_v18  ;;  %v1253_v57 = vor.u32 1.1754944e-38, %v1252_v60  ;;  %v1265_v34 = vand.u32 2147483647, %v4392_v36  ;;  %v1267_v12 = vand.u32 2147483648, %v4392_v36  ;;  %vm1251_vm10 = vcmp.eq.f32.partialorder %v1250_v19, 8.507059e+37  ;;  %v3656_v19 = vld [vmem:[#allocation2 + $0x180] sm:$0xff] }
 0x202   :  { %v4775_v49 = vmax.f32 %v6735_v4, %v4738_v52  ;;  %v1259_v39 = vmul.f32 %v4475_v38, %v6736_v16  ;;  %vm1261_vm11 = vweird.f32 %v4392_v36  ;;  %v3338_v13 = vmul.f32 -1.442695, %v369_v9  ;;  %v3657_v36 = vld [vmem:[#allocation2 + $0x188] sm:$0xff] }
 0x203   :  { %v1254_v30 = vsel %vm1251_vm10, %v1253_v57, %v1249_v37  ;;  %vm1263_vm12 = vmor %vm1261_vm11, %vm1262_vm9  ;;  %v1268_v16 = vor.u32 1.1754944e-38, %v1267_v12  ;;  %v3350_v51 = vmul.f32 -1.442695, %v1011_v32  ;;  %v3339_v18 = vmul.f32 -1.442695, %v372_v28 }
 0x204   :  { %v1260_v4 = vadd.f32 %v4475_v38, %v1259_v39  ;;  %vm1266_vm13 = vcmp.eq.f32.partialorder %v1265_v34, 8.507059e+37  ;;  %v4797_v52 = vmul.f32 %v3656_v19, %v1254_v30  ;;  %v4799_v9 = vmul.f32 %v3657_v36, %v1254_v30  ;;  %v1014_v36 = vpop.xlane.xlu1 %1013 }
 0x205   :  { %v4786_v5 = vpop.eup %3600  ;;  %3604 = vpow2.f32 %v3338_v13  ;;  %v6739_v57 = vsub.f32 1.0, %v4535_v53  ;;  %v2007_v28 = vmax.f32 %v4758_v45, %v4736_v50  ;;  %vm622_vm14 = vweird.f32 %v4459_v35 }
 0x206   :  { %v4790_v60 = vpop.eup %3602  ;;  %v4794_v58 = vmul.f32 %v4786_v5, %v4725_v14  ;;  %v1264_v25 = vsel %vm1263_vm12, %v4475_v38, %v1260_v4  ;;  %6737 = vst [vmem:[#allocation34_spill] sm:$0xff] %v4797_v52  ;;  %v3658_v38 = vld [vmem:[#allocation2 + $0x190] sm:$0xff]  ;;  %v3659_v4 = vld [vmem:[#allocation2 + $0x198] sm:$0xff]  ;;  %3606 = vpow2.f32 %v3350_v51  ;;  %vm623_vm15 = vweird.f32 %v4524_v44 }
 0x207   :  { %v1269_v39 = vsel %vm1266_vm13, %v1268_v16, %v1264_v25  ;;  %6738 = vst [vmem:[#allocation35_spill] sm:$0xff] %v4799_v9  ;;  %v620_v32 = vmul.f32 %v4524_v44, %v6739_v57  ;;  %v4813_v25 = vmul.f32 %v4790_v60, %v4731_v23  ;;  %3608 = vpow2.f32 %v3339_v18  ;;  %vm4825_vm0 = vmor %vm622_vm14, %vm623_vm15  ;;  %v366_v57 = vpop.xlane.xlu2 %365 }
 0x208   :  { %v4809_v34 = vmul.f32 %v3658_v38, %v1269_v39  ;;  %v4815_v13 = vmul.f32 %v3659_v4, %v1269_v39  ;;  %v626_v51 = vand.u32 2147483647, %v4459_v35  ;;  %v628_v39 = vand.u32 2147483648, %v4459_v35 }
 0x209   :  { %v621_v53 = vadd.f32 %v4524_v44, %v620_v32  ;;  %v6742_v32 = vsub.f32 1.0, %v4597_v59  ;;  %vm637_vm1 = vweird.f32 %v4494_v43  ;;  %vm638_vm2 = vweird.f32 %v4572_v63 }
 0x20a   :  { %v1443_v30 = vpack.c.bf16 %v4809_v34, %v4797_v52  ;;  %v1444_v16 = vpack.c.bf16 %v4815_v13, %v4799_v9  ;;  %vm627_vm3 = vcmp.eq.f32.partialorder %v626_v51, 8.507059e+37  ;;  %v629_v45 = vor.u32 1.1754944e-38, %v628_v39  ;;  %vm639_vm4 = vmor %vm637_vm1, %vm638_vm2 }
 0x20b   :  { %v625_v18 = vsel %vm4825_vm0, %v4524_v44, %v621_v53  ;;  %v635_v38 = vmul.f32 %v4572_v63, %v6742_v32  ;;  %v3605_v4 = vpop.eup %3604  ;;  %v641_v35 = vand.u32 2147483647, %v4494_v43  ;;  %v3351_v53 = vmul.f32 -1.442695, %v1014_v36 }
 0x20c   :  { %1734 = vmatpush.bf16.msra.mxu2 %v1443_v30  ;;  %1823 = vmatpush.bf16.msra.mxu3 %v1444_v16  ;;  %v643_v30 = vand.u32 2147483648, %v4494_v43  ;;  %v4841_v12 = vadd.f32 1.0, %v3605_v4  ;;  %v3337_v59 = vmul.f32 -1.442695, %v366_v57  ;;  %v3607_v19 = vpop.eup %3606  ;;  %v630_v32 = vsel %vm627_vm3, %v629_v45, %v625_v18  ;;  %v3660_v4 = vld [vmem:[#allocation2 + $0xa0] sm:$0xff]  ;;  %v3661_v57 = vld [vmem:[#allocation2 + $0xa8] sm:$0xff] }
 0x20d   :  { %v636_v44 = vadd.f32 %v4572_v63, %v635_v38  ;;  %vm642_vm5 = vcmp.eq.f32.partialorder %v641_v35, 8.507059e+37  ;;  %v6743_v50 = vsub.f32 1.0, %v4663_v62  ;;  %v3609_v51 = vpop.eup %3608  ;;  %v4848_v39 = vadd.f32 1.0, %v3607_v19  ;;  %v3662_v35 = vld [vmem:[#allocation2 + $0xb0] sm:$0xff] }
 0x20e   :  { %v644_v37 = vor.u32 1.1754944e-38, %v643_v30  ;;  %3610 = vrcp.f32 %v4841_v12  ;;  %v4851_v38 = vmul.f32 %v3660_v4, %v630_v32  ;;  %v4853_v36 = vadd.f32 1.0, %v3609_v51  ;;  %v3663_v30 = vld [vmem:[#allocation2 + $0xb8] sm:$0xff] }
 0x20f   :  { %v590_v16 = vmul.f32 %v4623_v47, %v6743_v50  ;;  %v640_v43 = vsel %vm639_vm4, %v4572_v63, %v636_v44  ;;  %v4855_v18 = vmul.f32 %v3661_v57, %v630_v32  ;;  %3612 = vpow2.f32 %v3351_v53 }
 0x210   :  { %v645_v45 = vsel %vm642_vm5, %v644_v37, %v640_v43  ;;  %v6744_v62 = vmax.f32 %v4667_v3, %v4653_v31  ;;  %3614 = vrcp.f32 %v4848_v39  ;;  %v6746_v53 = vmax.f32 %v4679_v29, %v4656_v55 }
 0x211   :  { %v4864_v63 = vmul.f32 %v3662_v35, %v645_v45  ;;  %v4866_v44 = vmul.f32 %v3663_v30, %v645_v45  ;;  %3616 = vrcp.f32 %v4853_v36  ;;  %v591_v3 = vadd.f32 %v4623_v47, %v590_v16 }
 0x212   :  { %v4861_v50 = vmax.f32 %v6744_v62, %v4797_v52  ;;  %v4873_v19 = vmax.f32 %v6746_v53, %v4799_v9  ;;  %v4878_v32 = vmax.f32 %v2007_v28, %v4851_v38  ;;  %3618 = vpow2.f32 %v3337_v59  ;;  %v3665_v28 = vld [vmem:[#allocation2 + $0x88] sm:$0xff]  ;;  %v3671_v52 = vld [vmem:[#allocation2 + $0x178] sm:$0xff] }
 0x213   :  { %6745 = vst [vmem:[#allocation36_spill] sm:$0xff] %v4866_v44  ;;  %v1445_v51 = vpack.c.bf16 %v4864_v63, %v4851_v38  ;;  %v1446_v43 = vpack.c.bf16 %v4866_v44, %v4855_v18  ;;  %vm592_vm6 = vweird.f32 %v4561_v27  ;;  %vm593_vm7 = vweird.f32 %v4623_v47 }
 0x214   :  { %v596_v29 = vand.u32 2147483647, %v4561_v27  ;;  %v598_v4 = vand.u32 2147483648, %v4561_v27  ;;  %v4888_v45 = vpop.eup %3610  ;;  %vm4892_vm8 = vmor %vm592_vm6, %vm593_vm7  ;;  %v6749_v59 = vsub.f32 1.0, %v4648_v26  ;;  %vm608_vm9 = vweird.f32 %v4617_v0 }
 0x215   :  { %1555 = vmatpush.bf16.msra.mxu0 %v1445_v51  ;;  %1644 = vmatpush.bf16.msra.mxu1 %v1446_v43  ;;  %v611_v62 = vand.u32 2147483647, %v4545_v10  ;;  %v3613_v27 = vpop.eup %3612  ;;  %v595_v30 = vsel %vm4892_vm8, %v4623_v47, %v591_v3  ;;  %vm607_vm10 = vweird.f32 %v4545_v10  ;;  %v2009_v35 = vmax.f32 %v4878_v32, %v4864_v63 }
 0x216   :  { %v605_v57 = vmul.f32 %v4617_v0, %v6749_v59  ;;  %v599_v53 = vor.u32 1.1754944e-38, %v598_v4  ;;  %v4907_v51 = vpop.eup %3614  ;;  %v4909_v26 = vadd.f32 1.0, %v3613_v27  ;;  %vm597_vm11 = vcmp.eq.f32.partialorder %v596_v29, 8.507059e+37  ;;  %vm609_vm12 = vmor %vm607_vm10, %vm608_vm9 }
 0x217   :  { %v613_v59 = vand.u32 2147483648, %v4545_v10  ;;  %v4913_v37 = vpop.eup %3616  ;;  %v6750_v47 = vmax.f32 %v4775_v49, %v4745_v11  ;;  %v6751_v29 = vsub.f32 1.0, %v4566_v33  ;;  %v4928_v10 = vmul.f32 %v4888_v45, %v4841_v12  ;;  %v3664_v33 = vld [vmem:[#allocation2 + $0x80] sm:$0xff] }
 0x218   :  { %v606_v43 = vadd.f32 %v4617_v0, %v605_v57  ;;  %v600_v4 = vsel %vm597_vm11, %v599_v53, %v595_v30  ;;  %v3619_v57 = vpop.eup %3618  ;;  %vm612_vm13 = vcmp.eq.f32.partialorder %v611_v62, 8.507059e+37  ;;  %v4933_v49 = vmul.f32 %v4907_v51, %v4848_v39 }
 0x219   :  { %v2029_v3 = vmax.f32 %v6750_v47, %v4855_v18  ;;  %v1214_v16 = vmul.f32 %v4542_v7, %v6751_v29  ;;  %v614_v27 = vor.u32 1.1754944e-38, %v613_v59  ;;  %3620 = vrcp.f32 %v4909_v26  ;;  %v3666_v59 = vld [vmem:[#allocation2 + $0x90] sm:$0xff] }
 0x21a   :  { %v610_v32 = vsel %vm609_vm12, %v4617_v0, %v606_v43  ;;  %v4936_v30 = vadd.f32 1.0, %v3619_v57  ;;  %v4938_v53 = vmul.f32 %v3664_v33, %v600_v4  ;;  %v4942_v47 = vmul.f32 %v4913_v37, %v4853_v36  ;;  %v3667_v33 = vld [vmem:[#allocation2 + $0x98] sm:$0xff] }
 0x21b   :  { %v615_v29 = vsel %vm612_vm13, %v614_v27, %v610_v32  ;;  %v4944_v0 = vmul.f32 %v3665_v28, %v600_v4  ;;  %v1215_v62 = vadd.f32 %v4542_v7, %v1214_v16  ;;  %v2030_v43 = vmax.f32 %v2029_v3, %v4866_v44 }
 0x21c   :  { %3622 = vrcp.f32 %v4936_v30  ;;  %v4949_v57 = vmul.f32 %v3666_v59, %v615_v29  ;;  %vm1216_vm14 = vweird.f32 %v4478_v22  ;;  %v4952_v55 = vmul.f32 %v3667_v33, %v615_v29 }
 0x21d   :  { %vm1217_vm15 = vweird.f32 %v4542_v7  ;;  %v1220_v32 = vand.u32 2147483647, %v4478_v22  ;;  %v1222_v28 = vand.u32 2147483648, %v4478_v22  ;;  %v6754_v29 = vsub.f32 1.0, %v4607_v20 }
 0x21e   :  { %v1441_v16 = vpack.c.bf16 %v4949_v57, %v4938_v53  ;;  %vm4961_vm0 = vmor %vm1216_vm14, %vm1217_vm15  ;;  %v4970_v31 = vmax.f32 %v2009_v35, %v4938_v53  ;;  %v1442_v22 = vpack.c.bf16 %v4952_v55, %v4944_v0  ;;  %vm1231_vm1 = vweird.f32 %v4528_v56  ;;  %v3668_v35 = vld [vmem:[#allocation2 + $0x160] sm:$0xff] }
 0x21f   :  { %v1229_v59 = vmul.f32 %v4589_v41, %v6754_v29  ;;  %v1219_v3 = vsel %vm4961_vm0, %v4542_v7, %v1215_v62  ;;  %v4977_v4 = vpop.eup %3620  ;;  %v1223_v11 = vor.u32 1.1754944e-38, %v1222_v28  ;;  %vm1232_vm2 = vweird.f32 %v4589_v41 }
 0x220   :  { %1556 = vmatpush.bf16.msra.mxu0 %v1441_v16  ;;  %1645 = vmatpush.bf16.msra.mxu1 %v1442_v22  ;;  %vm1221_vm3 = vcmp.eq.f32.partialorder %v1220_v32, 8.507059e+37  ;;  %vm4982_vm4 = vmor %vm1231_vm1, %vm1232_vm2  ;;  %v1235_v29 = vand.u32 2147483647, %v4528_v56  ;;  %v1237_v7 = vand.u32 2147483648, %v4528_v56  ;;  %v6757_v62 = vsub.f32 1.0, %v4714_v54 }
 0x221   :  { %v1230_v20 = vadd.f32 %v4589_v41, %v1229_v59  ;;  %v4994_v27 = vmax.f32 %v2030_v43, %v4944_v0  ;;  %v1224_v59 = vsel %vm1221_vm3, %v1223_v11, %v1219_v3  ;;  %vm1187_vm5 = vweird.f32 %v4691_v17 }
 0x222   :  { %v1184_v28 = vmul.f32 %v4691_v17, %v6757_v62  ;;  %v4991_v16 = vpop.eup %3622  ;;  %v5002_v22 = vmul.f32 %v4977_v4, %v4909_v26  ;;  %v1238_v54 = vor.u32 1.1754944e-38, %v1237_v7  ;;  %vm1186_vm6 = vweird.f32 %v4638_v2 }
 0x223   :  { %v1234_v32 = vsel %vm4982_vm4, %v4589_v41, %v1230_v20  ;;  %vm1236_vm7 = vcmp.eq.f32.partialorder %v1235_v29, 8.507059e+37  ;;  %v1190_v11 = vand.u32 2147483647, %v4638_v2  ;;  %v1192_v3 = vand.u32 2147483648, %v4638_v2  ;;  %vm5016_vm8 = vmor %vm1186_vm6, %vm1187_vm5  ;;  %v3670_v2 = vld [vmem:[#allocation2 + $0x168] sm:$0xff] }
 0x224   :  { %v1185_v43 = vadd.f32 %v4691_v17, %v1184_v28  ;;  %v5012_v41 = vmul.f32 %v4991_v16, %v4936_v30  ;;  %v1239_v20 = vsel %vm1236_vm7, %v1238_v54, %v1234_v32  ;;  %v5014_v62 = vmul.f32 %v3668_v35, %v1224_v59  ;;  %v3669_v28 = vld [vmem:[#allocation2 + $0x170] sm:$0xff]  ;;  %v3673_v54 = vld [vmem:[#allocation2 + $0x148] sm:$0xff] }
 0x225   :  { %v6760_v29 = vsub.f32 1.0, %v4729_v8  ;;  %v5023_v56 = vmul.f32 %v3669_v28, %v1239_v20  ;;  %v5025_v9 = vmul.f32 %v3670_v2, %v1224_v59  ;;  %v5027_v44 = vmul.f32 %v3671_v52, %v1239_v20 }
 0x226   :  { %v1189_v32 = vsel %vm5016_vm8, %v4691_v17, %v1185_v43  ;;  %v2032_v8 = vmax.f32 %v4994_v27, %v4952_v55  ;;  %v1193_v35 = vor.u32 1.1754944e-38, %v1192_v3  ;;  %vm1191_vm9 = vcmp.eq.f32.partialorder %v1190_v11, 8.507059e+37  ;;  %v3672_v11 = vld [vmem:[#allocation2 + $0x140] sm:$0xff] }
 0x227   :  { %v1199_v7 = vmul.f32 %v4703_v24, %v6760_v29  ;;  %v1439_v28 = vpack.c.bf16 %v5023_v56, %v5014_v62  ;;  %v1440_v59 = vpack.c.bf16 %v5027_v44, %v5025_v9  ;;  %vm1201_vm10 = vweird.f32 %v4651_v46 }
 0x228   :  { %v1194_v52 = vsel %vm1191_vm9, %v1193_v35, %v1189_v32  ;;  %vm1202_vm11 = vweird.f32 %v4703_v24  ;;  %v1205_v17 = vand.u32 2147483647, %v4651_v46  ;;  %v1207_v33 = vand.u32 2147483648, %v4651_v46 }
 0x229   :  { %v1200_v29 = vadd.f32 %v4703_v24, %v1199_v7  ;;  %v6761_v3 = vmax.f32 %v4861_v50, %v4809_v34  ;;  %1735 = vmatpush.bf16.msra.mxu2 %v1439_v28  ;;  %1824 = vmatpush.bf16.msra.mxu3 %v1440_v59  ;;  %vm1203_vm12 = vmor %vm1201_vm10, %vm1202_vm11  ;;  %v5049_v7 = vmul.f32 %v3672_v11, %v1194_v52  ;;  %v6762_v2 = vsub.f32 1.0, %v4718_v48 }
 0x22a   :  { %v1208_v46 = vor.u32 1.1754944e-38, %v1207_v33  ;;  %v5055_v43 = vmul.f32 %v3673_v54, %v1194_v52  ;;  %vm563_vm13 = vweird.f32 %v4698_v40  ;;  %vm1206_vm14 = vcmp.eq.f32.partialorder %v1205_v17, 8.507059e+37  ;;  %v3674_v33 = vld [vmem:[#allocation2 + $0x150] sm:$0xff] }
 0x22b   :  { %v2054_v20 = vmax.f32 %v6761_v3, %v5014_v62  ;;  %v560_v32 = vmul.f32 %v4698_v40, %v6762_v2  ;;  %v1204_v35 = vsel %vm1203_vm12, %v4703_v24, %v1200_v29  ;;  %vm562_vm15 = vweird.f32 %v4642_v1  ;;  %v3675_v2 = vld [vmem:[#allocation2 + $0x158] sm:$0xff] }
 0x22c   :  { %v566_v28 = vand.u32 2147483647, %v4642_v1  ;;  %v6763_v48 = vmax.f32 %v4873_v19, %v4815_v13  ;;  %v1209_v3 = vsel %vm1206_vm14, %v1208_v46, %v1204_v35  ;;  %vm5065_vm0 = vmor %vm562_vm15, %vm563_vm13  ;;  %v568_v54 = vand.u32 2147483648, %v4642_v1 }
 0x22d   :  { %v561_v50 = vadd.f32 %v4698_v40, %v560_v32  ;;  %v6766_v29 = vsub.f32 1.0, %v4769_v21  ;;  %v2055_v17 = vmax.f32 %v2054_v20, %v5023_v56  ;;  %v5074_v11 = vmul.f32 %v3674_v33, %v1209_v3 }
 0x22e   :  { %v2075_v59 = vmax.f32 %v6763_v48, %v5025_v9  ;;  %v5076_v32 = vmul.f32 %v3675_v2, %v1209_v3  ;;  %v569_v35 = vor.u32 1.1754944e-38, %v568_v54  ;;  %vm578_vm1 = vweird.f32 %v4741_v42  ;;  %v3676_v54 = vld [vmem:[#allocation2 + $0x60] sm:$0xff]  ;;  %v3677_v2 = vld [vmem:[#allocation2 + $0x68] sm:$0xff]  ;;  %v3679_v3 = vld [vmem:[#allocation2 + $0x78] sm:$0xff] }
 0x22f   :  { %v575_v52 = vmul.f32 %v4741_v42, %v6766_v29  ;;  %v565_v19 = vsel %vm5065_vm0, %v4698_v40, %v561_v50  ;;  %v581_v1 = vand.u32 2147483647, %v4681_v6  ;;  %v1435_v21 = vpack.c.bf16 %v5074_v11, %v5049_v7 }
 0x230   :  { %v1436_v20 = vpack.c.bf16 %v5076_v32, %v5055_v43  ;;  %vm567_vm2 = vcmp.eq.f32.partialorder %v566_v28, 8.507059e+37  ;;  %vm577_vm3 = vweird.f32 %v4681_v6  ;;  %v2076_v48 = vmax.f32 %v2075_v59, %v5027_v44 }
 0x231   :  { %v576_v46 = vadd.f32 %v4741_v42, %v575_v52  ;;  %v5091_v40 = vmax.f32 %v2055_v17, %v5049_v7  ;;  %v570_v50 = vsel %vm567_vm2, %v569_v35, %v565_v19  ;;  %vm5093_vm4 = vmor %vm577_vm3, %vm578_vm1  ;;  %v583_v24 = vand.u32 2147483648, %v4681_v6  ;;  %1736 = vmatpush.bf16.msra.mxu2 %v1435_v21  ;;  %v3678_v21 = vld [vmem:[#allocation2 + $0x70] sm:$0xff] }
 0x232   :  { %1825 = vmatpush.bf16.msra.mxu3 %v1436_v20  ;;  %vm582_vm5 = vcmp.eq.f32.partialorder %v581_v1, 8.507059e+37  ;;  %v5101_v29 = vmul.f32 %v3676_v54, %v570_v50  ;;  %v6769_v59 = vsub.f32 1.0, %v4813_v25  ;;  %vm1157_vm6 = vweird.f32 %v4790_v60 }
 0x233   :  { %v580_v28 = vsel %vm5093_vm4, %v4741_v42, %v576_v46  ;;  %v584_v17 = vor.u32 1.1754944e-38, %v583_v24  ;;  %v1160_v33 = vand.u32 2147483647, %v4731_v23  ;;  %v1162_v6 = vand.u32 2147483648, %v4731_v23 }
 0x234   :  { %v1154_v52 = vmul.f32 %v4790_v60, %v6769_v59  ;;  %v5109_v19 = vmul.f32 %v3677_v2, %v570_v50  ;;  %vm1156_vm7 = vweird.f32 %v4731_v23  ;;  %v6770_v35 = vsub.f32 1.0, %v4794_v58 }
 0x235   :  { %v585_v46 = vsel %vm582_vm5, %v584_v17, %v580_v28  ;;  %vm1158_vm8 = vmor %vm1156_vm7, %vm1157_vm6  ;;  %vm1161_vm9 = vcmp.eq.f32.partialorder %v1160_v33, 8.507059e+37  ;;  %v1163_v1 = vor.u32 1.1754944e-38, %v1162_v6  ;;  %vm1171_vm10 = vweird.f32 %v4725_v14 }
 0x236   :  { %v1155_v42 = vadd.f32 %v4790_v60, %v1154_v52  ;;  %v1169_v25 = vmul.f32 %v4786_v5, %v6770_v35  ;;  %v5117_v20 = vmul.f32 %v3678_v21, %v585_v46  ;;  %v5119_v50 = vmul.f32 %v3679_v3, %v585_v46  ;;  %v3680_v35 = vld [vmem:[#allocation2 + $0x120] sm:$0xff]  ;;  %v3682_v3 = vld [vmem:[#allocation2 + $0x130] sm:$0xff] }
 0x237   :  { %vm1172_vm11 = vweird.f32 %v4786_v5  ;;  %v1175_v58 = vand.u32 2147483647, %v4725_v14  ;;  %v1177_v28 = vand.u32 2147483648, %v4725_v14  ;;  %v2057_v59 = vmax.f32 %v5091_v40, %v5074_v11  ;;  %v3681_v14 = vld [vmem:[#allocation2 + $0x128] sm:$0xff] }
 0x238   :  { %v1159_v24 = vsel %vm1158_vm8, %v4790_v60, %v1155_v42  ;;  %v1170_v23 = vadd.f32 %v4786_v5, %v1169_v25  ;;  %v5129_v52 = vmax.f32 %v2076_v48, %v5055_v43  ;;  %v1437_v17 = vpack.c.bf16 %v5117_v20, %v5101_v29  ;;  %vm1173_vm12 = vmor %vm1171_vm10, %vm1172_vm11 }
 0x239   :  { %v1164_v54 = vsel %vm1161_vm9, %v1163_v1, %v1159_v24  ;;  %v1438_v60 = vpack.c.bf16 %v5119_v50, %v5109_v19  ;;  %v6771_v33 = vmax.f32 %v4970_v31, %v4949_v57  ;;  %v2033_v48 = vmax.f32 %v2032_v8, %v5109_v19 }
 0x23a   :  { %v1174_v2 = vsel %vm1173_vm12, %v4786_v5, %v1170_v23  ;;  %v1178_v42 = vor.u32 1.1754944e-38, %v1177_v28  ;;  %1557 = vmatpush.bf16.msra.mxu0 %v1437_v17  ;;  %vm1176_vm13 = vcmp.eq.f32.partialorder %v1175_v58, 8.507059e+37  ;;  %v5146_v25 = vmul.f32 %v3680_v35, %v1164_v54  ;;  %v3683_v23 = vld [vmem:[#allocation2 + $0x138] sm:$0xff] }
 0x23b   :  { %v2012_v6 = vmax.f32 %v6771_v33, %v5101_v29  ;;  %1646 = vmatpush.bf16.msra.mxu1 %v1438_v60  ;;  %v5148_v46 = vmul.f32 %v3681_v14, %v1164_v54  ;;  %v6772_v31 = vsub.f32 1.0, %v4928_v10  ;;  %vm533_vm14 = vweird.f32 %v4888_v45 }
 0x23c   :  { %v1179_v21 = vsel %vm1176_vm13, %v1178_v42, %v1174_v2  ;;  %v536_v27 = vand.u32 2147483647, %v4841_v12  ;;  %v538_v5 = vand.u32 2147483648, %v4841_v12  ;;  %v2034_v10 = vmax.f32 %v2033_v48, %v5119_v50 }
 0x23d   :  { %v530_v1 = vmul.f32 %v4888_v45, %v6772_v31  ;;  %v2013_v8 = vmax.f32 %v2012_v6, %v5117_v20  ;;  %v5157_v24 = vmul.f32 %v3682_v3, %v1179_v21  ;;  %v5159_v58 = vmul.f32 %v3683_v23, %v1179_v21 }
 0x23e   :  { %vm532_vm15 = vweird.f32 %v4841_v12  ;;  %vm537_vm0 = vcmp.eq.f32.partialorder %v536_v27, 8.507059e+37  ;;  %v6773_v28 = vsub.f32 1.0, %v4942_v47  ;;  %v539_v6 = vor.u32 1.1754944e-38, %v538_v5  ;;  %v3685_v27 = vld [vmem:[#allocation2 + $0x48] sm:$0xff] }
 0x23f   :  { %v531_v54 = vadd.f32 %v4888_v45, %v530_v1  ;;  %v1431_v60 = vpack.c.bf16 %v5157_v24, %v5146_v25  ;;  %v1432_v33 = vpack.c.bf16 %v5159_v58, %v5148_v46  ;;  %vm534_vm1 = vmor %vm532_vm15, %vm533_vm14  ;;  %vm547_vm2 = vweird.f32 %v4853_v36  ;;  %v3684_v1 = vld [vmem:[#allocation2 + $0x40] sm:$0xff] }
 0x240   :  { %v545_v17 = vmul.f32 %v4913_v37, %v6773_v28  ;;  %vm548_vm3 = vweird.f32 %v4913_v37  ;;  %v551_v47 = vand.u32 2147483647, %v4853_v36  ;;  %v553_v35 = vand.u32 2147483648, %v4853_v36 }
 0x241   :  { %v535_v48 = vsel %vm534_vm1, %v4888_v45, %v531_v54  ;;  %1737 = vmatpush.bf16.msra.mxu2 %v1431_v60  ;;  %1826 = vmatpush.bf16.msra.mxu3 %v1432_v33  ;;  %vm5178_vm4 = vmor %vm547_vm2, %vm548_vm3  ;;  %v6776_v14 = vsub.f32 1.0, %v5012_v41  ;;  %vm517_vm5 = vweird.f32 %v4936_v30  ;;  %vm518_vm7 = vweird.f32 %v4991_v16 }
 0x242   :  { %v546_v12 = vadd.f32 %v4913_v37, %v545_v17  ;;  %v540_v2 = vsel %vm537_vm0, %v539_v6, %v535_v48  ;;  %vm552_vm6 = vcmp.eq.f32.partialorder %v551_v47, 8.507059e+37  ;;  %v554_v3 = vor.u32 1.1754944e-38, %v553_v35  ;;  %vm5199_vm8 = vmor %vm517_vm5, %vm518_vm7 }
 0x243   :  { %v515_v31 = vmul.f32 %v4991_v16, %v6776_v14  ;;  %v5190_v21 = vmul.f32 %v3684_v1, %v540_v2  ;;  %v5192_v5 = vmul.f32 %v3685_v27, %v540_v2  ;;  %v521_v41 = vand.u32 2147483647, %v4936_v30 }
 0x244   :  { %v550_v45 = vsel %vm5178_vm4, %v4913_v37, %v546_v12  ;;  %v523_v28 = vand.u32 2147483648, %v4936_v30  ;;  %v6779_v17 = vsub.f32 1.0, %v4933_v49  ;;  %vm1126_vm10 = vweird.f32 %v4848_v39  ;;  %v3687_v12 = vld [vmem:[#allocation2 + $0x58] sm:$0xff] }
 0x245   :  { %v516_v36 = vadd.f32 %v4991_v16, %v515_v31  ;;  %v2014_v23 = vmax.f32 %v2013_v8, %v5190_v21  ;;  %v2035_v54 = vmax.f32 %v2034_v10, %v5192_v5  ;;  %v555_v33 = vsel %vm552_vm6, %v554_v3, %v550_v45  ;;  %v3686_v8 = vld [vmem:[#allocation2 + $0x50] sm:$0xff] }
 0x246   :  { %v1124_v60 = vmul.f32 %v4907_v51, %v6779_v17  ;;  %vm5210_vm9 = vcmp.eq.f32.partialorder %v521_v41, 8.507059e+37  ;;  %v5215_v10 = vmul.f32 %v3686_v8, %v555_v33  ;;  %v5217_v30 = vmul.f32 %v3687_v12, %v555_v33 }
 0x247   :  { %v520_v6 = vsel %vm5199_vm8, %v4991_v16, %v516_v36  ;;  %v524_v49 = vor.u32 1.1754944e-38, %v523_v28  ;;  %vm1127_vm11 = vweird.f32 %v4907_v51  ;;  %v1130_v2 = vand.u32 2147483647, %v4848_v39  ;;  %v3689_v28 = vld [vmem:[#allocation2 + $0x38] sm:$0xff] }
 0x248   :  { %v1125_v47 = vadd.f32 %v4907_v51, %v1124_v60  ;;  %v1132_v16 = vand.u32 2147483648, %v4848_v39  ;;  %v6782_v42 = vsub.f32 1.0, %v5002_v22  ;;  %v2015_v14 = vmax.f32 %v2014_v23, %v5215_v10  ;;  %vm5234_vm12 = vmor %vm1126_vm10, %vm1127_vm11  ;;  %v3688_v23 = vld [vmem:[#allocation2 + $0x30] sm:$0xff] }
 0x249   :  { %v1433_v31 = vpack.c.bf16 %v5215_v10, %v5190_v21  ;;  %v2036_v45 = vmax.f32 %v2035_v54, %v5217_v30  ;;  %v1434_v1 = vpack.c.bf16 %v5217_v30, %v5192_v5  ;;  %v2078_v22 = vmax.f32 %v5129_v52, %v5076_v32 }
 0x24a   :  { %v1139_v35 = vmul.f32 %v4977_v4, %v6782_v42  ;;  %v525_v3 = vsel %vm5210_vm9, %v524_v49, %v520_v6  ;;  %v1129_v36 = vsel %vm5234_vm12, %v4907_v51, %v1125_v47  ;;  %vm5245_vm13 = vcmp.eq.f32.partialorder %v1130_v2, 8.507059e+37 }
 0x24b   :  { %1558 = vmatpush.bf16.msra.mxu0 %v1433_v31  ;;  %1647 = vmatpush.bf16.msra.mxu1 %v1434_v1  ;;  %v2016_v39 = vmax.f32 %v2015_v14, %v4269_v15  ;;  %v713_v54 = vmul.f32 %v3688_v23, %v525_v3  ;;  %v2037_v37 = vmax.f32 %v2036_v45, %v4273_v61  ;;  %v1133_v52 = vor.u32 1.1754944e-38, %v1132_v16  ;;  %v6791_v14 = vld [vmem:[#allocation9_spill] sm:$0xff] }
 0x24c   :  { %v714_v17 = vmul.f32 %v3689_v28, %v525_v3  ;;  %v1140_v60 = vadd.f32 %v4977_v4, %v1139_v35  ;;  %vm1141_vm14 = vweird.f32 %v4909_v26  ;;  %vm1142_vm15 = vweird.f32 %v4977_v4  ;;  %v6793_v1 = vld [vmem:[#allocation13_spill] sm:$0xff]  ;;  %v6795_v3 = vld [vmem:[#allocation11_spill] sm:$0xff] }
 0x24d   :  { %v2017_v51 = vmax.f32 %v2016_v39, %v713_v54  ;;  %v1429_v33 = vpack.c.bf16 %v713_v54, %v4269_v15  ;;  %vm5255_vm0 = vmor %vm1141_vm14, %vm1142_vm15  ;;  %v1145_v48 = vand.u32 2147483647, %v4909_v26  ;;  %v1147_v8 = vand.u32 2147483648, %v4909_v26  ;;  %v6789_v26 = vld [vmem:[#allocation12_spill] sm:$0xff]  ;;  %v3693_v28 = vld [vmem:[#allocation2 + $0x118] sm:$0xff] }
 0x24e   :  { %v2038_v12 = vmax.f32 %v2037_v37, %v714_v17  ;;  %v1430_v49 = vpack.c.bf16 %v714_v17, %v4273_v61  ;;  %v1134_v47 = vsel %vm5245_vm13, %v1133_v52, %v1129_v36  ;;  %v1144_v2 = vsel %vm5255_vm0, %v4977_v4, %v1140_v60  ;;  %v6790_v61 = vld [vmem:[#allocation8_spill] sm:$0xff]  ;;  %v6794_v4 = vld [vmem:[#allocation10_spill] sm:$0xff] }
 0x24f   :  { %v2058_v15 = vmax.f32 %v2057_v59, %v5146_v25  ;;  %v2079_v16 = vmax.f32 %v2078_v22, %v5148_v46  ;;  %1559 = vmatpush.bf16.msra.mxu0 %v1429_v33  ;;  %v1148_v42 = vor.u32 1.1754944e-38, %v1147_v8  ;;  %v1911_v35 = vadd.f32 %v6789_v26, %v713_v54  ;;  %v3690_v59 = vld [vmem:[#allocation2 + $0x100] sm:$0xff]  ;;  %v3691_v22 = vld [vmem:[#allocation2 + $0x108] sm:$0xff]  ;;  %v3692_v54 = vld [vmem:[#allocation2 + $0x110] sm:$0xff] }
 0x250   :  { %1648 = vmatpush.bf16.msra.mxu1 %v1430_v49  ;;  %vm1146_vm1 = vcmp.eq.f32.partialorder %v1145_v48, 8.507059e+37  ;;  %v6792_v31 = vmax.f32 %v6790_v61, %v6791_v14  ;;  %v1932_v27 = vadd.f32 %v6793_v1, %v714_v17  ;;  %v6796_v36 = vmax.f32 %v6794_v4, %v6795_v3 }
 0x251   :  { %v1149_v40 = vsel %vm1146_vm1, %v1148_v42, %v1144_v2  ;;  %v1361_v39 = vmul.f32 %v3690_v59, %v1134_v47  ;;  %v1362_v23 = vmul.f32 %v3691_v22, %v1134_v47  ;;  %v1912_v37 = vadd.f32 %v1911_v35, %v5190_v21 }
 0x252   :  { %v2018_v45 = vmax.f32 %v2017_v51, %v6792_v31  ;;  %v2039_v41 = vmax.f32 %v2038_v12, %v6796_v36  ;;  %v1363_v52 = vmul.f32 %v3692_v54, %v1149_v40  ;;  %v1364_v60 = vmul.f32 %v3693_v28, %v1149_v40 }
 0x253   :  { %v1933_v33 = vadd.f32 %v1932_v27, %v5192_v5  ;;  %v2059_v17 = vmax.f32 %v2058_v15, %v5157_v24  ;;  %v2080_v6 = vmax.f32 %v2079_v16, %v5159_v58  ;;  %v6797_v48 = vpack.c.bf16 %v6791_v14, %v6790_v61 }
 0x254   :  { %v2040_v51 = vrot.slane %v2039_v41, 4  ;;  %v1913_v8 = vadd.f32 %v1912_v37, %v5215_v10  ;;  %v2019_v12 = vrot.slane %v2018_v45, 4  ;;  %v1427_v49 = vpack.c.bf16 %v1363_v52, %v1361_v39 }
 0x255   :  { %1560 = vmatpush.bf16.msra.mxu0 %v6797_v48  ;;  %v1951_v21 = vadd.f32 %v1363_v52, %v1361_v39  ;;  %v2046_v47 = vmax.f32 %v1361_v39, %v1363_v52  ;;  %v1428_v2 = vpack.c.bf16 %v1364_v60, %v1362_v23  ;;  %v6798_v42 = vpack.c.bf16 %v6795_v3, %v6794_v4  ;;  %v6800_v48 = vld [vmem:[#allocation36_spill] sm:$0xff] }
 0x256   :  { %v1972_v5 = vadd.f32 %v1364_v60, %v1362_v23  ;;  %v2067_v26 = vmax.f32 %v1362_v23, %v1364_v60  ;;  %v1914_v15 = vadd.f32 %v1913_v8, %v5101_v29  ;;  %v1934_v16 = vadd.f32 %v1933_v33, %v5217_v30  ;;  %1738 = vmatpush.bf16.msra.mxu2 %v1427_v49  ;;  %v6801_v8 = vld [vmem:[#allocation34_spill] sm:$0xff]  ;;  %v6803_v49 = vld [vmem:[#allocation32_spill] sm:$0xff] }
 0x257   :  { %1649 = vmatpush.bf16.msra.mxu1 %v6798_v42  ;;  %v1952_v35 = vadd.f32 %v1951_v21, %v5146_v25  ;;  %v2060_v61 = vmax.f32 %v2059_v17, %v2046_v47  ;;  %1827 = vmatpush.bf16.msra.mxu3 %v1428_v2  ;;  %v2041_v10 = vmax.f32 %v2039_v41, %v2040_v51  ;;  %v6799_v17 = vld [vmem:[#allocation30_spill] sm:$0xff]  ;;  %v6804_v2 = vld [vmem:[#allocation31_spill] sm:$0xff]  ;;  %vm2360_vm6 = vcmask 1040384  }
 0x258   :  { %v1973_v14 = vadd.f32 %v1972_v5, %v5148_v46  ;;  %v2081_v31 = vmax.f32 %v2080_v6, %v2067_v26  ;;  %v1915_v1 = vadd.f32 %v1914_v15, %v5117_v20  ;;  %v1935_v27 = vadd.f32 %v1934_v16, %v5109_v19  ;;  %v6805_v26 = vld [vmem:[#allocation26_spill] sm:$0xff]  ;;  %v6806_v16 = vld [vmem:[#allocation33_spill] sm:$0xff] }
 0x259   :  { %v1953_v4 = vadd.f32 %v1952_v35, %v5157_v24  ;;  %v2042_v3 = vrot.slane %v2041_v10, 2  ;;  %v2020_v36 = vmax.f32 %v2018_v45, %v2019_v12  ;;  %v2061_v29 = vrot.slane %v2060_v61, 4 }
 0x25a   :  { %v1974_v30 = vadd.f32 %v1973_v14, %v5159_v58  ;;  %v1916_v40 = vadd.f32 %v1915_v1, %v4938_v53  ;;  %v1936_v25 = vadd.f32 %v1935_v27, %v5119_v50  ;;  %v2082_v59 = vrot.slane %v2081_v31, 4  ;;  %v6808_v14 = vld [vmem:[#allocation28_spill] sm:$0xff]  ;;  %v6809_v1 = vld [vmem:[#allocation18_spill] sm:$0xff] }
 0x25b   :  { %v1954_v41 = vadd.f32 %v1953_v4, %v5049_v7  ;;  %v2043_v46 = vmax.f32 %v2041_v10, %v2042_v3  ;;  %v2021_v39 = vrot.slane %v2020_v36, 2  ;;  %v2062_v22 = vmax.f32 %v2060_v61, %v2061_v29  ;;  %v6807_v61 = vld [vmem:[#allocation27_spill] sm:$0xff]  ;;  %v6810_v4 = vld [vmem:[#allocation29_spill] sm:$0xff] }
 0x25c   :  { %v1975_v20 = vadd.f32 %v1974_v30, %v5055_v43  ;;  %v1917_v19 = vadd.f32 %v1916_v40, %v4949_v57  ;;  %v1937_v24 = vadd.f32 %v1936_v25, %v4944_v0  ;;  %v2083_v45 = vmax.f32 %v2081_v31, %v2082_v59  ;;  %v6812_v29 = vld [vmem:[#allocation19_spill] sm:$0xff]  ;;  %v6814_v59 = vld [vmem:[#allocation24_spill] sm:$0xff] }
 0x25d   :  { %v1955_v23 = vadd.f32 %v1954_v41, %v5074_v11  ;;  %v2044_v58 = vrot.slane %v2043_v46, 1  ;;  %v2022_v37 = vmax.f32 %v2020_v36, %v2021_v39  ;;  %v2063_v53 = vrot.slane %v2062_v22, 2  ;;  %v6811_v36 = vld [vmem:[#allocation22_spill] sm:$0xff]  ;;  %v6813_v40 = vld [vmem:[#allocation23_spill] sm:$0xff]  ;;  %v6815_v39 = vld [vmem:[#allocation20_spill] sm:$0xff] }
 0x25e   :  { %v1976_v50 = vadd.f32 %v1975_v20, %v5076_v32  ;;  %v1918_v54 = vadd.f32 %v1917_v19, %v4851_v38  ;;  %v1938_v7 = vadd.f32 %v1937_v24, %v4952_v55  ;;  %v2084_v52 = vrot.slane %v2083_v45, 2  ;;  %v6816_v20 = vld [vmem:[#allocation25_spill] sm:$0xff]  ;;  %v6817_v24 = vld [vmem:[#allocation14_spill] sm:$0xff] }
 0x25f   :  { %v1956_v28 = vadd.f32 %v1955_v23, %v5014_v62  ;;  %v5310_v43 = vmax.f32 %v2043_v46, %v2044_v58  ;;  %v2023_v57 = vrot.slane %v2022_v37, 1  ;;  %v2064_v60 = vmax.f32 %v2062_v22, %v2063_v53  ;;  %v6818_v23 = vld [vmem:[#allocation21_spill] sm:$0xff] }
 0x260   :  { %v1977_v0 = vadd.f32 %v1976_v50, %v5025_v9  ;;  %v1919_v11 = vadd.f32 %v1918_v54, %v4864_v63  ;;  %v1939_v33 = vadd.f32 %v1938_v7, %v4855_v18  ;;  %v2085_v62 = vmax.f32 %v2083_v45, %v2084_v52  ;;  %v6820_v54 = vld [vmem:[#allocation15_spill] sm:$0xff] }
 0x261   :  { %v1957_v51 = vadd.f32 %v1956_v28, %v5023_v56  ;;  %2170 = vrot.lane.b32.xlu2 %v5310_v43, %s3750_s2  ;;  %v5318_v55 = vmax.f32 %v2022_v37, %v2023_v57  ;;  %v2065_v38 = vrot.slane %v2064_v60, 1  ;;  %v6802_v56 = vld [vmem:[#allocation35_spill] sm:$0xff]  ;;  %v3752_v46 = vmov 128.0   ;;  %v6819_v37 = vld [vmem:[#allocation16_spill] sm:$0xff] }
 0x262   :  { %v1978_v32 = vadd.f32 %v1977_v0, %v5027_v44  ;;  %v1920_v6 = vadd.f32 %v1919_v11, %v6799_v17  ;;  %v1940_v9 = vadd.f32 %v1939_v33, %v6800_v48  ;;  %v2086_v44 = vrot.slane %v2085_v62, 1  ;;  %v6821_v11 = vld [vmem:[#allocation17_spill] sm:$0xff] }
 0x263   :  { %v1958_v63 = vadd.f32 %v1957_v51, %v6801_v8  ;;  %2168 = vrot.lane.b32.xlu0 %v5318_v55, %s3750_s2  ;;  %v5326_v18 = vmax.f32 %v2064_v60, %v2065_v38  ;;  %3624 = vrcp.f32 %v3752_v46  ;;  %v3440_v46 = vld [vmem:[%s6639_s3 + $0x18] sm:$0xff]  ;;  %vm2365_vm8 = vcmask 1041408  }
 0x264   :  { %v1979_v12 = vadd.f32 %v1978_v32, %v6802_v56  ;;  %v1941_v21 = vadd.f32 %v1940_v9, %v6803_v49  ;;  %v1921_v42 = vadd.f32 %v1920_v6, %v6804_v2  ;;  %vm2370_vm9 = vcmask 1042432  }
 0x265   :  { %v1959_v47 = vadd.f32 %v1958_v63, %v4809_v34  ;;  %2172 = vrot.lane.b32.xlu1 %v5326_v18, %s3750_s2  ;;  %v5341_v34 = vmax.f32 %v2085_v62, %v2086_v44  ;;  %vm2375_vm11 = vcmask 1043456   ;;  %vm2380_vm12 = vcmask 1044480  }
 0x266   :  { %v1980_v5 = vadd.f32 %v1979_v12, %v4815_v13  ;;  %v1942_v35 = vadd.f32 %v1941_v21, %v6806_v16  ;;  %v1922_v27 = vadd.f32 %v1921_v42, %v6809_v1  ;;  %vm2385_vm14 = vcmask 1045504  }
 0x267   :  { %v1960_v15 = vadd.f32 %v1959_v47, %v6805_v26  ;;  %vm2390_vm15 = vcmask 1046528   ;;  %vm2509_vm0 = vcmask 1042434  }
 0x268   :  { %v1981_v10 = vadd.f32 %v1980_v5, %v6807_v61  ;;  %v1943_v30 = vadd.f32 %v1942_v35, %v6812_v29  ;;  %v1923_v22 = vadd.f32 %v1922_v27, %v6815_v39  ;;  %v3437_v27 = vld [vmem:[%s6639_s3] sm:$0xff]  ;;  %v3757_v29 = vmov 0  }
 0x269   :  { %v1961_v31 = vadd.f32 %v1960_v15, %v6808_v14  ;;  %2180 = vrot.lane.b32.xlu2 %v5318_v55, %s3751_s9  ;;  %v3625_v52 = vpop.eup %3624  ;;  %1739 = vmatmul.bf16.vlgmr.msra.gmra.mxu2 %v3437_v27 }
 0x26a   :  { %v1982_v3 = vadd.f32 %v1981_v10, %v6810_v4  ;;  %v1944_v58 = vadd.f32 %v1943_v30, %v6818_v23  ;;  %v1924_v50 = vrot.slane %v1923_v22, 4  ;;  %v1994_v51 = vmul.f32 128.0, %v3625_v52  ;;  %1828 = vmatmul.bf16.vlgmr.msra.gmra.mxu3 %v3437_v27  ;;  %1650 = vmatmul.bf16.vlgmr.msra.gmra.mxu1 %v3437_v27  ;;  %v3438_v4 = vld [vmem:[%s6639_s3 + $0x8] sm:$0xff] }
 0x26b   :  { %v1962_v13 = vadd.f32 %v1961_v31, %v6811_v36  ;;  %2174 = vrot.lane.b32.xlu0 %v5341_v34, %s3750_s2  ;;  %vm1998_vm2 = vweird.f32 %v3625_v52  ;;  %1561 = vmatmul.bf16.vlgmr.msra.gmra.mxu0 %v3437_v27  ;;  %v3439_v36 = vld [vmem:[%s6639_s3 + $0x10] sm:$0xff] }
 0x26c   :  { %v1983_v25 = vadd.f32 %v1982_v3, %v6813_v40  ;;  %v1945_v57 = vrot.slane %v1944_v58, 4  ;;  %v1925_v0 = vadd.f32 %v1924_v50, %v1923_v22  ;;  %v1995_v6 = vsub.f32 1.0, %v1994_v51  ;;  %3478 = vset.pattern.permute.xlu2 %v3757_v29  ;;  %3477 = vset.pattern.permute.xlu0 %v3757_v29 }
 0x26d   :  { %v1963_v41 = vadd.f32 %v1962_v13, %v6814_v59  ;;  %2182 = vrot.lane.b32.xlu1 %v5310_v43, %s3751_s9  ;;  %v2096_v13 = vlaneseq }
 0x26e   :  { %v1984_v19 = vadd.f32 %v1983_v25, %v6816_v20  ;;  %v1946_v62 = vadd.f32 %v1945_v57, %v1944_v58  ;;  %v1926_v32 = vrot.slane %v1925_v0, 2  ;;  %v1996_v56 = vmul.f32 %v3625_v52, %v1995_v6 }
 0x26f   :  { %v1964_v45 = vadd.f32 %v1963_v41, %v6817_v24  ;;  %v5445_v40 = vand.u32 127, %v2096_v13  ;;  %v3758_v25 = vmov 1  }
 0x270   :  { %v1985_v7 = vadd.f32 %v1984_v19, %v6820_v54  ;;  %v1947_v9 = vrot.slane %v1946_v62, 2  ;;  %v1927_v8 = vadd.f32 %v1926_v32, %v1925_v0  ;;  %v1997_v2 = vadd.f32 %v3625_v52, %v1996_v56  ;;  %3480 = vset.pattern.permute.xlu1 %v3758_v25  ;;  %v3441_v54 = vld [vmem:[%s6639_s3 + $0x20] sm:$0xff] }
 0x271   :  { %2186 = vrot.lane.b32.xlu2 %v5341_v34, %s3751_s9  ;;  %v1965_v53 = vadd.f32 %v1964_v45, %v6819_v37  ;;  %vm2111_vm3 = vcmp.lt.s32.totalorder %v5445_v40, 2  ;;  %vm2098_vm4 = vcmp.lt.s32.totalorder %v5445_v40, 3  ;;  %vm2124_vm5 = vcmp.lt.s32.totalorder %v5445_v40, 1 }
 0x272   :  { %v1986_v33 = vadd.f32 %v1985_v7, %v6821_v11  ;;  %v1948_v49 = vadd.f32 %v1947_v9, %v1946_v62  ;;  %v1928_v21 = vrot.slane %v1927_v8, 1  ;;  %v1999_v15 = vsel %vm1998_vm2, %v3625_v52, %v1997_v2  ;;  %v5505_v52 = vld [vmem:[%s6641_s5] sm:$0xff] }
 0x273   :  { %2184 = vrot.lane.b32.xlu0 %v5326_v18, %s3751_s9  ;;  %v1966_v28 = vrot.slane %v1965_v53, 4  ;;  %v3760_v62 = vmov 2   ;;  %vm2137_vm7 = vcmp.lt.s32.totalorder %v5445_v40, 127  ;;  %vm2150_vm10 = vcmp.lt.s32.totalorder %v5445_v40, 126 }
 0x274   :  { %v1987_v17 = vrot.slane %v1986_v33, 4  ;;  %v1949_v44 = vrot.slane %v1948_v49, 1  ;;  %v1929_v5 = vadd.f32 %v1928_v21, %v1927_v8  ;;  %vm2163_vm13 = vcmp.lt.s32.totalorder %v5445_v40, 125 }
 0x275   :  { %2192 = vrot.lane.b32.xlu1 %v5318_v55, %s3753_s0  ;;  %v1967_v60 = vadd.f32 %v1966_v28, %v1965_v53  ;;  %v5495_v53 = vld [vmem:[%s6641_s5 + $0x8] sm:$0xff]  ;;  %vm2495_vm1 = vcmp.lt.s32.totalorder %v5445_v40, 48  ;;  %vm2567_vm2 = vcmp.lt.s32.totalorder %v5445_v40, 32 }
 0x276   :  { %v1988_v63 = vadd.f32 %v1987_v17, %v1986_v33  ;;  %v1950_v35 = vadd.f32 %v1949_v44, %v1948_v49  ;;  %v5382_v61 = vmul.f32 %v1999_v15, %v1929_v5  ;;  %v3759_v33 = vmov 4  }
 0x277   :  { %v1968_v38 = vrot.slane %v1967_v60, 2  ;;  %v3761_v5 = vmov 6  }
 0x278   :  { %v1989_v47 = vrot.slane %v1988_v63, 2  ;;  %v5386_v14 = vmul.f32 %v1999_v15, %v1950_v35  ;;  %v3762_v35 = vmov 3  }
 0x279   :  { %2196 = vrot.lane.b32.xlu2 %v5326_v18, %s3753_s0  ;;  %v1969_v48 = vadd.f32 %v1968_v38, %v1967_v60  ;;  %1744 = vmatmul.bf16.gmra.mxu2 %v3438_v4 }
 0x27a   :  { %v1990_v26 = vadd.f32 %v1989_v47, %v1988_v63  ;;  %1833 = vmatmul.bf16.gmra.mxu3 %v3438_v4  ;;  %1655 = vmatmul.bf16.gmra.mxu1 %v3438_v4  ;;  %v3442_v47 = vld [vmem:[%s6639_s3 + $0x28] sm:$0xff] }
 0x27b   :  { %2194 = vrot.lane.b32.xlu0 %v5310_v43, %s3753_s0  ;;  %v1970_v12 = vrot.slane %v1969_v48, 1  ;;  %1566 = vmatmul.bf16.gmra.mxu0 %v3438_v4 }
 0x27c   :  { %v1991_v10 = vrot.slane %v1990_v26, 1 }
 0x27d   :  { %2198 = vrot.lane.b32.xlu1 %v5341_v34, %s3753_s0  ;;  %v1971_v42 = vadd.f32 %v1970_v12, %v1969_v48 }
 0x27e   :  { %v1992_v31 = vadd.f32 %v1991_v10, %v1990_v26 }
 0x27f   :  { %v5378_v16 = vmul.f32 %v1999_v15, %v1971_v42 }
 0x280   :  { %v5392_v1 = vmul.f32 %v1999_v15, %v1992_v31 }
 0x281   :  { %2206 = vrot.lane.b32.xlu2 %v5310_v43, %s3754_s12 }
 0x283   :  { %2204 = vrot.lane.b32.xlu0 %v5318_v55, %s3754_s12 }
 0x285   :  { %2208 = vrot.lane.b32.xlu1 %v5326_v18, %s3754_s12 }
 0x289   :  { %2092 = vrot.lane.b32.xlu2 %v5378_v16, %s3750_s2  ;;  %1749 = vmatmul.bf16.gmra.mxu2 %v3439_v36 }
 0x28a   :  { %1838 = vmatmul.bf16.gmra.mxu3 %v3439_v36  ;;  %1660 = vmatmul.bf16.gmra.mxu1 %v3439_v36 }
 0x28b   :  { %2088 = vrot.lane.b32.xlu0 %v5382_v61, %s3750_s2  ;;  %1571 = vmatmul.bf16.gmra.mxu0 %v3439_v36 }
 0x28d   :  { %2090 = vrot.lane.b32.xlu1 %v5386_v14, %s3750_s2 }
 0x291   :  { %2103 = vrot.lane.b32.xlu2 %v5382_v61, %s3751_s9 }
 0x293   :  { %2094 = vrot.lane.b32.xlu0 %v5392_v1, %s3750_s2 }
 0x295   :  { %2105 = vrot.lane.b32.xlu1 %v5386_v14, %s3751_s9 }
 0x299   :  { %2109 = vrot.lane.b32.xlu2 %v5392_v1, %s3751_s9  ;;  %1754 = vmatmul.bf16.gmra.mxu2 %v3440_v46 }
 0x29a   :  { %1843 = vmatmul.bf16.gmra.mxu3 %v3440_v46  ;;  %1665 = vmatmul.bf16.gmra.mxu1 %v3440_v46 }
 0x29b   :  { %2107 = vrot.lane.b32.xlu0 %v5378_v16, %s3751_s9  ;;  %1576 = vmatmul.bf16.gmra.mxu0 %v3440_v46  ;;  %s3764_s9 = smov 48  }
 0x29d   :  { %2116 = vrot.lane.b32.xlu1 %v5382_v61, %s3753_s0 }
 0x2a1   :  { %2120 = vrot.lane.b32.xlu2 %v5378_v16, %s3753_s0 }
 0x2a3   :  { %2118 = vrot.lane.b32.xlu0 %v5386_v14, %s3753_s0 }
 0x2a5   :  { %2122 = vrot.lane.b32.xlu1 %v5392_v1, %s3753_s0 }
 0x2a9   :  { %2131 = vrot.lane.b32.xlu2 %v5386_v14, %s3754_s12  ;;  %1759 = vmatmul.bf16.gmra.mxu2 %v3441_v54 }
 0x2aa   :  { %1848 = vmatmul.bf16.gmra.mxu3 %v3441_v54  ;;  %1670 = vmatmul.bf16.gmra.mxu1 %v3441_v54 }
 0x2ab   :  { %2129 = vrot.lane.b32.xlu0 %v5382_v61, %s3754_s12  ;;  %1581 = vmatmul.bf16.gmra.mxu0 %v3441_v54 }
 0x2ad   :  { %2133 = vrot.lane.b32.xlu1 %v5378_v16, %s3754_s12 }
 0x2b1   :  { %2142 = vrot.lane.b32.xlu2 %v5382_v61, %s3755_s17 }
 0x2b3   :  { %2135 = vrot.lane.b32.xlu0 %v5392_v1, %s3754_s12 }
 0x2b5   :  { %2144 = vrot.lane.b32.xlu1 %v5386_v14, %s3755_s17 }
 0x2b9   :  { %2148 = vrot.lane.b32.xlu2 %v5392_v1, %s3755_s17  ;;  %1764 = vmatmul.bf16.gmra.mxu2 %v3442_v47 }
 0x2ba   :  { %1853 = vmatmul.bf16.gmra.mxu3 %v3442_v47  ;;  %1675 = vmatmul.bf16.gmra.mxu1 %v3442_v47 }
 0x2bb   :  { %2146 = vrot.lane.b32.xlu0 %v5378_v16, %s3755_s17  ;;  %v2171_v3 = vpop.permute.xlu2 %2170  ;;  %1586 = vmatmul.bf16.gmra.mxu0 %v3442_v47 }
 0x2bd   :  { %2155 = vrot.lane.b32.xlu1 %v5382_v61, %s3756_s18 }
 0x2c1   :  { %2159 = vrot.lane.b32.xlu2 %v5378_v16, %s3756_s18 }
 0x2c3   :  { %2157 = vrot.lane.b32.xlu0 %v5386_v14, %s3756_s18  ;;  %v2181_v30 = vpop.permute.xlu2 %2180 }
 0x2c5   :  { %2161 = vrot.lane.b32.xlu1 %v5392_v1, %s3756_s18 }
 0x2c9   :  { %2216 = vrot.lane.b32.xlu2 %v5318_v55, %s3755_s17 }
 0x2cb   :  { %2210 = vrot.lane.b32.xlu0 %v5341_v34, %s3754_s12  ;;  %v2187_v59 = vpop.permute.xlu2 %2186 }
 0x2cc   :  { %v5454_v41 = vsel %vm2111_vm3, %v2187_v59, %v2181_v30 }
 0x2cd   :  { %2218 = vrot.lane.b32.xlu1 %v5310_v43, %s3755_s17 }
 0x2d1   :  { %2222 = vrot.lane.b32.xlu2 %v5341_v34, %s3755_s17 }
 0x2d3   :  { %2220 = vrot.lane.b32.xlu0 %v5326_v18, %s3755_s17  ;;  %v2197_v39 = vpop.permute.xlu2 %2196 }
 0x2d5   :  { %v2169_v22 = vpop.permute.xlu0 %2168  ;;  %2228 = vrot.lane.b32.xlu1 %v5318_v55, %s3756_s18 }
 0x2d6   :  { %v5470_v20 = vsel %vm2098_vm4, %v2169_v22, %v2171_v3 }
 0x2d7   :  { %v2173_v19 = vpop.permute.xlu1 %2172 }
 0x2d8   :  { %v5474_v24 = vsel %vm2098_vm4, %v2171_v3, %v2173_v19 }
 0x2d9   :  { %2232 = vrot.lane.b32.xlu2 %v5326_v18, %s3756_s18 }
 0x2db   :  { %2230 = vrot.lane.b32.xlu0 %v5310_v43, %s3756_s18  ;;  %v5480_v45 = vpop.permute.xlu2 %2206 }
 0x2dd   :  { %v2175_v23 = vpop.permute.xlu0 %2174  ;;  %2234 = vrot.lane.b32.xlu1 %v5341_v34, %s3756_s18  ;;  %s3766_s18 = smov 112  }
 0x2de   :  { %v5486_v58 = vsel %vm2098_vm4, %v2173_v19, %v2175_v23  ;;  %v5490_v37 = vsel %vm2098_vm4, %v2175_v23, %v2169_v22 }
 0x2df   :  { %v2183_v50 = vpop.permute.xlu1 %2182 }
 0x2e0   :  { %v2190_v7 = vsel %vm2111_vm3, %v2181_v30, %v2183_v50 }
 0x2e1   :  { %2448 = vperm.xlu2 %3478, %v5495_v53  }
 0x2e3   :  { %2443 = vperm.xlu0 %3477, %v5505_v52   ;;  %v5509_v28 = vpop.permute.xlu2 %2092 }
 0x2e5   :  { %v2185_v57 = vpop.permute.xlu0 %2184  ;;  %2520 = vperm.xlu1 %3480, %v5495_v53  }
 0x2e6   :  { %v2188_v60 = vsel %vm2111_vm3, %v2185_v57, %v2187_v59  ;;  %v2189_v0 = vsel %vm2111_vm3, %v2183_v50, %v2185_v57 }
 0x2e7   :  { %v2193_v11 = vpop.permute.xlu1 %2192 }
 0x2e9   :  { %3479 = vset.pattern.permute.xlu2 %v3758_v25 }
 0x2ea   :  { %2516 = vperm.xlu2 %3479, %v5505_v52  }
 0x2eb   :  { %3485 = vset.pattern.permute.xlu0 %v3759_v33  ;;  %v5519_v51 = vpop.permute.xlu2 %2103 }
 0x2ec   :  { %2719 = vperm.xlu0 %3485, %v5505_v52  }
 0x2ed   :  { %v2195_v38 = vpop.permute.xlu0 %2194  ;;  %3482 = vset.pattern.permute.xlu1 %v3760_v62 }
 0x2ee   :  { %v2201_v32 = vsel %vm2124_vm5, %v2195_v38, %v2197_v39  ;;  %v2202_v17 = vsel %vm2124_vm5, %v2193_v11, %v2195_v38  ;;  %2592 = vperm.xlu1 %3482, %v5495_v53  }
 0x2ef   :  { %v2317_v6 = vrot.slane %v2202_v17, 7  ;;  %v2318_v48 = vrot.slane %v2201_v32, 7  ;;  %v2199_v9 = vpop.permute.xlu1 %2198 }
 0x2f0   :  { %v2200_v8 = vsel %vm2124_vm5, %v2197_v39, %v2199_v9  ;;  %v2203_v63 = vsel %vm2124_vm5, %v2199_v9, %v2193_v11  ;;  %v3443_v39 = vld [vmem:[%s6639_s3 + $0x30] sm:$0xff] }
 0x2f1   :  { %v2396_v56 = vsel %vm2360_vm6, %v2190_v7, %v2317_v6  ;;  %v5533_v12 = vsel %vm2360_vm6, %v2189_v0, %v2318_v48  ;;  %v2316_v49 = vrot.slane %v2203_v63, 7  ;;  %v2319_v21 = vrot.slane %v2200_v8, 7  ;;  %1769 = vmatmul.bf16.gmra.mxu2 %v3443_v39  ;;  %1858 = vmatmul.bf16.gmra.mxu3 %v3443_v39 }
 0x2f2   :  { %3481 = vset.pattern.permute.xlu2 %v3760_v62  ;;  %v2400_v13 = vsel %vm2365_vm8, %v2396_v56, %v5310_v43  ;;  %1591 = vmatmul.bf16.gmra.mxu0 %v3443_v39  ;;  %v3445_v56 = vld [vmem:[%s6639_s3 + $0x40] sm:$0xff] }
 0x2f3   :  { %v2395_v2 = vsel %vm2360_vm6, %v5454_v41, %v2316_v49  ;;  %v5541_v42 = vsel %vm2360_vm6, %v2188_v60, %v2319_v21  ;;  %2588 = vperm.xlu2 %3481, %v5505_v52   ;;  %v5545_v44 = vpop.permute.xlu2 %2109  ;;  %v3763_v41 = vmov 5   ;;  %1680 = vmatmul.bf16.gmra.mxu1 %v3443_v39 }
 0x2f4   :  { %3489 = vset.pattern.permute.xlu0 %v3761_v5  ;;  %v2399_v27 = vsel %vm2365_vm8, %v2395_v2, %v5318_v55  ;;  %v2115_v22 = vsel %vm2111_vm3, %v5545_v44, %v5519_v51 }
 0x2f5   :  { %v5548_v26 = vpop.permute.xlu0 %2204  ;;  %2863 = vperm.xlu0 %3489, %v5505_v52  }
 0x2f6   :  { %v2214_v15 = vsel %vm2137_vm7, %v5548_v26, %v5480_v45  ;;  %3484 = vset.pattern.permute.xlu1 %v3762_v35 }
 0x2f7   :  { %v2328_v10 = vrot.slane %v2214_v15, 5  ;;  %v5555_v31 = vpop.permute.xlu1 %2208  ;;  %2664 = vperm.xlu1 %3484, %v5495_v53  }
 0x2f8   :  { %v2213_v4 = vsel %vm2137_vm7, %v5480_v45, %v5555_v31  ;;  %v2244_v45 = vrot.slane %v2115_v22, 7 }
 0x2f9   :  { %v5565_v3 = vsel %vm2370_vm9, %v2399_v27, %v2328_v10  ;;  %v2329_v36 = vrot.slane %v2213_v4, 5  ;;  %v2305_v27 = vrot.slane %v5470_v20, 1  ;;  %v2304_v4 = vrot.slane %v5490_v37, 1 }
 0x2fb   :  { %v5570_v30 = vsel %vm2370_vm9, %v2400_v13, %v2329_v36  ;;  %3483 = vset.pattern.permute.xlu2 %v3762_v35  ;;  %v5572_v25 = vpop.permute.xlu2 %2120  ;;  %v2307_v36 = vrot.slane %v5486_v58, 1 }
 0x2fc   :  { %2660 = vperm.xlu2 %3483, %v5505_v52  }
 0x2fd   :  { %v2089_v55 = vpop.permute.xlu0 %2088  ;;  %3492 = vset.pattern.permute.xlu0 %v3757_v29 }
 0x2ff   :  { %v2091_v59 = vpop.permute.xlu1 %2090  ;;  %3488 = vset.pattern.permute.xlu1 %v3763_v41 }
 0x300   :  { %v2100_v46 = vsel %vm2098_vm4, %v2091_v59, %v5509_v28  ;;  %v2101_v43 = vsel %vm2098_vm4, %v2089_v55, %v2091_v59  ;;  %2795 = vperm.xlu1 %3488, %v5495_v53  }
 0x303   :  { %v5589_v19 = vpop.permute.xlu2 %2131 }
 0x304   :  { %3486 = vset.pattern.permute.xlu2 %v3759_v33 }
 0x305   :  { %v2095_v23 = vpop.permute.xlu0 %2094  ;;  %2723 = vperm.xlu2 %3486, %v5495_v53  }
 0x306   :  { %v2099_v50 = vsel %vm2098_vm4, %v5509_v28, %v2095_v23  ;;  %v2102_v54 = vsel %vm2098_vm4, %v2095_v23, %v2089_v55  ;;  %vm2770_vm4 = vcmp.lt.s32.totalorder %v5445_v40, 112 }
 0x307   :  { %v5599_v7 = vsel %vm2360_vm6, %v2102_v54, %v2244_v45  ;;  %v2106_v57 = vpop.permute.xlu1 %2105 }
 0x308   :  { %v2114_v60 = vsel %vm2111_vm3, %v5519_v51, %v2106_v57  ;;  %3491 = vset.pattern.permute.xlu1 %v3757_v29  ;;  %v3444_v51 = vld [vmem:[%s6639_s3 + $0x38] sm:$0xff] }
 0x309   :  { %v2245_v0 = vrot.slane %v2114_v60, 7  ;;  %1774 = vmatmul.bf16.gmra.mxu2 %v3444_v51  ;;  %1863 = vmatmul.bf16.gmra.mxu3 %v3444_v51 }
 0x30a   :  { %1596 = vmatmul.bf16.gmra.mxu0 %v3444_v51  ;;  %1685 = vmatmul.bf16.gmra.mxu1 %v3444_v51 }
 0x30b   :  { %v5606_v11 = vsel %vm2360_vm6, %v2101_v43, %v2245_v0  ;;  %v2143_v33 = vpop.permute.xlu2 %2142 }
 0x30d   :  { %v2108_v28 = vpop.permute.xlu0 %2107  ;;  %3487 = vset.pattern.permute.xlu2 %v3763_v41 }
 0x30e   :  { %v2113_v38 = vsel %vm2111_vm3, %v2106_v57, %v2108_v28  ;;  %2791 = vperm.xlu2 %3487, %v5505_v52  }
 0x30f   :  { %v2246_v62 = vrot.slane %v2113_v38, 7  ;;  %v2117_v32 = vpop.permute.xlu1 %2116 }
 0x311   :  { %v2363_v17 = vsel %vm2360_vm6, %v2100_v46, %v2246_v62 }
 0x313   :  { %v2149_v6 = vpop.permute.xlu2 %2148 }
 0x314   :  { %v2154_v45 = vsel %vm2150_vm10, %v2149_v6, %v2143_v33 }
 0x315   :  { %v2119_v48 = vpop.permute.xlu0 %2118 }
 0x316   :  { %3490 = vset.pattern.permute.xlu2 %v3761_v5  ;;  %v2126_v5 = vsel %vm2124_vm5, %v2119_v48, %v5572_v25  ;;  %v2127_v15 = vsel %vm2124_vm5, %v2117_v32, %v2119_v48 }
 0x317   :  { %v2123_v9 = vpop.permute.xlu1 %2122  ;;  %2867 = vperm.xlu2 %3490, %v5495_v53   ;;  %v2112_v53 = vsel %vm2111_vm3, %v2108_v28, %v5545_v44  ;;  %v2306_v44 = vrot.slane %v5474_v24, 1  ;;  %v2257_v59 = vrot.slane %v2127_v15, 6  ;;  %v2258_v41 = vrot.slane %v2126_v5, 6  ;;  %v5727_v24 = vpop.f32.mrf.mxu2 }
 0x318   :  { %v2128_v2 = vsel %vm2124_vm5, %v2123_v9, %v2117_v32  ;;  %v2125_v35 = vsel %vm2124_vm5, %v5572_v25, %v2123_v9  ;;  %6823 = vst [vmem:[#allocation8_spill] sm:$0xff] %v5727_v24  ;;  %vm2639_vm3 = vcmp.lt.s32.totalorder %v5445_v40, 16  ;;  %vm2842_vm5 = vcmp.lt.s32.totalorder %v5445_v40, 96 }
 0x319   :  { %1779 = vmatmul.bf16.gmra.mxu2 %v3445_v56  ;;  %1868 = vmatmul.bf16.gmra.mxu3 %v3445_v56  ;;  %v2256_v13 = vrot.slane %v2128_v2, 6  ;;  %v2259_v46 = vrot.slane %v2125_v35, 6  ;;  %v2367_v0 = vsel %vm2365_vm8, %v5606_v11, %v2257_v59  ;;  %v2368_v28 = vsel %vm2365_vm8, %v2363_v17, %v2258_v41  ;;  %v3446_v11 = vld [vmem:[%s6639_s3 + $0x48] sm:$0xff] }
 0x31a   :  { %1601 = vmatmul.bf16.gmra.mxu0 %v3445_v56  ;;  %1690 = vmatmul.bf16.gmra.mxu1 %v3445_v56  ;;  %v2372_v56 = vsel %vm2370_vm9, %v2367_v0, %v5386_v14  ;;  %v5725_v0 = vpop.f32.mrf.mxu1 }
 0x31b   :  { %v5617_v52 = vpop.permute.xlu2 %2159  ;;  %6822 = vst [vmem:[#allocation12_spill] sm:$0xff] %v5725_v0 }
 0x31d   :  { %v2130_v8 = vpop.permute.xlu0 %2129 }
 0x31e   :  { %v2140_v25 = vsel %vm2137_vm7, %v2130_v8, %v5589_v19 }
 0x31f   :  { %v2134_v63 = vpop.permute.xlu1 %2133  ;;  %3493 = vset.pattern.permute.xlu2 %v3757_v29  ;;  %v2247_v29 = vrot.slane %v2112_v53, 7  ;;  %v2268_v57 = vrot.slane %v2140_v25, 4 }
 0x320   :  { %v2139_v39 = vsel %vm2137_vm7, %v5589_v19, %v2134_v63 }
 0x321   :  { %v2364_v43 = vsel %vm2360_vm6, %v2099_v50, %v2247_v29  ;;  %v2366_v50 = vsel %vm2365_vm8, %v5599_v7, %v2256_v13  ;;  %v2269_v62 = vrot.slane %v2139_v39, 4 }
 0x322   :  { %v2369_v38 = vsel %vm2365_vm8, %v2364_v43, %v2259_v46  ;;  %v2371_v9 = vsel %vm2370_vm9, %v2366_v50, %v5382_v61 }
 0x323   :  { %v5623_v49 = vpop.permute.xlu2 %2216  ;;  %v2376_v17 = vsel %vm2375_vm11, %v2371_v9, %v2268_v57  ;;  %v2377_v61 = vsel %vm2375_vm11, %v2372_v56, %v2269_v62 }
 0x325   :  { %v2136_v21 = vpop.permute.xlu0 %2135 }
 0x326   :  { %v2138_v23 = vsel %vm2137_vm7, %v2134_v63, %v2136_v21  ;;  %v2141_v54 = vsel %vm2137_vm7, %v2136_v21, %v2130_v8  ;;  %v2374_v21 = vsel %vm2370_vm9, %v2369_v38, %v5392_v1 }
 0x327   :  { %v2145_v47 = vpop.permute.xlu1 %2144  ;;  %v2270_v32 = vrot.slane %v2138_v23, 4  ;;  %v2271_v51 = vrot.slane %v2141_v54, 4 }
 0x328   :  { %v2153_v19 = vsel %vm2150_vm10, %v2143_v33, %v2145_v47  ;;  %v2283_v33 = vrot.slane %v2154_v45, 3 }
 0x329   :  { %v2280_v8 = vrot.slane %v2153_v19, 3  ;;  %1784 = vmatmul.bf16.gmra.mxu2 %v3446_v11  ;;  %1873 = vmatmul.bf16.gmra.mxu3 %v3446_v11 }
 0x32a   :  { %1606 = vmatmul.bf16.gmra.mxu0 %v3446_v11  ;;  %1695 = vmatmul.bf16.gmra.mxu1 %v3446_v11  ;;  %v2402_v11 = vsel %vm2365_vm8, %v5541_v42, %v5341_v34 }
 0x32b   :  { %v5638_v10 = vpop.permute.xlu2 %2222  ;;  %v2381_v35 = vsel %vm2380_vm12, %v2376_v17, %v2280_v8 }
 0x32d   :  { %v2147_v55 = vpop.permute.xlu0 %2146 }
 0x32e   :  { %v2152_v60 = vsel %vm2150_vm10, %v2145_v47, %v2147_v55  ;;  %v2151_v7 = vsel %vm2150_vm10, %v2147_v55, %v2149_v6  ;;  %v2373_v6 = vsel %vm2370_vm9, %v2368_v28, %v5378_v16  ;;  %v2379_v16 = vsel %vm2375_vm11, %v2374_v21, %v2271_v51  ;;  %v5735_v28 = vpop.f32.mrf.mxu3  ;;  %v2425_v51 = vld [vmem:[%s6642_s6 + $0x10] sm:$0xff] }
 0x32f   :  { %v2156_v22 = vpop.permute.xlu1 %2155  ;;  %v2281_v63 = vrot.slane %v2152_v60, 3  ;;  %v2282_v53 = vrot.slane %v2151_v7, 3  ;;  %v2378_v14 = vsel %vm2375_vm11, %v2373_v6, %v2270_v32  ;;  %6824 = vst [vmem:[#allocation9_spill] sm:$0xff] %v5735_v28  ;;  %v2227_v32 = vsel %vm2150_vm10, %v5638_v10, %v5623_v49  ;;  %v5755_v7 = vpop.f32.mrf.mxu0 }
 0x330   :  { %6825 = vst [vmem:[#allocation13_spill] sm:$0xff] %v5755_v7  ;;  %v2343_v6 = vrot.slane %v2227_v32, 4 }
 0x331   :  { %v2382_v13 = vsel %vm2380_vm12, %v2377_v61, %v2281_v63  ;;  %v2383_v39 = vsel %vm2380_vm12, %v2378_v14, %v2282_v53  ;;  %v2401_v63 = vsel %vm2365_vm8, %v5533_v12, %v5326_v18 }
 0x333   :  { %v5671_v48 = vpop.permute.xlu2 %2232 }
 0x335   :  { %v2158_v47 = vpop.permute.xlu0 %2157 }
 0x336   :  { %v2165_v2 = vsel %vm2163_vm13, %v2158_v47, %v5617_v52  ;;  %v2166_v29 = vsel %vm2163_vm13, %v2156_v22, %v2158_v47 }
 0x337   :  { %v2292_v5 = vrot.slane %v2166_v29, 2  ;;  %v2293_v15 = vrot.slane %v2165_v2, 2  ;;  %v2162_v1 = vpop.permute.xlu1 %2161 }
 0x338   :  { %v2164_v55 = vsel %vm2163_vm13, %v5617_v52, %v2162_v1  ;;  %v2167_v59 = vsel %vm2163_vm13, %v2162_v1, %v2156_v22  ;;  %v2384_v52 = vsel %vm2380_vm12, %v2379_v16, %v2283_v33  ;;  %v2426_v33 = vld [vmem:[%s6642_s6 + $0x18] sm:$0xff] }
 0x339   :  { %v2386_v41 = vsel %vm2385_vm14, %v2381_v35, %v2292_v5  ;;  %v2387_v46 = vsel %vm2385_vm14, %v2382_v13, %v2293_v15  ;;  %v2294_v25 = vrot.slane %v2164_v55, 2  ;;  %v2295_v43 = vrot.slane %v2167_v59, 2  ;;  %v5795_v55 = vpop.f32.mrf.mxu1  ;;  %v5797_v59 = vpop.f32.mrf.mxu2 }
 0x33a   :  { %v2391_v45 = vsel %vm2390_vm15, %v2386_v41, %v2304_v4  ;;  %v2392_v23 = vsel %vm2390_vm15, %v2387_v46, %v2305_v27  ;;  %v3447_v27 = vld [vmem:[%s6639_s3 + $0x50] sm:$0xff]  ;;  %v2427_v41 = vld [vmem:[%s6642_s6 + $0x20] sm:$0xff] }
 0x33b   :  { %v2388_v22 = vsel %vm2385_vm14, %v2383_v39, %v2294_v25  ;;  %v2389_v54 = vsel %vm2385_vm14, %v2384_v52, %v2295_v43  ;;  %v5712_v50 = vpop.permute.xlu2 %2448  ;;  %1789 = vmatmul.bf16.gmra.mxu2 %v3447_v27  ;;  %1878 = vmatmul.bf16.gmra.mxu3 %v3447_v27  ;;  %v5808_v39 = vpop.f32.mrf.mxu3 }
 0x33c   :  { %v2393_v57 = vsel %vm2390_vm15, %v2388_v22, %v2306_v44  ;;  %v2394_v37 = vsel %vm2390_vm15, %v2389_v54, %v2307_v36  ;;  %1700 = vmatmul.bf16.gmra.mxu1 %v3447_v27  ;;  %1611 = vmatmul.bf16.gmra.mxu0 %v3447_v27  ;;  %v5823_v27 = vpop.f32.mrf.mxu0 }
 0x33d   :  { %v2211_v4 = vpop.permute.xlu0 %2210  ;;  %v5773_v61 = vmul.f32 %v2425_v51, %v2393_v57  ;;  %v2429_v57 = vld [vmem:[%s6642_s6 + $0x30] sm:$0xff]  ;;  %6826 = vst [vmem:[#allocation10_spill] sm:$0xff] %v5823_v27 }
 0x33e   :  { %v2212_v58 = vsel %vm2137_vm7, %v5555_v31, %v2211_v4  ;;  %v2215_v36 = vsel %vm2137_vm7, %v2211_v4, %v5548_v26  ;;  %v2423_v31 = vld [vmem:[%s6642_s6] sm:$0xff]  ;;  %v2424_v26 = vld [vmem:[%s6642_s6 + $0x8] sm:$0xff]  ;;  %vm2914_vm7 = vcmp.lt.s32.totalorder %v5445_v40, 80 }
 0x33f   :  { %v2219_v20 = vpop.permute.xlu1 %2218  ;;  %v2330_v9 = vrot.slane %v2212_v58, 5  ;;  %v5769_v21 = vmul.f32 %v2423_v31, %v2391_v45  ;;  %v5771_v47 = vmul.f32 %v2424_v26, %v2392_v23 }
 0x340   :  { %v2226_v38 = vsel %vm2150_vm10, %v5623_v49, %v2219_v20  ;;  %v2331_v49 = vrot.slane %v2215_v36, 5 }
 0x341   :  { %v2340_v17 = vrot.slane %v2226_v38, 4  ;;  %v2405_v12 = vsel %vm2370_vm9, %v2401_v63, %v2330_v9 }
 0x342   :  { %v2406_v42 = vsel %vm2370_vm9, %v2402_v11, %v2331_v49 }
 0x343   :  { %v2407_v15 = vsel %vm2375_vm11, %v5565_v3, %v2340_v17  ;;  %v2428_v3 = vld [vmem:[%s6642_s6 + $0x28] sm:$0xff]  ;;  %v2410_v52 = vsel %vm2375_vm11, %v2406_v42, %v2343_v6 }
 0x344   :  { %v5723_v19 = vpop.permute.xlu2 %2516 }
 0x345   :  { %v2221_v60 = vpop.permute.xlu0 %2220  ;;  %v2523_v38 = vmul.f32 %v5723_v19, %v5769_v21 }
 0x346   :  { %v2225_v62 = vsel %vm2150_vm10, %v2219_v20, %v2221_v60  ;;  %v2224_v8 = vsel %vm2150_vm10, %v2221_v60, %v5638_v10  ;;  %v5777_v10 = vmul.f32 %v2426_v33, %v2394_v37  ;;  %v2430_v37 = vld [vmem:[%s6642_s6 + $0x38] sm:$0xff] }
 0x347   :  { %v2229_v44 = vpop.permute.xlu1 %2228  ;;  %v2341_v56 = vrot.slane %v2225_v62, 4  ;;  %v2342_v29 = vrot.slane %v2224_v8, 4  ;;  %v2524_v62 = vmul.f32 %v5723_v19, %v5771_v47 }
 0x349   :  { %v2408_v1 = vsel %vm2375_vm11, %v5570_v30, %v2341_v56  ;;  %v2409_v43 = vsel %vm2375_vm11, %v2405_v12, %v2342_v29 }
 0x34d   :  { %v2231_v53 = vpop.permute.xlu0 %2230  ;;  %v5775_v2 = vpop.permute.xlu2 %2588 }
 0x34e   :  { %v2237_v18 = vsel %vm2163_vm13, %v2231_v53, %v5671_v48  ;;  %v2238_v34 = vsel %vm2163_vm13, %v2229_v44, %v2231_v53 }
 0x34f   :  { %v2352_v14 = vrot.slane %v2238_v34, 3  ;;  %v2353_v16 = vrot.slane %v2237_v18, 3  ;;  %v2235_v5 = vpop.permute.xlu1 %2234 }
 0x350   :  { %v2236_v35 = vsel %vm2163_vm13, %v5671_v48, %v2235_v5  ;;  %v2239_v13 = vsel %vm2163_vm13, %v2235_v5, %v2229_v44 }
 0x351   :  { %v2411_v30 = vsel %vm2380_vm12, %v2407_v15, %v2352_v14  ;;  %v2412_v46 = vsel %vm2380_vm12, %v2408_v1, %v2353_v16  ;;  %v2354_v48 = vrot.slane %v2236_v35, 3  ;;  %v2355_v25 = vrot.slane %v2239_v13, 3 }
 0x352   :  { %v2415_v45 = vsel %vm2385_vm14, %v2411_v30, 0.0  ;;  %v2416_v23 = vsel %vm2385_vm14, %v2412_v46, 0.0  ;;  %v2525_v35 = vmul.f32 %v5723_v19, %v5773_v61  ;;  %v2526_v13 = vmul.f32 %v5723_v19, %v5777_v10  ;;  %v3448_v19 = vld [vmem:[%s6639_s3 + $0x58] sm:$0xff] }
 0x353   :  { %v2419_v22 = vsel %vm2390_vm15, %v2415_v45, 0.0  ;;  %v2420_v54 = vsel %vm2390_vm15, %v2416_v23, 0.0  ;;  %v2413_v4 = vsel %vm2380_vm12, %v2409_v43, %v2354_v48  ;;  %v2414_v20 = vsel %vm2380_vm12, %v2410_v52, %v2355_v25  ;;  %v5879_v48 = vpop.f32.mrf.mxu3  ;;  %1794 = vmatmul.bf16.gmra.mxu2 %v3448_v19  ;;  %1883 = vmatmul.bf16.gmra.mxu3 %v3448_v19 }
 0x354   :  { %v5825_v60 = vmul.f32 %v2427_v41, %v2419_v22  ;;  %v5827_v44 = vmul.f32 %v2428_v3, %v2420_v54  ;;  %v2417_v58 = vsel %vm2385_vm14, %v2413_v4, 0.0  ;;  %v2418_v36 = vsel %vm2385_vm14, %v2414_v20, 0.0  ;;  %v5873_v41 = vpop.f32.mrf.mxu1  ;;  %v5875_v3 = vpop.f32.mrf.mxu2  ;;  %1616 = vmatmul.bf16.gmra.mxu0 %v3448_v19  ;;  %1705 = vmatmul.bf16.gmra.mxu1 %v3448_v19 }
 0x355   :  { %v2421_v32 = vsel %vm2390_vm15, %v2417_v58, 0.0  ;;  %v2422_v31 = vsel %vm2390_vm15, %v2418_v36, 0.0  ;;  %v2444_v26 = vpop.permute.xlu0 %2443  ;;  %v2595_v54 = vmul.f32 %v5775_v2, %v5769_v21  ;;  %v2596_v4 = vmul.f32 %v5775_v2, %v5771_v47 }
 0x356   :  { %v5837_v51 = vmul.f32 %v2429_v57, %v2421_v32  ;;  %v5839_v33 = vmul.f32 %v2430_v37, %v2422_v31  ;;  %v2455_v9 = vmul.f32 %v5712_v50, %v5825_v60  ;;  %v2456_v49 = vmul.f32 %v5712_v50, %v5827_v44  ;;  %v2661_v8 = vpop.permute.xlu2 %2660  ;;  %v5890_v57 = vpop.f32.mrf.mxu0 }
 0x357   :  { %v2451_v63 = vmul.f32 %v2444_v26, %v5769_v21  ;;  %v2452_v11 = vmul.f32 %v2444_v26, %v5771_v47  ;;  %v2453_v17 = vmul.f32 %v2444_v26, %v5773_v61  ;;  %v2454_v56 = vmul.f32 %v2444_v26, %v5777_v10  ;;  %v2521_v6 = vpop.permute.xlu1 %2520 }
 0x358   :  { %v2457_v53 = vmul.f32 %v5712_v50, %v5837_v51  ;;  %v2458_v29 = vmul.f32 %v5712_v50, %v5839_v33  ;;  %v5854_v18 = vmul.f32 %v2661_v8, %v5769_v21  ;;  %v5857_v34 = vmul.f32 %v2661_v8, %v5771_v47 }
 0x359   :  { %v2459_v12 = vadd.f32 %v2455_v9, %v2451_v63  ;;  %v2466_v42 = vadd.f32 %v2456_v49, %v2452_v11  ;;  %v5860_v14 = vmul.f32 %v2661_v8, %v5773_v61  ;;  %v5863_v16 = vmul.f32 %v2661_v8, %v5777_v10 }
 0x35a   :  { %v5865_v5 = vadd.f32 %v2457_v53, %v2453_v17  ;;  %v2480_v15 = vadd.f32 %v2458_v29, %v2454_v56  ;;  %v2527_v1 = vmul.f32 %v2521_v6, %v5825_v60  ;;  %v2528_v50 = vmul.f32 %v2521_v6, %v5827_v44 }
 0x35b   :  { %v2529_v30 = vmul.f32 %v2521_v6, %v5837_v51  ;;  %v2530_v46 = vmul.f32 %v2521_v6, %v5839_v33  ;;  %v2460_v25 = vrot.slane %v2459_v12, 4  ;;  %v2467_v43 = vrot.slane %v2466_v42, 4 }
 0x35c   :  { %v2531_v45 = vadd.f32 %v2527_v1, %v2523_v38  ;;  %v2538_v23 = vadd.f32 %v2528_v50, %v2524_v62  ;;  %v2597_v20 = vmul.f32 %v5775_v2, %v5773_v61  ;;  %v2598_v58 = vmul.f32 %v5775_v2, %v5777_v10 }
 0x35d   :  { %v5881_v52 = vadd.f32 %v2529_v30, %v2525_v35  ;;  %v5883_v22 = vadd.f32 %v2530_v46, %v2526_v13  ;;  %v2481_v36 = vrot.slane %v2480_v15, 4  ;;  %v2461_v62 = vadd.f32 %v2460_v25, %v2459_v12  ;;  %v5922_v46 = vpop.f32.mrf.mxu1  ;;  %v5924_v25 = vpop.f32.mrf.mxu2 }
 0x35e   :  { %v2720_v37 = vpop.permute.xlu0 %2719  ;;  %v2468_v32 = vadd.f32 %v2467_v43, %v2466_v42  ;;  %v2539_v30 = vrot.slane %v2538_v23, 4  ;;  %6827 = vst [vmem:[#allocation11_spill] sm:$0xff] %v5922_v46 }
 0x35f   :  { %v2724_v38 = vpop.permute.xlu2 %2723  ;;  %v2726_v31 = vmul.f32 %v2720_v37, %v5769_v21  ;;  %v2727_v26 = vmul.f32 %v2720_v37, %v5771_v47  ;;  %v2728_v49 = vmul.f32 %v2720_v37, %v5773_v61  ;;  %v2729_v8 = vmul.f32 %v2720_v37, %v5777_v10  ;;  %6828 = vst [vmem:[#allocation30_spill] sm:$0xff] %v5924_v25  ;;  %v5930_v37 = vpop.f32.mrf.mxu3 }
 0x360   :  { %v2593_v9 = vpop.permute.xlu1 %2592  ;;  %v2730_v63 = vmul.f32 %v2724_v38, %v5825_v60  ;;  %v2731_v2 = vmul.f32 %v2724_v38, %v5827_v44  ;;  %v2732_v11 = vmul.f32 %v2724_v38, %v5837_v51  ;;  %v2733_v17 = vmul.f32 %v2724_v38, %v5839_v33  ;;  %6829 = vst [vmem:[#allocation36_spill] sm:$0xff] %v5930_v37 }
 0x361   :  { %v2599_v56 = vmul.f32 %v2593_v9, %v5825_v60  ;;  %v2600_v6 = vmul.f32 %v2593_v9, %v5827_v44  ;;  %v2601_v12 = vmul.f32 %v2593_v9, %v5837_v51  ;;  %v2602_v42 = vmul.f32 %v2593_v9, %v5839_v33  ;;  %v5933_v9 = vpop.f32.mrf.mxu0 }
 0x362   :  { %v5908_v53 = vadd.f32 %v2730_v63, %v2726_v31  ;;  %v5910_v29 = vadd.f32 %v2731_v2, %v2727_v26  ;;  %v5914_v1 = vadd.f32 %v2732_v11, %v2728_v49  ;;  %v5916_v50 = vadd.f32 %v2733_v17, %v2729_v8  ;;  %6830 = vst [vmem:[#allocation34_spill] sm:$0xff] %v5933_v9 }
 0x363   :  { %v5918_v35 = vadd.f32 %v2599_v56, %v2595_v54  ;;  %v5920_v13 = vadd.f32 %v2600_v6, %v2596_v4  ;;  %v5926_v43 = vadd.f32 %v2601_v12, %v2597_v20  ;;  %v5928_v19 = vadd.f32 %v2602_v42, %v2598_v58 }
 0x364   :  { %v2474_v38 = vrot.slane %v5865_v5, 4  ;;  %v2482_v31 = vadd.f32 %v2481_v36, %v2480_v15  ;;  %v2532_v26 = vrot.slane %v2531_v45, 4  ;;  %v2469_v54 = vrot.slane %v2468_v32, 2 }
 0x365   :  { %v2462_v4 = vrot.slane %v2461_v62, 2  ;;  %v2540_v8 = vadd.f32 %v2539_v30, %v2538_v23 }
 0x366   :  { %v2470_v2 = vadd.f32 %v2469_v54, %v2468_v32  ;;  %v2475_v20 = vadd.f32 %v2474_v38, %v5865_v5  ;;  %v2533_v58 = vadd.f32 %v2532_v26, %v2531_v45  ;;  %v2483_v17 = vrot.slane %v2482_v31, 2  ;;  %v5948_v26 = vpop.f32.mrf.mxu1  ;;  %v5950_v54 = vpop.f32.mrf.mxu2 }
 0x367   :  { %v2463_v11 = vadd.f32 %v2462_v4, %v2461_v62  ;;  %v2541_v32 = vrot.slane %v2540_v8, 2  ;;  %v2546_v38 = vrot.slane %v5881_v52, 4 }
 0x368   :  { %v5935_v49 = vpop.permute.xlu2 %2791  ;;  %v2471_v6 = vrot.slane %v2470_v2, 1  ;;  %v2484_v42 = vadd.f32 %v2483_v17, %v2482_v31  ;;  %v5953_v17 = vpop.f32.mrf.mxu3 }
 0x369   :  { %v2665_v63 = vpop.permute.xlu1 %2664  ;;  %v2464_v12 = vrot.slane %v2463_v11, 1 }
 0x36a   :  { %v2671_v56 = vmul.f32 %v2665_v63, %v5825_v60  ;;  %v2672_v15 = vmul.f32 %v2665_v63, %v5827_v44  ;;  %v2673_v36 = vmul.f32 %v2665_v63, %v5837_v51  ;;  %v2674_v37 = vmul.f32 %v2665_v63, %v5839_v33 }
 0x36b   :  { %v2472_v62 = vadd.f32 %v2471_v6, %v2470_v2  ;;  %v2465_v30 = vadd.f32 %v2464_v12, %v2463_v11  ;;  %v2485_v4 = vrot.slane %v2484_v42, 1  ;;  %v2542_v63 = vadd.f32 %v2541_v32, %v2540_v8  ;;  %v2864_v2 = vpop.permute.xlu0 %2863  ;;  %v5960_v12 = vpop.f32.mrf.mxu0 }
 0x36c   :  { %v5943_v23 = vadd.f32 %v2671_v56, %v5854_v18  ;;  %v2682_v5 = vadd.f32 %v2672_v15, %v5857_v34  ;;  %v2689_v45 = vadd.f32 %v2673_v36, %v5860_v14  ;;  %v2696_v31 = vadd.f32 %v2674_v37, %v5863_v16  ;;  %v3449_v14 = vld [vmem:[%s6639_s3 + $0x60] sm:$0xff] }
 0x36d   :  { %2489 = vrot.lane.b32.xlu2 %v2472_v62, %s3764_s9  ;;  %2487 = vrot.lane.b32.xlu1 %v2465_v30, %s3764_s9  ;;  %v2476_v18 = vrot.slane %v2475_v20, 2  ;;  %v2534_v34 = vrot.slane %v2533_v58, 2  ;;  %v2486_v11 = vadd.f32 %v2485_v4, %v2484_v42  ;;  %v2543_v16 = vrot.slane %v2542_v63, 1 }
 0x36e   :  { %v2683_v56 = vrot.slane %v2682_v5, 4  ;;  %1799 = vmatmul.bf16.gmra.mxu2 %v3449_v14  ;;  %v5963_v15 = vadd.f32 %v2546_v38, %v5881_v52  ;;  %v2553_v36 = vrot.slane %v5883_v22, 4  ;;  %1888 = vmatmul.bf16.gmra.mxu3 %v3449_v14  ;;  %v2870_v42 = vmul.f32 %v2864_v2, %v5769_v21 }
 0x36f   :  { %v2477_v37 = vadd.f32 %v2476_v18, %v2475_v20  ;;  %v2535_v8 = vadd.f32 %v2534_v34, %v2533_v58  ;;  %2493 = vrot.lane.b32.xlu0 %v2486_v11, %s3764_s9  ;;  %v2690_v62 = vrot.slane %v2689_v45, 4  ;;  %v2697_v30 = vrot.slane %v2696_v31, 4  ;;  %1621 = vmatmul.bf16.gmra.mxu0 %v3449_v14 }
 0x370   :  { %1710 = vmatmul.bf16.gmra.mxu1 %v3449_v14  ;;  %v2684_v20 = vadd.f32 %v2683_v56, %v2682_v5  ;;  %v2871_v38 = vmul.f32 %v2864_v2, %v5771_v47  ;;  %v2872_v34 = vmul.f32 %v2864_v2, %v5773_v61  ;;  %v2544_v11 = vadd.f32 %v2543_v16, %v2542_v63 }
 0x371   :  { %v2868_v6 = vpop.permute.xlu2 %2867  ;;  %v2478_v4 = vrot.slane %v2477_v37, 1  ;;  %v2536_v58 = vrot.slane %v2535_v8, 1  ;;  %v2554_v46 = vadd.f32 %v2553_v36, %v5883_v22  ;;  %v2873_v9 = vmul.f32 %v2864_v2, %v5777_v10  ;;  %v5985_v2 = vpop.f32.mrf.mxu1 }
 0x372   :  { %v2874_v32 = vmul.f32 %v2868_v6, %v5825_v60  ;;  %v2875_v18 = vmul.f32 %v2868_v6, %v5827_v44  ;;  %v2876_v52 = vmul.f32 %v2868_v6, %v5837_v51  ;;  %v2877_v28 = vmul.f32 %v2868_v6, %v5839_v33  ;;  %v2796_v16 = vpop.permute.xlu1 %2795  ;;  %6831 = vst [vmem:[#allocation35_spill] sm:$0xff] %v5985_v2  ;;  %v5987_v6 = vpop.f32.mrf.mxu2 }
 0x373   :  { %v2479_v25 = vadd.f32 %v2478_v4, %v2477_v37  ;;  %v2676_v5 = vrot.slane %v5943_v23, 4  ;;  %v2691_v14 = vadd.f32 %v2690_v62, %v2689_v45  ;;  %v2685_v22 = vrot.slane %v2684_v20, 2  ;;  %6832 = vst [vmem:[#allocation32_spill] sm:$0xff] %v5987_v6 }
 0x374   :  { %v5976_v24 = vadd.f32 %v2874_v32, %v2870_v42  ;;  %v5981_v56 = vadd.f32 %v2875_v18, %v2871_v38  ;;  %v5983_v63 = vadd.f32 %v2876_v52, %v2872_v34  ;;  %v2698_v37 = vadd.f32 %v2697_v30, %v2696_v31  ;;  %v6000_v18 = vpop.f32.mrf.mxu3  ;;  %v6009_v38 = vpop.f32.mrf.mxu0 }
 0x375   :  { %2561 = vrot.lane.b32.xlu2 %v2544_v11, %s3765_s13  ;;  %2491 = vrot.lane.b32.xlu1 %v2479_v25, %s3764_s9  ;;  %v2537_v36 = vadd.f32 %v2536_v58, %v2535_v8  ;;  %v5989_v32 = vadd.f32 %v2877_v28, %v2873_v9  ;;  %v2735_v45 = vrot.slane %v5908_v53, 4  ;;  %v2742_v42 = vrot.slane %v5910_v29, 4  ;;  %6833 = vst [vmem:[#allocation31_spill] sm:$0xff] %v6000_v18 }
 0x376   :  { %v2604_v25 = vrot.slane %v5918_v35, 4  ;;  %v2611_v62 = vrot.slane %v5920_v13, 4  ;;  %v2618_v4 = vrot.slane %v5926_v43, 4  ;;  %v2798_v31 = vmul.f32 %v5935_v49, %v5769_v21  ;;  %6834 = vst [vmem:[#allocation26_spill] sm:$0xff] %v6009_v38 }
 0x377   :  { %v2799_v30 = vmul.f32 %v5935_v49, %v5771_v47  ;;  %2559 = vrot.lane.b32.xlu0 %v2537_v36, %s3765_s13  ;;  %v2802_v28 = vmul.f32 %v2796_v16, %v5825_v60  ;;  %v2800_v9 = vmul.f32 %v5935_v49, %v5773_v61  ;;  %v2801_v8 = vmul.f32 %v5935_v49, %v5777_v10 }
 0x378   :  { %v2677_v58 = vadd.f32 %v2676_v5, %v5943_v23  ;;  %v2692_v52 = vrot.slane %v2691_v14, 2  ;;  %v2686_v21 = vadd.f32 %v2685_v22, %v2684_v20  ;;  %v2699_v34 = vrot.slane %v2698_v37, 2 }
 0x379   :  { %v2803_v47 = vmul.f32 %v2796_v16, %v5827_v44  ;;  %v2804_v11 = vmul.f32 %v2796_v16, %v5837_v51  ;;  %v2805_v36 = vmul.f32 %v2796_v16, %v5839_v33  ;;  %v6014_v60 = vadd.f32 %v2802_v28, %v2798_v31  ;;  %v3450_v33 = vld [vmem:[%s6639_s3 + $0x68] sm:$0xff] }
 0x37a   :  { %v2612_v61 = vadd.f32 %v2611_v62, %v5920_v13  ;;  %v2548_v18 = vrot.slane %v5963_v15, 2  ;;  %v2555_v23 = vrot.slane %v2554_v46, 2  ;;  %v2619_v5 = vadd.f32 %v2618_v4, %v5926_v43 }
 0x37b   :  { %v2813_v10 = vadd.f32 %v2803_v47, %v2799_v30  ;;  %v6018_v49 = vadd.f32 %v2804_v11, %v2800_v9  ;;  %v2743_v20 = vadd.f32 %v2742_v42, %v5910_v29  ;;  %v6022_v22 = vadd.f32 %v2805_v36, %v2801_v8  ;;  %v6030_v8 = vpop.f32.mrf.mxu1 }
 0x37c   :  { %v2613_v44 = vrot.slane %v2612_v61, 2  ;;  %v2549_v51 = vadd.f32 %v2548_v18, %v5963_v15  ;;  %v2693_v13 = vadd.f32 %v2692_v52, %v2691_v14  ;;  %v2700_v16 = vadd.f32 %v2699_v34, %v2698_v37  ;;  %6835 = vst [vmem:[#allocation33_spill] sm:$0xff] %v6030_v8  ;;  %v6032_v15 = vpop.f32.mrf.mxu2  ;;  %v6034_v11 = vpop.f32.mrf.mxu3 }
 0x37d   :  { %v2556_v62 = vadd.f32 %v2555_v23, %v2554_v46  ;;  %v2620_v31 = vrot.slane %v2619_v5, 2  ;;  %v2625_v30 = vrot.slane %v5928_v19, 4  ;;  %v2814_v28 = vrot.slane %v2813_v10, 4  ;;  %6836 = vst [vmem:[#allocation27_spill] sm:$0xff] %v6032_v15 }
 0x37e   :  { %v2614_v9 = vadd.f32 %v2613_v44, %v2612_v61  ;;  %v2550_v43 = vrot.slane %v2549_v51, 1  ;;  %1804 = vmatmul.bf16.gmra.mxu2 %v3450_v33  ;;  %v2736_v29 = vadd.f32 %v2735_v45, %v5908_v53  ;;  %v2678_v42 = vrot.slane %v2677_v58, 2  ;;  %1893 = vmatmul.bf16.gmra.mxu3 %v3450_v33  ;;  %6837 = vst [vmem:[#allocation28_spill] sm:$0xff] %v6034_v11  ;;  %v6037_v61 = vpop.f32.mrf.mxu0 }
 0x37f   :  { %v2687_v4 = vrot.slane %v2686_v21, 1  ;;  %v2557_v18 = vrot.slane %v2556_v62, 1  ;;  %v2621_v46 = vadd.f32 %v2620_v31, %v2619_v5  ;;  %v2744_v52 = vrot.slane %v2743_v20, 2  ;;  %1626 = vmatmul.bf16.gmra.mxu0 %v3450_v33  ;;  %6838 = vst [vmem:[#allocation18_spill] sm:$0xff] %v6037_v61 }
 0x380   :  { %v2615_v14 = vrot.slane %v2614_v9, 1  ;;  %v2551_v37 = vadd.f32 %v2550_v43, %v2549_v51  ;;  %1715 = vmatmul.bf16.gmra.mxu1 %v3450_v33  ;;  %v2694_v34 = vrot.slane %v2693_v13, 1  ;;  %v2701_v47 = vrot.slane %v2700_v16, 1 }
 0x381   :  { %v2558_v36 = vadd.f32 %v2557_v18, %v2556_v62  ;;  %v2605_v53 = vadd.f32 %v2604_v25, %v5918_v35  ;;  %v2815_v45 = vadd.f32 %v2814_v28, %v2813_v10  ;;  %v2745_v44 = vadd.f32 %v2744_v52, %v2743_v20 }
 0x382   :  { %v2616_v23 = vadd.f32 %v2615_v14, %v2614_v9  ;;  %2563 = vrot.lane.b32.xlu1 %v2551_v37, %s3765_s13  ;;  %v2626_v51 = vadd.f32 %v2625_v30, %v5928_v19  ;;  %v2679_v5 = vadd.f32 %v2678_v42, %v2677_v58  ;;  %v2749_v31 = vrot.slane %v5914_v1, 4 }
 0x383   :  { %2565 = vrot.lane.b32.xlu0 %v2558_v36, %s3765_s13  ;;  %v2606_v33 = vrot.slane %v2605_v53, 2  ;;  %v2756_v43 = vrot.slane %v5916_v50, 4  ;;  %v2622_v35 = vrot.slane %v2621_v46, 1  ;;  %v2737_v25 = vrot.slane %v2736_v29, 2 }
 0x384   :  { %2633 = vrot.lane.b32.xlu2 %v2616_v23, %s3748_s11  ;;  %v2688_v10 = vadd.f32 %v2687_v4, %v2686_v21  ;;  %v2879_v62 = vrot.slane %v5976_v24, 4  ;;  %v2627_v9 = vrot.slane %v2626_v51, 2  ;;  %v2695_v20 = vadd.f32 %v2694_v34, %v2693_v13  ;;  %v6049_v21 = vpop.f32.mrf.mxu1  ;;  %v6051_v4 = vpop.f32.mrf.mxu2 }
 0x385   :  { %v2607_v28 = vadd.f32 %v2606_v33, %v2605_v53  ;;  %v2702_v18 = vadd.f32 %v2701_v47, %v2700_v16  ;;  %v2746_v19 = vrot.slane %v2745_v44, 1  ;;  %v2816_v58 = vrot.slane %v2815_v45, 2 }
 0x386   :  { %v2680_v30 = vrot.slane %v2679_v5, 1  ;;  %v2750_v14 = vadd.f32 %v2749_v31, %v5914_v1  ;;  %v2757_v37 = vadd.f32 %v2756_v43, %v5916_v50  ;;  %v2623_v52 = vadd.f32 %v2622_v35, %v2621_v46  ;;  %v3451_v1 = vld [vmem:[%s6639_s3 + $0x70] sm:$0xff]  ;;  %v6061_v46 = vpop.f32.mrf.mxu0 }
 0x387   :  { %v2608_v42 = vrot.slane %v2607_v28, 1  ;;  %v2738_v36 = vadd.f32 %v2737_v25, %v2736_v29  ;;  %v2709_v23 = vrot.slane %v2688_v10, 7  ;;  %v2880_v6 = vadd.f32 %v2879_v62, %v5976_v24  ;;  %v6057_v29 = vpop.f32.mrf.mxu3 }
 0x388   :  { %v2628_v13 = vadd.f32 %v2627_v9, %v2626_v51  ;;  %v2710_v16 = vrot.slane %v2695_v20, 6  ;;  %v2711_v34 = vrot.slane %v2702_v18, 5  ;;  %v2747_v47 = vadd.f32 %v2746_v19, %v2745_v44 }
 0x389   :  { %v2609_v53 = vadd.f32 %v2608_v42, %v2607_v28  ;;  %v2817_v33 = vadd.f32 %v2816_v58, %v2815_v45  ;;  %v2681_v50 = vadd.f32 %v2680_v30, %v2679_v5  ;;  %v2807_v24 = vrot.slane %v6014_v60, 4 }
 0x38a   :  { %2635 = vrot.lane.b32.xlu1 %v2623_v52, %s3748_s11  ;;  %v2739_v51 = vrot.slane %v2738_v36, 1  ;;  %v2751_v31 = vrot.slane %v2750_v14, 2  ;;  %v2828_v45 = vrot.slane %v6022_v22, 4  ;;  %v2629_v44 = vrot.slane %v2628_v13, 1 }
 0x38b   :  { %2631 = vrot.lane.b32.xlu0 %v2609_v53, %s3748_s11  ;;  %v2758_v43 = vrot.slane %v2757_v37, 2  ;;  %v2712_v5 = vsel %vm2360_vm6, %v2681_v50, %v2709_v23  ;;  %v2900_v35 = vrot.slane %v5989_v32, 4  ;;  %v2818_v25 = vrot.slane %v2817_v33, 1 }
 0x38c   :  { %2764 = vrot.lane.b32.xlu2 %v2747_v47, %s3766_s18  ;;  %v2881_v10 = vrot.slane %v2880_v6, 2  ;;  %v2713_v62 = vsel %vm2509_vm0, %v2710_v16, %v2711_v34  ;;  %v2808_v9 = vadd.f32 %v2807_v24, %v6014_v60  ;;  %v2740_v20 = vadd.f32 %v2739_v51, %v2738_v36  ;;  %v6075_v53 = vpop.f32.mrf.mxu1  ;;  %v6077_v16 = vpop.f32.mrf.mxu2 }
 0x38d   :  { %v6069_v28 = vsel %vm2365_vm8, %v2712_v5, %v2713_v62  ;;  %v2752_v18 = vadd.f32 %v2751_v31, %v2750_v14  ;;  %v2829_v19 = vadd.f32 %v2828_v45, %v6022_v22  ;;  %v2630_v58 = vadd.f32 %v2629_v44, %v2628_v13  ;;  %6839 = vst [vmem:[#allocation29_spill] sm:$0xff] %v6075_v53 }
 0x38e   :  { %1809 = vmatmul.bf16.gmra.mxu2 %v3451_v1  ;;  %1898 = vmatmul.bf16.gmra.mxu3 %v3451_v1  ;;  %v2759_v30 = vadd.f32 %v2758_v43, %v2757_v37  ;;  %v2901_v42 = vadd.f32 %v2900_v35, %v5989_v32  ;;  %v2819_v52 = vadd.f32 %v2818_v25, %v2817_v33  ;;  %v2821_v60 = vrot.slane %v6018_v49, 4  ;;  %v3452_v43 = vld [vmem:[%s6639_s3 + $0x78] sm:$0xff] }
 0x38f   :  { %1631 = vmatmul.bf16.gmra.mxu0 %v3451_v1  ;;  %v2882_v23 = vadd.f32 %v2881_v10, %v2880_v6  ;;  %6840 = vst [vmem:[#allocation22_spill] sm:$0xff] %v6077_v16  ;;  %v2753_v22 = vrot.slane %v2752_v18, 1  ;;  %v2809_v14 = vrot.slane %v2808_v9, 2  ;;  %v2893_v37 = vrot.slane %v5983_v63, 4  ;;  %v6083_v32 = vpop.f32.mrf.mxu3  ;;  %v6085_v6 = vpop.f32.mrf.mxu0 }
 0x390   :  { %1720 = vmatmul.bf16.gmra.mxu1 %v3451_v1  ;;  %6841 = vst [vmem:[#allocation19_spill] sm:$0xff] %v6083_v32  ;;  %v2760_v36 = vrot.slane %v2759_v30, 1  ;;  %v2830_v13 = vrot.slane %v2829_v19, 2  ;;  %v2902_v47 = vrot.slane %v2901_v42, 2  ;;  %v2822_v33 = vadd.f32 %v2821_v60, %v6018_v49 }
 0x391   :  { %6842 = vst [vmem:[#allocation23_spill] sm:$0xff] %v6085_v6  ;;  %v2883_v34 = vrot.slane %v2882_v23, 1  ;;  %v2754_v1 = vadd.f32 %v2753_v22, %v2752_v18  ;;  %v2810_v50 = vadd.f32 %v2809_v14, %v2808_v9  ;;  %v2894_v24 = vadd.f32 %v2893_v37, %v5983_v63 }
 0x392   :  { %2762 = vrot.lane.b32.xlu1 %v2740_v20, %s3766_s18  ;;  %v2761_v51 = vadd.f32 %v2760_v36, %v2759_v30  ;;  %v2831_v31 = vadd.f32 %v2830_v13, %v2829_v19  ;;  %v2903_v44 = vadd.f32 %v2902_v47, %v2901_v42  ;;  %v2886_v5 = vrot.slane %v5981_v56, 4 }
 0x393   :  { %2637 = vrot.lane.b32.xlu0 %v2630_v58, %s3748_s11  ;;  %v2884_v45 = vadd.f32 %v2883_v34, %v2882_v23  ;;  %v2811_v49 = vrot.slane %v2810_v50, 1  ;;  %v2823_v35 = vrot.slane %v2822_v33, 2  ;;  %v2895_v62 = vrot.slane %v2894_v24, 2 }
 0x394   :  { %2836 = vrot.lane.b32.xlu2 %v2819_v52, %s3767_s19  ;;  %v6096_v63 = vpop.f32.mrf.mxu1  ;;  %v6098_v25 = vpop.f32.mrf.mxu2  ;;  %v2832_v10 = vrot.slane %v2831_v31, 1  ;;  %v2904_v9 = vrot.slane %v2903_v44, 1  ;;  %v2887_v18 = vadd.f32 %v2886_v5, %v5981_v56 }
 0x395   :  { %6843 = vst [vmem:[#allocation24_spill] sm:$0xff] %v6096_v63  ;;  %v2812_v58 = vadd.f32 %v2811_v49, %v2810_v50  ;;  %v2824_v30 = vadd.f32 %v2823_v35, %v2822_v33  ;;  %v2896_v52 = vadd.f32 %v2895_v62, %v2894_v24  ;;  %v3092_v33 = vld [vmem:[%s6640_s4 + $0x10] sm:$0xff]  ;;  %v3090_v49 = vld [vmem:[%s6640_s4] sm:$0xff] }
 0x396   :  { %6844 = vst [vmem:[#allocation20_spill] sm:$0xff] %v6098_v25  ;;  %v2833_v42 = vadd.f32 %v2832_v10, %v2831_v31  ;;  %v2905_v23 = vadd.f32 %v2904_v9, %v2903_v44  ;;  %v2888_v22 = vrot.slane %v2887_v18, 2  ;;  %v3094_v44 = vld [vmem:[%s6640_s4 + $0x20] sm:$0xff]  ;;  %v3096_v35 = vld [vmem:[%s6640_s4 + $0x30] sm:$0xff]  ;;  %v3097_v10 = vld [vmem:[%s6640_s4 + $0x38] sm:$0xff] }
 0x397   :  { %v6100_v20 = vpop.f32.mrf.mxu3  ;;  %v6103_v19 = vpop.f32.mrf.mxu0  ;;  %v2825_v60 = vrot.slane %v2824_v30, 1  ;;  %v2897_v14 = vrot.slane %v2896_v52, 1 }
 0x398   :  { %6845 = vst [vmem:[#allocation25_spill] sm:$0xff] %v6100_v20  ;;  %v2889_v13 = vadd.f32 %v2888_v22, %v2887_v18 }
 0x399   :  { %6846 = vst [vmem:[#allocation14_spill] sm:$0xff] %v6103_v19  ;;  %v2826_v36 = vadd.f32 %v2825_v60, %v2824_v30  ;;  %v2898_v47 = vadd.f32 %v2897_v14, %v2896_v52  ;;  %v3093_v30 = vld [vmem:[%s6640_s4 + $0x18] sm:$0xff]  ;;  %v3100_v52 = vld [vmem:[%s6640_s4 + $0x50] sm:$0xff]  ;;  %v3095_v14 = vld [vmem:[%s6640_s4 + $0x28] sm:$0xff] }
 0x39a   :  { %2766 = vrot.lane.b32.xlu1 %v2754_v1, %s3766_s18  ;;  %v2890_v50 = vrot.slane %v2889_v13, 1 }
 0x39b   :  { %2768 = vrot.lane.b32.xlu0 %v2761_v51, %s3766_s18  ;;  %v3091_v51 = vld [vmem:[%s6640_s4 + $0x8] sm:$0xff] }
 0x39c   :  { %2906 = vrot.lane.b32.xlu2 %v2884_v45, %s3768_s1  ;;  %v6108_v37 = vpop.f32.mrf.mxu1  ;;  %v6110_v56 = vpop.f32.mrf.mxu2  ;;  %v2891_v24 = vadd.f32 %v2890_v50, %v2889_v13  ;;  %v3102_v13 = vld [vmem:[%s6640_s4 + $0x60] sm:$0xff] }
 0x39d   :  { %6847 = vst [vmem:[#allocation21_spill] sm:$0xff] %v6108_v37 }
 0x39e   :  { %1814 = vmatmul.bf16.gmra.mxu2 %v3452_v43  ;;  %1903 = vmatmul.bf16.gmra.mxu3 %v3452_v43  ;;  %6848 = vst [vmem:[#allocation16_spill] sm:$0xff] %v6110_v56 }
 0x39f   :  { %1636 = vmatmul.bf16.gmra.mxu0 %v3452_v43  ;;  %v6112_v34 = vpop.f32.mrf.mxu3  ;;  %v6117_v1 = vpop.f32.mrf.mxu0 }
 0x3a0   :  { %1725 = vmatmul.bf16.gmra.mxu1 %v3452_v43  ;;  %6849 = vst [vmem:[#allocation15_spill] sm:$0xff] %v6112_v34 }
 0x3a1   :  { %6850 = vst [vmem:[#allocation17_spill] sm:$0xff] %v6117_v1 }
 0x3a2   :  { %2834 = vrot.lane.b32.xlu1 %v2812_v58, %s3767_s19 }
 0x3a3   :  { %2840 = vrot.lane.b32.xlu0 %v2833_v42, %s3767_s19  ;;  %v3099_v42 = vld [vmem:[%s6640_s4 + $0x48] sm:$0xff] }
 0x3a4   :  { %2912 = vrot.lane.b32.xlu2 %v2905_v23, %s3768_s1  ;;  %v6124_v31 = vpop.f32.mrf.mxu1  ;;  %v6126_v45 = vpop.f32.mrf.mxu2 }
 0x3a5   :  { %6851 = vst [vmem:[#allocation37_spill] sm:$0xff] %v6124_v31 }
 0x3a6   :  { %6852 = vst [vmem:[#allocation38_spill] sm:$0xff] %v6126_v45 }
 0x3a7   :  { %v6132_v43 = vpop.f32.mrf.mxu3  ;;  %v6134_v5 = vpop.f32.mrf.mxu0 }
 0x3a8   :  { %6853 = vst [vmem:[#allocation39_spill] sm:$0xff] %v6132_v43 }
 0x3a9   :  { %6854 = vst [vmem:[#allocation40_spill] sm:$0xff] %v6134_v5 }
 0x3aa   :  { %2838 = vrot.lane.b32.xlu1 %v2826_v36, %s3767_s19  ;;  %s3321_s19 = sshll.u32 %s6644_s8, 4  ;;  %s3322_s19 = int_to_ptr.hbm [resolvable:$true] %s3321_s19 }
 0x3ab   :  { %2910 = vrot.lane.b32.xlu0 %v2898_v47, %s3768_s1  ;;  %v3103_v47 = vld [vmem:[%s6640_s4 + $0x68] sm:$0xff] }
 0x3ac   :  { %3118 = vperm.xlu2 %3493, %v3092_v33   ;;  %v6145_v62 = vpop.f32.mrf.mxu1  ;;  %v6147_v9 = vpop.f32.mrf.mxu2 }
 0x3ad   :  { %6855 = vst [vmem:[#allocation41_spill] sm:$0xff] %v6145_v62 }
 0x3ae   :  { %6856 = vst [vmem:[#allocation42_spill] sm:$0xff] %v6147_v9 }
 0x3af   :  { %v6149_v18 = vpop.f32.mrf.mxu3  ;;  %v6151_v58 = vpop.f32.mrf.mxu0 }
 0x3b0   :  { %6857 = vst [vmem:[#allocation43_spill] sm:$0xff] %v6149_v18 }
 0x3b1   :  { %6858 = vst [vmem:[#allocation44_spill] sm:$0xff] %v6151_v58 }
 0x3b2   :  { %2908 = vrot.lane.b32.xlu1 %v2891_v24, %s3768_s1  ;;  %v3098_v24 = vld [vmem:[%s6640_s4 + $0x40] sm:$0xff] }
 0x3b3   :  { %3113 = vperm.xlu0 %3492, %v3091_v51   ;;  %v3105_v51 = vld [vmem:[%s6640_s4 + $0x78] sm:$0xff] }
 0x3b4   :  { %3128 = vperm.xlu2 %3493, %v3094_v44   ;;  %v6162_v23 = vpop.f32.mrf.mxu1  ;;  %v6164_v60 = vpop.f32.mrf.mxu2 }
 0x3b5   :  { %6859 = vst [vmem:[#allocation45_spill] sm:$0xff] %v6162_v23 }
 0x3b6   :  { %6860 = vst [vmem:[#allocation46_spill] sm:$0xff] %v6164_v60 }
 0x3b7   :  { %v6166_v22 = vpop.f32.mrf.mxu3  ;;  %v6171_v36 = vpop.f32.mrf.mxu0 }
 0x3b8   :  { %6861 = vst [vmem:[#allocation47_spill] sm:$0xff] %v6166_v22 }
 0x3b9   :  { %6862 = vst [vmem:[#allocation48_spill] sm:$0xff] %v6171_v36 }
 0x3ba   :  { %3108 = vperm.xlu1 %3491, %v3090_v49  }
 0x3bb   :  { %3138 = vperm.xlu0 %3492, %v3096_v35   ;;  %v3101_v35 = vld [vmem:[%s6640_s4 + $0x58] sm:$0xff] }
 0x3bc   :  { %3143 = vperm.xlu2 %3493, %v3097_v10   ;;  %v6179_v33 = vpop.f32.mrf.mxu1  ;;  %v6181_v50 = vpop.f32.mrf.mxu2 }
 0x3bd   :  { %6863 = vst [vmem:[#allocation49_spill] sm:$0xff] %v6179_v33 }
 0x3be   :  { %6864 = vst [vmem:[#allocation50_spill] sm:$0xff] %v6181_v50 }
 0x3bf   :  { %v6189_v44 = vpop.f32.mrf.mxu3  ;;  %v6191_v49 = vpop.f32.mrf.mxu0 }
 0x3c0   :  { %6865 = vst [vmem:[#allocation51_spill] sm:$0xff] %v6189_v44 }
 0x3c1   :  { %6866 = vst [vmem:[#allocation52_spill] sm:$0xff] %v6191_v49 }
 0x3c2   :  { %3123 = vperm.xlu1 %3491, %v3093_v30  }
 0x3c3   :  { %3153 = vperm.xlu0 %3492, %v3099_v42  }
 0x3c4   :  { %3158 = vperm.xlu2 %3493, %v3100_v52   ;;  %v6196_v10 = vpop.f32.mrf.mxu1  ;;  %v6198_v30 = vpop.f32.mrf.mxu2 }
 0x3c5   :  { %6867 = vst [vmem:[#allocation53_spill] sm:$0xff] %v6196_v10 }
 0x3c6   :  { %6868 = vst [vmem:[#allocation54_spill] sm:$0xff] %v6198_v30 }
 0x3c7   :  { %v6200_v42 = vpop.f32.mrf.mxu3  ;;  %v6202_v52 = vpop.f32.mrf.mxu0 }
 0x3c8   :  { %6869 = vst [vmem:[#allocation55_spill] sm:$0xff] %v6200_v42  ;;  %v2490_v44 = vpop.permute.xlu2 %2489 }
 0x3c9   :  { %6870 = vst [vmem:[#allocation56_spill] sm:$0xff] %v6202_v52 }
 0x3ca   :  { %3133 = vperm.xlu1 %3491, %v3095_v14   ;;  %v3104_v14 = vld [vmem:[%s6640_s4 + $0x70] sm:$0xff] }
 0x3cb   :  { %3168 = vperm.xlu0 %3492, %v3102_v13  }
 0x3cc   :  { %3173 = vperm.xlu2 %3493, %v3103_v47  }
 0x3cf   :  { %v6211_v50 = vpop.f32.mrf.mxu3  ;;  %v6213_v33 = vpop.f32.mrf.mxu0 }
 0x3d0   :  { %6871 = vst [vmem:[#allocation57_spill] sm:$0xff] %v6211_v50  ;;  %v2562_v31 = vpop.permute.xlu2 %2561 }
 0x3d2   :  { %3148 = vperm.xlu1 %3491, %v3098_v24   ;;  %v6207_v24 = vpop.f32.mrf.mxu1 }
 0x3d3   :  { %3183 = vperm.xlu0 %3492, %v3105_v51   ;;  %v6209_v51 = vpop.f32.mrf.mxu2 }
 0x3d7   :  { %v6219_v5 = vpop.f32.mrf.mxu3  ;;  %v6221_v52 = vpop.f32.mrf.mxu0 }
 0x3da   :  { %3163 = vperm.xlu1 %3491, %v3101_v35   ;;  %v6215_v43 = vpop.f32.mrf.mxu1 }
 0x3db   :  { %v6217_v45 = vpop.f32.mrf.mxu2 }
 0x3de   :  { %v2634_v32 = vpop.permute.xlu2 %2633 }
 0x3df   :  { %v2488_v13 = vpop.permute.xlu1 %2487  ;;  %v6227_v16 = vpop.f32.mrf.mxu3 }
 0x3e0   :  { %v6229_v53 = vpop.f32.mrf.mxu0 }
 0x3e1   :  { %v2494_v47 = vpop.permute.xlu0 %2493 }
 0x3e2   :  { %3178 = vperm.xlu1 %3491, %v3104_v14   ;;  %v6223_v30 = vpop.f32.mrf.mxu1 }
 0x3e3   :  { %v6225_v10 = vpop.f32.mrf.mxu2 }
 0x3e6   :  { %v6235_v58 = vpop.permute.xlu2 %2764 }
 0x3e7   :  { %v2492_v35 = vpop.permute.xlu1 %2491  ;;  %v6237_v2 = vpop.f32.mrf.mxu3 }
 0x3e8   :  { %6874 = vst [vmem:[#allocation60_spill] sm:$0xff] %v6237_v2  ;;  %v6239_v38 = vpop.f32.mrf.mxu0  ;;  %v2496_v2 = vsel %vm2495_vm1, %v2492_v35, %v2494_v47  ;;  %v2497_v11 = vsel %vm2495_vm1, %v2490_v44, %v2492_v35 }
 0x3e9   :  { %v2560_v49 = vpop.permute.xlu0 %2559  ;;  %6875 = vst [vmem:[#allocation61_spill] sm:$0xff] %v6239_v38  ;;  %v2498_v38 = vsel %vm2495_vm1, %v2488_v13, %v2490_v44  ;;  %v2506_v8 = vrot.slane %v2497_v11, 6  ;;  %v2507_v35 = vrot.slane %v2496_v2, 5  ;;  %v2499_v11 = vsel %vm2495_vm1, %v2494_v47, %v2488_v13 }
 0x3ea   :  { %v6231_v9 = vpop.f32.mrf.mxu1  ;;  %v2570_v1 = vsel %vm2567_vm2, %v2560_v49, %v2562_v31 }
 0x3eb   :  { %6872 = vst [vmem:[#allocation58_spill] sm:$0xff] %v6231_v9  ;;  %v6233_v62 = vpop.f32.mrf.mxu2  ;;  %v2510_v2 = vsel %vm2509_vm0, %v2506_v8, %v2507_v35  ;;  %v3431_v35 = vld [vmem:[%s6643_s7 + $0x2] ss:$8 sm:$0xf] }
 0x3ec   :  { %6873 = vst [vmem:[#allocation59_spill] sm:$0xff] %v6233_v62 }
 0x3ee   :  { %v6247_v19 = vpop.permute.xlu2 %2836 }
 0x3ef   :  { %v6250_v60 = vpop.f32.mrf.mxu3 }
 0x3f0   :  { %v6257_v62 = vpop.f32.mrf.mxu0 }
 0x3f2   :  { %v6243_v25 = vpop.f32.mrf.mxu1 }
 0x3f3   :  { %v6245_v63 = vpop.f32.mrf.mxu2 }
 0x3f4   :  { %v2564_v14 = vpop.permute.xlu1 %2563 }
 0x3f5   :  { %v2566_v42 = vpop.permute.xlu0 %2565  ;;  %v2569_v61 = vsel %vm2567_vm2, %v2562_v31, %v2564_v14 }
 0x3f6   :  { %v2568_v15 = vsel %vm2567_vm2, %v2564_v14, %v2566_v42  ;;  %v2579_v34 = vrot.slane %v2569_v61, 6  ;;  %v2505_v14 = vrot.slane %v2498_v38, 7  ;;  %v2571_v61 = vsel %vm2567_vm2, %v2566_v42, %v2560_v49  ;;  %v6282_v38 = vpop.permute.xlu2 %2906 }
 0x3f7   :  { %v2580_v56 = vrot.slane %v2568_v15, 5  ;;  %v6292_v13 = vpop.f32.mrf.mxu3 }
 0x3f8   :  { %6878 = vst [vmem:[#allocation64_spill] sm:$0xff] %v6292_v13 }
 0x3fa   :  { %v6278_v15 = vpop.f32.mrf.mxu1 }
 0x3fb   :  { %6876 = vst [vmem:[#allocation62_spill] sm:$0xff] %v6278_v15  ;;  %v6284_v44 = vpop.f32.mrf.mxu2 }
 0x3fc   :  { %v2636_v6 = vpop.permute.xlu1 %2635  ;;  %6877 = vst [vmem:[#allocation63_spill] sm:$0xff] %v6284_v44 }
 0x3fd   :  { %v2632_v18 = vpop.permute.xlu0 %2631  ;;  %v2641_v37 = vsel %vm2639_vm3, %v2634_v32, %v2636_v6 }
 0x3fe   :  { %v2642_v7 = vsel %vm2639_vm3, %v2632_v18, %v2634_v32  ;;  %v2582_v32 = vsel %vm2509_vm0, %v2579_v34, %v2580_v56  ;;  %v2508_v56 = vsel %vm2360_vm6, %v2499_v11, %v2505_v14 }
 0x3ff   :  { %v2650_v47 = vrot.slane %v2642_v7, 7  ;;  %v3430_v7 = vld [vmem:[%s6643_s7 + $0x1] ss:$8 sm:$0xf] }
 0x404   :  { %v6241_v36 = vpop.permute.xlu1 %2762 }
 0x405   :  { %v2638_v20 = vpop.permute.xlu0 %2637 }
 0x406   :  { %v2640_v9 = vsel %vm2639_vm3, %v2636_v6, %v2638_v20  ;;  %v2651_v6 = vrot.slane %v2641_v37, 6  ;;  %v2643_v27 = vsel %vm2639_vm3, %v2638_v20, %v2632_v18  ;;  %v2500_v20 = vld [vmem:[%s6643_s7] ss:$8 sm:$0xf]  ;;  %v6305_v18 = vpop.f32.mrf.mxu0 }
 0x407   :  { %v2652_v0 = vrot.slane %v2640_v9, 5  ;;  %v2578_v9 = vrot.slane %v2570_v1, 7  ;;  %6879 = vst [vmem:[#allocation65_spill] sm:$0xff] %v6305_v18 }
 0x409   :  { %v2654_v37 = vsel %vm2509_vm0, %v2651_v6, %v2652_v0  ;;  %v2581_v34 = vsel %vm2360_vm6, %v2571_v61, %v2578_v9  ;;  %v2511_v0 = vsel %vm2365_vm8, %v2508_v56, %v2510_v2 }
 0x40a   :  { %v2513_v6 = vmul.f32 %v2511_v0, %v2500_v20 }
 0x40c   :  { %v2767_v22 = vpop.permute.xlu1 %2766 }
 0x40d   :  { %v2769_v23 = vpop.permute.xlu0 %2768  ;;  %v2772_v8 = vsel %vm2770_vm4, %v6235_v58, %v2767_v22 }
 0x40e   :  { %v2771_v1 = vsel %vm2770_vm4, %v2767_v22, %v2769_v23  ;;  %v2774_v49 = vsel %vm2770_vm4, %v2769_v23, %v6241_v36  ;;  %v2583_v23 = vsel %vm2365_vm8, %v2581_v34, %v2582_v32  ;;  %v2653_v22 = vsel %vm2360_vm6, %v2643_v27, %v2650_v47 }
 0x40f   :  { %v2781_v42 = vrot.slane %v2772_v8, 7  ;;  %v2655_v14 = vsel %vm2365_vm8, %v2653_v22, %v2654_v37  ;;  %v2782_v11 = vrot.slane %v2771_v1, 6  ;;  %v2783_v61 = vrot.slane %v2774_v49, 5 }
 0x410   :  { %v2585_v9 = vmul.f32 %v3430_v7, %v2583_v23  ;;  %v2773_v32 = vsel %vm2770_vm4, %v6241_v36, %v6235_v58  ;;  %v2657_v8 = vmul.f32 %v3431_v35, %v2655_v14  ;;  %v6331_v7 = vpop.f32.mrf.mxu1  ;;  %v6337_v23 = vpop.f32.mrf.mxu2  ;;  %v3432_v14 = vld [vmem:[%s6643_s7 + $0x3] ss:$8 sm:$0xf] }
 0x411   :  { %v2784_v47 = vsel %vm2360_vm6, %v2773_v32, %v2781_v42  ;;  %v2785_v1 = vsel %vm2509_vm0, %v2782_v11, %v2783_v61  ;;  %v6341_v35 = vpop.f32.mrf.mxu3  ;;  %v6352_v61 = vpop.f32.mrf.mxu0 }
 0x412   :  { %v2586_v36 = vadd.f32 %v2585_v9, %v2513_v6  ;;  %v3434_v9 = vld [vmem:[%s6643_s7 + $0x5] ss:$8 sm:$0xf] }
 0x414   :  { %v2835_v50 = vpop.permute.xlu1 %2834 }
 0x415   :  { %v2841_v31 = vpop.permute.xlu0 %2840  ;;  %v2845_v58 = vsel %vm2842_vm5, %v2835_v50, %v6247_v19 }
 0x416   :  { %v2846_v2 = vsel %vm2842_vm5, %v2841_v31, %v2835_v50  ;;  %v2786_v50 = vsel %vm2365_vm8, %v2784_v47, %v2785_v1 }
 0x417   :  { %v2855_v49 = vrot.slane %v2846_v2, 5  ;;  %v2658_v2 = vadd.f32 %v2657_v8, %v2586_v36 }
 0x41c   :  { %v2839_v27 = vpop.permute.xlu1 %2838 }
 0x41d   :  { %v2843_v56 = vsel %vm2842_vm5, %v2839_v27, %v2841_v31  ;;  %v2844_v37 = vsel %vm2842_vm5, %v6247_v19, %v2839_v27  ;;  %v2911_v0 = vpop.permute.xlu0 %2910  ;;  %v2913_v31 = vpop.permute.xlu2 %2912  ;;  %v3433_v19 = vld [vmem:[%s6643_s7 + $0x4] ss:$8 sm:$0xf]  ;;  %v2716_v27 = vmul.f32 %v3432_v14, %v6069_v28 }
 0x41e   :  { %v2853_v20 = vrot.slane %v2844_v37, 7  ;;  %v2854_v34 = vrot.slane %v2843_v56, 6  ;;  %v2915_v11 = vsel %vm2914_vm7, %v2911_v0, %v2913_v31  ;;  %v2918_v6 = vsel %vm2914_vm7, %v2913_v31, %v6282_v38  ;;  %v6375_v14 = vpop.f32.mrf.mxu2 }
 0x41f   :  { %v2788_v56 = vmul.f32 %v3433_v19, %v2786_v50  ;;  %v2926_v47 = vrot.slane %v2915_v11, 6  ;;  %v2717_v8 = vadd.f32 %v2716_v27, %v2658_v2  ;;  %v6377_v11 = vpop.f32.mrf.mxu3  ;;  %v1619_v2 = vpop.f32.mrf.mxu0 }
 0x420   :  { %v2856_v22 = vsel %vm2360_vm6, %v2845_v58, %v2853_v20  ;;  %v2857_v42 = vsel %vm2509_vm0, %v2854_v34, %v2855_v49  ;;  %v2927_v49 = vrot.slane %v2918_v6, 5  ;;  %v3435_v58 = vld [vmem:[%s6643_s7 + $0x6] ss:$8 sm:$0xf]  ;;  %s3769_s7 = smov [#allocation5]  }
 0x421   :  { %v2858_v32 = vsel %vm2365_vm8, %v2856_v22, %v2857_v42  ;;  %v2789_v31 = vadd.f32 %v2788_v56, %v2717_v8  ;;  %v6372_v42 = vpop.f32.mrf.mxu1  ;;  %s3319_s16 = sshll.u32 %s3769_s7, 4  ;;  %s3320_s16 = int_to_ptr.vmem [resolvable:$true] %s3319_s16 }
 0x422   :  { %v2860_v20 = vmul.f32 %v3434_v9, %v2858_v32  ;;  %v2929_v28 = vsel %vm2509_vm0, %v2926_v47, %v2927_v49 }
 0x424   :  { %v2909_v37 = vpop.permute.xlu1 %2908  ;;  %v2861_v19 = vadd.f32 %v2860_v20, %v2789_v31 }
 0x425   :  { %v2916_v1 = vsel %vm2914_vm7, %v2909_v37, %v2911_v0  ;;  %v2917_v36 = vsel %vm2914_vm7, %v6282_v38, %v2909_v37 }
 0x426   :  { %v2925_v34 = vrot.slane %v2916_v1, 7  ;;  %v6381_v38 = vpop.f32.mrf.mxu2 }
 0x427   :  { %6881 = vst [vmem:[#allocation67_spill] sm:$0xff] %v6381_v38  ;;  %v6383_v32 = vpop.f32.mrf.mxu3  ;;  %v6385_v56 = vpop.f32.mrf.mxu0 }
 0x428   :  { %v2928_v22 = vsel %vm2360_vm6, %v2917_v36, %v2925_v34  ;;  %6882 = vst [vmem:[#allocation68_spill] sm:$0xff] %v6383_v32 }
 0x429   :  { %v2930_v0 = vsel %vm2365_vm8, %v2928_v22, %v2929_v28  ;;  %v6379_v40 = vpop.f32.mrf.mxu1  ;;  %6883 = vst [vmem:[#allocation69_spill] sm:$0xff] %v6385_v56 }
 0x42a   :  { %v2932_v50 = vmul.f32 %v3435_v58, %v2930_v0  ;;  %6880 = vst [vmem:[#allocation66_spill] sm:$0xff] %v6379_v40  ;;  %v3119_v58 = vpop.permute.xlu2 %3118 }
 0x42c   :  { %v2933_v6 = vadd.f32 %v2932_v50, %v2861_v19 }
 0x42e   :  { %v3436_v9 = vmul.f32 -1.442695, %v2933_v6  ;;  %v6389_v1 = vpop.f32.mrf.mxu2 }
 0x42f   :  { %v6391_v8 = vpop.f32.mrf.mxu3  ;;  %v6393_v20 = vpop.f32.mrf.mxu0 }
 0x430   :  { %3626 = vpow2.f32 %v3436_v9  ;;  %6884 = vst [vmem:[#allocation70_spill] sm:$0xff] %v6391_v8 }
 0x431   :  { %v6387_v37 = vpop.f32.mrf.mxu1 }
 0x436   :  { %v3627_v27 = vpop.eup %3626  ;;  %v6397_v6 = vpop.f32.mrf.mxu2 }
 0x437   :  { %v2937_v47 = vadd.f32 1.0, %v3627_v27  ;;  %v6399_v27 = vpop.f32.mrf.mxu3  ;;  %v6401_v38 = vpop.f32.mrf.mxu0 }
 0x439   :  { %3628 = vrcp.f32 %v2937_v47  ;;  %v2949_v31 = vand.u32 2147483648, %v2937_v47  ;;  %v2947_v22 = vand.u32 2147483647, %v2937_v47  ;;  %vm2943_vm8 = vweird.f32 %v2937_v47  ;;  %v6395_v19 = vpop.f32.mrf.mxu1 }
 0x43b   :  { %v2950_v50 = vor.u32 1.1754944e-38, %v2949_v31  ;;  %vm2948_vm10 = vcmp.eq.f32.partialorder %v2947_v22, 8.507059e+37 }
 0x43f   :  { %v3629_v49 = vpop.eup %3628 }
 0x440   :  { %v2939_v34 = vmul.f32 %v3629_v49, %v2937_v47  ;;  %vm2944_vm6 = vweird.f32 %v3629_v49 }
 0x441   :  { %vm2945_vm9 = vmor %vm2943_vm8, %vm2944_vm6 }
 0x442   :  { %v2940_v36 = vsub.f32 1.0, %v2939_v34 }
 0x444   :  { %v2941_v28 = vmul.f32 %v3629_v49, %v2940_v36 }
 0x446   :  { %v2942_v0 = vadd.f32 %v3629_v49, %v2941_v28  ;;  %v3129_v28 = vpop.permute.xlu2 %3128 }
 0x448   :  { %v2946_v9 = vsel %vm2945_vm9, %v3629_v49, %v2942_v0 }
 0x449   :  { %v2951_v32 = vsel %vm2948_vm10, %v2950_v50, %v2946_v9 }
 0x44a   :  { %v6403_v34 = vperm.slane %v2951_v32, 0  ;;  %v6405_v36 = vperm.slane %v2951_v32, 1  ;;  %v6407_v40 = vperm.slane %v2951_v32, 2  ;;  %v6409_v47 = vperm.slane %v2951_v32, 3 }
 0x44c   :  { %v2970_v31 = vmul.f32 %v6403_v34, %v6229_v53  ;;  %v2971_v49 = vmul.f32 %v6405_v36, %v6223_v30  ;;  %v2972_v22 = vmul.f32 %v6407_v40, %v6225_v10  ;;  %v2973_v0 = vmul.f32 %v6409_v47, %v6227_v16 }
 0x44d   :  { %v2978_v50 = vmul.f32 %v6403_v34, %v6257_v62  ;;  %v2979_v32 = vmul.f32 %v6405_v36, %v6243_v25  ;;  %v2980_v9 = vmul.f32 %v6407_v40, %v6245_v63  ;;  %v2981_v53 = vmul.f32 %v6409_v47, %v6250_v60 }
 0x44e   :  { %v3034_v30 = vadd.f32 %v2970_v31, %v5890_v57  ;;  %v3035_v56 = vadd.f32 %v2971_v49, %v5873_v41  ;;  %v3036_v10 = vadd.f32 %v2972_v22, %v5875_v3  ;;  %v3037_v16 = vadd.f32 %v2973_v0, %v5879_v48  ;;  %v6435_v57 = vpop.f32.mrf.mxu1  ;;  %v3144_v31 = vpop.permute.xlu2 %3143 }
 0x44f   :  { %v3042_v13 = vadd.f32 %v2978_v50, %v5960_v12  ;;  %v3043_v62 = vadd.f32 %v2979_v32, %v5948_v26  ;;  %v3044_v25 = vadd.f32 %v2980_v9, %v5950_v54  ;;  %v3045_v63 = vadd.f32 %v2981_v53, %v5953_v17  ;;  %v6444_v54 = vpop.f32.mrf.mxu2  ;;  %v6446_v12 = vpop.f32.mrf.mxu3  ;;  %v6885_v50 = vld [vmem:[#allocation10_spill] sm:$0xff]  ;;  %v6887_v9 = vld [vmem:[#allocation13_spill] sm:$0xff] }
 0x450   :  { %v3194_v44 = vadd.f32 %v3119_v58, %v3034_v30  ;;  %v3195_v15 = vadd.f32 %v3119_v58, %v3035_v56  ;;  %v3196_v18 = vadd.f32 %v3119_v58, %v3036_v10  ;;  %v2990_v41 = vmul.f32 %v6403_v34, %v1619_v2  ;;  %v6453_v56 = vpop.f32.mrf.mxu0  ;;  %v3109_v49 = vpop.permute.xlu1 %3108 }
 0x451   :  { %v3202_v60 = vadd.f32 %v3129_v28, %v3042_v13  ;;  %v3203_v8 = vadd.f32 %v3129_v28, %v3043_v62  ;;  %v2991_v3 = vmul.f32 %v6405_v36, %v6372_v42  ;;  %v2992_v48 = vmul.f32 %v6407_v40, %v6375_v14  ;;  %v6889_v62 = vld [vmem:[#allocation8_spill] sm:$0xff] }
 0x452   :  { %3254 = vst [vmem:[#allocation5 + $0x20] sm:$0xff] %v3194_v44  ;;  %v2993_v26 = vmul.f32 %v6409_v47, %v6377_v11  ;;  %v3197_v17 = vadd.f32 %v3119_v58, %v3037_v16  ;;  %v2967_v44 = vmul.f32 %v6405_v36, %v6215_v43  ;;  %v3204_v13 = vadd.f32 %v3129_v28, %v3044_v25 }
 0x453   :  { %3255 = vst [vmem:[#allocation5 + $0x28] sm:$0xff] %v3195_v15  ;;  %v3054_v2 = vadd.f32 %v2990_v41, %v6061_v46  ;;  %v3055_v42 = vadd.f32 %v2991_v3, %v6049_v21  ;;  %v3056_v14 = vadd.f32 %v2992_v48, %v6051_v4  ;;  %v3205_v11 = vadd.f32 %v3129_v28, %v3045_v63  ;;  %v6890_v3 = vld [vmem:[#allocation9_spill] sm:$0xff] }
 0x454   :  { %3258 = vst [vmem:[#allocation5 + $0x40] sm:$0xff] %v3202_v60  ;;  %v3057_v15 = vadd.f32 %v2993_v26, %v6057_v29  ;;  %v2968_v58 = vmul.f32 %v6407_v40, %v6217_v45  ;;  %v2969_v21 = vmul.f32 %v6409_v47, %v6219_v5  ;;  %v3031_v4 = vadd.f32 %v2967_v44, %v5795_v55  ;;  %v3114_v55 = vpop.permute.xlu0 %3113 }
 0x455   :  { %3259 = vst [vmem:[#allocation5 + $0x48] sm:$0xff] %v3203_v8  ;;  %v3214_v43 = vadd.f32 %v3144_v31, %v3054_v2  ;;  %v3215_v22 = vadd.f32 %v3144_v31, %v3055_v42  ;;  %v3216_v46 = vadd.f32 %v3144_v31, %v3056_v14  ;;  %v2966_v8 = vmul.f32 %v6403_v34, %v6221_v52  ;;  %v6886_v52 = vld [vmem:[#allocation57_spill] sm:$0xff] }
 0x456   :  { %3287 = vst [vmem:[#allocation5 + $0x120] sm:$0xff] %v3196_v18  ;;  %v3032_v29 = vadd.f32 %v2968_v58, %v5797_v59  ;;  %v2962_v45 = vmul.f32 %v6403_v34, %v6213_v33  ;;  %v2963_v18 = vmul.f32 %v6405_v36, %v6207_v24  ;;  %v2964_v28 = vmul.f32 %v6407_v40, %v6209_v51  ;;  %v6888_v24 = vld [vmem:[#allocation12_spill] sm:$0xff]  ;;  %v6478_v16 = vpop.f32.mrf.mxu1  ;;  %v6892_v14 = vld [vmem:[#allocation21_spill] sm:$0xff] }
 0x457   :  { %3288 = vst [vmem:[#allocation5 + $0x128] sm:$0xff] %v3197_v17  ;;  %v3217_v0 = vadd.f32 %v3144_v31, %v3057_v15  ;;  %v3033_v5 = vadd.f32 %v2969_v21, %v5808_v39  ;;  %v3030_v32 = vadd.f32 %v2966_v8, %v6885_v50  ;;  %v2965_v59 = vmul.f32 %v6409_v47, %v6886_v52  ;;  %v6483_v60 = vpop.f32.mrf.mxu2  ;;  %v6490_v17 = vpop.f32.mrf.mxu3 }
 0x458   :  { %3291 = vst [vmem:[#allocation5 + $0x140] sm:$0xff] %v3204_v13  ;;  %v3026_v53 = vadd.f32 %v2962_v45, %v6887_v9  ;;  %v3191_v30 = vadd.f32 %v3114_v55, %v3031_v4  ;;  %v3027_v10 = vadd.f32 %v2963_v18, %v6888_v24  ;;  %v3002_v51 = vmul.f32 %v6403_v34, %v6401_v38  ;;  %v6891_v13 = vld [vmem:[#allocation17_spill] sm:$0xff]  ;;  %v6493_v42 = vpop.f32.mrf.mxu0  ;;  %v6496_v31 = vpop.permute.xlu1 %3123  ;;  %v6900_v9 = vld [vmem:[#allocation59_spill] sm:$0xff]  ;;  %v6902_v24 = vld [vmem:[#allocation60_spill] sm:$0xff] }
 0x459   :  { %3292 = vst [vmem:[#allocation5 + $0x148] sm:$0xff] %v3205_v11  ;;  %v3190_v33 = vadd.f32 %v3114_v55, %v3030_v32  ;;  %v3192_v39 = vadd.f32 %v3114_v55, %v3032_v29  ;;  %v3028_v25 = vadd.f32 %v2964_v28, %v6889_v62  ;;  %v3003_v63 = vmul.f32 %v6405_v36, %v6395_v19  ;;  %v6895_v28 = vld [vmem:[#allocation33_spill] sm:$0xff]  ;;  %v6898_v32 = vld [vmem:[#allocation27_spill] sm:$0xff]  ;;  %v6903_v62 = vld [vmem:[#allocation34_spill] sm:$0xff] }
 0x45a   :  { %3264 = vst [vmem:[#allocation5 + $0x70] sm:$0xff] %v3214_v43  ;;  %v3193_v41 = vadd.f32 %v3114_v55, %v3033_v5  ;;  %v3029_v48 = vadd.f32 %v2965_v59, %v6890_v3  ;;  %v3004_v26 = vmul.f32 %v6407_v40, %v6397_v6  ;;  %v3005_v38 = vmul.f32 %v6409_v47, %v6399_v27  ;;  %v6893_v6 = vld [vmem:[#allocation16_spill] sm:$0xff]  ;;  %v6897_v55 = vld [vmem:[#allocation58_spill] sm:$0xff] }
 0x45b   :  { %3265 = vst [vmem:[#allocation5 + $0x78] sm:$0xff] %v3215_v22  ;;  %v3186_v44 = vadd.f32 %v3109_v49, %v3026_v53  ;;  %v3066_v2 = vadd.f32 %v3002_v51, %v6891_v13  ;;  %v3187_v19 = vadd.f32 %v3109_v49, %v3027_v10  ;;  %v3067_v11 = vadd.f32 %v3003_v63, %v6892_v14  ;;  %v3159_v22 = vpop.permute.xlu2 %3158  ;;  %v6899_v59 = vld [vmem:[#allocation18_spill] sm:$0xff] }
 0x45c   :  { %3297 = vst [vmem:[#allocation5 + $0x170] sm:$0xff] %v3216_v46  ;;  %v3188_v15 = vadd.f32 %v3109_v49, %v3028_v25  ;;  %v3068_v58 = vadd.f32 %v3004_v26, %v6893_v6  ;;  %v2987_v27 = vmul.f32 %v6405_v36, %v6331_v7  ;;  %v3189_v43 = vadd.f32 %v3109_v49, %v3029_v48  ;;  %v6894_v46 = vld [vmem:[#allocation15_spill] sm:$0xff]  ;;  %v6896_v49 = vld [vmem:[#allocation61_spill] sm:$0xff]  ;;  %v6906_v6 = vld [vmem:[#allocation36_spill] sm:$0xff] }
 0x45d   :  { %3298 = vst [vmem:[#allocation5 + $0x178] sm:$0xff] %v3217_v0  ;;  %v3069_v21 = vadd.f32 %v3005_v38, %v6894_v46  ;;  %v2988_v4 = vmul.f32 %v6407_v40, %v6337_v23  ;;  %v3226_v8 = vadd.f32 %v3159_v22, %v3066_v2  ;;  %v2989_v29 = vmul.f32 %v6409_v47, %v6341_v35  ;;  %v3139_v0 = vpop.permute.xlu0 %3138  ;;  %v6904_v48 = vld [vmem:[#allocation11_spill] sm:$0xff]  ;;  %v6905_v2 = vld [vmem:[#allocation30_spill] sm:$0xff] }
 0x45e   :  { %3252 = vst [vmem:[#allocation5 + $0x10] sm:$0xff] %v3190_v33  ;;  %v2986_v45 = vmul.f32 %v6403_v34, %v6352_v61  ;;  %v3227_v18 = vadd.f32 %v3159_v22, %v3067_v11  ;;  %v3051_v7 = vadd.f32 %v2987_v27, %v6895_v28  ;;  %v2974_v5 = vmul.f32 %v6403_v34, %v6896_v49  ;;  %v6901_v33 = vld [vmem:[#allocation28_spill] sm:$0xff]  ;;  %v1723_v51 = vpop.f32.mrf.mxu1  ;;  %v6910_v49 = vld [vmem:[#allocation70_spill] sm:$0xff] }
 0x45f   :  { %3253 = vst [vmem:[#allocation5 + $0x18] sm:$0xff] %v3191_v30  ;;  %v2975_v50 = vmul.f32 %v6405_v36, %v6897_v55  ;;  %v3228_v23 = vadd.f32 %v3159_v22, %v3068_v58  ;;  %v3052_v52 = vadd.f32 %v2988_v4, %v6898_v32  ;;  %v2976_v61 = vmul.f32 %v6407_v40, %v6900_v9  ;;  %v6912_v32 = vld [vmem:[#allocation14_spill] sm:$0xff] }
 0x460   :  { %3285 = vst [vmem:[#allocation5 + $0x110] sm:$0xff] %v3192_v39  ;;  %v3050_v35 = vadd.f32 %v2986_v45, %v6899_v59  ;;  %v3229_v53 = vadd.f32 %v3159_v22, %v3069_v21  ;;  %v3053_v30 = vadd.f32 %v2989_v29, %v6901_v33  ;;  %v2977_v10 = vmul.f32 %v6409_v47, %v6902_v24  ;;  %v1634_v11 = vpop.f32.mrf.mxu0  ;;  %v6527_v27 = vpop.permute.xlu1 %3133  ;;  %v6907_v22 = vld [vmem:[#allocation45_spill] sm:$0xff]  ;;  %v6908_v29 = vld [vmem:[#allocation46_spill] sm:$0xff] }
 0x461   :  { %3286 = vst [vmem:[#allocation5 + $0x118] sm:$0xff] %v3193_v41  ;;  %v3038_v25 = vadd.f32 %v2974_v5, %v6903_v62  ;;  %v3015_v63 = vmul.f32 %v6405_v36, %v1723_v51  ;;  %v1812_v41 = vpop.f32.mrf.mxu2  ;;  %v3211_v3 = vadd.f32 %v3139_v0, %v3051_v7  ;;  %v3039_v26 = vadd.f32 %v2975_v50, %v6904_v48  ;;  %v6909_v7 = vld [vmem:[#allocation47_spill] sm:$0xff]  ;;  %v6916_v51 = vld [vmem:[#allocation25_spill] sm:$0xff] }
 0x462   :  { %3250 = vst [vmem:[#allocation5] sm:$0xff] %v3186_v44  ;;  %v3210_v39 = vadd.f32 %v3139_v0, %v3050_v35  ;;  %v3016_v38 = vmul.f32 %v6407_v40, %v1812_v41  ;;  %v1901_v44 = vpop.f32.mrf.mxu3  ;;  %v3212_v13 = vadd.f32 %v3139_v0, %v3052_v52  ;;  %v3041_v58 = vadd.f32 %v2977_v10, %v6906_v6  ;;  %v6913_v35 = vld [vmem:[#allocation24_spill] sm:$0xff]  ;;  %v6917_v62 = vld [vmem:[#allocation63_spill] sm:$0xff] }
 0x463   :  { %3251 = vst [vmem:[#allocation5 + $0x8] sm:$0xff] %v3187_v19  ;;  %v3040_v19 = vadd.f32 %v2976_v61, %v6905_v2  ;;  %v3017_v14 = vmul.f32 %v6409_v47, %v1901_v44  ;;  %v3079_v46 = vadd.f32 %v3015_v63, %v6907_v22  ;;  %v2999_v21 = vmul.f32 %v6405_v36, %v6387_v37  ;;  %v6911_v37 = vld [vmem:[#allocation65_spill] sm:$0xff]  ;;  %v3174_v50 = vpop.permute.xlu2 %3173 }
 0x464   :  { %3283 = vst [vmem:[#allocation5 + $0x100] sm:$0xff] %v3188_v15  ;;  %v3213_v15 = vadd.f32 %v3139_v0, %v3053_v30  ;;  %v2998_v4 = vmul.f32 %v6403_v34, %v6393_v20  ;;  %v3080_v45 = vadd.f32 %v3016_v38, %v6908_v29  ;;  %v3001_v5 = vmul.f32 %v6409_v47, %v6910_v49  ;;  %v6915_v30 = vld [vmem:[#allocation62_spill] sm:$0xff] }
 0x465   :  { %3284 = vst [vmem:[#allocation5 + $0x108] sm:$0xff] %v3189_v43  ;;  %v3198_v43 = vadd.f32 %v6496_v31, %v3038_v25  ;;  %v3200_v28 = vadd.f32 %v6496_v31, %v3040_v19  ;;  %v3081_v0 = vadd.f32 %v3017_v14, %v6909_v7  ;;  %v2982_v55 = vmul.f32 %v6403_v34, %v6911_v37  ;;  %v6920_v19 = vld [vmem:[#allocation26_spill] sm:$0xff] }
 0x466   :  { %3270 = vst [vmem:[#allocation5 + $0xa0] sm:$0xff] %v3226_v8  ;;  %v3199_v8 = vadd.f32 %v6496_v31, %v3039_v26  ;;  %v3201_v20 = vadd.f32 %v6496_v31, %v3041_v58  ;;  %v3062_v52 = vadd.f32 %v2998_v4, %v6912_v32  ;;  %v3239_v59 = vadd.f32 %v3174_v50, %v3079_v46  ;;  %v6552_v10 = vpop.f32.mrf.mxu1  ;;  %v6919_v26 = vld [vmem:[#allocation64_spill] sm:$0xff]  ;;  %v6921_v58 = vld [vmem:[#allocation35_spill] sm:$0xff] }
 0x467   :  { %3271 = vst [vmem:[#allocation5 + $0xa8] sm:$0xff] %v3227_v18  ;;  %v3000_v18 = vmul.f32 %v6407_v40, %v6389_v1  ;;  %v3014_v1 = vmul.f32 %v6403_v34, %v1634_v11  ;;  %v3063_v9 = vadd.f32 %v2999_v21, %v6913_v35  ;;  %v3240_v61 = vadd.f32 %v3174_v50, %v3080_v45  ;;  %v6923_v45 = vld [vmem:[#allocation31_spill] sm:$0xff] }
 0x468   :  { %3303 = vst [vmem:[#allocation5 + $0x1a0] sm:$0xff] %v3228_v23  ;;  %v3154_v23 = vpop.permute.xlu0 %3153  ;;  %v2983_v24 = vmul.f32 %v6405_v36, %v6915_v30  ;;  %v3241_v31 = vadd.f32 %v3174_v50, %v3081_v0  ;;  %v2984_v25 = vmul.f32 %v6407_v40, %v6917_v62  ;;  %v2985_v38 = vmul.f32 %v6409_v47, %v6919_v26  ;;  %v6567_v11 = vpop.f32.mrf.mxu0  ;;  %v6925_v0 = vld [vmem:[#allocation69_spill] sm:$0xff]  ;;  %v6934_v26 = vld [vmem:[#allocation22_spill] sm:$0xff] }
 0x469   :  { %3304 = vst [vmem:[#allocation5 + $0x1a8] sm:$0xff] %v3229_v53  ;;  %v6914_v53 = vld [vmem:[#allocation20_spill] sm:$0xff]  ;;  %v6557_v63 = vpop.f32.mrf.mxu2  ;;  %v3222_v41 = vadd.f32 %v3154_v23, %v3062_v52  ;;  %v3223_v2 = vadd.f32 %v3154_v23, %v3063_v9  ;;  %v3046_v14 = vadd.f32 %v2982_v55, %v6920_v19  ;;  %v3149_v22 = vpop.permute.xlu1 %3148  ;;  %v3012_v46 = vmul.f32 %v6407_v40, %v6483_v60  ;;  %v6926_v60 = vld [vmem:[#allocation41_spill] sm:$0xff]  ;;  %v6929_v52 = vld [vmem:[#allocation67_spill] sm:$0xff] }
 0x46a   :  { %3262 = vst [vmem:[#allocation5 + $0x60] sm:$0xff] %v3210_v39  ;;  %v3064_v33 = vadd.f32 %v3000_v18, %v6914_v53  ;;  %v3065_v39 = vadd.f32 %v3001_v5, %v6916_v51  ;;  %v6562_v44 = vpop.f32.mrf.mxu3  ;;  %v3049_v18 = vadd.f32 %v2985_v38, %v6923_v45  ;;  %v2994_v49 = vmul.f32 %v6403_v34, %v6925_v0 }
 0x46b   :  { %3263 = vst [vmem:[#allocation5 + $0x68] sm:$0xff] %v3211_v3  ;;  %v6918_v3 = vld [vmem:[#allocation48_spill] sm:$0xff]  ;;  %v3206_v7 = vadd.f32 %v6527_v27, %v3046_v14  ;;  %v6935_v14 = vld [vmem:[#allocation19_spill] sm:$0xff] }
 0x46c   :  { %3295 = vst [vmem:[#allocation5 + $0x160] sm:$0xff] %v3212_v13  ;;  %v3078_v48 = vadd.f32 %v3014_v1, %v6918_v3  ;;  %v3010_v13 = vmul.f32 %v6403_v34, %v6493_v42  ;;  %v3224_v6 = vadd.f32 %v3154_v23, %v3064_v33  ;;  %v3225_v21 = vadd.f32 %v3154_v23, %v3065_v39  ;;  %v6922_v42 = vld [vmem:[#allocation32_spill] sm:$0xff] }
 0x46d   :  { %3296 = vst [vmem:[#allocation5 + $0x168] sm:$0xff] %v3213_v15  ;;  %v3011_v15 = vmul.f32 %v6405_v36, %v6478_v16  ;;  %v3048_v4 = vadd.f32 %v2984_v25, %v6922_v42  ;;  %v6924_v16 = vld [vmem:[#allocation44_spill] sm:$0xff]  ;;  %v2996_v1 = vmul.f32 %v6407_v40, %v6929_v52  ;;  %v3209_v9 = vadd.f32 %v6527_v27, %v3049_v18  ;;  %v6933_v25 = vld [vmem:[#allocation29_spill] sm:$0xff]  ;;  %v6943_v52 = vld [vmem:[#allocation39_spill] sm:$0xff] }
 0x46e   :  { %3256 = vst [vmem:[#allocation5 + $0x30] sm:$0xff] %v3198_v43  ;;  %v3047_v43 = vadd.f32 %v2983_v24, %v6921_v58  ;;  %v3238_v29 = vadd.f32 %v3174_v50, %v3078_v48  ;;  %v6928_v50 = vld [vmem:[#allocation42_spill] sm:$0xff]  ;;  %v1728_v33 = vpop.f32.mrf.mxu1  ;;  %v6932_v24 = vld [vmem:[#allocation23_spill] sm:$0xff]  ;;  %v3008_v18 = vmul.f32 %v6407_v40, %v6444_v54 }
 0x46f   :  { %3257 = vst [vmem:[#allocation5 + $0x38] sm:$0xff] %v3199_v8  ;;  %v3013_v8 = vmul.f32 %v6409_v47, %v6490_v17  ;;  %v3075_v5 = vadd.f32 %v3011_v15, %v6926_v60  ;;  %v3076_v23 = vadd.f32 %v3012_v46, %v6928_v50  ;;  %v3208_v32 = vadd.f32 %v6527_v27, %v3048_v4  ;;  %v6939_v60 = vld [vmem:[#allocation56_spill] sm:$0xff]  ;;  %v6942_v50 = vld [vmem:[#allocation38_spill] sm:$0xff] }
 0x470   :  { %3289 = vst [vmem:[#allocation5 + $0x130] sm:$0xff] %v3200_v28  ;;  %v3074_v28 = vadd.f32 %v3010_v13, %v6924_v16  ;;  %v3207_v37 = vadd.f32 %v6527_v27, %v3047_v43  ;;  %v3169_v55 = vpop.permute.xlu0 %3168  ;;  %v3023_v51 = vmul.f32 %v6405_v36, %v1728_v33  ;;  %v3060_v38 = vadd.f32 %v2996_v1, %v6934_v26 }
 0x471   :  { %3290 = vst [vmem:[#allocation5 + $0x138] sm:$0xff] %v3201_v20  ;;  %v6927_v20 = vld [vmem:[#allocation66_spill] sm:$0xff]  ;;  %v1817_v39 = vpop.f32.mrf.mxu2  ;;  %v3235_v62 = vadd.f32 %v3169_v55, %v3075_v5  ;;  %v3236_v27 = vadd.f32 %v3169_v55, %v3076_v23  ;;  %v3164_v58 = vpop.permute.xlu1 %3163  ;;  %v3006_v43 = vmul.f32 %v6403_v34, %v6453_v56  ;;  %v3007_v4 = vmul.f32 %v6405_v36, %v6435_v57  ;;  %v6940_v57 = vld [vmem:[#allocation40_spill] sm:$0xff] }
 0x472   :  { %3277 = vst [vmem:[#allocation5 + $0xd8] sm:$0xff] %v3239_v59  ;;  %v2995_v17 = vmul.f32 %v6405_v36, %v6927_v20  ;;  %v6930_v59 = vld [vmem:[#allocation43_spill] sm:$0xff]  ;;  %v3234_v30 = vadd.f32 %v3169_v55, %v3074_v28  ;;  %v3024_v3 = vmul.f32 %v6407_v40, %v1817_v39  ;;  %v1906_v48 = vpop.f32.mrf.mxu3  ;;  %v3220_v16 = vadd.f32 %v3149_v22, %v3060_v38  ;;  %v6941_v20 = vld [vmem:[#allocation37_spill] sm:$0xff] }
 0x473   :  { %3309 = vst [vmem:[#allocation5 + $0x1d0] sm:$0xff] %v3240_v61  ;;  %v3077_v35 = vadd.f32 %v3013_v8, %v6930_v59  ;;  %v6931_v61 = vld [vmem:[#allocation68_spill] sm:$0xff]  ;;  %v3025_v13 = vmul.f32 %v6409_v47, %v1906_v48  ;;  %v6938_v28 = vld [vmem:[#allocation55_spill] sm:$0xff]  ;;  %v3009_v56 = vmul.f32 %v6409_v47, %v6446_v12  ;;  %v3072_v23 = vadd.f32 %v3008_v18, %v6942_v50 }
 0x474   :  { %3310 = vst [vmem:[#allocation5 + $0x1d8] sm:$0xff] %v3241_v31  ;;  %v2997_v53 = vmul.f32 %v6409_v47, %v6931_v61  ;;  %v3058_v31 = vadd.f32 %v2994_v49, %v6932_v24  ;;  %v3019_v1 = vmul.f32 %v6405_v36, %v6552_v10  ;;  %v3021_v61 = vmul.f32 %v6409_v47, %v6562_v44  ;;  %v6945_v24 = vld [vmem:[#allocation49_spill] sm:$0xff]  ;;  %v6946_v10 = vld [vmem:[#allocation50_spill] sm:$0xff] }
 0x475   :  { %3268 = vst [vmem:[#allocation5 + $0x90] sm:$0xff] %v3222_v41  ;;  %v3059_v41 = vadd.f32 %v2995_v17, %v6933_v25  ;;  %v3237_v19 = vadd.f32 %v3169_v55, %v3077_v35  ;;  %v3071_v17 = vadd.f32 %v3007_v4, %v6941_v20  ;;  %v3020_v35 = vmul.f32 %v6407_v40, %v6557_v63  ;;  %v6947_v63 = vld [vmem:[#allocation51_spill] sm:$0xff] }
 0x476   :  { %3269 = vst [vmem:[#allocation5 + $0x98] sm:$0xff] %v3223_v2  ;;  %v1639_v2 = vpop.f32.mrf.mxu0  ;;  %v3061_v15 = vadd.f32 %v2997_v53, %v6935_v14  ;;  %v3218_v46 = vadd.f32 %v3149_v22, %v3058_v31  ;;  %v3083_v31 = vadd.f32 %v3019_v1, %v6945_v24  ;;  %v3085_v39 = vadd.f32 %v3021_v61, %v6947_v63 }
 0x477   :  { %3301 = vst [vmem:[#allocation5 + $0x190] sm:$0xff] %v3224_v6  ;;  %v3022_v6 = vmul.f32 %v6403_v34, %v1639_v2  ;;  %v3219_v8 = vadd.f32 %v3149_v22, %v3059_v41  ;;  %v3231_v53 = vadd.f32 %v3164_v58, %v3071_v17 }
 0x478   :  { %3302 = vst [vmem:[#allocation5 + $0x198] sm:$0xff] %v3225_v21  ;;  %v6936_v21 = vld [vmem:[#allocation53_spill] sm:$0xff]  ;;  %v3221_v0 = vadd.f32 %v3149_v22, %v3061_v15  ;;  %v3184_v49 = vpop.permute.xlu0 %3183  ;;  %v3073_v22 = vadd.f32 %v3009_v56, %v6943_v52 }
 0x479   :  { %3276 = vst [vmem:[#allocation5 + $0xd0] sm:$0xff] %v3238_v29  ;;  %v3087_v42 = vadd.f32 %v3023_v51, %v6936_v21  ;;  %v6937_v29 = vld [vmem:[#allocation54_spill] sm:$0xff]  ;;  %v3086_v5 = vadd.f32 %v3022_v6, %v6939_v60  ;;  %v3084_v51 = vadd.f32 %v3020_v35, %v6946_v10 }
 0x47a   :  { %3260 = vst [vmem:[#allocation5 + $0x50] sm:$0xff] %v3206_v7  ;;  %v3088_v45 = vadd.f32 %v3024_v3, %v6937_v29  ;;  %v3089_v7 = vadd.f32 %v3025_v13, %v6938_v28  ;;  %v3233_v36 = vadd.f32 %v3164_v58, %v3073_v22 }
 0x47b   :  { %3261 = vst [vmem:[#allocation5 + $0x58] sm:$0xff] %v3207_v37  ;;  %v3070_v37 = vadd.f32 %v3006_v43, %v6940_v57  ;;  %v3247_v55 = vadd.f32 %v3184_v49, %v3087_v42  ;;  %v3246_v59 = vadd.f32 %v3184_v49, %v3086_v5 }
 0x47c   :  { %3293 = vst [vmem:[#allocation5 + $0x150] sm:$0xff] %v3208_v32  ;;  %v3248_v54 = vadd.f32 %v3184_v49, %v3088_v45  ;;  %v3018_v32 = vmul.f32 %v6403_v34, %v6567_v11  ;;  %v3249_v12 = vadd.f32 %v3184_v49, %v3089_v7  ;;  %v3179_v34 = vpop.permute.xlu1 %3178  ;;  %v6944_v11 = vld [vmem:[#allocation52_spill] sm:$0xff] }
 0x47d   :  { %3294 = vst [vmem:[#allocation5 + $0x158] sm:$0xff] %v3209_v9  ;;  %v3230_v9 = vadd.f32 %v3164_v58, %v3070_v37  ;;  %v3244_v47 = vadd.f32 %v3179_v34, %v3084_v51  ;;  %v3245_v44 = vadd.f32 %v3179_v34, %v3085_v39 }
 0x47e   :  { %3274 = vst [vmem:[#allocation5 + $0xc0] sm:$0xff] %v3234_v30  ;;  %v3082_v33 = vadd.f32 %v3018_v32, %v6944_v11  ;;  %v3232_v30 = vadd.f32 %v3164_v58, %v3072_v23 }
 0x47f   :  { %3275 = vst [vmem:[#allocation5 + $0xc8] sm:$0xff] %v3235_v62  ;;  %v3243_v62 = vadd.f32 %v3179_v34, %v3083_v31 }
 0x480   :  { %3307 = vst [vmem:[#allocation5 + $0x1c0] sm:$0xff] %v3236_v27  ;;  %v3242_v40 = vadd.f32 %v3179_v34, %v3082_v33 }
 0x481   :  { %3308 = vst [vmem:[#allocation5 + $0x1c8] sm:$0xff] %v3237_v19 }
 0x482   :  { %3266 = vst [vmem:[#allocation5 + $0x80] sm:$0xff] %v3218_v46 }
 0x483   :  { %3267 = vst [vmem:[#allocation5 + $0x88] sm:$0xff] %v3219_v8 }
 0x484   :  { %3299 = vst [vmem:[#allocation5 + $0x180] sm:$0xff] %v3220_v16 }
 0x485   :  { %3300 = vst [vmem:[#allocation5 + $0x188] sm:$0xff] %v3221_v0 }
 0x486   :  { %3281 = vst [vmem:[#allocation5 + $0xf8] sm:$0xff] %v3247_v55 }
 0x487   :  { %3313 = vst [vmem:[#allocation5 + $0x1f0] sm:$0xff] %v3248_v54 }
 0x488   :  { %3314 = vst [vmem:[#allocation5 + $0x1f8] sm:$0xff] %v3249_v12 }
 0x489   :  { %3280 = vst [vmem:[#allocation5 + $0xf0] sm:$0xff] %v3246_v59 }
 0x48a   :  { %3272 = vst [vmem:[#allocation5 + $0xb0] sm:$0xff] %v3230_v9 }
 0x48b   :  { %3273 = vst [vmem:[#allocation5 + $0xb8] sm:$0xff] %v3231_v53 }
 0x48c   :  { %3305 = vst [vmem:[#allocation5 + $0x1b0] sm:$0xff] %v3232_v30 }
 0x48d   :  { %3306 = vst [vmem:[#allocation5 + $0x1b8] sm:$0xff] %v3233_v36 }
 0x48e   :  { %3278 = vst [vmem:[#allocation5 + $0xe0] sm:$0xff] %v3242_v40 }
 0x48f   :  { %3279 = vst [vmem:[#allocation5 + $0xe8] sm:$0xff] %v3243_v62 }
 0x490   :  { %3311 = vst [vmem:[#allocation5 + $0x1e0] sm:$0xff] %v3244_v47 }
 0x491   :  { %3312 = vst [vmem:[#allocation5 + $0x1e8] sm:$0xff] %v3245_v44 }
 0x492   :  { %3327 = dma.vmem_to_hbm [thread:$0]  %s3320_s16, 8192, %s3322_s19, [#allocation4], %s3747_s10, %s3747_s10, %s3748_s11  }
 0x493   :  { %3744 = dma.done.wait [#allocation4], 8192  }
 0x494   :  { %3745 = vsyncadd [#allocation4], 4294959104 }
 0x495   :  { %3332 = vsyncpa [#allocation3], 1 }
 0x496   :  { %3333 = vsyncpa [#allocation4], 1 }

// kernel: tpu_custom_call.1
= control target key start
LH: loop header
LB: loop body
LE: loop exit
PB: predicated region body
PF: predicated region fallthrough
CT: control target
= control target key end

     0   :  { %13 = vsyncpa [#allocation3], 0  ;;  %s6636_s0 = inlined_call_operand.hbm [shape: f32[2,128,256], index: 0, kind: input, shape index: {}]   ;;  %s6637_s1 = inlined_call_operand.vmem [shape: f32[128,8], index: 1, kind: input, shape index: {}]   ;;  %s6638_s2 = inlined_call_operand.vmem [shape: f32[128,8], index: 2, kind: input, shape index: {}]   ;;  %s6639_s3 = inlined_call_operand.vmem [shape: bf16[256,128], index: 3, kind: input, shape index: {}]   ;;  %s6640_s4 = inlined_call_operand.vmem [shape: f32[128,1], index: 4, kind: input, shape index: {}]   ;;  %s6641_s5 = inlined_call_operand.vmem [shape: f32[16,7], index: 5, kind: input, shape index: {}]   ;;  %s6642_s6 = inlined_call_operand.vmem [shape: f32[16,512], index: 6, kind: input, shape index: {}]   ;;  %s6643_s7 = inlined_call_operand.vmem [shape: f32[8,512], index: 7, kind: input, shape index: {}]   ;;  %s6644_s8 = inlined_call_operand.hbm [shape: f32[2,128,256], index: 8, kind: output, shape index: {}]  }
   0x1   :  { %14 = vsyncpa [#allocation4], 0  ;;  %s19_s29 = sshll.u32 %s6636_s0, 4  ;;  %s3746_s30 = smov [#allocation2]   ;;  %s20_s29 = int_to_ptr.hbm [resolvable:$true] %s19_s29 }
   0x2   :  { %s21_s9 = sshll.u32 %s3746_s30, 4  ;;  %s3747_s10 = smov 256   ;;  %s22_s9 = int_to_ptr.vmem [resolvable:$true] %s21_s9 }
   0x3   :  { %s3748_s11 = smov 16  }
   0x4   :  { %27 = dma.hbm_to_vmem [thread:$0]  %s20_s29, 8192, %s22_s9, [#allocation3], %s3747_s10, %s3747_s10, %s3748_s11  }
   0x5   :  { %3742 = dma.done.wait [#allocation3], 8192  }
   0x6   :  { %3743 = vsyncadd [#allocation3], 4294959104  ;;  %v3821_v0 = vld [vmem:[#allocation2 + $0x20] sm:$0xff]  ;;  %v3823_v1 = vld [vmem:[#allocation2 + $0x28] sm:$0xff]  ;;  %vm245_vm1 = vcmask 64512   ;;  %s3751_s9 = smov 2  }
   0x7   :  { %v3825_v2 = vld [vmem:[#allocation2] sm:$0xff]  ;;  %v116_v3 = vadd.f32 %v3823_v1, %v3821_v0  ;;  %v79_v4 = vld [vmem:[#allocation2 + $0x8] sm:$0xff]  ;;  %v84_v9 = vld [vmem:[#allocation2 + $0x30] sm:$0xff]  ;;  %v187_v51 = vmax.f32 %v3821_v0, %v3823_v1  ;;  %s3753_s0 = smov 1   ;;  %s3754_s12 = smov 127  }
   0x8   :  { %v3829_v5 = vld [vmem:[#allocation2 + $0x40] sm:$0xff]  ;;  %v3831_v6 = vld [vmem:[#allocation2 + $0x48] sm:$0xff]  ;;  %v110_v7 = vadd.f32 %v79_v4, %v3825_v2  ;;  %v85_v10 = vld [vmem:[#allocation2 + $0x38] sm:$0xff]  ;;  %v181_v47 = vmax.f32 %v3825_v2, %v79_v4  ;;  %s3755_s17 = smov 126   ;;  %s3756_s18 = smov 125  }
   0x9   :  { %v122_v8 = vadd.f32 %v3831_v6, %v3829_v5  ;;  %117 = vadd.xlane.f32.xlu1 %v116_v3  ;;  %v80_v11 = vld [vmem:[#allocation2 + $0x10] sm:$0xff]  ;;  %v81_v12 = vld [vmem:[#allocation2 + $0x18] sm:$0xff]  ;;  %v119_v15 = vadd.f32 %v85_v10, %v84_v9  ;;  %v90_v20 = vld [vmem:[#allocation2 + $0x60] sm:$0xff]  ;;  %v190_v50 = vmax.f32 %v84_v9, %v85_v10  ;;  %v193_v52 = vmax.f32 %v3829_v5, %v3831_v6  ;;  %s3765_s13 = smov 32   ;;  %s3767_s19 = smov 96  }
   0xa   :  { %111 = vadd.xlane.f32.xlu0 %v110_v7  ;;  %v88_v13 = vld [vmem:[#allocation2 + $0x50] sm:$0xff]  ;;  %v89_v14 = vld [vmem:[#allocation2 + $0x58] sm:$0xff]  ;;  %v113_v16 = vadd.f32 %v81_v12, %v80_v11  ;;  %v91_v21 = vld [vmem:[#allocation2 + $0x68] sm:$0xff]  ;;  %v184_v49 = vmax.f32 %v80_v11, %v81_v12 }
   0xb   :  { %123 = vadd.xlane.f32.xlu2 %v122_v8  ;;  %v125_v17 = vadd.f32 %v89_v14, %v88_v13  ;;  %v92_v18 = vld [vmem:[#allocation2 + $0x70] sm:$0xff]  ;;  %v93_v19 = vld [vmem:[#allocation2 + $0x78] sm:$0xff]  ;;  %v94_v22 = vld [vmem:[#allocation2 + $0x80] sm:$0xff]  ;;  %v128_v25 = vadd.f32 %v91_v21, %v90_v20  ;;  %v199_v53 = vmax.f32 %v90_v20, %v91_v21  ;;  %v196_v54 = vmax.f32 %v88_v13, %v89_v14 }
   0xc   :  { %v95_v23 = vld [vmem:[#allocation2 + $0x88] sm:$0xff]  ;;  %v131_v24 = vadd.f32 %v93_v19, %v92_v18  ;;  %v98_v27 = vld [vmem:[#allocation2 + $0xa0] sm:$0xff]  ;;  %v96_v29 = vld [vmem:[#allocation2 + $0x90] sm:$0xff]  ;;  %v202_v55 = vmax.f32 %v92_v18, %v93_v19  ;;  %v3749_v19 = vmov 256.0  }
   0xd   :  { %v134_v26 = vadd.f32 %v95_v23, %v94_v22  ;;  %v99_v28 = vld [vmem:[#allocation2 + $0xa8] sm:$0xff]  ;;  %v97_v30 = vld [vmem:[#allocation2 + $0x98] sm:$0xff]  ;;  %v100_v31 = vld [vmem:[#allocation2 + $0xb0] sm:$0xff]  ;;  %v205_v57 = vmax.f32 %v94_v22, %v95_v23  ;;  %3494 = vrcp.f32 %v3749_v19 }
   0xe   :  { %v101_v32 = vld [vmem:[#allocation2 + $0xb8] sm:$0xff]  ;;  %v140_v33 = vadd.f32 %v99_v28, %v98_v27  ;;  %v137_v34 = vadd.f32 %v97_v30, %v96_v29  ;;  %v104_v36 = vld [vmem:[#allocation2 + $0xd0] sm:$0xff]  ;;  %v102_v38 = vld [vmem:[#allocation2 + $0xc0] sm:$0xff]  ;;  %v208_v56 = vmax.f32 %v96_v29, %v97_v30  ;;  %v211_v58 = vmax.f32 %v98_v27, %v99_v28 }
   0xf   :  { %v143_v35 = vadd.f32 %v101_v32, %v100_v31  ;;  %v105_v37 = vld [vmem:[#allocation2 + $0xd8] sm:$0xff]  ;;  %v103_v39 = vld [vmem:[#allocation2 + $0xc8] sm:$0xff]  ;;  %v106_v40 = vld [vmem:[#allocation2 + $0xe0] sm:$0xff]  ;;  %v214_v60 = vmax.f32 %v100_v31, %v101_v32 }
  0x10   :  { %v107_v41 = vld [vmem:[#allocation2 + $0xe8] sm:$0xff]  ;;  %v149_v42 = vadd.f32 %v105_v37, %v104_v36  ;;  %v146_v43 = vadd.f32 %v103_v39, %v102_v38  ;;  %v108_v45 = vld [vmem:[#allocation2 + $0xf0] sm:$0xff]  ;;  %v109_v46 = vld [vmem:[#allocation2 + $0xf8] sm:$0xff]  ;;  %v217_v59 = vmax.f32 %v102_v38, %v103_v39  ;;  %v220_v61 = vmax.f32 %v104_v36, %v105_v37 }
  0x11   :  { %120 = vadd.xlane.f32.xlu1 %v119_v15  ;;  %v152_v44 = vadd.f32 %v107_v41, %v106_v40  ;;  %v155_v48 = vadd.f32 %v109_v46, %v108_v45  ;;  %v740_v62 = vld [vmem:[#allocation2 + $0x100] sm:$0xff]  ;;  %v741_v63 = vld [vmem:[#allocation2 + $0x108] sm:$0xff]  ;;  %v226_v0 = vmax.f32 %v108_v45, %v109_v46  ;;  %v223_v1 = vmax.f32 %v106_v40, %v107_v41  ;;  %v742_v5 = vld [vmem:[#allocation2 + $0x110] sm:$0xff] }
  0x12   :  { %114 = vadd.xlane.f32.xlu0 %v113_v16  ;;  %v772_v2 = vadd.f32 %v741_v63, %v740_v62  ;;  %v744_v3 = vld [vmem:[#allocation2 + $0x120] sm:$0xff]  ;;  %v745_v4 = vld [vmem:[#allocation2 + $0x128] sm:$0xff]  ;;  %v743_v6 = vld [vmem:[#allocation2 + $0x118] sm:$0xff]  ;;  %v836_v9 = vmax.f32 %v740_v62, %v741_v63 }
  0x13   :  { %126 = vadd.xlane.f32.xlu2 %v125_v17  ;;  %v778_v7 = vadd.f32 %v745_v4, %v744_v3  ;;  %v775_v8 = vadd.f32 %v743_v6, %v742_v5  ;;  %v746_v10 = vld [vmem:[#allocation2 + $0x130] sm:$0xff]  ;;  %v747_v11 = vld [vmem:[#allocation2 + $0x138] sm:$0xff]  ;;  %v839_v13 = vmax.f32 %v742_v5, %v743_v6  ;;  %v842_v14 = vmax.f32 %v744_v3, %v745_v4  ;;  %v748_v15 = vld [vmem:[#allocation2 + $0x140] sm:$0xff]  ;;  %v3495_v23 = vpop.eup %3494 }
  0x14   :  { %v781_v12 = vadd.f32 %v747_v11, %v746_v10  ;;  %v749_v16 = vld [vmem:[#allocation2 + $0x148] sm:$0xff]  ;;  %v750_v17 = vld [vmem:[#allocation2 + $0x150] sm:$0xff]  ;;  %v751_v18 = vld [vmem:[#allocation2 + $0x158] sm:$0xff]  ;;  %v845_v20 = vmax.f32 %v746_v10, %v747_v11  ;;  %v159_v27 = vmul.f32 256.0, %v3495_v23  ;;  %vm163_vm0 = vweird.f32 %v3495_v23 }
  0x15   :  { %v784_v21 = vadd.f32 %v749_v16, %v748_v15  ;;  %v787_v22 = vadd.f32 %v751_v18, %v750_v17  ;;  %v848_v28 = vmax.f32 %v748_v15, %v749_v16  ;;  %v851_v29 = vmax.f32 %v750_v17, %v751_v18  ;;  %v754_v31 = vld [vmem:[#allocation2 + $0x170] sm:$0xff]  ;;  %v755_v32 = vld [vmem:[#allocation2 + $0x178] sm:$0xff]  ;;  %v3878_v18 = vld [vmem:[%s6637_s1 + $0x20] sm:$0xff] }
  0x16   :  { %v160_v30 = vsub.f32 1.0, %v159_v27  ;;  %v793_v40 = vadd.f32 %v755_v32, %v754_v31 }
  0x18   :  { %v161_v36 = vmul.f32 %v3495_v23, %v160_v30  ;;  %v766_v30 = vld [vmem:[#allocation2 + $0x1d0] sm:$0xff] }
  0x19   :  { %132 = vadd.xlane.f32.xlu1 %v131_v24  ;;  %v752_v24 = vld [vmem:[#allocation2 + $0x160] sm:$0xff] }
  0x1a   :  { %129 = vadd.xlane.f32.xlu0 %v128_v25  ;;  %v753_v25 = vld [vmem:[#allocation2 + $0x168] sm:$0xff] }
  0x1b   :  { %135 = vadd.xlane.f32.xlu2 %v134_v26  ;;  %v790_v26 = vadd.f32 %v753_v25, %v752_v24  ;;  %v854_v39 = vmax.f32 %v752_v24, %v753_v25 }
  0x21   :  { %141 = vadd.xlane.f32.xlu1 %v140_v33  ;;  %v756_v33 = vld [vmem:[#allocation2 + $0x180] sm:$0xff] }
  0x22   :  { %138 = vadd.xlane.f32.xlu0 %v137_v34  ;;  %v757_v34 = vld [vmem:[#allocation2 + $0x188] sm:$0xff] }
  0x23   :  { %144 = vadd.xlane.f32.xlu2 %v143_v35  ;;  %v796_v41 = vadd.f32 %v757_v34, %v756_v33 }
  0x29   :  { %150 = vadd.xlane.f32.xlu1 %v149_v42  ;;  %v162_v42 = vadd.f32 %v3495_v23, %v161_v36 }
  0x2a   :  { %147 = vadd.xlane.f32.xlu0 %v146_v43  ;;  %v758_v43 = vld [vmem:[#allocation2 + $0x190] sm:$0xff] }
  0x2b   :  { %153 = vadd.xlane.f32.xlu2 %v152_v44  ;;  %v759_v44 = vld [vmem:[#allocation2 + $0x198] sm:$0xff]  ;;  %v3841_v46 = vsel %vm163_vm0, %v3495_v23, %v162_v42 }
  0x2c   :  { %v863_v3 = vmax.f32 %v758_v43, %v759_v44 }
  0x31   :  { %182 = vmax.xlane.f32.xlu1 %v181_v47 }
  0x32   :  { %156 = vadd.xlane.f32.xlu0 %v155_v48 }
  0x33   :  { %185 = vmax.xlane.f32.xlu2 %v184_v49  ;;  %v799_v49 = vadd.f32 %v759_v44, %v758_v43 }
  0x39   :  { %191 = vmax.xlane.f32.xlu1 %v190_v50 }
  0x3a   :  { %188 = vmax.xlane.f32.xlu0 %v187_v51  ;;  %v857_v51 = vmax.f32 %v754_v31, %v755_v32  ;;  %v767_v31 = vld [vmem:[#allocation2 + $0x1d8] sm:$0xff]  ;;  %v768_v32 = vld [vmem:[#allocation2 + $0x1e0] sm:$0xff] }
  0x3b   :  { %194 = vmax.xlane.f32.xlu2 %v193_v52  ;;  %v860_v52 = vmax.f32 %v756_v33, %v757_v34  ;;  %v769_v33 = vld [vmem:[#allocation2 + $0x1e8] sm:$0xff]  ;;  %v811_v44 = vadd.f32 %v767_v31, %v766_v30 }
  0x41   :  { %200 = vmax.xlane.f32.xlu1 %v199_v53  ;;  %v3847_v53 = vld [vmem:[%s6637_s1 + $0x8] sm:$0xff] }
  0x42   :  { %197 = vmax.xlane.f32.xlu0 %v196_v54 }
  0x43   :  { %203 = vmax.xlane.f32.xlu2 %v202_v55  ;;  %v3853_v55 = vld [vmem:[%s6637_s1] sm:$0xff] }
  0x49   :  { %209 = vmax.xlane.f32.xlu1 %v208_v56 }
  0x4a   :  { %206 = vmax.xlane.f32.xlu0 %v205_v57  ;;  %v760_v57 = vld [vmem:[#allocation2 + $0x1a0] sm:$0xff] }
  0x4b   :  { %212 = vmax.xlane.f32.xlu2 %v211_v58  ;;  %v761_v58 = vld [vmem:[#allocation2 + $0x1a8] sm:$0xff] }
  0x4c   :  { %v802_v6 = vadd.f32 %v761_v58, %v760_v57  ;;  %v866_v24 = vmax.f32 %v760_v57, %v761_v58  ;;  %v3915_v57 = vld [vmem:[%s6637_s1 + $0x40] sm:$0xff] }
  0x51   :  { %218 = vmax.xlane.f32.xlu1 %v217_v59  ;;  %v762_v59 = vld [vmem:[#allocation2 + $0x1b0] sm:$0xff] }
  0x52   :  { %215 = vmax.xlane.f32.xlu0 %v214_v60  ;;  %v763_v60 = vld [vmem:[#allocation2 + $0x1b8] sm:$0xff] }
  0x53   :  { %221 = vmax.xlane.f32.xlu2 %v220_v61  ;;  %v869_v25 = vmax.f32 %v762_v59, %v763_v60 }
  0x59   :  { %227 = vmax.xlane.f32.xlu1 %v226_v0  ;;  %v3861_v0 = vld [vmem:[%s6637_s1 + $0x10] sm:$0xff] }
  0x5a   :  { %224 = vmax.xlane.f32.xlu0 %v223_v1 }
  0x5b   :  { %773 = vadd.xlane.f32.xlu2 %v772_v2 }
  0x61   :  { %779 = vadd.xlane.f32.xlu1 %v778_v7  ;;  %v805_v7 = vadd.f32 %v763_v60, %v762_v59 }
  0x62   :  { %776 = vadd.xlane.f32.xlu0 %v775_v8  ;;  %v3868_v8 = vld [vmem:[%s6637_s1 + $0x18] sm:$0xff] }
  0x63   :  { %837 = vmax.xlane.f32.xlu2 %v836_v9 }
  0x69   :  { %782 = vadd.xlane.f32.xlu1 %v781_v12 }
  0x6a   :  { %840 = vmax.xlane.f32.xlu0 %v839_v13  ;;  %v764_v13 = vld [vmem:[#allocation2 + $0x1c0] sm:$0xff] }
  0x6b   :  { %843 = vmax.xlane.f32.xlu2 %v842_v14  ;;  %v765_v14 = vld [vmem:[#allocation2 + $0x1c8] sm:$0xff] }
  0x6c   :  { %v872_v42 = vmax.f32 %v764_v13, %v765_v14 }
  0x71   :  { %846 = vmax.xlane.f32.xlu1 %v845_v20 }
  0x72   :  { %785 = vadd.xlane.f32.xlu0 %v784_v21 }
  0x73   :  { %788 = vadd.xlane.f32.xlu2 %v787_v22  ;;  %v808_v22 = vadd.f32 %v765_v14, %v764_v13 }
  0x79   :  { %791 = vadd.xlane.f32.xlu1 %v790_v26 }
  0x7a   :  { %849 = vmax.xlane.f32.xlu0 %v848_v28  ;;  %v3888_v28 = vld [vmem:[%s6637_s1 + $0x28] sm:$0xff] }
  0x7b   :  { %852 = vmax.xlane.f32.xlu2 %v851_v29 }
  0x7c   :  { %v118_v35 = vpop.xlane.xlu1 %117 }
  0x7d   :  { %v112_v37 = vpop.xlane.xlu0 %111  ;;  %v167_v61 = vmul.f32 %v3841_v46, %v118_v35 }
  0x7e   :  { %v124_v38 = vpop.xlane.xlu2 %123  ;;  %v165_v54 = vmul.f32 %v3841_v46, %v112_v37 }
  0x7f   :  { %v231_v9 = vmul.f32 %v167_v61, %v3861_v0  ;;  %v169_v16 = vmul.f32 %v3841_v46, %v124_v38 }
  0x80   :  { %v229_v62 = vmul.f32 %v165_v54, %v3853_v55  ;;  %v771_v54 = vld [vmem:[#allocation2 + $0x1f8] sm:$0xff] }
  0x81   :  { %855 = vmax.xlane.f32.xlu1 %v854_v39  ;;  %v249_v15 = vsel %vm245_vm1, %v231_v9, 0.0  ;;  %v233_v26 = vmul.f32 %v169_v16, %v3878_v18  ;;  %v3898_v39 = vld [vmem:[%s6637_s1 + $0x30] sm:$0xff]  ;;  %v3928_v9 = vld [vmem:[%s6637_s1 + $0x48] sm:$0xff] }
  0x82   :  { %794 = vadd.xlane.f32.xlu0 %v793_v40  ;;  %v246_v10 = vsel %vm245_vm1, %v229_v62, 0.0  ;;  %v3938_v16 = vld [vmem:[%s6637_s1 + $0x50] sm:$0xff] }
  0x83   :  { %797 = vadd.xlane.f32.xlu2 %v796_v41  ;;  %v253_v34 = vsel %vm245_vm1, %v233_v26, 0.0 }
  0x84   :  { %v121_v45 = vpop.xlane.xlu1 %120 }
  0x85   :  { %v115_v47 = vpop.xlane.xlu0 %114  ;;  %v168_v4 = vmul.f32 %v3841_v46, %v121_v45  ;;  %v814_v45 = vadd.f32 %v769_v33, %v768_v32 }
  0x86   :  { %v127_v48 = vpop.xlane.xlu2 %126  ;;  %v166_v50 = vmul.f32 %v3841_v46, %v115_v47  ;;  %v3906_v47 = vld [vmem:[%s6637_s1 + $0x38] sm:$0xff] }
  0x87   :  { %v232_v12 = vmul.f32 %v168_v4, %v3868_v8  ;;  %v170_v27 = vmul.f32 %v3841_v46, %v127_v48 }
  0x88   :  { %v230_v56 = vmul.f32 %v166_v50, %v3847_v53 }
  0x89   :  { %800 = vadd.xlane.f32.xlu1 %v799_v49  ;;  %v251_v23 = vsel %vm245_vm1, %v232_v12, 0.0  ;;  %v234_v35 = vmul.f32 %v170_v27, %v3888_v28 }
  0x8a   :  { %858 = vmax.xlane.f32.xlu0 %v857_v51  ;;  %v247_v5 = vsel %vm245_vm1, %v230_v56, 0.0 }
  0x8b   :  { %861 = vmax.xlane.f32.xlu2 %v860_v52  ;;  %v248_v11 = vadd.f32 %v247_v5, %v246_v10  ;;  %v255_v48 = vsel %vm245_vm1, %v234_v35, 0.0  ;;  %v770_v52 = vld [vmem:[#allocation2 + $0x1f0] sm:$0xff] }
  0x8c   :  { %v133_v63 = vpop.xlane.xlu1 %132  ;;  %v817_v60 = vadd.f32 %v771_v54, %v770_v52 }
  0x8d   :  { %v130_v1 = vpop.xlane.xlu0 %129  ;;  %v250_v19 = vadd.f32 %v249_v15, %v248_v11  ;;  %v172_v43 = vmul.f32 %v3841_v46, %v133_v63 }
  0x8e   :  { %v136_v2 = vpop.xlane.xlu2 %135  ;;  %v171_v36 = vmul.f32 %v3841_v46, %v130_v1 }
  0x8f   :  { %v252_v29 = vadd.f32 %v251_v23, %v250_v19  ;;  %v173_v51 = vmul.f32 %v3841_v46, %v136_v2  ;;  %v236_v56 = vmul.f32 %v172_v43, %v3906_v47  ;;  %v875_v2 = vmax.f32 %v766_v30, %v767_v31  ;;  %v3949_v31 = vld [vmem:[%s6637_s1 + $0x58] sm:$0xff] }
  0x90   :  { %v235_v49 = vmul.f32 %v171_v36, %v3898_v39 }
  0x91   :  { %864 = vmax.xlane.f32.xlu1 %v863_v3  ;;  %v254_v38 = vadd.f32 %v253_v34, %v252_v29  ;;  %v237_v62 = vmul.f32 %v173_v51, %v3915_v57  ;;  %v878_v3 = vmax.f32 %v768_v32, %v769_v33  ;;  %v259_v4 = vsel %vm245_vm1, %v236_v56, 0.0 }
  0x92   :  { %803 = vadd.xlane.f32.xlu0 %v802_v6  ;;  %v257_v58 = vsel %vm245_vm1, %v235_v49, 0.0 }
  0x93   :  { %806 = vadd.xlane.f32.xlu2 %v805_v7  ;;  %v256_v50 = vadd.f32 %v255_v48, %v254_v38  ;;  %v261_v11 = vsel %vm245_vm1, %v237_v62, 0.0 }
  0x94   :  { %v142_v17 = vpop.xlane.xlu1 %141 }
  0x95   :  { %v139_v20 = vpop.xlane.xlu0 %138  ;;  %v258_v61 = vadd.f32 %v257_v58, %v256_v50  ;;  %v175_v12 = vmul.f32 %v3841_v46, %v142_v17 }
  0x96   :  { %v3880_v21 = vpop.xlane.xlu2 %144  ;;  %v174_v5 = vmul.f32 %v3841_v46, %v139_v20 }
  0x97   :  { %v260_v10 = vadd.f32 %v259_v4, %v258_v61  ;;  %v239_v26 = vmul.f32 %v175_v12, %v3938_v16  ;;  %v176_v29 = vmul.f32 %v3841_v46, %v3880_v21  ;;  %v3958_v21 = vld [vmem:[%s6637_s1 + $0x60] sm:$0xff] }
  0x98   :  { %v238_v13 = vmul.f32 %v174_v5, %v3928_v9  ;;  %v3984_v5 = vld [vmem:[%s6637_s1 + $0x70] sm:$0xff] }
  0x99   :  { %809 = vadd.xlane.f32.xlu1 %v808_v22  ;;  %v262_v20 = vadd.f32 %v261_v11, %v260_v10  ;;  %v240_v43 = vmul.f32 %v176_v29, %v3949_v31  ;;  %v3991_v10 = vld [vmem:[%s6637_s1 + $0x78] sm:$0xff] }
  0x9a   :  { %867 = vmax.xlane.f32.xlu0 %v866_v24  ;;  %v263_v27 = vsel %vm245_vm1, %v238_v13, 0.0 }
  0x9b   :  { %870 = vmax.xlane.f32.xlu2 %v869_v25  ;;  %v881_v25 = vmax.f32 %v770_v52, %v771_v54  ;;  %v264_v36 = vadd.f32 %v263_v27, %v262_v20  ;;  %v267_v58 = vsel %vm245_vm1, %v240_v43, 0.0 }
  0x9c   :  { %v3893_v37 = vpop.xlane.xlu1 %150 }
  0x9d   :  { %v148_v40 = vpop.xlane.xlu0 %147 }
  0x9e   :  { %v3900_v41 = vpop.xlane.xlu2 %153  ;;  %v177_v32 = vmul.f32 %v3841_v46, %v148_v40  ;;  %v178_v40 = vmul.f32 %v3841_v46, %v3893_v37 }
  0xa0   :  { %v241_v48 = vmul.f32 %v177_v32, %v3958_v21 }
  0xa1   :  { %873 = vmax.xlane.f32.xlu1 %v872_v42  ;;  %v265_v42 = vsel %vm245_vm1, %v239_v26, 0.0 }
  0xa2   :  { %812 = vadd.xlane.f32.xlu0 %v811_v44  ;;  %v266_v51 = vadd.f32 %v265_v42, %v264_v36  ;;  %v269_v62 = vsel %vm245_vm1, %v241_v48, 0.0 }
  0xa3   :  { %815 = vadd.xlane.f32.xlu2 %v814_v45  ;;  %v3967_v45 = vld [vmem:[%s6637_s1 + $0x68] sm:$0xff]  ;;  %s3768_s1 = smov 80  }
  0xa4   :  { %v183_v59 = vpop.xlane.xlu1 %182  ;;  %v268_v4 = vadd.f32 %v267_v58, %v266_v51 }
  0xa5   :  { %v3919_v63 = vpop.xlane.xlu0 %156  ;;  %v284_v6 = vmul.f32 %v183_v59, %v3853_v55  ;;  %v242_v59 = vmul.f32 %v178_v40, %v3967_v45 }
  0xa6   :  { %v186_v1 = vpop.xlane.xlu2 %185 }
  0xa7   :  { %v285_v7 = vmul.f32 %v186_v1, %v3847_v53  ;;  %v300_v14 = vsel %vm245_vm1, %v284_v6, 0.0  ;;  %v271_v12 = vsel %vm245_vm1, %v242_v59, 0.0 }
  0xa9   :  { %818 = vadd.xlane.f32.xlu1 %v817_v60  ;;  %v301_v15 = vsel %vm245_vm1, %v285_v7, 0.0  ;;  %v179_v60 = vmul.f32 %v3841_v46, %v3900_v41  ;;  %v180_v7 = vmul.f32 %v3841_v46, %v3919_v63  ;;  %v270_v41 = vadd.f32 %v269_v62, %v268_v4 }
  0xaa   :  { %876 = vmax.xlane.f32.xlu0 %v875_v2  ;;  %v302_v22 = vadd.f32 %v301_v15, %v300_v14 }
  0xab   :  { %879 = vmax.xlane.f32.xlu2 %v878_v3  ;;  %v243_v13 = vmul.f32 %v179_v60, %v3984_v5  ;;  %v244_v63 = vmul.f32 %v180_v7, %v3991_v10 }
  0xac   :  { %v192_v19 = vpop.xlane.xlu1 %191 }
  0xad   :  { %v287_v23 = vmul.f32 %v192_v19, %v3868_v8  ;;  %v189_v24 = vpop.xlane.xlu0 %188  ;;  %v275_v32 = vsel %vm245_vm1, %v244_v63, 0.0 }
  0xae   :  { %v195_v17 = vpop.xlane.xlu2 %194  ;;  %v286_v30 = vmul.f32 %v189_v24, %v3861_v0  ;;  %v272_v24 = vadd.f32 %v271_v12, %v270_v41 }
  0xaf   :  { %v305_v33 = vsel %vm245_vm1, %v287_v23, 0.0  ;;  %v288_v35 = vmul.f32 %v195_v17, %v3878_v18 }
  0xb0   :  { %v303_v34 = vsel %vm245_vm1, %v286_v30, 0.0 }
  0xb1   :  { %v304_v38 = vadd.f32 %v303_v34, %v302_v22  ;;  %v307_v49 = vsel %vm245_vm1, %v288_v35, 0.0 }
  0xb2   :  { %882 = vmax.xlane.f32.xlu0 %v881_v25  ;;  %v273_v25 = vsel %vm245_vm1, %v243_v13, 0.0 }
  0xb3   :  { %v306_v44 = vadd.f32 %v305_v33, %v304_v38  ;;  %v274_v33 = vadd.f32 %v273_v25, %v272_v24 }
  0xb4   :  { %v201_v50 = vpop.xlane.xlu1 %200 }
  0xb5   :  { %v290_v52 = vmul.f32 %v201_v50, %v3898_v39  ;;  %v198_v54 = vpop.xlane.xlu0 %197  ;;  %v308_v61 = vadd.f32 %v307_v49, %v306_v44  ;;  %v276_v38 = vadd.f32 %v275_v32, %v274_v33  ;;  %v4018_v32 = vld [vmem:[%s6638_s2 + $0x10] sm:$0xff]  ;;  %v4023_v33 = vld [vmem:[%s6638_s2 + $0x8] sm:$0xff] }
  0xb6   :  { %v204_v56 = vpop.xlane.xlu2 %203  ;;  %v289_v37 = vmul.f32 %v198_v54, %v3888_v28 }
  0xb7   :  { %v311_v1 = vsel %vm245_vm1, %v290_v52, 0.0  ;;  %v291_v3 = vmul.f32 %v204_v56, %v3906_v47  ;;  %v277_v52 = vrot.slane %v276_v38, 4 }
  0xb8   :  { %v309_v2 = vsel %vm245_vm1, %v289_v37, 0.0 }
  0xb9   :  { %v310_v6 = vadd.f32 %v309_v2, %v308_v61  ;;  %v313_v14 = vsel %vm245_vm1, %v291_v3, 0.0  ;;  %v278_v59 = vadd.f32 %v277_v52, %v276_v38 }
  0xbb   :  { %v312_v11 = vadd.f32 %v311_v1, %v310_v6  ;;  %v279_v6 = vrot.slane %v278_v59, 2 }
  0xbc   :  { %v210_v15 = vpop.xlane.xlu1 %209 }
  0xbd   :  { %v293_v19 = vmul.f32 %v210_v15, %v3928_v9  ;;  %v207_v20 = vpop.xlane.xlu0 %206  ;;  %v314_v17 = vadd.f32 %v313_v14, %v312_v11  ;;  %v280_v12 = vadd.f32 %v279_v6, %v278_v59 }
  0xbe   :  { %v213_v22 = vpop.xlane.xlu2 %212  ;;  %v292_v23 = vmul.f32 %v207_v20, %v3915_v57 }
  0xbf   :  { %v317_v26 = vsel %vm245_vm1, %v293_v19, 0.0  ;;  %v294_v29 = vmul.f32 %v213_v22, %v3938_v16  ;;  %v281_v20 = vrot.slane %v280_v12, 1 }
  0xc0   :  { %v315_v27 = vsel %vm245_vm1, %v292_v23, 0.0 }
  0xc1   :  { %v316_v30 = vadd.f32 %v315_v27, %v314_v17  ;;  %v319_v35 = vsel %vm245_vm1, %v294_v29, 0.0  ;;  %v282_v24 = vadd.f32 %v281_v20, %v280_v12 }
  0xc3   :  { %v318_v34 = vadd.f32 %v317_v26, %v316_v30  ;;  %v283_v29 = vmax.f32 %v282_v24, 0.0 }
  0xc4   :  { %v219_v36 = vpop.xlane.xlu1 %218 }
  0xc5   :  { %v296_v42 = vmul.f32 %v219_v36, %v3958_v21  ;;  %v216_v43 = vpop.xlane.xlu0 %215  ;;  %v320_v48 = vadd.f32 %v319_v35, %v318_v34  ;;  %v4028_v34 = vld [vmem:[%s6638_s2] sm:$0xff] }
  0xc6   :  { %v222_v40 = vpop.xlane.xlu2 %221  ;;  %v295_v44 = vmul.f32 %v216_v43, %v3949_v31 }
  0xc7   :  { %v323_v49 = vsel %vm245_vm1, %v296_v42, 0.0  ;;  %v297_v51 = vmul.f32 %v222_v40, %v3967_v45 }
  0xc8   :  { %v321_v50 = vsel %vm245_vm1, %v295_v44, 0.0 }
  0xc9   :  { %v322_v54 = vadd.f32 %v321_v50, %v320_v48  ;;  %v325_v58 = vsel %vm245_vm1, %v297_v51, 0.0 }
  0xcb   :  { %v324_v56 = vadd.f32 %v323_v49, %v322_v54 }
  0xcc   :  { %v228_v37 = vpop.xlane.xlu1 %227 }
  0xcd   :  { %v299_v60 = vmul.f32 %v228_v37, %v3991_v10  ;;  %v225_v61 = vpop.xlane.xlu0 %224  ;;  %v326_v2 = vadd.f32 %v325_v58, %v324_v56 }
  0xce   :  { %v774_v62 = vpop.xlane.xlu2 %773  ;;  %v298_v1 = vmul.f32 %v225_v61, %v3984_v5 }
  0xcf   :  { %v329_v3 = vsel %vm245_vm1, %v299_v60, 0.0  ;;  %v820_v58 = vmul.f32 %v774_v62, %v3841_v46 }
  0xd0   :  { %v327_v4 = vsel %vm245_vm1, %v298_v1, 0.0 }
  0xd1   :  { %v328_v7 = vadd.f32 %v327_v4, %v326_v2  ;;  %v884_v2 = vmul.f32 %v820_v58, %v3853_v55 }
  0xd3   :  { %v330_v41 = vadd.f32 %v329_v3, %v328_v7 }
  0xd4   :  { %v780_v11 = vpop.xlane.xlu1 %779 }
  0xd5   :  { %v331_v13 = vrot.slane %v330_v41, 4  ;;  %v777_v14 = vpop.xlane.xlu0 %776  ;;  %v822_v59 = vmul.f32 %v780_v11, %v3841_v46 }
  0xd6   :  { %v838_v15 = vpop.xlane.xlu2 %837  ;;  %v821_v56 = vmul.f32 %v777_v14, %v3841_v46 }
  0xd7   :  { %v332_v19 = vadd.f32 %v331_v13, %v330_v41  ;;  %v886_v4 = vmul.f32 %v822_v59, %v3861_v0  ;;  %v900_v41 = vsel %vm245_vm1, %v884_v2, 0.0 }
  0xd8   :  { %v885_v60 = vmul.f32 %v821_v56, %v3847_v53 }
  0xd9   :  { %v333_v22 = vrot.slane %v332_v19, 2  ;;  %v903_v14 = vsel %vm245_vm1, %v886_v4, 0.0 }
  0xda   :  { %v901_v6 = vsel %vm245_vm1, %v885_v60, 0.0 }
  0xdb   :  { %v334_v63 = vadd.f32 %v333_v22, %v332_v19  ;;  %v902_v12 = vadd.f32 %v901_v6, %v900_v41 }
  0xdc   :  { %v783_v23 = vpop.xlane.xlu1 %782 }
  0xdd   :  { %v335_v17 = vrot.slane %v334_v63, 1  ;;  %v841_v25 = vpop.xlane.xlu0 %840  ;;  %v823_v3 = vmul.f32 %v783_v23, %v3841_v46  ;;  %v938_v23 = vmul.f32 %v838_v15, %v3853_v55 }
  0xde   :  { %v844_v26 = vpop.xlane.xlu2 %843  ;;  %v939_v11 = vmul.f32 %v841_v25, %v3847_v53 }
  0xdf   :  { %v336_v27 = vadd.f32 %v335_v17, %v334_v63  ;;  %v887_v62 = vmul.f32 %v823_v3, %v3868_v8  ;;  %v940_v53 = vmul.f32 %v844_v26, %v3861_v0 }
  0xe1   :  { %v337_v30 = vmax.f32 %v336_v27, 0.0  ;;  %v905_v24 = vsel %vm245_vm1, %v887_v62, 0.0  ;;  %v904_v27 = vadd.f32 %v903_v14, %v902_v12 }
  0xe3   :  { %v4030_v35 = vadd.f32 %v337_v30, %v283_v29  ;;  %v955_v29 = vsel %vm245_vm1, %v939_v11, 0.0 }
  0xe4   :  { %v847_v36 = vpop.xlane.xlu1 %846 }
  0xe5   :  { %v786_v38 = vpop.xlane.xlu0 %785  ;;  %v341_v43 = vmul.f32 %v4030_v35, %v4018_v32  ;;  %v340_v40 = vmul.f32 %v4030_v35, %v4023_v33  ;;  %v339_v44 = vmul.f32 %v4030_v35, %v4028_v34  ;;  %v941_v55 = vmul.f32 %v847_v36, %v3868_v8 }
  0xe6   :  { %v789_v42 = vpop.xlane.xlu2 %788  ;;  %v824_v7 = vmul.f32 %v786_v38, %v3841_v46 }
  0xe7   :  { %v361_v48 = vsel %vm245_vm1, %v341_v43, 0.0  ;;  %v358_v49 = vsel %vm245_vm1, %v340_v40, 0.0  ;;  %v355_v50 = vsel %vm245_vm1, %v339_v44, 0.0  ;;  %v825_v20 = vmul.f32 %v789_v42, %v3841_v46 }
  0xe8   :  { %362 = vadd.xlane.f32.xlu1 %v361_v48  ;;  %359 = vadd.xlane.f32.xlu0 %v358_v49  ;;  %v888_v19 = vmul.f32 %v824_v7, %v3878_v18  ;;  %v954_v42 = vsel %vm245_vm1, %v938_v23, 0.0  ;;  %v906_v43 = vadd.f32 %v905_v24, %v904_v27  ;;  %v957_v44 = vsel %vm245_vm1, %v940_v53, 0.0 }
  0xe9   :  { %356 = vadd.xlane.f32.xlu2 %v355_v50  ;;  %v889_v30 = vmul.f32 %v825_v20, %v3888_v28  ;;  %v956_v15 = vadd.f32 %v955_v29, %v954_v42  ;;  %v959_v59 = vsel %vm245_vm1, %v941_v55, 0.0 }
  0xea   :  { %v907_v25 = vsel %vm245_vm1, %v888_v19, 0.0 }
  0xeb   :  { %v908_v48 = vadd.f32 %v907_v25, %v906_v43  ;;  %v909_v26 = vsel %vm245_vm1, %v889_v30, 0.0  ;;  %v958_v8 = vadd.f32 %v957_v44, %v956_v15 }
  0xec   :  { %v792_v51 = vpop.xlane.xlu1 %791 }
  0xed   :  { %v850_v52 = vpop.xlane.xlu0 %849  ;;  %v826_v17 = vmul.f32 %v792_v51, %v3841_v46 }
  0xee   :  { %v853_v54 = vpop.xlane.xlu2 %852  ;;  %v942_v49 = vmul.f32 %v850_v52, %v3878_v18  ;;  %v960_v52 = vadd.f32 %v959_v59, %v958_v8 }
  0xef   :  { %v890_v40 = vmul.f32 %v826_v17, %v3898_v39  ;;  %v943_v18 = vmul.f32 %v853_v54, %v3888_v28 }
  0xf0   :  { %v961_v2 = vsel %vm245_vm1, %v942_v49, 0.0 }
  0xf1   :  { %v911_v36 = vsel %vm245_vm1, %v890_v40, 0.0  ;;  %v962_v41 = vadd.f32 %v961_v2, %v960_v52  ;;  %v963_v12 = vsel %vm245_vm1, %v943_v18, 0.0 }
  0xf4   :  { %v856_v37 = vpop.xlane.xlu1 %855 }
  0xf5   :  { %v795_v61 = vpop.xlane.xlu0 %794  ;;  %v944_v7 = vmul.f32 %v856_v37, %v3898_v39  ;;  %v964_v39 = vadd.f32 %v963_v12, %v962_v41 }
  0xf6   :  { %v798_v1 = vpop.xlane.xlu2 %797  ;;  %v827_v38 = vmul.f32 %v795_v61, %v3841_v46  ;;  %v910_v61 = vadd.f32 %v909_v26, %v908_v48 }
  0xf7   :  { %v828_v51 = vmul.f32 %v798_v1, %v3841_v46  ;;  %v965_v24 = vsel %vm245_vm1, %v944_v7, 0.0 }
  0xf8   :  { %v891_v50 = vmul.f32 %v827_v38, %v3906_v47  ;;  %v912_v6 = vadd.f32 %v911_v36, %v910_v61 }
  0xf9   :  { %v892_v4 = vmul.f32 %v828_v51, %v3915_v57 }
  0xfa   :  { %v913_v3 = vsel %vm245_vm1, %v891_v50, 0.0 }
  0xfb   :  { %v914_v11 = vadd.f32 %v913_v3, %v912_v6  ;;  %v915_v28 = vsel %vm245_vm1, %v892_v4, 0.0 }
  0xfc   :  { %v801_v13 = vpop.xlane.xlu1 %800 }
  0xfd   :  { %v859_v22 = vpop.xlane.xlu0 %858  ;;  %v829_v60 = vmul.f32 %v801_v13, %v3841_v46  ;;  %v916_v27 = vadd.f32 %v915_v28, %v914_v11 }
  0xfe   :  { %v862_v63 = vpop.xlane.xlu2 %861  ;;  %v945_v13 = vmul.f32 %v859_v22, %v3906_v47  ;;  %v966_v22 = vadd.f32 %v965_v24, %v964_v39 }
  0xff   :  { %v893_v62 = vmul.f32 %v829_v60, %v3928_v9  ;;  %v946_v47 = vmul.f32 %v862_v63, %v3915_v57 }
 0x100   :  { %v967_v29 = vsel %vm245_vm1, %v945_v13, 0.0 }
 0x101   :  { %v917_v37 = vsel %vm245_vm1, %v893_v62, 0.0  ;;  %v968_v42 = vadd.f32 %v967_v29, %v966_v22  ;;  %v969_v55 = vsel %vm245_vm1, %v946_v47, 0.0 }
 0x102   :  { %v918_v30 = vadd.f32 %v917_v37, %v916_v27 }
 0x104   :  { %v865_v0 = vpop.xlane.xlu1 %864 }
 0x105   :  { %v804_v56 = vpop.xlane.xlu0 %803  ;;  %v947_v38 = vmul.f32 %v865_v0, %v3928_v9  ;;  %v970_v9 = vadd.f32 %v969_v55, %v968_v42 }
 0x106   :  { %v807_v58 = vpop.xlane.xlu2 %806  ;;  %v830_v1 = vmul.f32 %v804_v56, %v3841_v46 }
 0x107   :  { %v831_v19 = vmul.f32 %v807_v58, %v3841_v46  ;;  %v971_v49 = vsel %vm245_vm1, %v947_v38, 0.0 }
 0x108   :  { %v894_v54 = vmul.f32 %v830_v1, %v3938_v16  ;;  %v972_v59 = vadd.f32 %v971_v49, %v970_v9  ;;  %v75_v9 = vld [vmem:[%s6638_s2 + $0x68] sm:$0xff] }
 0x109   :  { %v895_v25 = vmul.f32 %v831_v19, %v3949_v31 }
 0x10a   :  { %v919_v53 = vsel %vm245_vm1, %v894_v54, 0.0 }
 0x10b   :  { %v920_v15 = vadd.f32 %v919_v53, %v918_v30  ;;  %v921_v48 = vsel %vm245_vm1, %v895_v25, 0.0 }
 0x10c   :  { %v810_v14 = vpop.xlane.xlu1 %809 }
 0x10d   :  { %v868_v20 = vpop.xlane.xlu0 %867  ;;  %v832_v17 = vmul.f32 %v810_v14, %v3841_v46  ;;  %v922_v51 = vadd.f32 %v921_v48, %v920_v15 }
 0x10e   :  { %v871_v23 = vpop.xlane.xlu2 %870  ;;  %v948_v40 = vmul.f32 %v868_v20, %v3938_v16 }
 0x10f   :  { %v896_v43 = vmul.f32 %v832_v17, %v3958_v21  ;;  %v949_v58 = vmul.f32 %v871_v23, %v3949_v31 }
 0x110   :  { %v973_v56 = vsel %vm245_vm1, %v948_v40, 0.0  ;;  %v74_v40 = vld [vmem:[%s6638_s2 + $0x60] sm:$0xff] }
 0x111   :  { %v923_v0 = vsel %vm245_vm1, %v896_v43, 0.0  ;;  %v974_v2 = vadd.f32 %v973_v56, %v972_v59  ;;  %v975_v18 = vsel %vm245_vm1, %v949_v58, 0.0 }
 0x112   :  { %v924_v36 = vadd.f32 %v923_v0, %v922_v51 }
 0x113   :  { %v976_v62 = vadd.f32 %v975_v18, %v974_v2 }
 0x114   :  { %v874_v44 = vpop.xlane.xlu1 %873 }
 0x115   :  { %v813_v57 = vpop.xlane.xlu0 %812  ;;  %v950_v60 = vmul.f32 %v874_v44, %v3958_v21  ;;  %v77_v44 = vld [vmem:[%s6638_s2 + $0x78] sm:$0xff] }
 0x116   :  { %v816_v63 = vpop.xlane.xlu2 %815  ;;  %v833_v26 = vmul.f32 %v813_v57, %v3841_v46  ;;  %v354_v51 = vmul.f32 %v4030_v35, %v77_v44 }
 0x117   :  { %v834_v50 = vmul.f32 %v816_v63, %v3841_v46  ;;  %v977_v7 = vsel %vm245_vm1, %v950_v60, 0.0  ;;  %v351_v60 = vmul.f32 %v4030_v35, %v74_v40 }
 0x118   :  { %v897_v16 = vmul.f32 %v833_v26, %v3967_v45  ;;  %v978_v14 = vadd.f32 %v977_v7, %v976_v62 }
 0x119   :  { %v898_v8 = vmul.f32 %v834_v50, %v3984_v5 }
 0x11a   :  { %v925_v61 = vsel %vm245_vm1, %v897_v16, 0.0  ;;  %v400_v16 = vsel %vm245_vm1, %v354_v51, 0.0 }
 0x11b   :  { %v926_v52 = vadd.f32 %v925_v61, %v924_v36  ;;  %v927_v4 = vsel %vm245_vm1, %v898_v8, 0.0  ;;  %v72_v8 = vld [vmem:[%s6638_s2 + $0x50] sm:$0xff]  ;;  %v73_v61 = vld [vmem:[%s6638_s2 + $0x58] sm:$0xff] }
 0x11c   :  { %v819_v3 = vpop.xlane.xlu1 %818 }
 0x11d   :  { %v835_v1 = vmul.f32 %v819_v3, %v3841_v46  ;;  %v877_v31 = vpop.xlane.xlu0 %876  ;;  %v928_v12 = vadd.f32 %v927_v4, %v926_v52  ;;  %v391_v52 = vsel %vm245_vm1, %v351_v60, 0.0  ;;  %v71_v4 = vld [vmem:[%s6638_s2 + $0x48] sm:$0xff] }
 0x11e   :  { %v880_v6 = vpop.xlane.xlu2 %879  ;;  %v951_v41 = vmul.f32 %v877_v31, %v3967_v45 }
 0x11f   :  { %v899_v21 = vmul.f32 %v835_v1, %v3991_v10  ;;  %v952_v13 = vmul.f32 %v880_v6, %v3984_v5  ;;  %v352_v1 = vmul.f32 %v4030_v35, %v75_v9  ;;  %v70_v6 = vld [vmem:[%s6638_s2 + $0x40] sm:$0xff] }
 0x120   :  { %v979_v11 = vsel %vm245_vm1, %v951_v41, 0.0 }
 0x121   :  { %v929_v28 = vsel %vm245_vm1, %v899_v21, 0.0  ;;  %v980_v19 = vadd.f32 %v979_v11, %v978_v14  ;;  %v981_v20 = vsel %vm245_vm1, %v952_v13, 0.0  ;;  %v394_v41 = vsel %vm245_vm1, %v352_v1, 0.0 }
 0x122   :  { %v930_v54 = vadd.f32 %v929_v28, %v928_v12  ;;  %v68_v12 = vld [vmem:[%s6638_s2 + $0x30] sm:$0xff]  ;;  %v349_v11 = vmul.f32 %v4030_v35, %v72_v8  ;;  %v350_v14 = vmul.f32 %v4030_v35, %v73_v61 }
 0x123   :  { %v982_v39 = vadd.f32 %v981_v20, %v980_v19 }
 0x124   :  { %v931_v46 = vrot.slane %v930_v54, 4  ;;  %v385_v28 = vsel %vm245_vm1, %v349_v11, 0.0  ;;  %v388_v19 = vsel %vm245_vm1, %v350_v14, 0.0 }
 0x125   :  { %v883_v23 = vpop.xlane.xlu0 %882 }
 0x126   :  { %v932_v24 = vadd.f32 %v931_v46, %v930_v54  ;;  %v953_v45 = vmul.f32 %v883_v23, %v3991_v10  ;;  %v76_v10 = vld [vmem:[%s6638_s2 + $0x70] sm:$0xff]  ;;  %v69_v46 = vld [vmem:[%s6638_s2 + $0x38] sm:$0xff]  ;;  %v348_v23 = vmul.f32 %v4030_v35, %v71_v4 }
 0x127   :  { %v353_v56 = vmul.f32 %v4030_v35, %v76_v10 }
 0x128   :  { %v933_v37 = vrot.slane %v932_v24, 2  ;;  %v983_v17 = vsel %vm245_vm1, %v953_v45, 0.0 }
 0x129   :  { %v984_v27 = vadd.f32 %v983_v17, %v982_v39  ;;  %v397_v59 = vsel %vm245_vm1, %v353_v56, 0.0  ;;  %v382_v39 = vsel %vm245_vm1, %v348_v23, 0.0  ;;  %v66_v17 = vld [vmem:[%s6638_s2 + $0x20] sm:$0xff] }
 0x12a   :  { %v934_v29 = vadd.f32 %v933_v37, %v932_v24  ;;  %v347_v24 = vmul.f32 %v4030_v35, %v70_v6 }
 0x12b   :  { %v985_v47 = vrot.slane %v984_v27, 4 }
 0x12c   :  { %v935_v22 = vrot.slane %v934_v29, 1  ;;  %v379_v37 = vsel %vm245_vm1, %v347_v24, 0.0 }
 0x12d   :  { %v986_v5 = vadd.f32 %v985_v47, %v984_v27  ;;  %v67_v47 = vld [vmem:[%s6638_s2 + $0x28] sm:$0xff] }
 0x12e   :  { %v936_v30 = vadd.f32 %v935_v22, %v934_v29  ;;  %v345_v29 = vmul.f32 %v4030_v35, %v68_v12 }
 0x12f   :  { %v987_v53 = vrot.slane %v986_v5, 2 }
 0x130   :  { %v937_v43 = vmax.f32 %v936_v30, 0.0  ;;  %v65_v30 = vld [vmem:[%s6638_s2 + $0x18] sm:$0xff]  ;;  %s3750_s2 = smov 3  }
 0x131   :  { %v988_v25 = vadd.f32 %v987_v53, %v986_v5  ;;  %v373_v53 = vsel %vm245_vm1, %v345_v29, 0.0 }
 0x133   :  { %v989_v38 = vrot.slane %v988_v25, 1 }
 0x135   :  { %v990_v42 = vadd.f32 %v989_v38, %v988_v25  ;;  %v346_v38 = vmul.f32 %v4030_v35, %v69_v46 }
 0x137   :  { %v991_v55 = vmax.f32 %v990_v42, 0.0 }
 0x139   :  { %v4121_v15 = vadd.f32 %v991_v55, %v937_v43  ;;  %v376_v55 = vsel %vm245_vm1, %v346_v38, 0.0 }
 0x13b   :  { %v1007_v48 = vmul.f32 %v4121_v15, %v76_v10  ;;  %v1005_v57 = vmul.f32 %v4121_v15, %v74_v40  ;;  %v1008_v63 = vmul.f32 %v4121_v15, %v77_v44  ;;  %v1006_v0 = vmul.f32 %v4121_v15, %v75_v9 }
 0x13c   :  { %v1003_v36 = vmul.f32 %v4121_v15, %v72_v8  ;;  %v1004_v2 = vmul.f32 %v4121_v15, %v73_v61  ;;  %v1002_v31 = vmul.f32 %v4121_v15, %v71_v4  ;;  %v1001_v7 = vmul.f32 %v4121_v15, %v70_v6 }
 0x13d   :  { %v1051_v49 = vsel %vm245_vm1, %v1007_v48, 0.0  ;;  %v1045_v26 = vsel %vm245_vm1, %v1005_v57, 0.0  ;;  %v1054_v50 = vsel %vm245_vm1, %v1008_v63, 0.0  ;;  %v1048_v58 = vsel %vm245_vm1, %v1006_v0, 0.0 }
 0x13e   :  { %1052 = vadd.xlane.f32.xlu1 %v1051_v49  ;;  %1046 = vadd.xlane.f32.xlu0 %v1045_v26  ;;  %v1039_v18 = vsel %vm245_vm1, %v1003_v36, 0.0  ;;  %v1042_v3 = vsel %vm245_vm1, %v1004_v2, 0.0  ;;  %v1036_v62 = vsel %vm245_vm1, %v1002_v31, 0.0  ;;  %v1033_v21 = vsel %vm245_vm1, %v1001_v7, 0.0 }
 0x13f   :  { %1055 = vadd.xlane.f32.xlu2 %v1054_v50  ;;  %v999_v13 = vmul.f32 %v4121_v15, %v68_v12  ;;  %v1000_v20 = vmul.f32 %v4121_v15, %v69_v46  ;;  %v997_v27 = vmul.f32 %v4121_v15, %v66_v17  ;;  %v998_v5 = vmul.f32 %v4121_v15, %v67_v47 }
 0x140   :  { %v996_v42 = vmul.f32 %v4121_v15, %v65_v30  ;;  %v995_v43 = vmul.f32 %v4121_v15, %v4018_v32  ;;  %v343_v44 = vmul.f32 %v4030_v35, %v66_v17  ;;  %v993_v48 = vmul.f32 %v4121_v15, %v4028_v34 }
 0x141   :  { %v1027_v54 = vsel %vm245_vm1, %v999_v13, 0.0  ;;  %v1030_v45 = vsel %vm245_vm1, %v1000_v20, 0.0  ;;  %v1021_v22 = vsel %vm245_vm1, %v997_v27, 0.0  ;;  %v1024_v25 = vsel %vm245_vm1, %v998_v5, 0.0 }
 0x142   :  { %v1018_v10 = vsel %vm245_vm1, %v996_v42, 0.0  ;;  %v1015_v40 = vsel %vm245_vm1, %v995_v43, 0.0  ;;  %v344_v57 = vmul.f32 %v4030_v35, %v67_v47  ;;  %v367_v63 = vsel %vm245_vm1, %v343_v44, 0.0 }
 0x143   :  { %v1009_v32 = vsel %vm245_vm1, %v993_v48, 0.0  ;;  %v994_v26 = vmul.f32 %v4121_v15, %v4023_v33  ;;  %v342_v50 = vmul.f32 %v4030_v35, %v65_v30  ;;  %v3630_v48 = vld [vmem:[#allocation2] sm:$0xff] }
 0x144   :  { %v370_v49 = vsel %vm245_vm1, %v344_v57, 0.0 }
 0x145   :  { %v1012_v9 = vsel %vm245_vm1, %v994_v26, 0.0  ;;  %v364_v34 = vsel %vm245_vm1, %v342_v50, 0.0  ;;  %v3632_v50 = vld [vmem:[#allocation2 + $0x8] sm:$0xff] }
 0x146   :  { %1049 = vadd.xlane.f32.xlu1 %v1048_v58  ;;  %401 = vadd.xlane.f32.xlu0 %v400_v16 }
 0x147   :  { %398 = vadd.xlane.f32.xlu2 %v397_v59 }
 0x14e   :  { %1040 = vadd.xlane.f32.xlu1 %v1039_v18  ;;  %392 = vadd.xlane.f32.xlu0 %v391_v52 }
 0x14f   :  { %1043 = vadd.xlane.f32.xlu2 %v1042_v3 }
 0x156   :  { %395 = vadd.xlane.f32.xlu1 %v394_v41  ;;  %1037 = vadd.xlane.f32.xlu0 %v1036_v62 }
 0x157   :  { %1034 = vadd.xlane.f32.xlu2 %v1033_v21 }
 0x15b   :  { %v360_v0 = vpop.xlane.xlu0 %359  ;;  %v363_v16 = vpop.xlane.xlu1 %362 }
 0x15c   :  { %v357_v51 = vpop.xlane.xlu2 %356  ;;  %v3335_v56 = vmul.f32 -1.442695, %v360_v0  ;;  %v3336_v59 = vmul.f32 -1.442695, %v363_v16  ;;  %v3633_v0 = vld [vmem:[#allocation2 + $0x18] sm:$0xff] }
 0x15d   :  { %v3334_v58 = vmul.f32 -1.442695, %v357_v51 }
 0x15e   :  { %386 = vadd.xlane.f32.xlu1 %v385_v28  ;;  %1028 = vadd.xlane.f32.xlu0 %v1027_v54  ;;  %3496 = vpow2.f32 %v3335_v56 }
 0x15f   :  { %389 = vadd.xlane.f32.xlu2 %v388_v19  ;;  %3498 = vpow2.f32 %v3334_v58 }
 0x160   :  { %3500 = vpow2.f32 %v3336_v59 }
 0x164   :  { %v3497_v8 = vpop.eup %3496 }
 0x165   :  { %v3499_v36 = vpop.eup %3498  ;;  %v452_v33 = vadd.f32 1.0, %v3497_v8 }
 0x166   :  { %1031 = vadd.xlane.f32.xlu1 %v1030_v45  ;;  %383 = vadd.xlane.f32.xlu0 %v382_v39  ;;  %v451_v15 = vadd.f32 1.0, %v3499_v36  ;;  %v3501_v35 = vpop.eup %3500 }
 0x167   :  { %380 = vadd.xlane.f32.xlu2 %v379_v37  ;;  %3502 = vrcp.f32 %v452_v33  ;;  %v453_v60 = vadd.f32 1.0, %v3501_v35  ;;  %v493_v54 = vand.u32 2147483648, %v452_v33  ;;  %vm487_vm6 = vweird.f32 %v452_v33 }
 0x168   :  { %3504 = vrcp.f32 %v451_v15  ;;  %vm472_vm3 = vweird.f32 %v451_v15  ;;  %v476_v14 = vand.u32 2147483647, %v451_v15  ;;  %v478_v28 = vand.u32 2147483648, %v451_v15 }
 0x169   :  { %3506 = vrcp.f32 %v453_v60  ;;  %v491_v24 = vand.u32 2147483647, %v452_v33  ;;  %v494_v47 = vor.u32 1.1754944e-38, %v493_v54  ;;  %v508_v5 = vand.u32 2147483648, %v453_v60 }
 0x16a   :  { %v479_v29 = vor.u32 1.1754944e-38, %v478_v28  ;;  %vm477_vm9 = vcmp.eq.f32.partialorder %v476_v14, 8.507059e+37  ;;  %vm502_vm11 = vweird.f32 %v453_v60 }
 0x16b   :  { %vm492_vm10 = vcmp.eq.f32.partialorder %v491_v24, 8.507059e+37  ;;  %v509_v44 = vor.u32 1.1754944e-38, %v508_v5 }
 0x16d   :  { %v3503_v61 = vpop.eup %3502 }
 0x16e   :  { %1022 = vadd.xlane.f32.xlu1 %v1021_v22  ;;  %374 = vadd.xlane.f32.xlu0 %v373_v53  ;;  %v3505_v2 = vpop.eup %3504  ;;  %v483_v18 = vmul.f32 %v3503_v61, %v452_v33  ;;  %vm488_vm4 = vweird.f32 %v3503_v61  ;;  %v506_v22 = vand.u32 2147483647, %v453_v60  ;;  %v3634_v33 = vld [vmem:[#allocation2 + $0x20] sm:$0xff] }
 0x16f   :  { %1025 = vadd.xlane.f32.xlu2 %v1024_v25  ;;  %v468_v52 = vmul.f32 %v3505_v2, %v451_v15  ;;  %v4223_v3 = vpop.eup %3506  ;;  %vm473_vm2 = vweird.f32 %v3505_v2  ;;  %vm4231_vm7 = vmor %vm487_vm6, %vm488_vm4 }
 0x170   :  { %v484_v4 = vsub.f32 1.0, %v483_v18  ;;  %v498_v31 = vmul.f32 %v4223_v3, %v453_v60  ;;  %vm4227_vm5 = vmor %vm472_vm3, %vm473_vm2  ;;  %vm503_vm8 = vweird.f32 %v4223_v3  ;;  %vm507_vm13 = vcmp.eq.f32.partialorder %v506_v22, 8.507059e+37  ;;  %v3635_v60 = vld [vmem:[#allocation2 + $0x28] sm:$0xff]  ;;  %v3644_v18 = vld [vmem:[#allocation2 + $0x1c0] sm:$0xff] }
 0x171   :  { %v469_v1 = vsub.f32 1.0, %v468_v52  ;;  %vm4243_vm12 = vmor %vm502_vm11, %vm503_vm8 }
 0x172   :  { %v485_v7 = vmul.f32 %v3503_v61, %v484_v4  ;;  %v499_v41 = vsub.f32 1.0, %v498_v31 }
 0x173   :  { %v470_v6 = vmul.f32 %v3505_v2, %v469_v1 }
 0x174   :  { %v486_v21 = vadd.f32 %v3503_v61, %v485_v7  ;;  %v500_v13 = vmul.f32 %v4223_v3, %v499_v41 }
 0x175   :  { %v471_v62 = vadd.f32 %v3505_v2, %v470_v6 }
 0x176   :  { %377 = vadd.xlane.f32.xlu1 %v376_v55  ;;  %1019 = vadd.xlane.f32.xlu0 %v1018_v10  ;;  %v490_v17 = vsel %vm4231_vm7, %v3503_v61, %v486_v21  ;;  %v501_v27 = vadd.f32 %v4223_v3, %v500_v13 }
 0x177   :  { %1016 = vadd.xlane.f32.xlu2 %v1015_v40  ;;  %v475_v37 = vsel %vm4227_vm5, %v3505_v2, %v471_v62  ;;  %v495_v25 = vsel %vm492_vm10, %v494_v47, %v490_v17 }
 0x178   :  { %v480_v53 = vsel %vm477_vm9, %v479_v29, %v475_v37  ;;  %v505_v43 = vsel %vm4243_vm12, %v4223_v3, %v501_v27 }
 0x179   :  { %v4250_v57 = vmul.f32 %v3630_v48, %v480_v53  ;;  %v510_v16 = vsel %vm507_vm13, %v509_v44, %v505_v43 }
 0x17a   :  { %v4269_v15 = vmul.f32 %v3634_v33, %v510_v16  ;;  %v4273_v61 = vmul.f32 %v3635_v60, %v510_v16 }
 0x17b   :  { %6682 = vst [vmem:[#allocation8_spill] sm:$0xff] %v4250_v57 }
 0x17e   :  { %368 = vadd.xlane.f32.xlu1 %v367_v63  ;;  %1010 = vadd.xlane.f32.xlu0 %v1009_v32  ;;  %v3631_v63 = vld [vmem:[#allocation2 + $0x10] sm:$0xff] }
 0x17f   :  { %371 = vadd.xlane.f32.xlu2 %v370_v49  ;;  %v4252_v32 = vmul.f32 %v3631_v63, %v495_v25 }
 0x181   :  { %6683 = vst [vmem:[#allocation9_spill] sm:$0xff] %v4252_v32  ;;  %v1909_v36 = vadd.f32 %v4252_v32, %v4250_v57 }
 0x186   :  { %1013 = vadd.xlane.f32.xlu1 %v1012_v9  ;;  %v4256_v9 = vmul.f32 %v3632_v50, %v480_v53 }
 0x187   :  { %365 = vadd.xlane.f32.xlu2 %v364_v34  ;;  %v4258_v34 = vmul.f32 %v3633_v0, %v495_v25 }
 0x188   :  { %6684 = vst [vmem:[#allocation10_spill] sm:$0xff] %v4256_v9 }
 0x189   :  { %6685 = vst [vmem:[#allocation11_spill] sm:$0xff] %v4258_v34  ;;  %v1930_v35 = vadd.f32 %v4258_v34, %v4256_v9  ;;  %v3652_v34 = vld [vmem:[#allocation2 + $0xc0] sm:$0xff] }
 0x18b   :  { %v4291_v28 = vadd.f32 %v1930_v35, %v4273_v61 }
 0x18d   :  { %6687 = vst [vmem:[#allocation13_spill] sm:$0xff] %v4291_v28 }
 0x1b1   :  { %v1053_v12 = vpop.xlane.xlu1 %1052  ;;  %v1047_v11 = vpop.xlane.xlu0 %1046 }
 0x1b2   :  { %v3364_v19 = vmul.f32 -1.442695, %v1053_v12  ;;  %v3362_v46 = vmul.f32 -1.442695, %v1047_v11  ;;  %v1056_v20 = vpop.xlane.xlu2 %1055  ;;  %v4286_v12 = vadd.f32 %v1909_v36, %v4269_v15 }
 0x1b3   :  { %v3365_v45 = vmul.f32 -1.442695, %v1056_v20 }
 0x1b4   :  { %3508 = vpow2.f32 %v3364_v19  ;;  %6686 = vst [vmem:[#allocation12_spill] sm:$0xff] %v4286_v12 }
 0x1b5   :  { %3510 = vpow2.f32 %v3362_v46 }
 0x1b6   :  { %3512 = vpow2.f32 %v3365_v45 }
 0x1b9   :  { %v1050_v38 = vpop.xlane.xlu1 %1049  ;;  %v402_v42 = vpop.xlane.xlu0 %401 }
 0x1ba   :  { %v3509_v55 = vpop.eup %3508  ;;  %v3363_v10 = vmul.f32 -1.442695, %v1050_v38  ;;  %v399_v40 = vpop.xlane.xlu2 %398  ;;  %v3349_v58 = vmul.f32 -1.442695, %v402_v42 }
 0x1bb   :  { %v3511_v49 = vpop.eup %3510  ;;  %v4254_v26 = vadd.f32 1.0, %v3509_v55  ;;  %v3348_v8 = vmul.f32 -1.442695, %v399_v40 }
 0x1bc   :  { %v3513_v51 = vpop.eup %3512  ;;  %v4260_v56 = vadd.f32 1.0, %v3511_v49  ;;  %3514 = vpow2.f32 %v3363_v10 }
 0x1bd   :  { %3516 = vrcp.f32 %v4254_v26  ;;  %v4263_v59 = vadd.f32 1.0, %v3513_v51  ;;  %v1340_v4 = vand.u32 2147483647, %v4254_v26  ;;  %v1342_v21 = vand.u32 2147483648, %v4254_v26 }
 0x1be   :  { %3518 = vrcp.f32 %v4260_v56  ;;  %vm1336_vm14 = vweird.f32 %v4254_v26  ;;  %v1310_v20 = vand.u32 2147483647, %v4260_v56  ;;  %v1312_v39 = vand.u32 2147483648, %v4260_v56 }
 0x1bf   :  { %3520 = vrcp.f32 %v4263_v59  ;;  %v1355_v14 = vand.u32 2147483647, %v4263_v59  ;;  %vm4301_vm15 = vcmp.eq.f32.partialorder %v1340_v4, 8.507059e+37  ;;  %vm1351_vm0 = vweird.f32 %v4263_v59 }
 0x1c0   :  { %3522 = vpow2.f32 %v3349_v58  ;;  %v1357_v45 = vand.u32 2147483648, %v4263_v59  ;;  %v1343_v29 = vor.u32 1.1754944e-38, %v1342_v21  ;;  %v4325_v10 = vor.u32 1.1754944e-38, %v1312_v39  ;;  %v3636_v21 = vld [vmem:[#allocation2 + $0x1e0] sm:$0xff] }
 0x1c1   :  { %3524 = vpow2.f32 %v3348_v8  ;;  %v1041_v52 = vpop.xlane.xlu1 %1040  ;;  %v393_v3 = vpop.xlane.xlu0 %392  ;;  %vm4316_vm2 = vcmp.eq.f32.partialorder %v1355_v14, 8.507059e+37  ;;  %vm1306_vm13 = vweird.f32 %v4260_v56 }
 0x1c2   :  { %v3515_v6 = vpop.eup %3514  ;;  %v3360_v7 = vmul.f32 -1.442695, %v1041_v52  ;;  %v3346_v41 = vmul.f32 -1.442695, %v393_v3  ;;  %v1044_v62 = vpop.xlane.xlu2 %1043  ;;  %v1358_v55 = vor.u32 1.1754944e-38, %v1357_v45 }
 0x1c3   :  { %v3517_v11 = vpop.eup %3516  ;;  %v3361_v13 = vmul.f32 -1.442695, %v1044_v62  ;;  %v4296_v46 = vadd.f32 1.0, %v3515_v6 }
 0x1c4   :  { %v4293_v54 = vpop.eup %3518  ;;  %v1332_v19 = vmul.f32 %v3517_v11, %v4254_v26  ;;  %3526 = vpow2.f32 %v3360_v7  ;;  %vm1337_vm1 = vweird.f32 %v3517_v11 }
 0x1c5   :  { %v4299_v23 = vpop.eup %3520  ;;  %3528 = vpow2.f32 %v3346_v41  ;;  %v4312_v5 = vmul.f32 %v4293_v54, %v4260_v56  ;;  %vm1338_vm4 = vmor %vm1336_vm14, %vm1337_vm1  ;;  %v1325_v58 = vand.u32 2147483647, %v4296_v46  ;;  %v1327_v33 = vand.u32 2147483648, %v4296_v46 }
 0x1c6   :  { %v3523_v37 = vpop.eup %3522  ;;  %v1333_v17 = vsub.f32 1.0, %v1332_v19  ;;  %v1347_v27 = vmul.f32 %v4299_v23, %v4263_v59  ;;  %3530 = vpow2.f32 %v3361_v13  ;;  %vm1352_vm3 = vweird.f32 %v4299_v23  ;;  %v3637_v19 = vld [vmem:[#allocation2 + $0x1e8] sm:$0xff] }
 0x1c7   :  { %v3525_v47 = vpop.eup %3524  ;;  %v4314_v22 = vadd.f32 1.0, %v3523_v37  ;;  %3532 = vrcp.f32 %v4296_v46  ;;  %v1303_v50 = vsub.f32 1.0, %v4312_v5  ;;  %vm1353_vm5 = vmor %vm1351_vm0, %vm1352_vm3  ;;  %v3638_v37 = vld [vmem:[#allocation2 + $0x1f0] sm:$0xff]  ;;  %vm1307_vm10 = vweird.f32 %v4293_v54 }
 0x1c8   :  { %v1348_v25 = vsub.f32 1.0, %v1347_v27  ;;  %v4321_v30 = vadd.f32 1.0, %v3525_v47  ;;  %v1334_v38 = vmul.f32 %v3517_v11, %v1333_v17  ;;  %v3639_v27 = vld [vmem:[#allocation2 + $0x1f8] sm:$0xff]  ;;  %vm4453_vm0 = vcmp.eq.f32.partialorder %v1310_v20, 8.507059e+37  ;;  %v3640_v20 = vld [vmem:[#allocation2 + $0xe0] sm:$0xff] }
 0x1c9   :  { %3534 = vrcp.f32 %v4314_v22  ;;  %v396_v42 = vpop.xlane.xlu1 %395  ;;  %v1038_v43 = vpop.xlane.xlu0 %1037  ;;  %v701_v6 = vand.u32 2147483647, %v4314_v22  ;;  %v703_v7 = vand.u32 2147483648, %v4314_v22  ;;  %vm697_vm7 = vweird.f32 %v4314_v22 }
 0x1ca   :  { %v3527_v40 = vpop.eup %3526  ;;  %3536 = vrcp.f32 %v4321_v30  ;;  %v3347_v44 = vmul.f32 -1.442695, %v396_v42  ;;  %v3359_v48 = vmul.f32 -1.442695, %v1038_v43  ;;  %v1035_v63 = vpop.xlane.xlu2 %1034  ;;  %v1335_v49 = vadd.f32 %v3517_v11, %v1334_v38 }
 0x1cb   :  { %v4329_v0 = vadd.f32 1.0, %v3527_v40  ;;  %v1349_v51 = vmul.f32 %v4299_v23, %v1348_v25  ;;  %v3529_v16 = vpop.eup %3528  ;;  %v3358_v8 = vmul.f32 -1.442695, %v1035_v63  ;;  %vm682_vm6 = vweird.f32 %v4321_v30 }
 0x1cc   :  { %3538 = vpow2.f32 %v3347_v44  ;;  %v1339_v36 = vsel %vm1338_vm4, %v3517_v11, %v1335_v49  ;;  %v3531_v35 = vpop.eup %3530  ;;  %v4338_v60 = vadd.f32 1.0, %v3529_v16  ;;  %v686_v43 = vand.u32 2147483647, %v4321_v30 }
 0x1cd   :  { %3540 = vrcp.f32 %v4329_v0  ;;  %v1344_v52 = vsel %vm4301_vm15, %v1343_v29, %v1339_v36  ;;  %v1350_v26 = vadd.f32 %v4299_v23, %v1349_v51  ;;  %v4343_v3 = vpop.eup %3532  ;;  %v4345_v4 = vadd.f32 1.0, %v3531_v35 }
 0x1ce   :  { %3542 = vpow2.f32 %v3359_v48  ;;  %v4357_v11 = vmul.f32 %v3636_v21, %v1344_v52  ;;  %v4367_v24 = vmul.f32 %v3637_v19, %v1344_v52  ;;  %v4378_v53 = vmul.f32 %v4343_v3, %v4296_v46 }
 0x1cf   :  { %v4353_v41 = vpop.eup %3534  ;;  %3544 = vrcp.f32 %v4338_v60  ;;  %v1354_v62 = vsel %vm1353_vm5, %v4299_v23, %v1350_v26  ;;  %v688_v63 = vand.u32 2147483648, %v4321_v30  ;;  %vm4404_vm9 = vcmp.eq.f32.partialorder %v686_v43, 8.507059e+37 }
 0x1d0   :  { %6692 = vst [vmem:[#allocation14_spill] sm:$0xff] %v4357_v11  ;;  %v4360_v13 = vpop.eup %3536  ;;  %v693_v59 = vmul.f32 %v4353_v41, %v4314_v22  ;;  %3546 = vrcp.f32 %v4345_v4  ;;  %v1359_v14 = vsel %vm4316_vm2, %v1358_v55, %v1354_v62  ;;  %v1318_v62 = vsub.f32 1.0, %v4378_v53  ;;  %vm1308_vm2 = vmor %vm1306_vm13, %vm1307_vm10 }
 0x1d1   :  { %6693 = vst [vmem:[#allocation15_spill] sm:$0xff] %v4367_v24  ;;  %v678_v23 = vmul.f32 %v4360_v13, %v4321_v30  ;;  %3548 = vpow2.f32 %v3358_v8  ;;  %v387_v45 = vpop.xlane.xlu1 %386  ;;  %v1029_v39 = vpop.xlane.xlu0 %1028  ;;  %v4371_v17 = vmul.f32 %v3638_v37, %v1359_v14  ;;  %v4373_v29 = vmul.f32 %v3639_v27, %v1359_v14 }
 0x1d2   :  { %v3539_v47 = vpop.eup %3538  ;;  %v3344_v25 = vmul.f32 -1.442695, %v387_v45  ;;  %v3356_v38 = vmul.f32 -1.442695, %v1029_v39  ;;  %v390_v42 = vpop.xlane.xlu2 %389  ;;  %v694_v40 = vsub.f32 1.0, %v693_v59  ;;  %vm683_vm8 = vweird.f32 %v4360_v13 }
 0x1d3   :  { %6694 = vst [vmem:[#allocation16_spill] sm:$0xff] %v4371_v17  ;;  %v4381_v55 = vpop.eup %3540  ;;  %v679_v44 = vsub.f32 1.0, %v678_v23  ;;  %v4383_v48 = vadd.f32 1.0, %v3539_v47  ;;  %v3345_v51 = vmul.f32 -1.442695, %v390_v42  ;;  %v1455_v16 = vpack.c.bf16 %v4371_v17, %v4357_v11  ;;  %vm4422_vm11 = vmor %vm682_vm6, %vm683_vm8 }
 0x1d4   :  { %6695 = vst [vmem:[#allocation17_spill] sm:$0xff] %v4373_v29  ;;  %v3543_v49 = vpop.eup %3542  ;;  %3550 = vpow2.f32 %v3344_v25  ;;  %v1456_v35 = vpack.c.bf16 %v4373_v29, %v4367_v24  ;;  %v4402_v21 = vmul.f32 %v4381_v55, %v4329_v0  ;;  %v695_v45 = vmul.f32 %v4353_v41, %v694_v40 }
 0x1d5   :  { %v4389_v8 = vpop.eup %3544  ;;  %3552 = vrcp.f32 %v4383_v48  ;;  %v4392_v36 = vadd.f32 1.0, %v3543_v49  ;;  %v680_v52 = vmul.f32 %v4360_v13, %v679_v44  ;;  %1731 = vmatpush.bf16.msra.mxu2 %v1455_v16  ;;  %v689_v27 = vor.u32 1.1754944e-38, %v688_v63 }
 0x1d6   :  { %v4397_v26 = vpop.eup %3546  ;;  %3554 = vpow2.f32 %v3356_v38  ;;  %v4411_v19 = vmul.f32 %v4389_v8, %v4338_v60  ;;  %1820 = vmatpush.bf16.msra.mxu3 %v1456_v35  ;;  %vm698_vm12 = vweird.f32 %v4353_v41  ;;  %v696_v30 = vadd.f32 %v4353_v41, %v695_v45 }
 0x1d7   :  { %v3549_v14 = vpop.eup %3548  ;;  %3556 = vrcp.f32 %v4392_v36  ;;  %v681_v23 = vadd.f32 %v4360_v13, %v680_v52  ;;  %v4430_v47 = vmul.f32 %v4397_v26, %v4345_v4  ;;  %vm4438_vm14 = vcmp.eq.f32.partialorder %v701_v6, 8.507059e+37  ;;  %vm4447_vm15 = vmor %vm697_vm7, %vm698_vm12 }
 0x1d8   :  { %v4416_v39 = vadd.f32 1.0, %v3549_v14  ;;  %3558 = vpow2.f32 %v3345_v51  ;;  %v700_v59 = vsel %vm4447_vm15, %v4353_v41, %v696_v30  ;;  %v704_v14 = vor.u32 1.1754944e-38, %v703_v7 }
 0x1d9   :  { %v1032_v25 = vpop.xlane.xlu1 %1031  ;;  %v384_v38 = vpop.xlane.xlu0 %383  ;;  %v685_v42 = vsel %vm4422_vm11, %v4360_v13, %v681_v23  ;;  %vm1321_vm1 = vweird.f32 %v4296_v46  ;;  %v1304_v41 = vmul.f32 %v4293_v54, %v1303_v50  ;;  %vm1322_vm3 = vweird.f32 %v4343_v3 }
 0x1da   :  { %v3551_v40 = vpop.eup %3550  ;;  %3560 = vrcp.f32 %v4416_v39  ;;  %v3357_v44 = vmul.f32 -1.442695, %v1032_v25  ;;  %v3343_v63 = vmul.f32 -1.442695, %v384_v38  ;;  %v381_v49 = vpop.xlane.xlu2 %380  ;;  %v690_v51 = vsel %vm4404_vm9, %v689_v27, %v685_v42  ;;  %v3641_v27 = vld [vmem:[#allocation2 + $0xe8] sm:$0xff]  ;;  %vm1323_vm4 = vmor %vm1321_vm1, %vm1322_vm3 }
 0x1db   :  { %v4457_v16 = vpop.eup %3552  ;;  %v4459_v35 = vadd.f32 1.0, %v3551_v40  ;;  %v3342_v52 = vmul.f32 -1.442695, %v381_v49  ;;  %v4470_v37 = vmul.f32 %v3640_v20, %v690_v51  ;;  %v4472_v25 = vmul.f32 %v3641_v27, %v690_v51  ;;  %v3643_v51 = vld [vmem:[#allocation2 + $0xf8] sm:$0xff] }
 0x1dc   :  { %v3555_v23 = vpop.eup %3554  ;;  %v4468_v45 = vmul.f32 %v4457_v16, %v4383_v48  ;;  %3562 = vpow2.f32 %v3357_v44  ;;  %v705_v7 = vsel %vm4438_vm14, %v704_v14, %v700_v59  ;;  %v2047_v40 = vmax.f32 %v4371_v17, %v4357_v11  ;;  %v3642_v44 = vld [vmem:[#allocation2 + $0xf0] sm:$0xff] }
 0x1dd   :  { %6706 = vst [vmem:[#allocation18_spill] sm:$0xff] %v4470_v37  ;;  %v4475_v38 = vpop.eup %3556  ;;  %3564 = vrcp.f32 %v4459_v35  ;;  %v4478_v22 = vadd.f32 1.0, %v3555_v23  ;;  %v4491_v49 = vmul.f32 %v3642_v44, %v705_v7  ;;  %v4496_v5 = vmul.f32 %v3643_v51, %v705_v7 }
 0x1de   :  { %6707 = vst [vmem:[#allocation19_spill] sm:$0xff] %v4472_v25  ;;  %v3559_v42 = vpop.eup %3558  ;;  %v4487_v30 = vmul.f32 %v4475_v38, %v4392_v36  ;;  %3566 = vpow2.f32 %v3343_v63  ;;  %v1305_v50 = vadd.f32 %v4293_v54, %v1304_v41  ;;  %v1273_v59 = vsub.f32 1.0, %v4402_v21 }
 0x1df   :  { %6708 = vst [vmem:[#allocation20_spill] sm:$0xff] %v4491_v49  ;;  %3568 = vrcp.f32 %v4478_v22  ;;  %v4494_v43 = vadd.f32 1.0, %v3559_v42  ;;  %v2068_v14 = vmax.f32 %v4373_v29, %v4367_v24  ;;  %v1453_v63 = vpack.c.bf16 %v4491_v49, %v4470_v37 }
 0x1e0   :  { %6709 = vst [vmem:[#allocation21_spill] sm:$0xff] %v4496_v5  ;;  %v4499_v13 = vpop.eup %3560  ;;  %3570 = vpow2.f32 %v3342_v52  ;;  %v1454_v7 = vpack.c.bf16 %v4496_v5, %v4472_v25  ;;  %v1309_v41 = vsel %vm1308_vm2, %v4293_v54, %v1305_v50  ;;  %v1319_v42 = vmul.f32 %v4343_v3, %v1318_v62 }
 0x1e1   :  { %v4517_v52 = vmul.f32 %v4499_v13, %v4416_v39  ;;  %1553 = vmatpush.bf16.msra.mxu0 %v1453_v63  ;;  %3572 = vrcp.f32 %v4494_v43  ;;  %v1314_v63 = vsel %vm4453_vm0, %v4325_v10, %v1309_v41  ;;  %v1023_v54 = vpop.xlane.xlu1 %1022  ;;  %v375_v2 = vpop.xlane.xlu0 %374  ;;  %vm1326_vm5 = vcmp.eq.f32.partialorder %v1325_v58, 8.507059e+37 }
 0x1e2   :  { %v3563_v21 = vpop.eup %3562  ;;  %1642 = vmatpush.bf16.msra.mxu1 %v1454_v7  ;;  %v1328_v6 = vor.u32 1.1754944e-38, %v1327_v33  ;;  %v4557_v51 = vmul.f32 %v3644_v18, %v1314_v63  ;;  %v1026_v62 = vpop.xlane.xlu2 %1025  ;;  %v3354_v20 = vmul.f32 -1.442695, %v1023_v54  ;;  %v3340_v58 = vmul.f32 -1.442695, %v375_v2  ;;  %v3647_v18 = vld [vmem:[#allocation2 + $0x1d8] sm:$0xff] }
 0x1e3   :  { %v4524_v44 = vpop.eup %3564  ;;  %v4528_v56 = vadd.f32 1.0, %v3563_v21  ;;  %v1320_v21 = vadd.f32 %v4343_v3, %v1319_v42  ;;  %v3646_v42 = vld [vmem:[#allocation2 + $0x1d0] sm:$0xff]  ;;  %v1274_v54 = vmul.f32 %v4381_v55, %v1273_v59  ;;  %vm1276_vm6 = vweird.f32 %v4329_v0 }
 0x1e4   :  { %v3567_v50 = vpop.eup %3566  ;;  %v4535_v53 = vmul.f32 %v4524_v44, %v4459_v35  ;;  %6710 = vst [vmem:[#allocation22_spill] sm:$0xff] %v4557_v51  ;;  %v4579_v2 = vmax.f32 %v2047_v40, %v4557_v51  ;;  %vm1277_vm7 = vweird.f32 %v4381_v55  ;;  %vm1291_vm10 = vweird.f32 %v4345_v4 }
 0x1e5   :  { %v4542_v7 = vpop.eup %3568  ;;  %3574 = vrcp.f32 %v4528_v56  ;;  %v4545_v10 = vadd.f32 1.0, %v3567_v50  ;;  %v1324_v31 = vsel %vm1323_vm4, %v4343_v3, %v1320_v21  ;;  %v3645_v50 = vld [vmem:[#allocation2 + $0x1c8] sm:$0xff]  ;;  %v1275_v40 = vadd.f32 %v4381_v55, %v1274_v54  ;;  %vm4599_vm8 = vmor %vm1276_vm6, %vm1277_vm7 }
 0x1e6   :  { %v3571_v41 = vpop.eup %3570  ;;  %v4559_v1 = vmul.f32 %v3645_v50, %v1314_v63  ;;  %v1329_v23 = vsel %vm1326_vm5, %v1328_v6, %v1324_v31  ;;  %v4566_v33 = vmul.f32 %v4542_v7, %v4478_v22  ;;  %v3355_v31 = vmul.f32 -1.442695, %v1026_v62 }
 0x1e7   :  { %v4561_v27 = vadd.f32 1.0, %v3571_v41  ;;  %v4568_v3 = vmul.f32 %v3646_v42, %v1329_v23  ;;  %v4570_v21 = vmul.f32 %v3647_v18, %v1329_v23  ;;  %v4572_v63 = vpop.eup %3572  ;;  %3576 = vrcp.f32 %v4545_v10 }
 0x1e8   :  { %6711 = vst [vmem:[#allocation23_spill] sm:$0xff] %v4559_v1  ;;  %v4586_v23 = vmax.f32 %v2068_v14, %v4559_v1  ;;  %v4597_v59 = vmul.f32 %v4572_v63, %v4494_v43  ;;  %v1280_v62 = vand.u32 2147483647, %v4329_v0  ;;  %v1282_v50 = vand.u32 2147483648, %v4329_v0 }
 0x1e9   :  { %6712 = vst [vmem:[#allocation24_spill] sm:$0xff] %v4568_v3  ;;  %3578 = vrcp.f32 %v4561_v27  ;;  %v1451_v6 = vpack.c.bf16 %v4568_v3, %v4557_v51  ;;  %v1452_v42 = vpack.c.bf16 %v4570_v21, %v4559_v1  ;;  %v1279_v18 = vsel %vm4599_vm8, %v4381_v55, %v1275_v40  ;;  %v3649_v51 = vld [vmem:[#allocation2 + $0x1a8] sm:$0xff] }
 0x1ea   :  { %6713 = vst [vmem:[#allocation25_spill] sm:$0xff] %v4570_v21  ;;  %3580 = vpow2.f32 %v3354_v20  ;;  %vm1281_vm9 = vcmp.eq.f32.partialorder %v1280_v62, 8.507059e+37  ;;  %v1283_v29 = vor.u32 1.1754944e-38, %v1282_v50  ;;  %vm1292_vm11 = vweird.f32 %v4397_v26 }
 0x1eb   :  { %v4589_v41 = vpop.eup %3574  ;;  %1732 = vmatpush.bf16.msra.mxu2 %v1451_v6  ;;  %3582 = vpow2.f32 %v3340_v58  ;;  %1821 = vmatpush.bf16.msra.mxu3 %v1452_v42  ;;  %v6716_v58 = vsub.f32 1.0, %v4430_v47  ;;  %v378_v6 = vpop.xlane.xlu1 %377  ;;  %v1297_v55 = vand.u32 2147483648, %v4345_v4  ;;  %v2049_v14 = vmax.f32 %v4579_v2, %v4568_v3  ;;  %vm4628_vm12 = vmor %vm1291_vm10, %vm1292_vm11 }
 0x1ec   :  { %v4607_v20 = vmul.f32 %v4589_v41, %v4528_v56  ;;  %3584 = vpow2.f32 %v3355_v31  ;;  %v1295_v31 = vand.u32 2147483647, %v4345_v4  ;;  %v1284_v62 = vsel %vm1281_vm9, %v1283_v29, %v1279_v18  ;;  %v3648_v29 = vld [vmem:[#allocation2 + $0x1a0] sm:$0xff] }
 0x1ed   :  { %v1289_v54 = vmul.f32 %v4397_v26, %v6716_v58  ;;  %v4617_v0 = vpop.eup %3576  ;;  %v3341_v58 = vmul.f32 -1.442695, %v378_v6  ;;  %v2070_v4 = vmax.f32 %v4586_v23, %v4570_v21  ;;  %v1298_v17 = vor.u32 1.1754944e-38, %v1297_v55  ;;  %v1017_v6 = vpop.xlane.xlu2 %1016 }
 0x1ee   :  { %vm1296_vm13 = vcmp.eq.f32.partialorder %v1295_v31, 8.507059e+37  ;;  %v4640_v18 = vmul.f32 %v3648_v29, %v1284_v62  ;;  %v4644_v23 = vmul.f32 %v3649_v51, %v1284_v62  ;;  %v6723_v51 = vsub.f32 1.0, %v4411_v19 }
 0x1ef   :  { %v1290_v42 = vadd.f32 %v4397_v26, %v1289_v54  ;;  %v4623_v47 = vpop.eup %3578  ;;  %v1020_v54 = vpop.xlane.xlu0 %1019  ;;  %3586 = vpow2.f32 %v3341_v58  ;;  %vm652_vm14 = vweird.f32 %v4338_v60  ;;  %vm653_vm15 = vweird.f32 %v4389_v8 }
 0x1f0   :  { %v3581_v46 = vpop.eup %3580  ;;  %6719 = vst [vmem:[#allocation26_spill] sm:$0xff] %v4640_v18  ;;  %v3353_v21 = vmul.f32 -1.442695, %v1020_v54  ;;  %v4663_v62 = vmul.f32 %v4623_v47, %v4561_v27  ;;  %v656_v54 = vand.u32 2147483647, %v4338_v60  ;;  %v4679_v29 = vmax.f32 %v2070_v4, %v4644_v23  ;;  %vm4683_vm0 = vmor %vm652_vm14, %vm653_vm15 }
 0x1f1   :  { %v1294_v40 = vsel %vm4628_vm12, %v4397_v26, %v1290_v42  ;;  %v3583_v11 = vpop.eup %3582  ;;  %v4638_v2 = vadd.f32 1.0, %v3581_v46  ;;  %6720 = vst [vmem:[#allocation27_spill] sm:$0xff] %v4644_v23  ;;  %v4648_v26 = vmul.f32 %v4617_v0, %v4545_v10  ;;  %v3650_v42 = vld [vmem:[#allocation2 + $0x1b0] sm:$0xff]  ;;  %vm668_vm1 = vweird.f32 %v4457_v16 }
 0x1f2   :  { %v3585_v3 = vpop.eup %3584  ;;  %v4642_v1 = vadd.f32 1.0, %v3583_v11  ;;  %v1299_v24 = vsel %vm1296_vm13, %v1298_v17, %v1294_v40  ;;  %v3651_v11 = vld [vmem:[#allocation2 + $0x1b8] sm:$0xff]  ;;  %v3352_v17 = vmul.f32 -1.442695, %v1017_v6  ;;  %v650_v40 = vmul.f32 %v4389_v8, %v6723_v51 }
 0x1f3   :  { %3588 = vrcp.f32 %v4638_v2  ;;  %v4651_v46 = vadd.f32 1.0, %v3585_v3  ;;  %v4653_v31 = vmul.f32 %v3650_v42, %v1299_v24  ;;  %v4656_v55 = vmul.f32 %v3651_v11, %v1299_v24  ;;  %v369_v9 = vpop.xlane.xlu1 %368 }
 0x1f4   :  { %3590 = vrcp.f32 %v4642_v1  ;;  %v4667_v3 = vmax.f32 %v2049_v14, %v4640_v18  ;;  %v651_v19 = vadd.f32 %v4389_v8, %v650_v40  ;;  %v658_v14 = vand.u32 2147483648, %v4338_v60 }
 0x1f5   :  { %6721 = vst [vmem:[#allocation28_spill] sm:$0xff] %v4653_v31  ;;  %3592 = vrcp.f32 %v4651_v46  ;;  %v1447_v50 = vpack.c.bf16 %v4653_v31, %v4640_v18  ;;  %v1448_v24 = vpack.c.bf16 %v4656_v55, %v4644_v23  ;;  %v3587_v58 = vpop.eup %3586  ;;  %v6726_v42 = vsub.f32 1.0, %v4468_v45  ;;  %v372_v28 = vpop.xlane.xlu2 %371 }
 0x1f6   :  { %6722 = vst [vmem:[#allocation29_spill] sm:$0xff] %v4656_v55  ;;  %3594 = vpow2.f32 %v3353_v21  ;;  %v4681_v6 = vadd.f32 1.0, %v3587_v58  ;;  %v655_v60 = vsel %vm4683_vm0, %v4389_v8, %v651_v19  ;;  %v659_v4 = vor.u32 1.1754944e-38, %v658_v14 }
 0x1f7   :  { %1733 = vmatpush.bf16.msra.mxu2 %v1447_v50  ;;  %3596 = vpow2.f32 %v3352_v17  ;;  %1822 = vmatpush.bf16.msra.mxu3 %v1448_v24  ;;  %v665_v11 = vmul.f32 %v4457_v16, %v6726_v42  ;;  %vm667_vm2 = vweird.f32 %v4383_v48  ;;  %v671_v51 = vand.u32 2147483647, %v4383_v48  ;;  %v1011_v32 = vpop.xlane.xlu0 %1010 }
 0x1f8   :  { %3598 = vrcp.f32 %v4681_v6  ;;  %vm657_vm3 = vcmp.eq.f32.partialorder %v656_v54, 8.507059e+37  ;;  %v673_v50 = vand.u32 2147483648, %v4383_v48  ;;  %vm669_vm4 = vmor %vm667_vm2, %vm668_vm1  ;;  %v6727_v14 = vsub.f32 1.0, %v4517_v52 }
 0x1f9   :  { %v4691_v17 = vpop.eup %3588  ;;  %v666_v45 = vadd.f32 %v4457_v16, %v665_v11  ;;  %v660_v19 = vsel %vm657_vm3, %v659_v4, %v655_v60  ;;  %vm672_vm5 = vcmp.eq.f32.partialorder %v671_v51, 8.507059e+37  ;;  %v3654_v4 = vld [vmem:[#allocation2 + $0xc8] sm:$0xff]  ;;  %vm1247_vm6 = vweird.f32 %v4499_v13 }
 0x1fa   :  { %v4698_v40 = vpop.eup %3590  ;;  %v1244_v21 = vmul.f32 %v4499_v13, %v6727_v14  ;;  %v4714_v54 = vmul.f32 %v4691_v17, %v4638_v2  ;;  %v674_v58 = vor.u32 1.1754944e-38, %v673_v50  ;;  %v4738_v52 = vmul.f32 %v3654_v4, %v660_v19 }
 0x1fb   :  { %v4703_v24 = vpop.eup %3592  ;;  %v4718_v48 = vmul.f32 %v4698_v40, %v4642_v1  ;;  %v670_v11 = vsel %vm669_vm4, %v4457_v16, %v666_v45  ;;  %v4733_v16 = vmul.f32 %v3652_v34, %v660_v19  ;;  %v3653_v45 = vld [vmem:[#allocation2 + $0xd0] sm:$0xff]  ;;  %vm1246_vm7 = vweird.f32 %v4416_v39 }
 0x1fc   :  { %v3595_v42 = vpop.eup %3594  ;;  %v4729_v8 = vmul.f32 %v4703_v24, %v4651_v46  ;;  %v675_v18 = vsel %vm672_vm5, %v674_v58, %v670_v11  ;;  %6730 = vst [vmem:[#allocation32_spill] sm:$0xff] %v4738_v52  ;;  %v1245_v51 = vadd.f32 %v4499_v13, %v1244_v21  ;;  %v3655_v58 = vld [vmem:[#allocation2 + $0xd8] sm:$0xff]  ;;  %v1250_v19 = vand.u32 2147483647, %v4416_v39  ;;  %vm4762_vm8 = vmor %vm1246_vm7, %vm1247_vm6 }
 0x1fd   :  { %v3597_v60 = vpop.eup %3596  ;;  %v4725_v14 = vadd.f32 1.0, %v3595_v42  ;;  %6728 = vst [vmem:[#allocation30_spill] sm:$0xff] %v4733_v16  ;;  %v4736_v50 = vmul.f32 %v3653_v45, %v675_v18  ;;  %v4745_v11 = vmul.f32 %v3655_v58, %v675_v18  ;;  %v6732_v4 = vmax.f32 %v4491_v49, %v4470_v37 }
 0x1fe   :  { %v4731_v23 = vadd.f32 1.0, %v3597_v60  ;;  %v4741_v42 = vpop.eup %3598  ;;  %v1252_v60 = vand.u32 2147483648, %v4416_v39  ;;  %v1249_v37 = vsel %vm4762_vm8, %v4499_v13, %v1245_v51  ;;  %vm1262_vm9 = vweird.f32 %v4475_v38 }
 0x1ff   :  { %3600 = vrcp.f32 %v4725_v14  ;;  %6729 = vst [vmem:[#allocation31_spill] sm:$0xff] %v4736_v50  ;;  %v1449_v34 = vpack.c.bf16 %v4736_v50, %v4733_v16  ;;  %v4758_v45 = vmax.f32 %v6732_v4, %v4733_v16  ;;  %v1450_v18 = vpack.c.bf16 %v4745_v11, %v4738_v52 }
 0x200   :  { %6731 = vst [vmem:[#allocation33_spill] sm:$0xff] %v4745_v11  ;;  %3602 = vrcp.f32 %v4731_v23  ;;  %v4769_v21 = vmul.f32 %v4741_v42, %v4681_v6  ;;  %v6735_v4 = vmax.f32 %v4496_v5, %v4472_v25  ;;  %v6736_v16 = vsub.f32 1.0, %v4487_v30 }
 0x201   :  { %1554 = vmatpush.bf16.msra.mxu0 %v1449_v34  ;;  %1643 = vmatpush.bf16.msra.mxu1 %v1450_v18  ;;  %v1253_v57 = vor.u32 1.1754944e-38, %v1252_v60  ;;  %v1265_v34 = vand.u32 2147483647, %v4392_v36  ;;  %v1267_v12 = vand.u32 2147483648, %v4392_v36  ;;  %vm1251_vm10 = vcmp.eq.f32.partialorder %v1250_v19, 8.507059e+37  ;;  %v3656_v19 = vld [vmem:[#allocation2 + $0x180] sm:$0xff] }
 0x202   :  { %v4775_v49 = vmax.f32 %v6735_v4, %v4738_v52  ;;  %v1259_v39 = vmul.f32 %v4475_v38, %v6736_v16  ;;  %vm1261_vm11 = vweird.f32 %v4392_v36  ;;  %v3338_v13 = vmul.f32 -1.442695, %v369_v9  ;;  %v3657_v36 = vld [vmem:[#allocation2 + $0x188] sm:$0xff] }
 0x203   :  { %v1254_v30 = vsel %vm1251_vm10, %v1253_v57, %v1249_v37  ;;  %vm1263_vm12 = vmor %vm1261_vm11, %vm1262_vm9  ;;  %v1268_v16 = vor.u32 1.1754944e-38, %v1267_v12  ;;  %v3350_v51 = vmul.f32 -1.442695, %v1011_v32  ;;  %v3339_v18 = vmul.f32 -1.442695, %v372_v28 }
 0x204   :  { %v1260_v4 = vadd.f32 %v4475_v38, %v1259_v39  ;;  %vm1266_vm13 = vcmp.eq.f32.partialorder %v1265_v34, 8.507059e+37  ;;  %v4797_v52 = vmul.f32 %v3656_v19, %v1254_v30  ;;  %v4799_v9 = vmul.f32 %v3657_v36, %v1254_v30  ;;  %v1014_v36 = vpop.xlane.xlu1 %1013 }
 0x205   :  { %v4786_v5 = vpop.eup %3600  ;;  %3604 = vpow2.f32 %v3338_v13  ;;  %v6739_v57 = vsub.f32 1.0, %v4535_v53  ;;  %v2007_v28 = vmax.f32 %v4758_v45, %v4736_v50  ;;  %vm622_vm14 = vweird.f32 %v4459_v35 }
 0x206   :  { %v4790_v60 = vpop.eup %3602  ;;  %v4794_v58 = vmul.f32 %v4786_v5, %v4725_v14  ;;  %v1264_v25 = vsel %vm1263_vm12, %v4475_v38, %v1260_v4  ;;  %6737 = vst [vmem:[#allocation34_spill] sm:$0xff] %v4797_v52  ;;  %v3658_v38 = vld [vmem:[#allocation2 + $0x190] sm:$0xff]  ;;  %v3659_v4 = vld [vmem:[#allocation2 + $0x198] sm:$0xff]  ;;  %3606 = vpow2.f32 %v3350_v51  ;;  %vm623_vm15 = vweird.f32 %v4524_v44 }
 0x207   :  { %v1269_v39 = vsel %vm1266_vm13, %v1268_v16, %v1264_v25  ;;  %6738 = vst [vmem:[#allocation35_spill] sm:$0xff] %v4799_v9  ;;  %v620_v32 = vmul.f32 %v4524_v44, %v6739_v57  ;;  %v4813_v25 = vmul.f32 %v4790_v60, %v4731_v23  ;;  %3608 = vpow2.f32 %v3339_v18  ;;  %vm4825_vm0 = vmor %vm622_vm14, %vm623_vm15  ;;  %v366_v57 = vpop.xlane.xlu2 %365 }
 0x208   :  { %v4809_v34 = vmul.f32 %v3658_v38, %v1269_v39  ;;  %v4815_v13 = vmul.f32 %v3659_v4, %v1269_v39  ;;  %v626_v51 = vand.u32 2147483647, %v4459_v35  ;;  %v628_v39 = vand.u32 2147483648, %v4459_v35 }
 0x209   :  { %v621_v53 = vadd.f32 %v4524_v44, %v620_v32  ;;  %v6742_v32 = vsub.f32 1.0, %v4597_v59  ;;  %vm637_vm1 = vweird.f32 %v4494_v43  ;;  %vm638_vm2 = vweird.f32 %v4572_v63 }
 0x20a   :  { %v1443_v30 = vpack.c.bf16 %v4809_v34, %v4797_v52  ;;  %v1444_v16 = vpack.c.bf16 %v4815_v13, %v4799_v9  ;;  %vm627_vm3 = vcmp.eq.f32.partialorder %v626_v51, 8.507059e+37  ;;  %v629_v45 = vor.u32 1.1754944e-38, %v628_v39  ;;  %vm639_vm4 = vmor %vm637_vm1, %vm638_vm2 }
 0x20b   :  { %v625_v18 = vsel %vm4825_vm0, %v4524_v44, %v621_v53  ;;  %v635_v38 = vmul.f32 %v4572_v63, %v6742_v32  ;;  %v3605_v4 = vpop.eup %3604  ;;  %v641_v35 = vand.u32 2147483647, %v4494_v43  ;;  %v3351_v53 = vmul.f32 -1.442695, %v1014_v36 }
 0x20c   :  { %1734 = vmatpush.bf16.msra.mxu2 %v1443_v30  ;;  %1823 = vmatpush.bf16.msra.mxu3 %v1444_v16  ;;  %v643_v30 = vand.u32 2147483648, %v4494_v43  ;;  %v4841_v12 = vadd.f32 1.0, %v3605_v4  ;;  %v3337_v59 = vmul.f32 -1.442695, %v366_v57  ;;  %v3607_v19 = vpop.eup %3606  ;;  %v630_v32 = vsel %vm627_vm3, %v629_v45, %v625_v18  ;;  %v3660_v4 = vld [vmem:[#allocation2 + $0xa0] sm:$0xff]  ;;  %v3661_v57 = vld [vmem:[#allocation2 + $0xa8] sm:$0xff] }
 0x20d   :  { %v636_v44 = vadd.f32 %v4572_v63, %v635_v38  ;;  %vm642_vm5 = vcmp.eq.f32.partialorder %v641_v35, 8.507059e+37  ;;  %v6743_v50 = vsub.f32 1.0, %v4663_v62  ;;  %v3609_v51 = vpop.eup %3608  ;;  %v4848_v39 = vadd.f32 1.0, %v3607_v19  ;;  %v3662_v35 = vld [vmem:[#allocation2 + $0xb0] sm:$0xff] }
 0x20e   :  { %v644_v37 = vor.u32 1.1754944e-38, %v643_v30  ;;  %3610 = vrcp.f32 %v4841_v12  ;;  %v4851_v38 = vmul.f32 %v3660_v4, %v630_v32  ;;  %v4853_v36 = vadd.f32 1.0, %v3609_v51  ;;  %v3663_v30 = vld [vmem:[#allocation2 + $0xb8] sm:$0xff] }
 0x20f   :  { %v590_v16 = vmul.f32 %v4623_v47, %v6743_v50  ;;  %v640_v43 = vsel %vm639_vm4, %v4572_v63, %v636_v44  ;;  %v4855_v18 = vmul.f32 %v3661_v57, %v630_v32  ;;  %3612 = vpow2.f32 %v3351_v53 }
 0x210   :  { %v645_v45 = vsel %vm642_vm5, %v644_v37, %v640_v43  ;;  %v6744_v62 = vmax.f32 %v4667_v3, %v4653_v31  ;;  %3614 = vrcp.f32 %v4848_v39  ;;  %v6746_v53 = vmax.f32 %v4679_v29, %v4656_v55 }
 0x211   :  { %v4864_v63 = vmul.f32 %v3662_v35, %v645_v45  ;;  %v4866_v44 = vmul.f32 %v3663_v30, %v645_v45  ;;  %3616 = vrcp.f32 %v4853_v36  ;;  %v591_v3 = vadd.f32 %v4623_v47, %v590_v16 }
 0x212   :  { %v4861_v50 = vmax.f32 %v6744_v62, %v4797_v52  ;;  %v4873_v19 = vmax.f32 %v6746_v53, %v4799_v9  ;;  %v4878_v32 = vmax.f32 %v2007_v28, %v4851_v38  ;;  %3618 = vpow2.f32 %v3337_v59  ;;  %v3665_v28 = vld [vmem:[#allocation2 + $0x88] sm:$0xff]  ;;  %v3671_v52 = vld [vmem:[#allocation2 + $0x178] sm:$0xff] }
 0x213   :  { %6745 = vst [vmem:[#allocation36_spill] sm:$0xff] %v4866_v44  ;;  %v1445_v51 = vpack.c.bf16 %v4864_v63, %v4851_v38  ;;  %v1446_v43 = vpack.c.bf16 %v4866_v44, %v4855_v18  ;;  %vm592_vm6 = vweird.f32 %v4561_v27  ;;  %vm593_vm7 = vweird.f32 %v4623_v47 }
 0x214   :  { %v596_v29 = vand.u32 2147483647, %v4561_v27  ;;  %v598_v4 = vand.u32 2147483648, %v4561_v27  ;;  %v4888_v45 = vpop.eup %3610  ;;  %vm4892_vm8 = vmor %vm592_vm6, %vm593_vm7  ;;  %v6749_v59 = vsub.f32 1.0, %v4648_v26  ;;  %vm608_vm9 = vweird.f32 %v4617_v0 }
 0x215   :  { %1555 = vmatpush.bf16.msra.mxu0 %v1445_v51  ;;  %1644 = vmatpush.bf16.msra.mxu1 %v1446_v43  ;;  %v611_v62 = vand.u32 2147483647, %v4545_v10  ;;  %v3613_v27 = vpop.eup %3612  ;;  %v595_v30 = vsel %vm4892_vm8, %v4623_v47, %v591_v3  ;;  %vm607_vm10 = vweird.f32 %v4545_v10  ;;  %v2009_v35 = vmax.f32 %v4878_v32, %v4864_v63 }
 0x216   :  { %v605_v57 = vmul.f32 %v4617_v0, %v6749_v59  ;;  %v599_v53 = vor.u32 1.1754944e-38, %v598_v4  ;;  %v4907_v51 = vpop.eup %3614  ;;  %v4909_v26 = vadd.f32 1.0, %v3613_v27  ;;  %vm597_vm11 = vcmp.eq.f32.partialorder %v596_v29, 8.507059e+37  ;;  %vm609_vm12 = vmor %vm607_vm10, %vm608_vm9 }
 0x217   :  { %v613_v59 = vand.u32 2147483648, %v4545_v10  ;;  %v4913_v37 = vpop.eup %3616  ;;  %v6750_v47 = vmax.f32 %v4775_v49, %v4745_v11  ;;  %v6751_v29 = vsub.f32 1.0, %v4566_v33  ;;  %v4928_v10 = vmul.f32 %v4888_v45, %v4841_v12  ;;  %v3664_v33 = vld [vmem:[#allocation2 + $0x80] sm:$0xff] }
 0x218   :  { %v606_v43 = vadd.f32 %v4617_v0, %v605_v57  ;;  %v600_v4 = vsel %vm597_vm11, %v599_v53, %v595_v30  ;;  %v3619_v57 = vpop.eup %3618  ;;  %vm612_vm13 = vcmp.eq.f32.partialorder %v611_v62, 8.507059e+37  ;;  %v4933_v49 = vmul.f32 %v4907_v51, %v4848_v39 }
 0x219   :  { %v2029_v3 = vmax.f32 %v6750_v47, %v4855_v18  ;;  %v1214_v16 = vmul.f32 %v4542_v7, %v6751_v29  ;;  %v614_v27 = vor.u32 1.1754944e-38, %v613_v59  ;;  %3620 = vrcp.f32 %v4909_v26  ;;  %v3666_v59 = vld [vmem:[#allocation2 + $0x90] sm:$0xff] }
 0x21a   :  { %v610_v32 = vsel %vm609_vm12, %v4617_v0, %v606_v43  ;;  %v4936_v30 = vadd.f32 1.0, %v3619_v57  ;;  %v4938_v53 = vmul.f32 %v3664_v33, %v600_v4  ;;  %v4942_v47 = vmul.f32 %v4913_v37, %v4853_v36  ;;  %v3667_v33 = vld [vmem:[#allocation2 + $0x98] sm:$0xff] }
 0x21b   :  { %v615_v29 = vsel %vm612_vm13, %v614_v27, %v610_v32  ;;  %v4944_v0 = vmul.f32 %v3665_v28, %v600_v4  ;;  %v1215_v62 = vadd.f32 %v4542_v7, %v1214_v16  ;;  %v2030_v43 = vmax.f32 %v2029_v3, %v4866_v44 }
 0x21c   :  { %3622 = vrcp.f32 %v4936_v30  ;;  %v4949_v57 = vmul.f32 %v3666_v59, %v615_v29  ;;  %vm1216_vm14 = vweird.f32 %v4478_v22  ;;  %v4952_v55 = vmul.f32 %v3667_v33, %v615_v29 }
 0x21d   :  { %vm1217_vm15 = vweird.f32 %v4542_v7  ;;  %v1220_v32 = vand.u32 2147483647, %v4478_v22  ;;  %v1222_v28 = vand.u32 2147483648, %v4478_v22  ;;  %v6754_v29 = vsub.f32 1.0, %v4607_v20 }
 0x21e   :  { %v1441_v16 = vpack.c.bf16 %v4949_v57, %v4938_v53  ;;  %vm4961_vm0 = vmor %vm1216_vm14, %vm1217_vm15  ;;  %v4970_v31 = vmax.f32 %v2009_v35, %v4938_v53  ;;  %v1442_v22 = vpack.c.bf16 %v4952_v55, %v4944_v0  ;;  %vm1231_vm1 = vweird.f32 %v4528_v56  ;;  %v3668_v35 = vld [vmem:[#allocation2 + $0x160] sm:$0xff] }
 0x21f   :  { %v1229_v59 = vmul.f32 %v4589_v41, %v6754_v29  ;;  %v1219_v3 = vsel %vm4961_vm0, %v4542_v7, %v1215_v62  ;;  %v4977_v4 = vpop.eup %3620  ;;  %v1223_v11 = vor.u32 1.1754944e-38, %v1222_v28  ;;  %vm1232_vm2 = vweird.f32 %v4589_v41 }
 0x220   :  { %1556 = vmatpush.bf16.msra.mxu0 %v1441_v16  ;;  %1645 = vmatpush.bf16.msra.mxu1 %v1442_v22  ;;  %vm1221_vm3 = vcmp.eq.f32.partialorder %v1220_v32, 8.507059e+37  ;;  %vm4982_vm4 = vmor %vm1231_vm1, %vm1232_vm2  ;;  %v1235_v29 = vand.u32 2147483647, %v4528_v56  ;;  %v1237_v7 = vand.u32 2147483648, %v4528_v56  ;;  %v6757_v62 = vsub.f32 1.0, %v4714_v54 }
 0x221   :  { %v1230_v20 = vadd.f32 %v4589_v41, %v1229_v59  ;;  %v4994_v27 = vmax.f32 %v2030_v43, %v4944_v0  ;;  %v1224_v59 = vsel %vm1221_vm3, %v1223_v11, %v1219_v3  ;;  %vm1187_vm5 = vweird.f32 %v4691_v17 }
 0x222   :  { %v1184_v28 = vmul.f32 %v4691_v17, %v6757_v62  ;;  %v4991_v16 = vpop.eup %3622  ;;  %v5002_v22 = vmul.f32 %v4977_v4, %v4909_v26  ;;  %v1238_v54 = vor.u32 1.1754944e-38, %v1237_v7  ;;  %vm1186_vm6 = vweird.f32 %v4638_v2 }
 0x223   :  { %v1234_v32 = vsel %vm4982_vm4, %v4589_v41, %v1230_v20  ;;  %vm1236_vm7 = vcmp.eq.f32.partialorder %v1235_v29, 8.507059e+37  ;;  %v1190_v11 = vand.u32 2147483647, %v4638_v2  ;;  %v1192_v3 = vand.u32 2147483648, %v4638_v2  ;;  %vm5016_vm8 = vmor %vm1186_vm6, %vm1187_vm5  ;;  %v3670_v2 = vld [vmem:[#allocation2 + $0x168] sm:$0xff] }
 0x224   :  { %v1185_v43 = vadd.f32 %v4691_v17, %v1184_v28  ;;  %v5012_v41 = vmul.f32 %v4991_v16, %v4936_v30  ;;  %v1239_v20 = vsel %vm1236_vm7, %v1238_v54, %v1234_v32  ;;  %v5014_v62 = vmul.f32 %v3668_v35, %v1224_v59  ;;  %v3669_v28 = vld [vmem:[#allocation2 + $0x170] sm:$0xff]  ;;  %v3673_v54 = vld [vmem:[#allocation2 + $0x148] sm:$0xff] }
 0x225   :  { %v6760_v29 = vsub.f32 1.0, %v4729_v8  ;;  %v5023_v56 = vmul.f32 %v3669_v28, %v1239_v20  ;;  %v5025_v9 = vmul.f32 %v3670_v2, %v1224_v59  ;;  %v5027_v44 = vmul.f32 %v3671_v52, %v1239_v20 }
 0x226   :  { %v1189_v32 = vsel %vm5016_vm8, %v4691_v17, %v1185_v43  ;;  %v2032_v8 = vmax.f32 %v4994_v27, %v4952_v55  ;;  %v1193_v35 = vor.u32 1.1754944e-38, %v1192_v3  ;;  %vm1191_vm9 = vcmp.eq.f32.partialorder %v1190_v11, 8.507059e+37  ;;  %v3672_v11 = vld [vmem:[#allocation2 + $0x140] sm:$0xff] }
 0x227   :  { %v1199_v7 = vmul.f32 %v4703_v24, %v6760_v29  ;;  %v1439_v28 = vpack.c.bf16 %v5023_v56, %v5014_v62  ;;  %v1440_v59 = vpack.c.bf16 %v5027_v44, %v5025_v9  ;;  %vm1201_vm10 = vweird.f32 %v4651_v46 }
 0x228   :  { %v1194_v52 = vsel %vm1191_vm9, %v1193_v35, %v1189_v32  ;;  %vm1202_vm11 = vweird.f32 %v4703_v24  ;;  %v1205_v17 = vand.u32 2147483647, %v4651_v46  ;;  %v1207_v33 = vand.u32 2147483648, %v4651_v46 }
 0x229   :  { %v1200_v29 = vadd.f32 %v4703_v24, %v1199_v7  ;;  %v6761_v3 = vmax.f32 %v4861_v50, %v4809_v34  ;;  %1735 = vmatpush.bf16.msra.mxu2 %v1439_v28  ;;  %1824 = vmatpush.bf16.msra.mxu3 %v1440_v59  ;;  %vm1203_vm12 = vmor %vm1201_vm10, %vm1202_vm11  ;;  %v5049_v7 = vmul.f32 %v3672_v11, %v1194_v52  ;;  %v6762_v2 = vsub.f32 1.0, %v4718_v48 }
 0x22a   :  { %v1208_v46 = vor.u32 1.1754944e-38, %v1207_v33  ;;  %v5055_v43 = vmul.f32 %v3673_v54, %v1194_v52  ;;  %vm563_vm13 = vweird.f32 %v4698_v40  ;;  %vm1206_vm14 = vcmp.eq.f32.partialorder %v1205_v17, 8.507059e+37  ;;  %v3674_v33 = vld [vmem:[#allocation2 + $0x150] sm:$0xff] }
 0x22b   :  { %v2054_v20 = vmax.f32 %v6761_v3, %v5014_v62  ;;  %v560_v32 = vmul.f32 %v4698_v40, %v6762_v2  ;;  %v1204_v35 = vsel %vm1203_vm12, %v4703_v24, %v1200_v29  ;;  %vm562_vm15 = vweird.f32 %v4642_v1  ;;  %v3675_v2 = vld [vmem:[#allocation2 + $0x158] sm:$0xff] }
 0x22c   :  { %v566_v28 = vand.u32 2147483647, %v4642_v1  ;;  %v6763_v48 = vmax.f32 %v4873_v19, %v4815_v13  ;;  %v1209_v3 = vsel %vm1206_vm14, %v1208_v46, %v1204_v35  ;;  %vm5065_vm0 = vmor %vm562_vm15, %vm563_vm13  ;;  %v568_v54 = vand.u32 2147483648, %v4642_v1 }
 0x22d   :  { %v561_v50 = vadd.f32 %v4698_v40, %v560_v32  ;;  %v6766_v29 = vsub.f32 1.0, %v4769_v21  ;;  %v2055_v17 = vmax.f32 %v2054_v20, %v5023_v56  ;;  %v5074_v11 = vmul.f32 %v3674_v33, %v1209_v3 }
 0x22e   :  { %v2075_v59 = vmax.f32 %v6763_v48, %v5025_v9  ;;  %v5076_v32 = vmul.f32 %v3675_v2, %v1209_v3  ;;  %v569_v35 = vor.u32 1.1754944e-38, %v568_v54  ;;  %vm578_vm1 = vweird.f32 %v4741_v42  ;;  %v3676_v54 = vld [vmem:[#allocation2 + $0x60] sm:$0xff]  ;;  %v3677_v2 = vld [vmem:[#allocation2 + $0x68] sm:$0xff]  ;;  %v3679_v3 = vld [vmem:[#allocation2 + $0x78] sm:$0xff] }
 0x22f   :  { %v575_v52 = vmul.f32 %v4741_v42, %v6766_v29  ;;  %v565_v19 = vsel %vm5065_vm0, %v4698_v40, %v561_v50  ;;  %v581_v1 = vand.u32 2147483647, %v4681_v6  ;;  %v1435_v21 = vpack.c.bf16 %v5074_v11, %v5049_v7 }
 0x230   :  { %v1436_v20 = vpack.c.bf16 %v5076_v32, %v5055_v43  ;;  %vm567_vm2 = vcmp.eq.f32.partialorder %v566_v28, 8.507059e+37  ;;  %vm577_vm3 = vweird.f32 %v4681_v6  ;;  %v2076_v48 = vmax.f32 %v2075_v59, %v5027_v44 }
 0x231   :  { %v576_v46 = vadd.f32 %v4741_v42, %v575_v52  ;;  %v5091_v40 = vmax.f32 %v2055_v17, %v5049_v7  ;;  %v570_v50 = vsel %vm567_vm2, %v569_v35, %v565_v19  ;;  %vm5093_vm4 = vmor %vm577_vm3, %vm578_vm1  ;;  %v583_v24 = vand.u32 2147483648, %v4681_v6  ;;  %1736 = vmatpush.bf16.msra.mxu2 %v1435_v21  ;;  %v3678_v21 = vld [vmem:[#allocation2 + $0x70] sm:$0xff] }
 0x232   :  { %1825 = vmatpush.bf16.msra.mxu3 %v1436_v20  ;;  %vm582_vm5 = vcmp.eq.f32.partialorder %v581_v1, 8.507059e+37  ;;  %v5101_v29 = vmul.f32 %v3676_v54, %v570_v50  ;;  %v6769_v59 = vsub.f32 1.0, %v4813_v25  ;;  %vm1157_vm6 = vweird.f32 %v4790_v60 }
 0x233   :  { %v580_v28 = vsel %vm5093_vm4, %v4741_v42, %v576_v46  ;;  %v584_v17 = vor.u32 1.1754944e-38, %v583_v24  ;;  %v1160_v33 = vand.u32 2147483647, %v4731_v23  ;;  %v1162_v6 = vand.u32 2147483648, %v4731_v23 }
 0x234   :  { %v1154_v52 = vmul.f32 %v4790_v60, %v6769_v59  ;;  %v5109_v19 = vmul.f32 %v3677_v2, %v570_v50  ;;  %vm1156_vm7 = vweird.f32 %v4731_v23  ;;  %v6770_v35 = vsub.f32 1.0, %v4794_v58 }
 0x235   :  { %v585_v46 = vsel %vm582_vm5, %v584_v17, %v580_v28  ;;  %vm1158_vm8 = vmor %vm1156_vm7, %vm1157_vm6  ;;  %vm1161_vm9 = vcmp.eq.f32.partialorder %v1160_v33, 8.507059e+37  ;;  %v1163_v1 = vor.u32 1.1754944e-38, %v1162_v6  ;;  %vm1171_vm10 = vweird.f32 %v4725_v14 }
 0x236   :  { %v1155_v42 = vadd.f32 %v4790_v60, %v1154_v52  ;;  %v1169_v25 = vmul.f32 %v4786_v5, %v6770_v35  ;;  %v5117_v20 = vmul.f32 %v3678_v21, %v585_v46  ;;  %v5119_v50 = vmul.f32 %v3679_v3, %v585_v46  ;;  %v3680_v35 = vld [vmem:[#allocation2 + $0x120] sm:$0xff]  ;;  %v3682_v3 = vld [vmem:[#allocation2 + $0x130] sm:$0xff] }
 0x237   :  { %vm1172_vm11 = vweird.f32 %v4786_v5  ;;  %v1175_v58 = vand.u32 2147483647, %v4725_v14  ;;  %v1177_v28 = vand.u32 2147483648, %v4725_v14  ;;  %v2057_v59 = vmax.f32 %v5091_v40, %v5074_v11  ;;  %v3681_v14 = vld [vmem:[#allocation2 + $0x128] sm:$0xff] }
 0x238   :  { %v1159_v24 = vsel %vm1158_vm8, %v4790_v60, %v1155_v42  ;;  %v1170_v23 = vadd.f32 %v4786_v5, %v1169_v25  ;;  %v5129_v52 = vmax.f32 %v2076_v48, %v5055_v43  ;;  %v1437_v17 = vpack.c.bf16 %v5117_v20, %v5101_v29  ;;  %vm1173_vm12 = vmor %vm1171_vm10, %vm1172_vm11 }
 0x239   :  { %v1164_v54 = vsel %vm1161_vm9, %v1163_v1, %v1159_v24  ;;  %v1438_v60 = vpack.c.bf16 %v5119_v50, %v5109_v19  ;;  %v6771_v33 = vmax.f32 %v4970_v31, %v4949_v57  ;;  %v2033_v48 = vmax.f32 %v2032_v8, %v5109_v19 }
 0x23a   :  { %v1174_v2 = vsel %vm1173_vm12, %v4786_v5, %v1170_v23  ;;  %v1178_v42 = vor.u32 1.1754944e-38, %v1177_v28  ;;  %1557 = vmatpush.bf16.msra.mxu0 %v1437_v17  ;;  %vm1176_vm13 = vcmp.eq.f32.partialorder %v1175_v58, 8.507059e+37  ;;  %v5146_v25 = vmul.f32 %v3680_v35, %v1164_v54  ;;  %v3683_v23 = vld [vmem:[#allocation2 + $0x138] sm:$0xff] }
 0x23b   :  { %v2012_v6 = vmax.f32 %v6771_v33, %v5101_v29  ;;  %1646 = vmatpush.bf16.msra.mxu1 %v1438_v60  ;;  %v5148_v46 = vmul.f32 %v3681_v14, %v1164_v54  ;;  %v6772_v31 = vsub.f32 1.0, %v4928_v10  ;;  %vm533_vm14 = vweird.f32 %v4888_v45 }
 0x23c   :  { %v1179_v21 = vsel %vm1176_vm13, %v1178_v42, %v1174_v2  ;;  %v536_v27 = vand.u32 2147483647, %v4841_v12  ;;  %v538_v5 = vand.u32 2147483648, %v4841_v12  ;;  %v2034_v10 = vmax.f32 %v2033_v48, %v5119_v50 }
 0x23d   :  { %v530_v1 = vmul.f32 %v4888_v45, %v6772_v31  ;;  %v2013_v8 = vmax.f32 %v2012_v6, %v5117_v20  ;;  %v5157_v24 = vmul.f32 %v3682_v3, %v1179_v21  ;;  %v5159_v58 = vmul.f32 %v3683_v23, %v1179_v21 }
 0x23e   :  { %vm532_vm15 = vweird.f32 %v4841_v12  ;;  %vm537_vm0 = vcmp.eq.f32.partialorder %v536_v27, 8.507059e+37  ;;  %v6773_v28 = vsub.f32 1.0, %v4942_v47  ;;  %v539_v6 = vor.u32 1.1754944e-38, %v538_v5  ;;  %v3685_v27 = vld [vmem:[#allocation2 + $0x48] sm:$0xff] }
 0x23f   :  { %v531_v54 = vadd.f32 %v4888_v45, %v530_v1  ;;  %v1431_v60 = vpack.c.bf16 %v5157_v24, %v5146_v25  ;;  %v1432_v33 = vpack.c.bf16 %v5159_v58, %v5148_v46  ;;  %vm534_vm1 = vmor %vm532_vm15, %vm533_vm14  ;;  %vm547_vm2 = vweird.f32 %v4853_v36  ;;  %v3684_v1 = vld [vmem:[#allocation2 + $0x40] sm:$0xff] }
 0x240   :  { %v545_v17 = vmul.f32 %v4913_v37, %v6773_v28  ;;  %vm548_vm3 = vweird.f32 %v4913_v37  ;;  %v551_v47 = vand.u32 2147483647, %v4853_v36  ;;  %v553_v35 = vand.u32 2147483648, %v4853_v36 }
 0x241   :  { %v535_v48 = vsel %vm534_vm1, %v4888_v45, %v531_v54  ;;  %1737 = vmatpush.bf16.msra.mxu2 %v1431_v60  ;;  %1826 = vmatpush.bf16.msra.mxu3 %v1432_v33  ;;  %vm5178_vm4 = vmor %vm547_vm2, %vm548_vm3  ;;  %v6776_v14 = vsub.f32 1.0, %v5012_v41  ;;  %vm517_vm5 = vweird.f32 %v4936_v30  ;;  %vm518_vm7 = vweird.f32 %v4991_v16 }
 0x242   :  { %v546_v12 = vadd.f32 %v4913_v37, %v545_v17  ;;  %v540_v2 = vsel %vm537_vm0, %v539_v6, %v535_v48  ;;  %vm552_vm6 = vcmp.eq.f32.partialorder %v551_v47, 8.507059e+37  ;;  %v554_v3 = vor.u32 1.1754944e-38, %v553_v35  ;;  %vm5199_vm8 = vmor %vm517_vm5, %vm518_vm7 }
 0x243   :  { %v515_v31 = vmul.f32 %v4991_v16, %v6776_v14  ;;  %v5190_v21 = vmul.f32 %v3684_v1, %v540_v2  ;;  %v5192_v5 = vmul.f32 %v3685_v27, %v540_v2  ;;  %v521_v41 = vand.u32 2147483647, %v4936_v30 }
 0x244   :  { %v550_v45 = vsel %vm5178_vm4, %v4913_v37, %v546_v12  ;;  %v523_v28 = vand.u32 2147483648, %v4936_v30  ;;  %v6779_v17 = vsub.f32 1.0, %v4933_v49  ;;  %vm1126_vm10 = vweird.f32 %v4848_v39  ;;  %v3687_v12 = vld [vmem:[#allocation2 + $0x58] sm:$0xff] }
 0x245   :  { %v516_v36 = vadd.f32 %v4991_v16, %v515_v31  ;;  %v2014_v23 = vmax.f32 %v2013_v8, %v5190_v21  ;;  %v2035_v54 = vmax.f32 %v2034_v10, %v5192_v5  ;;  %v555_v33 = vsel %vm552_vm6, %v554_v3, %v550_v45  ;;  %v3686_v8 = vld [vmem:[#allocation2 + $0x50] sm:$0xff] }
 0x246   :  { %v1124_v60 = vmul.f32 %v4907_v51, %v6779_v17  ;;  %vm5210_vm9 = vcmp.eq.f32.partialorder %v521_v41, 8.507059e+37  ;;  %v5215_v10 = vmul.f32 %v3686_v8, %v555_v33  ;;  %v5217_v30 = vmul.f32 %v3687_v12, %v555_v33 }
 0x247   :  { %v520_v6 = vsel %vm5199_vm8, %v4991_v16, %v516_v36  ;;  %v524_v49 = vor.u32 1.1754944e-38, %v523_v28  ;;  %vm1127_vm11 = vweird.f32 %v4907_v51  ;;  %v1130_v2 = vand.u32 2147483647, %v4848_v39  ;;  %v3689_v28 = vld [vmem:[#allocation2 + $0x38] sm:$0xff] }
 0x248   :  { %v1125_v47 = vadd.f32 %v4907_v51, %v1124_v60  ;;  %v1132_v16 = vand.u32 2147483648, %v4848_v39  ;;  %v6782_v42 = vsub.f32 1.0, %v5002_v22  ;;  %v2015_v14 = vmax.f32 %v2014_v23, %v5215_v10  ;;  %vm5234_vm12 = vmor %vm1126_vm10, %vm1127_vm11  ;;  %v3688_v23 = vld [vmem:[#allocation2 + $0x30] sm:$0xff] }
 0x249   :  { %v1433_v31 = vpack.c.bf16 %v5215_v10, %v5190_v21  ;;  %v2036_v45 = vmax.f32 %v2035_v54, %v5217_v30  ;;  %v1434_v1 = vpack.c.bf16 %v5217_v30, %v5192_v5  ;;  %v2078_v22 = vmax.f32 %v5129_v52, %v5076_v32 }
 0x24a   :  { %v1139_v35 = vmul.f32 %v4977_v4, %v6782_v42  ;;  %v525_v3 = vsel %vm5210_vm9, %v524_v49, %v520_v6  ;;  %v1129_v36 = vsel %vm5234_vm12, %v4907_v51, %v1125_v47  ;;  %vm5245_vm13 = vcmp.eq.f32.partialorder %v1130_v2, 8.507059e+37 }
 0x24b   :  { %1558 = vmatpush.bf16.msra.mxu0 %v1433_v31  ;;  %1647 = vmatpush.bf16.msra.mxu1 %v1434_v1  ;;  %v2016_v39 = vmax.f32 %v2015_v14, %v4269_v15  ;;  %v713_v54 = vmul.f32 %v3688_v23, %v525_v3  ;;  %v2037_v37 = vmax.f32 %v2036_v45, %v4273_v61  ;;  %v1133_v52 = vor.u32 1.1754944e-38, %v1132_v16  ;;  %v6791_v14 = vld [vmem:[#allocation9_spill] sm:$0xff] }
 0x24c   :  { %v714_v17 = vmul.f32 %v3689_v28, %v525_v3  ;;  %v1140_v60 = vadd.f32 %v4977_v4, %v1139_v35  ;;  %vm1141_vm14 = vweird.f32 %v4909_v26  ;;  %vm1142_vm15 = vweird.f32 %v4977_v4  ;;  %v6793_v1 = vld [vmem:[#allocation13_spill] sm:$0xff]  ;;  %v6795_v3 = vld [vmem:[#allocation11_spill] sm:$0xff] }
 0x24d   :  { %v2017_v51 = vmax.f32 %v2016_v39, %v713_v54  ;;  %v1429_v33 = vpack.c.bf16 %v713_v54, %v4269_v15  ;;  %vm5255_vm0 = vmor %vm1141_vm14, %vm1142_vm15  ;;  %v1145_v48 = vand.u32 2147483647, %v4909_v26  ;;  %v1147_v8 = vand.u32 2147483648, %v4909_v26  ;;  %v6789_v26 = vld [vmem:[#allocation12_spill] sm:$0xff]  ;;  %v3693_v28 = vld [vmem:[#allocation2 + $0x118] sm:$0xff] }
 0x24e   :  { %v2038_v12 = vmax.f32 %v2037_v37, %v714_v17  ;;  %v1430_v49 = vpack.c.bf16 %v714_v17, %v4273_v61  ;;  %v1134_v47 = vsel %vm5245_vm13, %v1133_v52, %v1129_v36  ;;  %v1144_v2 = vsel %vm5255_vm0, %v4977_v4, %v1140_v60  ;;  %v6790_v61 = vld [vmem:[#allocation8_spill] sm:$0xff]  ;;  %v6794_v4 = vld [vmem:[#allocation10_spill] sm:$0xff] }
 0x24f   :  { %v2058_v15 = vmax.f32 %v2057_v59, %v5146_v25  ;;  %v2079_v16 = vmax.f32 %v2078_v22, %v5148_v46  ;;  %1559 = vmatpush.bf16.msra.mxu0 %v1429_v33  ;;  %v1148_v42 = vor.u32 1.1754944e-38, %v1147_v8  ;;  %v1911_v35 = vadd.f32 %v6789_v26, %v713_v54  ;;  %v3690_v59 = vld [vmem:[#allocation2 + $0x100] sm:$0xff]  ;;  %v3691_v22 = vld [vmem:[#allocation2 + $0x108] sm:$0xff]  ;;  %v3692_v54 = vld [vmem:[#allocation2 + $0x110] sm:$0xff] }
 0x250   :  { %1648 = vmatpush.bf16.msra.mxu1 %v1430_v49  ;;  %vm1146_vm1 = vcmp.eq.f32.partialorder %v1145_v48, 8.507059e+37  ;;  %v6792_v31 = vmax.f32 %v6790_v61, %v6791_v14  ;;  %v1932_v27 = vadd.f32 %v6793_v1, %v714_v17  ;;  %v6796_v36 = vmax.f32 %v6794_v4, %v6795_v3 }
 0x251   :  { %v1149_v40 = vsel %vm1146_vm1, %v1148_v42, %v1144_v2  ;;  %v1361_v39 = vmul.f32 %v3690_v59, %v1134_v47  ;;  %v1362_v23 = vmul.f32 %v3691_v22, %v1134_v47  ;;  %v1912_v37 = vadd.f32 %v1911_v35, %v5190_v21 }
 0x252   :  { %v2018_v45 = vmax.f32 %v2017_v51, %v6792_v31  ;;  %v2039_v41 = vmax.f32 %v2038_v12, %v6796_v36  ;;  %v1363_v52 = vmul.f32 %v3692_v54, %v1149_v40  ;;  %v1364_v60 = vmul.f32 %v3693_v28, %v1149_v40 }
 0x253   :  { %v1933_v33 = vadd.f32 %v1932_v27, %v5192_v5  ;;  %v2059_v17 = vmax.f32 %v2058_v15, %v5157_v24  ;;  %v2080_v6 = vmax.f32 %v2079_v16, %v5159_v58  ;;  %v6797_v48 = vpack.c.bf16 %v6791_v14, %v6790_v61 }
 0x254   :  { %v2040_v51 = vrot.slane %v2039_v41, 4  ;;  %v1913_v8 = vadd.f32 %v1912_v37, %v5215_v10  ;;  %v2019_v12 = vrot.slane %v2018_v45, 4  ;;  %v1427_v49 = vpack.c.bf16 %v1363_v52, %v1361_v39 }
 0x255   :  { %1560 = vmatpush.bf16.msra.mxu0 %v6797_v48  ;;  %v1951_v21 = vadd.f32 %v1363_v52, %v1361_v39  ;;  %v2046_v47 = vmax.f32 %v1361_v39, %v1363_v52  ;;  %v1428_v2 = vpack.c.bf16 %v1364_v60, %v1362_v23  ;;  %v6798_v42 = vpack.c.bf16 %v6795_v3, %v6794_v4  ;;  %v6800_v48 = vld [vmem:[#allocation36_spill] sm:$0xff] }
 0x256   :  { %v1972_v5 = vadd.f32 %v1364_v60, %v1362_v23  ;;  %v2067_v26 = vmax.f32 %v1362_v23, %v1364_v60  ;;  %v1914_v15 = vadd.f32 %v1913_v8, %v5101_v29  ;;  %v1934_v16 = vadd.f32 %v1933_v33, %v5217_v30  ;;  %1738 = vmatpush.bf16.msra.mxu2 %v1427_v49  ;;  %v6801_v8 = vld [vmem:[#allocation34_spill] sm:$0xff]  ;;  %v6803_v49 = vld [vmem:[#allocation32_spill] sm:$0xff] }
 0x257   :  { %1649 = vmatpush.bf16.msra.mxu1 %v6798_v42  ;;  %v1952_v35 = vadd.f32 %v1951_v21, %v5146_v25  ;;  %v2060_v61 = vmax.f32 %v2059_v17, %v2046_v47  ;;  %1827 = vmatpush.bf16.msra.mxu3 %v1428_v2  ;;  %v2041_v10 = vmax.f32 %v2039_v41, %v2040_v51  ;;  %v6799_v17 = vld [vmem:[#allocation30_spill] sm:$0xff]  ;;  %v6804_v2 = vld [vmem:[#allocation31_spill] sm:$0xff]  ;;  %vm2360_vm6 = vcmask 1040384  }
 0x258   :  { %v1973_v14 = vadd.f32 %v1972_v5, %v5148_v46  ;;  %v2081_v31 = vmax.f32 %v2080_v6, %v2067_v26  ;;  %v1915_v1 = vadd.f32 %v1914_v15, %v5117_v20  ;;  %v1935_v27 = vadd.f32 %v1934_v16, %v5109_v19  ;;  %v6805_v26 = vld [vmem:[#allocation26_spill] sm:$0xff]  ;;  %v6806_v16 = vld [vmem:[#allocation33_spill] sm:$0xff] }
 0x259   :  { %v1953_v4 = vadd.f32 %v1952_v35, %v5157_v24  ;;  %v2042_v3 = vrot.slane %v2041_v10, 2  ;;  %v2020_v36 = vmax.f32 %v2018_v45, %v2019_v12  ;;  %v2061_v29 = vrot.slane %v2060_v61, 4 }
 0x25a   :  { %v1974_v30 = vadd.f32 %v1973_v14, %v5159_v58  ;;  %v1916_v40 = vadd.f32 %v1915_v1, %v4938_v53  ;;  %v1936_v25 = vadd.f32 %v1935_v27, %v5119_v50  ;;  %v2082_v59 = vrot.slane %v2081_v31, 4  ;;  %v6808_v14 = vld [vmem:[#allocation28_spill] sm:$0xff]  ;;  %v6809_v1 = vld [vmem:[#allocation18_spill] sm:$0xff] }
 0x25b   :  { %v1954_v41 = vadd.f32 %v1953_v4, %v5049_v7  ;;  %v2043_v46 = vmax.f32 %v2041_v10, %v2042_v3  ;;  %v2021_v39 = vrot.slane %v2020_v36, 2  ;;  %v2062_v22 = vmax.f32 %v2060_v61, %v2061_v29  ;;  %v6807_v61 = vld [vmem:[#allocation27_spill] sm:$0xff]  ;;  %v6810_v4 = vld [vmem:[#allocation29_spill] sm:$0xff] }
 0x25c   :  { %v1975_v20 = vadd.f32 %v1974_v30, %v5055_v43  ;;  %v1917_v19 = vadd.f32 %v1916_v40, %v4949_v57  ;;  %v1937_v24 = vadd.f32 %v1936_v25, %v4944_v0  ;;  %v2083_v45 = vmax.f32 %v2081_v31, %v2082_v59  ;;  %v6812_v29 = vld [vmem:[#allocation19_spill] sm:$0xff]  ;;  %v6814_v59 = vld [vmem:[#allocation24_spill] sm:$0xff] }
 0x25d   :  { %v1955_v23 = vadd.f32 %v1954_v41, %v5074_v11  ;;  %v2044_v58 = vrot.slane %v2043_v46, 1  ;;  %v2022_v37 = vmax.f32 %v2020_v36, %v2021_v39  ;;  %v2063_v53 = vrot.slane %v2062_v22, 2  ;;  %v6811_v36 = vld [vmem:[#allocation22_spill] sm:$0xff]  ;;  %v6813_v40 = vld [vmem:[#allocation23_spill] sm:$0xff]  ;;  %v6815_v39 = vld [vmem:[#allocation20_spill] sm:$0xff] }
 0x25e   :  { %v1976_v50 = vadd.f32 %v1975_v20, %v5076_v32  ;;  %v1918_v54 = vadd.f32 %v1917_v19, %v4851_v38  ;;  %v1938_v7 = vadd.f32 %v1937_v24, %v4952_v55  ;;  %v2084_v52 = vrot.slane %v2083_v45, 2  ;;  %v6816_v20 = vld [vmem:[#allocation25_spill] sm:$0xff]  ;;  %v6817_v24 = vld [vmem:[#allocation14_spill] sm:$0xff] }
 0x25f   :  { %v1956_v28 = vadd.f32 %v1955_v23, %v5014_v62  ;;  %v5310_v43 = vmax.f32 %v2043_v46, %v2044_v58  ;;  %v2023_v57 = vrot.slane %v2022_v37, 1  ;;  %v2064_v60 = vmax.f32 %v2062_v22, %v2063_v53  ;;  %v6818_v23 = vld [vmem:[#allocation21_spill] sm:$0xff] }
 0x260   :  { %v1977_v0 = vadd.f32 %v1976_v50, %v5025_v9  ;;  %v1919_v11 = vadd.f32 %v1918_v54, %v4864_v63  ;;  %v1939_v33 = vadd.f32 %v1938_v7, %v4855_v18  ;;  %v2085_v62 = vmax.f32 %v2083_v45, %v2084_v52  ;;  %v6820_v54 = vld [vmem:[#allocation15_spill] sm:$0xff] }
 0x261   :  { %v1957_v51 = vadd.f32 %v1956_v28, %v5023_v56  ;;  %2170 = vrot.lane.b32.xlu2 %v5310_v43, %s3750_s2  ;;  %v5318_v55 = vmax.f32 %v2022_v37, %v2023_v57  ;;  %v2065_v38 = vrot.slane %v2064_v60, 1  ;;  %v6802_v56 = vld [vmem:[#allocation35_spill] sm:$0xff]  ;;  %v3752_v46 = vmov 128.0   ;;  %v6819_v37 = vld [vmem:[#allocation16_spill] sm:$0xff] }
 0x262   :  { %v1978_v32 = vadd.f32 %v1977_v0, %v5027_v44  ;;  %v1920_v6 = vadd.f32 %v1919_v11, %v6799_v17  ;;  %v1940_v9 = vadd.f32 %v1939_v33, %v6800_v48  ;;  %v2086_v44 = vrot.slane %v2085_v62, 1  ;;  %v6821_v11 = vld [vmem:[#allocation17_spill] sm:$0xff] }
 0x263   :  { %v1958_v63 = vadd.f32 %v1957_v51, %v6801_v8  ;;  %2168 = vrot.lane.b32.xlu0 %v5318_v55, %s3750_s2  ;;  %v5326_v18 = vmax.f32 %v2064_v60, %v2065_v38  ;;  %3624 = vrcp.f32 %v3752_v46  ;;  %v3440_v46 = vld [vmem:[%s6639_s3 + $0x18] sm:$0xff]  ;;  %vm2365_vm8 = vcmask 1041408  }
 0x264   :  { %v1979_v12 = vadd.f32 %v1978_v32, %v6802_v56  ;;  %v1941_v21 = vadd.f32 %v1940_v9, %v6803_v49  ;;  %v1921_v42 = vadd.f32 %v1920_v6, %v6804_v2  ;;  %vm2370_vm9 = vcmask 1042432  }
 0x265   :  { %v1959_v47 = vadd.f32 %v1958_v63, %v4809_v34  ;;  %2172 = vrot.lane.b32.xlu1 %v5326_v18, %s3750_s2  ;;  %v5341_v34 = vmax.f32 %v2085_v62, %v2086_v44  ;;  %vm2375_vm11 = vcmask 1043456   ;;  %vm2380_vm12 = vcmask 1044480  }
 0x266   :  { %v1980_v5 = vadd.f32 %v1979_v12, %v4815_v13  ;;  %v1942_v35 = vadd.f32 %v1941_v21, %v6806_v16  ;;  %v1922_v27 = vadd.f32 %v1921_v42, %v6809_v1  ;;  %vm2385_vm14 = vcmask 1045504  }
 0x267   :  { %v1960_v15 = vadd.f32 %v1959_v47, %v6805_v26  ;;  %vm2390_vm15 = vcmask 1046528   ;;  %vm2509_vm0 = vcmask 1042434  }
 0x268   :  { %v1981_v10 = vadd.f32 %v1980_v5, %v6807_v61  ;;  %v1943_v30 = vadd.f32 %v1942_v35, %v6812_v29  ;;  %v1923_v22 = vadd.f32 %v1922_v27, %v6815_v39  ;;  %v3437_v27 = vld [vmem:[%s6639_s3] sm:$0xff]  ;;  %v3757_v29 = vmov 0  }
 0x269   :  { %v1961_v31 = vadd.f32 %v1960_v15, %v6808_v14  ;;  %2180 = vrot.lane.b32.xlu2 %v5318_v55, %s3751_s9  ;;  %v3625_v52 = vpop.eup %3624  ;;  %1739 = vmatmul.bf16.vlgmr.msra.gmra.mxu2 %v3437_v27 }
 0x26a   :  { %v1982_v3 = vadd.f32 %v1981_v10, %v6810_v4  ;;  %v1944_v58 = vadd.f32 %v1943_v30, %v6818_v23  ;;  %v1924_v50 = vrot.slane %v1923_v22, 4  ;;  %v1994_v51 = vmul.f32 128.0, %v3625_v52  ;;  %1828 = vmatmul.bf16.vlgmr.msra.gmra.mxu3 %v3437_v27  ;;  %1650 = vmatmul.bf16.vlgmr.msra.gmra.mxu1 %v3437_v27  ;;  %v3438_v4 = vld [vmem:[%s6639_s3 + $0x8] sm:$0xff] }
 0x26b   :  { %v1962_v13 = vadd.f32 %v1961_v31, %v6811_v36  ;;  %2174 = vrot.lane.b32.xlu0 %v5341_v34, %s3750_s2  ;;  %vm1998_vm2 = vweird.f32 %v3625_v52  ;;  %1561 = vmatmul.bf16.vlgmr.msra.gmra.mxu0 %v3437_v27  ;;  %v3439_v36 = vld [vmem:[%s6639_s3 + $0x10] sm:$0xff] }
 0x26c   :  { %v1983_v25 = vadd.f32 %v1982_v3, %v6813_v40  ;;  %v1945_v57 = vrot.slane %v1944_v58, 4  ;;  %v1925_v0 = vadd.f32 %v1924_v50, %v1923_v22  ;;  %v1995_v6 = vsub.f32 1.0, %v1994_v51  ;;  %3478 = vset.pattern.permute.xlu2 %v3757_v29  ;;  %3477 = vset.pattern.permute.xlu0 %v3757_v29 }
 0x26d   :  { %v1963_v41 = vadd.f32 %v1962_v13, %v6814_v59  ;;  %2182 = vrot.lane.b32.xlu1 %v5310_v43, %s3751_s9  ;;  %v2096_v13 = vlaneseq }
 0x26e   :  { %v1984_v19 = vadd.f32 %v1983_v25, %v6816_v20  ;;  %v1946_v62 = vadd.f32 %v1945_v57, %v1944_v58  ;;  %v1926_v32 = vrot.slane %v1925_v0, 2  ;;  %v1996_v56 = vmul.f32 %v3625_v52, %v1995_v6 }
 0x26f   :  { %v1964_v45 = vadd.f32 %v1963_v41, %v6817_v24  ;;  %v5445_v40 = vand.u32 127, %v2096_v13  ;;  %v3758_v25 = vmov 1  }
 0x270   :  { %v1985_v7 = vadd.f32 %v1984_v19, %v6820_v54  ;;  %v1947_v9 = vrot.slane %v1946_v62, 2  ;;  %v1927_v8 = vadd.f32 %v1926_v32, %v1925_v0  ;;  %v1997_v2 = vadd.f32 %v3625_v52, %v1996_v56  ;;  %3480 = vset.pattern.permute.xlu1 %v3758_v25  ;;  %v3441_v54 = vld [vmem:[%s6639_s3 + $0x20] sm:$0xff] }
 0x271   :  { %2186 = vrot.lane.b32.xlu2 %v5341_v34, %s3751_s9  ;;  %v1965_v53 = vadd.f32 %v1964_v45, %v6819_v37  ;;  %vm2111_vm3 = vcmp.lt.s32.totalorder %v5445_v40, 2  ;;  %vm2098_vm4 = vcmp.lt.s32.totalorder %v5445_v40, 3  ;;  %vm2124_vm5 = vcmp.lt.s32.totalorder %v5445_v40, 1 }
 0x272   :  { %v1986_v33 = vadd.f32 %v1985_v7, %v6821_v11  ;;  %v1948_v49 = vadd.f32 %v1947_v9, %v1946_v62  ;;  %v1928_v21 = vrot.slane %v1927_v8, 1  ;;  %v1999_v15 = vsel %vm1998_vm2, %v3625_v52, %v1997_v2  ;;  %v5505_v52 = vld [vmem:[%s6641_s5] sm:$0xff] }
 0x273   :  { %2184 = vrot.lane.b32.xlu0 %v5326_v18, %s3751_s9  ;;  %v1966_v28 = vrot.slane %v1965_v53, 4  ;;  %v3760_v62 = vmov 2   ;;  %vm2137_vm7 = vcmp.lt.s32.totalorder %v5445_v40, 127  ;;  %vm2150_vm10 = vcmp.lt.s32.totalorder %v5445_v40, 126 }
 0x274   :  { %v1987_v17 = vrot.slane %v1986_v33, 4  ;;  %v1949_v44 = vrot.slane %v1948_v49, 1  ;;  %v1929_v5 = vadd.f32 %v1928_v21, %v1927_v8  ;;  %vm2163_vm13 = vcmp.lt.s32.totalorder %v5445_v40, 125 }
 0x275   :  { %2192 = vrot.lane.b32.xlu1 %v5318_v55, %s3753_s0  ;;  %v1967_v60 = vadd.f32 %v1966_v28, %v1965_v53  ;;  %v5495_v53 = vld [vmem:[%s6641_s5 + $0x8] sm:$0xff]  ;;  %vm2495_vm1 = vcmp.lt.s32.totalorder %v5445_v40, 48  ;;  %vm2567_vm2 = vcmp.lt.s32.totalorder %v5445_v40, 32 }
 0x276   :  { %v1988_v63 = vadd.f32 %v1987_v17, %v1986_v33  ;;  %v1950_v35 = vadd.f32 %v1949_v44, %v1948_v49  ;;  %v5382_v61 = vmul.f32 %v1999_v15, %v1929_v5  ;;  %v3759_v33 = vmov 4  }
 0x277   :  { %v1968_v38 = vrot.slane %v1967_v60, 2  ;;  %v3761_v5 = vmov 6  }
 0x278   :  { %v1989_v47 = vrot.slane %v1988_v63, 2  ;;  %v5386_v14 = vmul.f32 %v1999_v15, %v1950_v35  ;;  %v3762_v35 = vmov 3  }
 0x279   :  { %2196 = vrot.lane.b32.xlu2 %v5326_v18, %s3753_s0  ;;  %v1969_v48 = vadd.f32 %v1968_v38, %v1967_v60  ;;  %1744 = vmatmul.bf16.gmra.mxu2 %v3438_v4 }
 0x27a   :  { %v1990_v26 = vadd.f32 %v1989_v47, %v1988_v63  ;;  %1833 = vmatmul.bf16.gmra.mxu3 %v3438_v4  ;;  %1655 = vmatmul.bf16.gmra.mxu1 %v3438_v4  ;;  %v3442_v47 = vld [vmem:[%s6639_s3 + $0x28] sm:$0xff] }
 0x27b   :  { %2194 = vrot.lane.b32.xlu0 %v5310_v43, %s3753_s0  ;;  %v1970_v12 = vrot.slane %v1969_v48, 1  ;;  %1566 = vmatmul.bf16.gmra.mxu0 %v3438_v4 }
 0x27c   :  { %v1991_v10 = vrot.slane %v1990_v26, 1 }
 0x27d   :  { %2198 = vrot.lane.b32.xlu1 %v5341_v34, %s3753_s0  ;;  %v1971_v42 = vadd.f32 %v1970_v12, %v1969_v48 }
 0x27e   :  { %v1992_v31 = vadd.f32 %v1991_v10, %v1990_v26 }
 0x27f   :  { %v5378_v16 = vmul.f32 %v1999_v15, %v1971_v42 }
 0x280   :  { %v5392_v1 = vmul.f32 %v1999_v15, %v1992_v31 }
 0x281   :  { %2206 = vrot.lane.b32.xlu2 %v5310_v43, %s3754_s12 }
 0x283   :  { %2204 = vrot.lane.b32.xlu0 %v5318_v55, %s3754_s12 }
 0x285   :  { %2208 = vrot.lane.b32.xlu1 %v5326_v18, %s3754_s12 }
 0x289   :  { %2092 = vrot.lane.b32.xlu2 %v5378_v16, %s3750_s2  ;;  %1749 = vmatmul.bf16.gmra.mxu2 %v3439_v36 }
 0x28a   :  { %1838 = vmatmul.bf16.gmra.mxu3 %v3439_v36  ;;  %1660 = vmatmul.bf16.gmra.mxu1 %v3439_v36 }
 0x28b   :  { %2088 = vrot.lane.b32.xlu0 %v5382_v61, %s3750_s2  ;;  %1571 = vmatmul.bf16.gmra.mxu0 %v3439_v36 }
 0x28d   :  { %2090 = vrot.lane.b32.xlu1 %v5386_v14, %s3750_s2 }
 0x291   :  { %2103 = vrot.lane.b32.xlu2 %v5382_v61, %s3751_s9 }
 0x293   :  { %2094 = vrot.lane.b32.xlu0 %v5392_v1, %s3750_s2 }
 0x295   :  { %2105 = vrot.lane.b32.xlu1 %v5386_v14, %s3751_s9 }
 0x299   :  { %2109 = vrot.lane.b32.xlu2 %v5392_v1, %s3751_s9  ;;  %1754 = vmatmul.bf16.gmra.mxu2 %v3440_v46 }
 0x29a   :  { %1843 = vmatmul.bf16.gmra.mxu3 %v3440_v46  ;;  %1665 = vmatmul.bf16.gmra.mxu1 %v3440_v46 }
 0x29b   :  { %2107 = vrot.lane.b32.xlu0 %v5378_v16, %s3751_s9  ;;  %1576 = vmatmul.bf16.gmra.mxu0 %v3440_v46  ;;  %s3764_s9 = smov 48  }
 0x29d   :  { %2116 = vrot.lane.b32.xlu1 %v5382_v61, %s3753_s0 }
 0x2a1   :  { %2120 = vrot.lane.b32.xlu2 %v5378_v16, %s3753_s0 }
 0x2a3   :  { %2118 = vrot.lane.b32.xlu0 %v5386_v14, %s3753_s0 }
 0x2a5   :  { %2122 = vrot.lane.b32.xlu1 %v5392_v1, %s3753_s0 }
 0x2a9   :  { %2131 = vrot.lane.b32.xlu2 %v5386_v14, %s3754_s12  ;;  %1759 = vmatmul.bf16.gmra.mxu2 %v3441_v54 }
 0x2aa   :  { %1848 = vmatmul.bf16.gmra.mxu3 %v3441_v54  ;;  %1670 = vmatmul.bf16.gmra.mxu1 %v3441_v54 }
 0x2ab   :  { %2129 = vrot.lane.b32.xlu0 %v5382_v61, %s3754_s12  ;;  %1581 = vmatmul.bf16.gmra.mxu0 %v3441_v54 }
 0x2ad   :  { %2133 = vrot.lane.b32.xlu1 %v5378_v16, %s3754_s12 }
 0x2b1   :  { %2142 = vrot.lane.b32.xlu2 %v5382_v61, %s3755_s17 }
 0x2b3   :  { %2135 = vrot.lane.b32.xlu0 %v5392_v1, %s3754_s12 }
 0x2b5   :  { %2144 = vrot.lane.b32.xlu1 %v5386_v14, %s3755_s17 }
 0x2b9   :  { %2148 = vrot.lane.b32.xlu2 %v5392_v1, %s3755_s17  ;;  %1764 = vmatmul.bf16.gmra.mxu2 %v3442_v47 }
 0x2ba   :  { %1853 = vmatmul.bf16.gmra.mxu3 %v3442_v47  ;;  %1675 = vmatmul.bf16.gmra.mxu1 %v3442_v47 }
 0x2bb   :  { %2146 = vrot.lane.b32.xlu0 %v5378_v16, %s3755_s17  ;;  %v2171_v3 = vpop.permute.xlu2 %2170  ;;  %1586 = vmatmul.bf16.gmra.mxu0 %v3442_v47 }
 0x2bd   :  { %2155 = vrot.lane.b32.xlu1 %v5382_v61, %s3756_s18 }
 0x2c1   :  { %2159 = vrot.lane.b32.xlu2 %v5378_v16, %s3756_s18 }
 0x2c3   :  { %2157 = vrot.lane.b32.xlu0 %v5386_v14, %s3756_s18  ;;  %v2181_v30 = vpop.permute.xlu2 %2180 }
 0x2c5   :  { %2161 = vrot.lane.b32.xlu1 %v5392_v1, %s3756_s18 }
 0x2c9   :  { %2216 = vrot.lane.b32.xlu2 %v5318_v55, %s3755_s17 }
 0x2cb   :  { %2210 = vrot.lane.b32.xlu0 %v5341_v34, %s3754_s12  ;;  %v2187_v59 = vpop.permute.xlu2 %2186 }
 0x2cc   :  { %v5454_v41 = vsel %vm2111_vm3, %v2187_v59, %v2181_v30 }
 0x2cd   :  { %2218 = vrot.lane.b32.xlu1 %v5310_v43, %s3755_s17 }
 0x2d1   :  { %2222 = vrot.lane.b32.xlu2 %v5341_v34, %s3755_s17 }
 0x2d3   :  { %2220 = vrot.lane.b32.xlu0 %v5326_v18, %s3755_s17  ;;  %v2197_v39 = vpop.permute.xlu2 %2196 }
 0x2d5   :  { %v2169_v22 = vpop.permute.xlu0 %2168  ;;  %2228 = vrot.lane.b32.xlu1 %v5318_v55, %s3756_s18 }
 0x2d6   :  { %v5470_v20 = vsel %vm2098_vm4, %v2169_v22, %v2171_v3 }
 0x2d7   :  { %v2173_v19 = vpop.permute.xlu1 %2172 }
 0x2d8   :  { %v5474_v24 = vsel %vm2098_vm4, %v2171_v3, %v2173_v19 }
 0x2d9   :  { %2232 = vrot.lane.b32.xlu2 %v5326_v18, %s3756_s18 }
 0x2db   :  { %2230 = vrot.lane.b32.xlu0 %v5310_v43, %s3756_s18  ;;  %v5480_v45 = vpop.permute.xlu2 %2206 }
 0x2dd   :  { %v2175_v23 = vpop.permute.xlu0 %2174  ;;  %2234 = vrot.lane.b32.xlu1 %v5341_v34, %s3756_s18  ;;  %s3766_s18 = smov 112  }
 0x2de   :  { %v5486_v58 = vsel %vm2098_vm4, %v2173_v19, %v2175_v23  ;;  %v5490_v37 = vsel %vm2098_vm4, %v2175_v23, %v2169_v22 }
 0x2df   :  { %v2183_v50 = vpop.permute.xlu1 %2182 }
 0x2e0   :  { %v2190_v7 = vsel %vm2111_vm3, %v2181_v30, %v2183_v50 }
 0x2e1   :  { %2448 = vperm.xlu2 %3478, %v5495_v53  }
 0x2e3   :  { %2443 = vperm.xlu0 %3477, %v5505_v52   ;;  %v5509_v28 = vpop.permute.xlu2 %2092 }
 0x2e5   :  { %v2185_v57 = vpop.permute.xlu0 %2184  ;;  %2520 = vperm.xlu1 %3480, %v5495_v53  }
 0x2e6   :  { %v2188_v60 = vsel %vm2111_vm3, %v2185_v57, %v2187_v59  ;;  %v2189_v0 = vsel %vm2111_vm3, %v2183_v50, %v2185_v57 }
 0x2e7   :  { %v2193_v11 = vpop.permute.xlu1 %2192 }
 0x2e9   :  { %3479 = vset.pattern.permute.xlu2 %v3758_v25 }
 0x2ea   :  { %2516 = vperm.xlu2 %3479, %v5505_v52  }
 0x2eb   :  { %3485 = vset.pattern.permute.xlu0 %v3759_v33  ;;  %v5519_v51 = vpop.permute.xlu2 %2103 }
 0x2ec   :  { %2719 = vperm.xlu0 %3485, %v5505_v52  }
 0x2ed   :  { %v2195_v38 = vpop.permute.xlu0 %2194  ;;  %3482 = vset.pattern.permute.xlu1 %v3760_v62 }
 0x2ee   :  { %v2201_v32 = vsel %vm2124_vm5, %v2195_v38, %v2197_v39  ;;  %v2202_v17 = vsel %vm2124_vm5, %v2193_v11, %v2195_v38  ;;  %2592 = vperm.xlu1 %3482, %v5495_v53  }
 0x2ef   :  { %v2317_v6 = vrot.slane %v2202_v17, 7  ;;  %v2318_v48 = vrot.slane %v2201_v32, 7  ;;  %v2199_v9 = vpop.permute.xlu1 %2198 }
 0x2f0   :  { %v2200_v8 = vsel %vm2124_vm5, %v2197_v39, %v2199_v9  ;;  %v2203_v63 = vsel %vm2124_vm5, %v2199_v9, %v2193_v11  ;;  %v3443_v39 = vld [vmem:[%s6639_s3 + $0x30] sm:$0xff] }
 0x2f1   :  { %v2396_v56 = vsel %vm2360_vm6, %v2190_v7, %v2317_v6  ;;  %v5533_v12 = vsel %vm2360_vm6, %v2189_v0, %v2318_v48  ;;  %v2316_v49 = vrot.slane %v2203_v63, 7  ;;  %v2319_v21 = vrot.slane %v2200_v8, 7  ;;  %1769 = vmatmul.bf16.gmra.mxu2 %v3443_v39  ;;  %1858 = vmatmul.bf16.gmra.mxu3 %v3443_v39 }
 0x2f2   :  { %3481 = vset.pattern.permute.xlu2 %v3760_v62  ;;  %v2400_v13 = vsel %vm2365_vm8, %v2396_v56, %v5310_v43  ;;  %1591 = vmatmul.bf16.gmra.mxu0 %v3443_v39  ;;  %v3445_v56 = vld [vmem:[%s6639_s3 + $0x40] sm:$0xff] }
 0x2f3   :  { %v2395_v2 = vsel %vm2360_vm6, %v5454_v41, %v2316_v49  ;;  %v5541_v42 = vsel %vm2360_vm6, %v2188_v60, %v2319_v21  ;;  %2588 = vperm.xlu2 %3481, %v5505_v52   ;;  %v5545_v44 = vpop.permute.xlu2 %2109  ;;  %v3763_v41 = vmov 5   ;;  %1680 = vmatmul.bf16.gmra.mxu1 %v3443_v39 }
 0x2f4   :  { %3489 = vset.pattern.permute.xlu0 %v3761_v5  ;;  %v2399_v27 = vsel %vm2365_vm8, %v2395_v2, %v5318_v55  ;;  %v2115_v22 = vsel %vm2111_vm3, %v5545_v44, %v5519_v51 }
 0x2f5   :  { %v5548_v26 = vpop.permute.xlu0 %2204  ;;  %2863 = vperm.xlu0 %3489, %v5505_v52  }
 0x2f6   :  { %v2214_v15 = vsel %vm2137_vm7, %v5548_v26, %v5480_v45  ;;  %3484 = vset.pattern.permute.xlu1 %v3762_v35 }
 0x2f7   :  { %v2328_v10 = vrot.slane %v2214_v15, 5  ;;  %v5555_v31 = vpop.permute.xlu1 %2208  ;;  %2664 = vperm.xlu1 %3484, %v5495_v53  }
 0x2f8   :  { %v2213_v4 = vsel %vm2137_vm7, %v5480_v45, %v5555_v31  ;;  %v2244_v45 = vrot.slane %v2115_v22, 7 }
 0x2f9   :  { %v5565_v3 = vsel %vm2370_vm9, %v2399_v27, %v2328_v10  ;;  %v2329_v36 = vrot.slane %v2213_v4, 5  ;;  %v2305_v27 = vrot.slane %v5470_v20, 1  ;;  %v2304_v4 = vrot.slane %v5490_v37, 1 }
 0x2fb   :  { %v5570_v30 = vsel %vm2370_vm9, %v2400_v13, %v2329_v36  ;;  %3483 = vset.pattern.permute.xlu2 %v3762_v35  ;;  %v5572_v25 = vpop.permute.xlu2 %2120  ;;  %v2307_v36 = vrot.slane %v5486_v58, 1 }
 0x2fc   :  { %2660 = vperm.xlu2 %3483, %v5505_v52  }
 0x2fd   :  { %v2089_v55 = vpop.permute.xlu0 %2088  ;;  %3492 = vset.pattern.permute.xlu0 %v3757_v29 }
 0x2ff   :  { %v2091_v59 = vpop.permute.xlu1 %2090  ;;  %3488 = vset.pattern.permute.xlu1 %v3763_v41 }
 0x300   :  { %v2100_v46 = vsel %vm2098_vm4, %v2091_v59, %v5509_v28  ;;  %v2101_v43 = vsel %vm2098_vm4, %v2089_v55, %v2091_v59  ;;  %2795 = vperm.xlu1 %3488, %v5495_v53  }
 0x303   :  { %v5589_v19 = vpop.permute.xlu2 %2131 }
 0x304   :  { %3486 = vset.pattern.permute.xlu2 %v3759_v33 }
 0x305   :  { %v2095_v23 = vpop.permute.xlu0 %2094  ;;  %2723 = vperm.xlu2 %3486, %v5495_v53  }
 0x306   :  { %v2099_v50 = vsel %vm2098_vm4, %v5509_v28, %v2095_v23  ;;  %v2102_v54 = vsel %vm2098_vm4, %v2095_v23, %v2089_v55  ;;  %vm2770_vm4 = vcmp.lt.s32.totalorder %v5445_v40, 112 }
 0x307   :  { %v5599_v7 = vsel %vm2360_vm6, %v2102_v54, %v2244_v45  ;;  %v2106_v57 = vpop.permute.xlu1 %2105 }
 0x308   :  { %v2114_v60 = vsel %vm2111_vm3, %v5519_v51, %v2106_v57  ;;  %3491 = vset.pattern.permute.xlu1 %v3757_v29  ;;  %v3444_v51 = vld [vmem:[%s6639_s3 + $0x38] sm:$0xff] }
 0x309   :  { %v2245_v0 = vrot.slane %v2114_v60, 7  ;;  %1774 = vmatmul.bf16.gmra.mxu2 %v3444_v51  ;;  %1863 = vmatmul.bf16.gmra.mxu3 %v3444_v51 }
 0x30a   :  { %1596 = vmatmul.bf16.gmra.mxu0 %v3444_v51  ;;  %1685 = vmatmul.bf16.gmra.mxu1 %v3444_v51 }
 0x30b   :  { %v5606_v11 = vsel %vm2360_vm6, %v2101_v43, %v2245_v0  ;;  %v2143_v33 = vpop.permute.xlu2 %2142 }
 0x30d   :  { %v2108_v28 = vpop.permute.xlu0 %2107  ;;  %3487 = vset.pattern.permute.xlu2 %v3763_v41 }
 0x30e   :  { %v2113_v38 = vsel %vm2111_vm3, %v2106_v57, %v2108_v28  ;;  %2791 = vperm.xlu2 %3487, %v5505_v52  }
 0x30f   :  { %v2246_v62 = vrot.slane %v2113_v38, 7  ;;  %v2117_v32 = vpop.permute.xlu1 %2116 }
 0x311   :  { %v2363_v17 = vsel %vm2360_vm6, %v2100_v46, %v2246_v62 }
 0x313   :  { %v2149_v6 = vpop.permute.xlu2 %2148 }
 0x314   :  { %v2154_v45 = vsel %vm2150_vm10, %v2149_v6, %v2143_v33 }
 0x315   :  { %v2119_v48 = vpop.permute.xlu0 %2118 }
 0x316   :  { %3490 = vset.pattern.permute.xlu2 %v3761_v5  ;;  %v2126_v5 = vsel %vm2124_vm5, %v2119_v48, %v5572_v25  ;;  %v2127_v15 = vsel %vm2124_vm5, %v2117_v32, %v2119_v48 }
 0x317   :  { %v2123_v9 = vpop.permute.xlu1 %2122  ;;  %2867 = vperm.xlu2 %3490, %v5495_v53   ;;  %v2112_v53 = vsel %vm2111_vm3, %v2108_v28, %v5545_v44  ;;  %v2306_v44 = vrot.slane %v5474_v24, 1  ;;  %v2257_v59 = vrot.slane %v2127_v15, 6  ;;  %v2258_v41 = vrot.slane %v2126_v5, 6  ;;  %v5727_v24 = vpop.f32.mrf.mxu2 }
 0x318   :  { %v2128_v2 = vsel %vm2124_vm5, %v2123_v9, %v2117_v32  ;;  %v2125_v35 = vsel %vm2124_vm5, %v5572_v25, %v2123_v9  ;;  %6823 = vst [vmem:[#allocation8_spill] sm:$0xff] %v5727_v24  ;;  %vm2639_vm3 = vcmp.lt.s32.totalorder %v5445_v40, 16  ;;  %vm2842_vm5 = vcmp.lt.s32.totalorder %v5445_v40, 96 }
 0x319   :  { %1779 = vmatmul.bf16.gmra.mxu2 %v3445_v56  ;;  %1868 = vmatmul.bf16.gmra.mxu3 %v3445_v56  ;;  %v2256_v13 = vrot.slane %v2128_v2, 6  ;;  %v2259_v46 = vrot.slane %v2125_v35, 6  ;;  %v2367_v0 = vsel %vm2365_vm8, %v5606_v11, %v2257_v59  ;;  %v2368_v28 = vsel %vm2365_vm8, %v2363_v17, %v2258_v41  ;;  %v3446_v11 = vld [vmem:[%s6639_s3 + $0x48] sm:$0xff] }
 0x31a   :  { %1601 = vmatmul.bf16.gmra.mxu0 %v3445_v56  ;;  %1690 = vmatmul.bf16.gmra.mxu1 %v3445_v56  ;;  %v2372_v56 = vsel %vm2370_vm9, %v2367_v0, %v5386_v14  ;;  %v5725_v0 = vpop.f32.mrf.mxu1 }
 0x31b   :  { %v5617_v52 = vpop.permute.xlu2 %2159  ;;  %6822 = vst [vmem:[#allocation12_spill] sm:$0xff] %v5725_v0 }
 0x31d   :  { %v2130_v8 = vpop.permute.xlu0 %2129 }
 0x31e   :  { %v2140_v25 = vsel %vm2137_vm7, %v2130_v8, %v5589_v19 }
 0x31f   :  { %v2134_v63 = vpop.permute.xlu1 %2133  ;;  %3493 = vset.pattern.permute.xlu2 %v3757_v29  ;;  %v2247_v29 = vrot.slane %v2112_v53, 7  ;;  %v2268_v57 = vrot.slane %v2140_v25, 4 }
 0x320   :  { %v2139_v39 = vsel %vm2137_vm7, %v5589_v19, %v2134_v63 }
 0x321   :  { %v2364_v43 = vsel %vm2360_vm6, %v2099_v50, %v2247_v29  ;;  %v2366_v50 = vsel %vm2365_vm8, %v5599_v7, %v2256_v13  ;;  %v2269_v62 = vrot.slane %v2139_v39, 4 }
 0x322   :  { %v2369_v38 = vsel %vm2365_vm8, %v2364_v43, %v2259_v46  ;;  %v2371_v9 = vsel %vm2370_vm9, %v2366_v50, %v5382_v61 }
 0x323   :  { %v5623_v49 = vpop.permute.xlu2 %2216  ;;  %v2376_v17 = vsel %vm2375_vm11, %v2371_v9, %v2268_v57  ;;  %v2377_v61 = vsel %vm2375_vm11, %v2372_v56, %v2269_v62 }
 0x325   :  { %v2136_v21 = vpop.permute.xlu0 %2135 }
 0x326   :  { %v2138_v23 = vsel %vm2137_vm7, %v2134_v63, %v2136_v21  ;;  %v2141_v54 = vsel %vm2137_vm7, %v2136_v21, %v2130_v8  ;;  %v2374_v21 = vsel %vm2370_vm9, %v2369_v38, %v5392_v1 }
 0x327   :  { %v2145_v47 = vpop.permute.xlu1 %2144  ;;  %v2270_v32 = vrot.slane %v2138_v23, 4  ;;  %v2271_v51 = vrot.slane %v2141_v54, 4 }
 0x328   :  { %v2153_v19 = vsel %vm2150_vm10, %v2143_v33, %v2145_v47  ;;  %v2283_v33 = vrot.slane %v2154_v45, 3 }
 0x329   :  { %v2280_v8 = vrot.slane %v2153_v19, 3  ;;  %1784 = vmatmul.bf16.gmra.mxu2 %v3446_v11  ;;  %1873 = vmatmul.bf16.gmra.mxu3 %v3446_v11 }
 0x32a   :  { %1606 = vmatmul.bf16.gmra.mxu0 %v3446_v11  ;;  %1695 = vmatmul.bf16.gmra.mxu1 %v3446_v11  ;;  %v2402_v11 = vsel %vm2365_vm8, %v5541_v42, %v5341_v34 }
 0x32b   :  { %v5638_v10 = vpop.permute.xlu2 %2222  ;;  %v2381_v35 = vsel %vm2380_vm12, %v2376_v17, %v2280_v8 }
 0x32d   :  { %v2147_v55 = vpop.permute.xlu0 %2146 }
 0x32e   :  { %v2152_v60 = vsel %vm2150_vm10, %v2145_v47, %v2147_v55  ;;  %v2151_v7 = vsel %vm2150_vm10, %v2147_v55, %v2149_v6  ;;  %v2373_v6 = vsel %vm2370_vm9, %v2368_v28, %v5378_v16  ;;  %v2379_v16 = vsel %vm2375_vm11, %v2374_v21, %v2271_v51  ;;  %v5735_v28 = vpop.f32.mrf.mxu3  ;;  %v2425_v51 = vld [vmem:[%s6642_s6 + $0x10] sm:$0xff] }
 0x32f   :  { %v2156_v22 = vpop.permute.xlu1 %2155  ;;  %v2281_v63 = vrot.slane %v2152_v60, 3  ;;  %v2282_v53 = vrot.slane %v2151_v7, 3  ;;  %v2378_v14 = vsel %vm2375_vm11, %v2373_v6, %v2270_v32  ;;  %6824 = vst [vmem:[#allocation9_spill] sm:$0xff] %v5735_v28  ;;  %v2227_v32 = vsel %vm2150_vm10, %v5638_v10, %v5623_v49  ;;  %v5755_v7 = vpop.f32.mrf.mxu0 }
 0x330   :  { %6825 = vst [vmem:[#allocation13_spill] sm:$0xff] %v5755_v7  ;;  %v2343_v6 = vrot.slane %v2227_v32, 4 }
 0x331   :  { %v2382_v13 = vsel %vm2380_vm12, %v2377_v61, %v2281_v63  ;;  %v2383_v39 = vsel %vm2380_vm12, %v2378_v14, %v2282_v53  ;;  %v2401_v63 = vsel %vm2365_vm8, %v5533_v12, %v5326_v18 }
 0x333   :  { %v5671_v48 = vpop.permute.xlu2 %2232 }
 0x335   :  { %v2158_v47 = vpop.permute.xlu0 %2157 }
 0x336   :  { %v2165_v2 = vsel %vm2163_vm13, %v2158_v47, %v5617_v52  ;;  %v2166_v29 = vsel %vm2163_vm13, %v2156_v22, %v2158_v47 }
 0x337   :  { %v2292_v5 = vrot.slane %v2166_v29, 2  ;;  %v2293_v15 = vrot.slane %v2165_v2, 2  ;;  %v2162_v1 = vpop.permute.xlu1 %2161 }
 0x338   :  { %v2164_v55 = vsel %vm2163_vm13, %v5617_v52, %v2162_v1  ;;  %v2167_v59 = vsel %vm2163_vm13, %v2162_v1, %v2156_v22  ;;  %v2384_v52 = vsel %vm2380_vm12, %v2379_v16, %v2283_v33  ;;  %v2426_v33 = vld [vmem:[%s6642_s6 + $0x18] sm:$0xff] }
 0x339   :  { %v2386_v41 = vsel %vm2385_vm14, %v2381_v35, %v2292_v5  ;;  %v2387_v46 = vsel %vm2385_vm14, %v2382_v13, %v2293_v15  ;;  %v2294_v25 = vrot.slane %v2164_v55, 2  ;;  %v2295_v43 = vrot.slane %v2167_v59, 2  ;;  %v5795_v55 = vpop.f32.mrf.mxu1  ;;  %v5797_v59 = vpop.f32.mrf.mxu2 }
 0x33a   :  { %v2391_v45 = vsel %vm2390_vm15, %v2386_v41, %v2304_v4  ;;  %v2392_v23 = vsel %vm2390_vm15, %v2387_v46, %v2305_v27  ;;  %v3447_v27 = vld [vmem:[%s6639_s3 + $0x50] sm:$0xff]  ;;  %v2427_v41 = vld [vmem:[%s6642_s6 + $0x20] sm:$0xff] }
 0x33b   :  { %v2388_v22 = vsel %vm2385_vm14, %v2383_v39, %v2294_v25  ;;  %v2389_v54 = vsel %vm2385_vm14, %v2384_v52, %v2295_v43  ;;  %v5712_v50 = vpop.permute.xlu2 %2448  ;;  %1789 = vmatmul.bf16.gmra.mxu2 %v3447_v27  ;;  %1878 = vmatmul.bf16.gmra.mxu3 %v3447_v27  ;;  %v5808_v39 = vpop.f32.mrf.mxu3 }
 0x33c   :  { %v2393_v57 = vsel %vm2390_vm15, %v2388_v22, %v2306_v44  ;;  %v2394_v37 = vsel %vm2390_vm15, %v2389_v54, %v2307_v36  ;;  %1700 = vmatmul.bf16.gmra.mxu1 %v3447_v27  ;;  %1611 = vmatmul.bf16.gmra.mxu0 %v3447_v27  ;;  %v5823_v27 = vpop.f32.mrf.mxu0 }
 0x33d   :  { %v2211_v4 = vpop.permute.xlu0 %2210  ;;  %v5773_v61 = vmul.f32 %v2425_v51, %v2393_v57  ;;  %v2429_v57 = vld [vmem:[%s6642_s6 + $0x30] sm:$0xff]  ;;  %6826 = vst [vmem:[#allocation10_spill] sm:$0xff] %v5823_v27 }
 0x33e   :  { %v2212_v58 = vsel %vm2137_vm7, %v5555_v31, %v2211_v4  ;;  %v2215_v36 = vsel %vm2137_vm7, %v2211_v4, %v5548_v26  ;;  %v2423_v31 = vld [vmem:[%s6642_s6] sm:$0xff]  ;;  %v2424_v26 = vld [vmem:[%s6642_s6 + $0x8] sm:$0xff]  ;;  %vm2914_vm7 = vcmp.lt.s32.totalorder %v5445_v40, 80 }
 0x33f   :  { %v2219_v20 = vpop.permute.xlu1 %2218  ;;  %v2330_v9 = vrot.slane %v2212_v58, 5  ;;  %v5769_v21 = vmul.f32 %v2423_v31, %v2391_v45  ;;  %v5771_v47 = vmul.f32 %v2424_v26, %v2392_v23 }
 0x340   :  { %v2226_v38 = vsel %vm2150_vm10, %v5623_v49, %v2219_v20  ;;  %v2331_v49 = vrot.slane %v2215_v36, 5 }
 0x341   :  { %v2340_v17 = vrot.slane %v2226_v38, 4  ;;  %v2405_v12 = vsel %vm2370_vm9, %v2401_v63, %v2330_v9 }
 0x342   :  { %v2406_v42 = vsel %vm2370_vm9, %v2402_v11, %v2331_v49 }
 0x343   :  { %v2407_v15 = vsel %vm2375_vm11, %v5565_v3, %v2340_v17  ;;  %v2428_v3 = vld [vmem:[%s6642_s6 + $0x28] sm:$0xff]  ;;  %v2410_v52 = vsel %vm2375_vm11, %v2406_v42, %v2343_v6 }
 0x344   :  { %v5723_v19 = vpop.permute.xlu2 %2516 }
 0x345   :  { %v2221_v60 = vpop.permute.xlu0 %2220  ;;  %v2523_v38 = vmul.f32 %v5723_v19, %v5769_v21 }
 0x346   :  { %v2225_v62 = vsel %vm2150_vm10, %v2219_v20, %v2221_v60  ;;  %v2224_v8 = vsel %vm2150_vm10, %v2221_v60, %v5638_v10  ;;  %v5777_v10 = vmul.f32 %v2426_v33, %v2394_v37  ;;  %v2430_v37 = vld [vmem:[%s6642_s6 + $0x38] sm:$0xff] }
 0x347   :  { %v2229_v44 = vpop.permute.xlu1 %2228  ;;  %v2341_v56 = vrot.slane %v2225_v62, 4  ;;  %v2342_v29 = vrot.slane %v2224_v8, 4  ;;  %v2524_v62 = vmul.f32 %v5723_v19, %v5771_v47 }
 0x349   :  { %v2408_v1 = vsel %vm2375_vm11, %v5570_v30, %v2341_v56  ;;  %v2409_v43 = vsel %vm2375_vm11, %v2405_v12, %v2342_v29 }
 0x34d   :  { %v2231_v53 = vpop.permute.xlu0 %2230  ;;  %v5775_v2 = vpop.permute.xlu2 %2588 }
 0x34e   :  { %v2237_v18 = vsel %vm2163_vm13, %v2231_v53, %v5671_v48  ;;  %v2238_v34 = vsel %vm2163_vm13, %v2229_v44, %v2231_v53 }
 0x34f   :  { %v2352_v14 = vrot.slane %v2238_v34, 3  ;;  %v2353_v16 = vrot.slane %v2237_v18, 3  ;;  %v2235_v5 = vpop.permute.xlu1 %2234 }
 0x350   :  { %v2236_v35 = vsel %vm2163_vm13, %v5671_v48, %v2235_v5  ;;  %v2239_v13 = vsel %vm2163_vm13, %v2235_v5, %v2229_v44 }
 0x351   :  { %v2411_v30 = vsel %vm2380_vm12, %v2407_v15, %v2352_v14  ;;  %v2412_v46 = vsel %vm2380_vm12, %v2408_v1, %v2353_v16  ;;  %v2354_v48 = vrot.slane %v2236_v35, 3  ;;  %v2355_v25 = vrot.slane %v2239_v13, 3 }
 0x352   :  { %v2415_v45 = vsel %vm2385_vm14, %v2411_v30, 0.0  ;;  %v2416_v23 = vsel %vm2385_vm14, %v2412_v46, 0.0  ;;  %v2525_v35 = vmul.f32 %v5723_v19, %v5773_v61  ;;  %v2526_v13 = vmul.f32 %v5723_v19, %v5777_v10  ;;  %v3448_v19 = vld [vmem:[%s6639_s3 + $0x58] sm:$0xff] }
 0x353   :  { %v2419_v22 = vsel %vm2390_vm15, %v2415_v45, 0.0  ;;  %v2420_v54 = vsel %vm2390_vm15, %v2416_v23, 0.0  ;;  %v2413_v4 = vsel %vm2380_vm12, %v2409_v43, %v2354_v48  ;;  %v2414_v20 = vsel %vm2380_vm12, %v2410_v52, %v2355_v25  ;;  %v5879_v48 = vpop.f32.mrf.mxu3  ;;  %1794 = vmatmul.bf16.gmra.mxu2 %v3448_v19  ;;  %1883 = vmatmul.bf16.gmra.mxu3 %v3448_v19 }
 0x354   :  { %v5825_v60 = vmul.f32 %v2427_v41, %v2419_v22  ;;  %v5827_v44 = vmul.f32 %v2428_v3, %v2420_v54  ;;  %v2417_v58 = vsel %vm2385_vm14, %v2413_v4, 0.0  ;;  %v2418_v36 = vsel %vm2385_vm14, %v2414_v20, 0.0  ;;  %v5873_v41 = vpop.f32.mrf.mxu1  ;;  %v5875_v3 = vpop.f32.mrf.mxu2  ;;  %1616 = vmatmul.bf16.gmra.mxu0 %v3448_v19  ;;  %1705 = vmatmul.bf16.gmra.mxu1 %v3448_v19 }
 0x355   :  { %v2421_v32 = vsel %vm2390_vm15, %v2417_v58, 0.0  ;;  %v2422_v31 = vsel %vm2390_vm15, %v2418_v36, 0.0  ;;  %v2444_v26 = vpop.permute.xlu0 %2443  ;;  %v2595_v54 = vmul.f32 %v5775_v2, %v5769_v21  ;;  %v2596_v4 = vmul.f32 %v5775_v2, %v5771_v47 }
 0x356   :  { %v5837_v51 = vmul.f32 %v2429_v57, %v2421_v32  ;;  %v5839_v33 = vmul.f32 %v2430_v37, %v2422_v31  ;;  %v2455_v9 = vmul.f32 %v5712_v50, %v5825_v60  ;;  %v2456_v49 = vmul.f32 %v5712_v50, %v5827_v44  ;;  %v2661_v8 = vpop.permute.xlu2 %2660  ;;  %v5890_v57 = vpop.f32.mrf.mxu0 }
 0x357   :  { %v2451_v63 = vmul.f32 %v2444_v26, %v5769_v21  ;;  %v2452_v11 = vmul.f32 %v2444_v26, %v5771_v47  ;;  %v2453_v17 = vmul.f32 %v2444_v26, %v5773_v61  ;;  %v2454_v56 = vmul.f32 %v2444_v26, %v5777_v10  ;;  %v2521_v6 = vpop.permute.xlu1 %2520 }
 0x358   :  { %v2457_v53 = vmul.f32 %v5712_v50, %v5837_v51  ;;  %v2458_v29 = vmul.f32 %v5712_v50, %v5839_v33  ;;  %v5854_v18 = vmul.f32 %v2661_v8, %v5769_v21  ;;  %v5857_v34 = vmul.f32 %v2661_v8, %v5771_v47 }
 0x359   :  { %v2459_v12 = vadd.f32 %v2455_v9, %v2451_v63  ;;  %v2466_v42 = vadd.f32 %v2456_v49, %v2452_v11  ;;  %v5860_v14 = vmul.f32 %v2661_v8, %v5773_v61  ;;  %v5863_v16 = vmul.f32 %v2661_v8, %v5777_v10 }
 0x35a   :  { %v5865_v5 = vadd.f32 %v2457_v53, %v2453_v17  ;;  %v2480_v15 = vadd.f32 %v2458_v29, %v2454_v56  ;;  %v2527_v1 = vmul.f32 %v2521_v6, %v5825_v60  ;;  %v2528_v50 = vmul.f32 %v2521_v6, %v5827_v44 }
 0x35b   :  { %v2529_v30 = vmul.f32 %v2521_v6, %v5837_v51  ;;  %v2530_v46 = vmul.f32 %v2521_v6, %v5839_v33  ;;  %v2460_v25 = vrot.slane %v2459_v12, 4  ;;  %v2467_v43 = vrot.slane %v2466_v42, 4 }
 0x35c   :  { %v2531_v45 = vadd.f32 %v2527_v1, %v2523_v38  ;;  %v2538_v23 = vadd.f32 %v2528_v50, %v2524_v62  ;;  %v2597_v20 = vmul.f32 %v5775_v2, %v5773_v61  ;;  %v2598_v58 = vmul.f32 %v5775_v2, %v5777_v10 }
 0x35d   :  { %v5881_v52 = vadd.f32 %v2529_v30, %v2525_v35  ;;  %v5883_v22 = vadd.f32 %v2530_v46, %v2526_v13  ;;  %v2481_v36 = vrot.slane %v2480_v15, 4  ;;  %v2461_v62 = vadd.f32 %v2460_v25, %v2459_v12  ;;  %v5922_v46 = vpop.f32.mrf.mxu1  ;;  %v5924_v25 = vpop.f32.mrf.mxu2 }
 0x35e   :  { %v2720_v37 = vpop.permute.xlu0 %2719  ;;  %v2468_v32 = vadd.f32 %v2467_v43, %v2466_v42  ;;  %v2539_v30 = vrot.slane %v2538_v23, 4  ;;  %6827 = vst [vmem:[#allocation11_spill] sm:$0xff] %v5922_v46 }
 0x35f   :  { %v2724_v38 = vpop.permute.xlu2 %2723  ;;  %v2726_v31 = vmul.f32 %v2720_v37, %v5769_v21  ;;  %v2727_v26 = vmul.f32 %v2720_v37, %v5771_v47  ;;  %v2728_v49 = vmul.f32 %v2720_v37, %v5773_v61  ;;  %v2729_v8 = vmul.f32 %v2720_v37, %v5777_v10  ;;  %6828 = vst [vmem:[#allocation30_spill] sm:$0xff] %v5924_v25  ;;  %v5930_v37 = vpop.f32.mrf.mxu3 }
 0x360   :  { %v2593_v9 = vpop.permute.xlu1 %2592  ;;  %v2730_v63 = vmul.f32 %v2724_v38, %v5825_v60  ;;  %v2731_v2 = vmul.f32 %v2724_v38, %v5827_v44  ;;  %v2732_v11 = vmul.f32 %v2724_v38, %v5837_v51  ;;  %v2733_v17 = vmul.f32 %v2724_v38, %v5839_v33  ;;  %6829 = vst [vmem:[#allocation36_spill] sm:$0xff] %v5930_v37 }
 0x361   :  { %v2599_v56 = vmul.f32 %v2593_v9, %v5825_v60  ;;  %v2600_v6 = vmul.f32 %v2593_v9, %v5827_v44  ;;  %v2601_v12 = vmul.f32 %v2593_v9, %v5837_v51  ;;  %v2602_v42 = vmul.f32 %v2593_v9, %v5839_v33  ;;  %v5933_v9 = vpop.f32.mrf.mxu0 }
 0x362   :  { %v5908_v53 = vadd.f32 %v2730_v63, %v2726_v31  ;;  %v5910_v29 = vadd.f32 %v2731_v2, %v2727_v26  ;;  %v5914_v1 = vadd.f32 %v2732_v11, %v2728_v49  ;;  %v5916_v50 = vadd.f32 %v2733_v17, %v2729_v8  ;;  %6830 = vst [vmem:[#allocation34_spill] sm:$0xff] %v5933_v9 }
 0x363   :  { %v5918_v35 = vadd.f32 %v2599_v56, %v2595_v54  ;;  %v5920_v13 = vadd.f32 %v2600_v6, %v2596_v4  ;;  %v5926_v43 = vadd.f32 %v2601_v12, %v2597_v20  ;;  %v5928_v19 = vadd.f32 %v2602_v42, %v2598_v58 }
 0x364   :  { %v2474_v38 = vrot.slane %v5865_v5, 4  ;;  %v2482_v31 = vadd.f32 %v2481_v36, %v2480_v15  ;;  %v2532_v26 = vrot.slane %v2531_v45, 4  ;;  %v2469_v54 = vrot.slane %v2468_v32, 2 }
 0x365   :  { %v2462_v4 = vrot.slane %v2461_v62, 2  ;;  %v2540_v8 = vadd.f32 %v2539_v30, %v2538_v23 }
 0x366   :  { %v2470_v2 = vadd.f32 %v2469_v54, %v2468_v32  ;;  %v2475_v20 = vadd.f32 %v2474_v38, %v5865_v5  ;;  %v2533_v58 = vadd.f32 %v2532_v26, %v2531_v45  ;;  %v2483_v17 = vrot.slane %v2482_v31, 2  ;;  %v5948_v26 = vpop.f32.mrf.mxu1  ;;  %v5950_v54 = vpop.f32.mrf.mxu2 }
 0x367   :  { %v2463_v11 = vadd.f32 %v2462_v4, %v2461_v62  ;;  %v2541_v32 = vrot.slane %v2540_v8, 2  ;;  %v2546_v38 = vrot.slane %v5881_v52, 4 }
 0x368   :  { %v5935_v49 = vpop.permute.xlu2 %2791  ;;  %v2471_v6 = vrot.slane %v2470_v2, 1  ;;  %v2484_v42 = vadd.f32 %v2483_v17, %v2482_v31  ;;  %v5953_v17 = vpop.f32.mrf.mxu3 }
 0x369   :  { %v2665_v63 = vpop.permute.xlu1 %2664  ;;  %v2464_v12 = vrot.slane %v2463_v11, 1 }
 0x36a   :  { %v2671_v56 = vmul.f32 %v2665_v63, %v5825_v60  ;;  %v2672_v15 = vmul.f32 %v2665_v63, %v5827_v44  ;;  %v2673_v36 = vmul.f32 %v2665_v63, %v5837_v51  ;;  %v2674_v37 = vmul.f32 %v2665_v63, %v5839_v33 }
 0x36b   :  { %v2472_v62 = vadd.f32 %v2471_v6, %v2470_v2  ;;  %v2465_v30 = vadd.f32 %v2464_v12, %v2463_v11  ;;  %v2485_v4 = vrot.slane %v2484_v42, 1  ;;  %v2542_v63 = vadd.f32 %v2541_v32, %v2540_v8  ;;  %v2864_v2 = vpop.permute.xlu0 %2863  ;;  %v5960_v12 = vpop.f32.mrf.mxu0 }
 0x36c   :  { %v5943_v23 = vadd.f32 %v2671_v56, %v5854_v18  ;;  %v2682_v5 = vadd.f32 %v2672_v15, %v5857_v34  ;;  %v2689_v45 = vadd.f32 %v2673_v36, %v5860_v14  ;;  %v2696_v31 = vadd.f32 %v2674_v37, %v5863_v16  ;;  %v3449_v14 = vld [vmem:[%s6639_s3 + $0x60] sm:$0xff] }
 0x36d   :  { %2489 = vrot.lane.b32.xlu2 %v2472_v62, %s3764_s9  ;;  %2487 = vrot.lane.b32.xlu1 %v2465_v30, %s3764_s9  ;;  %v2476_v18 = vrot.slane %v2475_v20, 2  ;;  %v2534_v34 = vrot.slane %v2533_v58, 2  ;;  %v2486_v11 = vadd.f32 %v2485_v4, %v2484_v42  ;;  %v2543_v16 = vrot.slane %v2542_v63, 1 }
 0x36e   :  { %v2683_v56 = vrot.slane %v2682_v5, 4  ;;  %1799 = vmatmul.bf16.gmra.mxu2 %v3449_v14  ;;  %v5963_v15 = vadd.f32 %v2546_v38, %v5881_v52  ;;  %v2553_v36 = vrot.slane %v5883_v22, 4  ;;  %1888 = vmatmul.bf16.gmra.mxu3 %v3449_v14  ;;  %v2870_v42 = vmul.f32 %v2864_v2, %v5769_v21 }
 0x36f   :  { %v2477_v37 = vadd.f32 %v2476_v18, %v2475_v20  ;;  %v2535_v8 = vadd.f32 %v2534_v34, %v2533_v58  ;;  %2493 = vrot.lane.b32.xlu0 %v2486_v11, %s3764_s9  ;;  %v2690_v62 = vrot.slane %v2689_v45, 4  ;;  %v2697_v30 = vrot.slane %v2696_v31, 4  ;;  %1621 = vmatmul.bf16.gmra.mxu0 %v3449_v14 }
 0x370   :  { %1710 = vmatmul.bf16.gmra.mxu1 %v3449_v14  ;;  %v2684_v20 = vadd.f32 %v2683_v56, %v2682_v5  ;;  %v2871_v38 = vmul.f32 %v2864_v2, %v5771_v47  ;;  %v2872_v34 = vmul.f32 %v2864_v2, %v5773_v61  ;;  %v2544_v11 = vadd.f32 %v2543_v16, %v2542_v63 }
 0x371   :  { %v2868_v6 = vpop.permute.xlu2 %2867  ;;  %v2478_v4 = vrot.slane %v2477_v37, 1  ;;  %v2536_v58 = vrot.slane %v2535_v8, 1  ;;  %v2554_v46 = vadd.f32 %v2553_v36, %v5883_v22  ;;  %v2873_v9 = vmul.f32 %v2864_v2, %v5777_v10  ;;  %v5985_v2 = vpop.f32.mrf.mxu1 }
 0x372   :  { %v2874_v32 = vmul.f32 %v2868_v6, %v5825_v60  ;;  %v2875_v18 = vmul.f32 %v2868_v6, %v5827_v44  ;;  %v2876_v52 = vmul.f32 %v2868_v6, %v5837_v51  ;;  %v2877_v28 = vmul.f32 %v2868_v6, %v5839_v33  ;;  %v2796_v16 = vpop.permute.xlu1 %2795  ;;  %6831 = vst [vmem:[#allocation35_spill] sm:$0xff] %v5985_v2  ;;  %v5987_v6 = vpop.f32.mrf.mxu2 }
 0x373   :  { %v2479_v25 = vadd.f32 %v2478_v4, %v2477_v37  ;;  %v2676_v5 = vrot.slane %v5943_v23, 4  ;;  %v2691_v14 = vadd.f32 %v2690_v62, %v2689_v45  ;;  %v2685_v22 = vrot.slane %v2684_v20, 2  ;;  %6832 = vst [vmem:[#allocation32_spill] sm:$0xff] %v5987_v6 }
 0x374   :  { %v5976_v24 = vadd.f32 %v2874_v32, %v2870_v42  ;;  %v5981_v56 = vadd.f32 %v2875_v18, %v2871_v38  ;;  %v5983_v63 = vadd.f32 %v2876_v52, %v2872_v34  ;;  %v2698_v37 = vadd.f32 %v2697_v30, %v2696_v31  ;;  %v6000_v18 = vpop.f32.mrf.mxu3  ;;  %v6009_v38 = vpop.f32.mrf.mxu0 }
 0x375   :  { %2561 = vrot.lane.b32.xlu2 %v2544_v11, %s3765_s13  ;;  %2491 = vrot.lane.b32.xlu1 %v2479_v25, %s3764_s9  ;;  %v2537_v36 = vadd.f32 %v2536_v58, %v2535_v8  ;;  %v5989_v32 = vadd.f32 %v2877_v28, %v2873_v9  ;;  %v2735_v45 = vrot.slane %v5908_v53, 4  ;;  %v2742_v42 = vrot.slane %v5910_v29, 4  ;;  %6833 = vst [vmem:[#allocation31_spill] sm:$0xff] %v6000_v18 }
 0x376   :  { %v2604_v25 = vrot.slane %v5918_v35, 4  ;;  %v2611_v62 = vrot.slane %v5920_v13, 4  ;;  %v2618_v4 = vrot.slane %v5926_v43, 4  ;;  %v2798_v31 = vmul.f32 %v5935_v49, %v5769_v21  ;;  %6834 = vst [vmem:[#allocation26_spill] sm:$0xff] %v6009_v38 }
 0x377   :  { %v2799_v30 = vmul.f32 %v5935_v49, %v5771_v47  ;;  %2559 = vrot.lane.b32.xlu0 %v2537_v36, %s3765_s13  ;;  %v2802_v28 = vmul.f32 %v2796_v16, %v5825_v60  ;;  %v2800_v9 = vmul.f32 %v5935_v49, %v5773_v61  ;;  %v2801_v8 = vmul.f32 %v5935_v49, %v5777_v10 }
 0x378   :  { %v2677_v58 = vadd.f32 %v2676_v5, %v5943_v23  ;;  %v2692_v52 = vrot.slane %v2691_v14, 2  ;;  %v2686_v21 = vadd.f32 %v2685_v22, %v2684_v20  ;;  %v2699_v34 = vrot.slane %v2698_v37, 2 }
 0x379   :  { %v2803_v47 = vmul.f32 %v2796_v16, %v5827_v44  ;;  %v2804_v11 = vmul.f32 %v2796_v16, %v5837_v51  ;;  %v2805_v36 = vmul.f32 %v2796_v16, %v5839_v33  ;;  %v6014_v60 = vadd.f32 %v2802_v28, %v2798_v31  ;;  %v3450_v33 = vld [vmem:[%s6639_s3 + $0x68] sm:$0xff] }
 0x37a   :  { %v2612_v61 = vadd.f32 %v2611_v62, %v5920_v13  ;;  %v2548_v18 = vrot.slane %v5963_v15, 2  ;;  %v2555_v23 = vrot.slane %v2554_v46, 2  ;;  %v2619_v5 = vadd.f32 %v2618_v4, %v5926_v43 }
 0x37b   :  { %v2813_v10 = vadd.f32 %v2803_v47, %v2799_v30  ;;  %v6018_v49 = vadd.f32 %v2804_v11, %v2800_v9  ;;  %v2743_v20 = vadd.f32 %v2742_v42, %v5910_v29  ;;  %v6022_v22 = vadd.f32 %v2805_v36, %v2801_v8  ;;  %v6030_v8 = vpop.f32.mrf.mxu1 }
 0x37c   :  { %v2613_v44 = vrot.slane %v2612_v61, 2  ;;  %v2549_v51 = vadd.f32 %v2548_v18, %v5963_v15  ;;  %v2693_v13 = vadd.f32 %v2692_v52, %v2691_v14  ;;  %v2700_v16 = vadd.f32 %v2699_v34, %v2698_v37  ;;  %6835 = vst [vmem:[#allocation33_spill] sm:$0xff] %v6030_v8  ;;  %v6032_v15 = vpop.f32.mrf.mxu2  ;;  %v6034_v11 = vpop.f32.mrf.mxu3 }
 0x37d   :  { %v2556_v62 = vadd.f32 %v2555_v23, %v2554_v46  ;;  %v2620_v31 = vrot.slane %v2619_v5, 2  ;;  %v2625_v30 = vrot.slane %v5928_v19, 4  ;;  %v2814_v28 = vrot.slane %v2813_v10, 4  ;;  %6836 = vst [vmem:[#allocation27_spill] sm:$0xff] %v6032_v15 }
 0x37e   :  { %v2614_v9 = vadd.f32 %v2613_v44, %v2612_v61  ;;  %v2550_v43 = vrot.slane %v2549_v51, 1  ;;  %1804 = vmatmul.bf16.gmra.mxu2 %v3450_v33  ;;  %v2736_v29 = vadd.f32 %v2735_v45, %v5908_v53  ;;  %v2678_v42 = vrot.slane %v2677_v58, 2  ;;  %1893 = vmatmul.bf16.gmra.mxu3 %v3450_v33  ;;  %6837 = vst [vmem:[#allocation28_spill] sm:$0xff] %v6034_v11  ;;  %v6037_v61 = vpop.f32.mrf.mxu0 }
 0x37f   :  { %v2687_v4 = vrot.slane %v2686_v21, 1  ;;  %v2557_v18 = vrot.slane %v2556_v62, 1  ;;  %v2621_v46 = vadd.f32 %v2620_v31, %v2619_v5  ;;  %v2744_v52 = vrot.slane %v2743_v20, 2  ;;  %1626 = vmatmul.bf16.gmra.mxu0 %v3450_v33  ;;  %6838 = vst [vmem:[#allocation18_spill] sm:$0xff] %v6037_v61 }
 0x380   :  { %v2615_v14 = vrot.slane %v2614_v9, 1  ;;  %v2551_v37 = vadd.f32 %v2550_v43, %v2549_v51  ;;  %1715 = vmatmul.bf16.gmra.mxu1 %v3450_v33  ;;  %v2694_v34 = vrot.slane %v2693_v13, 1  ;;  %v2701_v47 = vrot.slane %v2700_v16, 1 }
 0x381   :  { %v2558_v36 = vadd.f32 %v2557_v18, %v2556_v62  ;;  %v2605_v53 = vadd.f32 %v2604_v25, %v5918_v35  ;;  %v2815_v45 = vadd.f32 %v2814_v28, %v2813_v10  ;;  %v2745_v44 = vadd.f32 %v2744_v52, %v2743_v20 }
 0x382   :  { %v2616_v23 = vadd.f32 %v2615_v14, %v2614_v9  ;;  %2563 = vrot.lane.b32.xlu1 %v2551_v37, %s3765_s13  ;;  %v2626_v51 = vadd.f32 %v2625_v30, %v5928_v19  ;;  %v2679_v5 = vadd.f32 %v2678_v42, %v2677_v58  ;;  %v2749_v31 = vrot.slane %v5914_v1, 4 }
 0x383   :  { %2565 = vrot.lane.b32.xlu0 %v2558_v36, %s3765_s13  ;;  %v2606_v33 = vrot.slane %v2605_v53, 2  ;;  %v2756_v43 = vrot.slane %v5916_v50, 4  ;;  %v2622_v35 = vrot.slane %v2621_v46, 1  ;;  %v2737_v25 = vrot.slane %v2736_v29, 2 }
 0x384   :  { %2633 = vrot.lane.b32.xlu2 %v2616_v23, %s3748_s11  ;;  %v2688_v10 = vadd.f32 %v2687_v4, %v2686_v21  ;;  %v2879_v62 = vrot.slane %v5976_v24, 4  ;;  %v2627_v9 = vrot.slane %v2626_v51, 2  ;;  %v2695_v20 = vadd.f32 %v2694_v34, %v2693_v13  ;;  %v6049_v21 = vpop.f32.mrf.mxu1  ;;  %v6051_v4 = vpop.f32.mrf.mxu2 }
 0x385   :  { %v2607_v28 = vadd.f32 %v2606_v33, %v2605_v53  ;;  %v2702_v18 = vadd.f32 %v2701_v47, %v2700_v16  ;;  %v2746_v19 = vrot.slane %v2745_v44, 1  ;;  %v2816_v58 = vrot.slane %v2815_v45, 2 }
 0x386   :  { %v2680_v30 = vrot.slane %v2679_v5, 1  ;;  %v2750_v14 = vadd.f32 %v2749_v31, %v5914_v1  ;;  %v2757_v37 = vadd.f32 %v2756_v43, %v5916_v50  ;;  %v2623_v52 = vadd.f32 %v2622_v35, %v2621_v46  ;;  %v3451_v1 = vld [vmem:[%s6639_s3 + $0x70] sm:$0xff]  ;;  %v6061_v46 = vpop.f32.mrf.mxu0 }
 0x387   :  { %v2608_v42 = vrot.slane %v2607_v28, 1  ;;  %v2738_v36 = vadd.f32 %v2737_v25, %v2736_v29  ;;  %v2709_v23 = vrot.slane %v2688_v10, 7  ;;  %v2880_v6 = vadd.f32 %v2879_v62, %v5976_v24  ;;  %v6057_v29 = vpop.f32.mrf.mxu3 }
 0x388   :  { %v2628_v13 = vadd.f32 %v2627_v9, %v2626_v51  ;;  %v2710_v16 = vrot.slane %v2695_v20, 6  ;;  %v2711_v34 = vrot.slane %v2702_v18, 5  ;;  %v2747_v47 = vadd.f32 %v2746_v19, %v2745_v44 }
 0x389   :  { %v2609_v53 = vadd.f32 %v2608_v42, %v2607_v28  ;;  %v2817_v33 = vadd.f32 %v2816_v58, %v2815_v45  ;;  %v2681_v50 = vadd.f32 %v2680_v30, %v2679_v5  ;;  %v2807_v24 = vrot.slane %v6014_v60, 4 }
 0x38a   :  { %2635 = vrot.lane.b32.xlu1 %v2623_v52, %s3748_s11  ;;  %v2739_v51 = vrot.slane %v2738_v36, 1  ;;  %v2751_v31 = vrot.slane %v2750_v14, 2  ;;  %v2828_v45 = vrot.slane %v6022_v22, 4  ;;  %v2629_v44 = vrot.slane %v2628_v13, 1 }
 0x38b   :  { %2631 = vrot.lane.b32.xlu0 %v2609_v53, %s3748_s11  ;;  %v2758_v43 = vrot.slane %v2757_v37, 2  ;;  %v2712_v5 = vsel %vm2360_vm6, %v2681_v50, %v2709_v23  ;;  %v2900_v35 = vrot.slane %v5989_v32, 4  ;;  %v2818_v25 = vrot.slane %v2817_v33, 1 }
 0x38c   :  { %2764 = vrot.lane.b32.xlu2 %v2747_v47, %s3766_s18  ;;  %v2881_v10 = vrot.slane %v2880_v6, 2  ;;  %v2713_v62 = vsel %vm2509_vm0, %v2710_v16, %v2711_v34  ;;  %v2808_v9 = vadd.f32 %v2807_v24, %v6014_v60  ;;  %v2740_v20 = vadd.f32 %v2739_v51, %v2738_v36  ;;  %v6075_v53 = vpop.f32.mrf.mxu1  ;;  %v6077_v16 = vpop.f32.mrf.mxu2 }
 0x38d   :  { %v6069_v28 = vsel %vm2365_vm8, %v2712_v5, %v2713_v62  ;;  %v2752_v18 = vadd.f32 %v2751_v31, %v2750_v14  ;;  %v2829_v19 = vadd.f32 %v2828_v45, %v6022_v22  ;;  %v2630_v58 = vadd.f32 %v2629_v44, %v2628_v13  ;;  %6839 = vst [vmem:[#allocation29_spill] sm:$0xff] %v6075_v53 }
 0x38e   :  { %1809 = vmatmul.bf16.gmra.mxu2 %v3451_v1  ;;  %1898 = vmatmul.bf16.gmra.mxu3 %v3451_v1  ;;  %v2759_v30 = vadd.f32 %v2758_v43, %v2757_v37  ;;  %v2901_v42 = vadd.f32 %v2900_v35, %v5989_v32  ;;  %v2819_v52 = vadd.f32 %v2818_v25, %v2817_v33  ;;  %v2821_v60 = vrot.slane %v6018_v49, 4  ;;  %v3452_v43 = vld [vmem:[%s6639_s3 + $0x78] sm:$0xff] }
 0x38f   :  { %1631 = vmatmul.bf16.gmra.mxu0 %v3451_v1  ;;  %v2882_v23 = vadd.f32 %v2881_v10, %v2880_v6  ;;  %6840 = vst [vmem:[#allocation22_spill] sm:$0xff] %v6077_v16  ;;  %v2753_v22 = vrot.slane %v2752_v18, 1  ;;  %v2809_v14 = vrot.slane %v2808_v9, 2  ;;  %v2893_v37 = vrot.slane %v5983_v63, 4  ;;  %v6083_v32 = vpop.f32.mrf.mxu3  ;;  %v6085_v6 = vpop.f32.mrf.mxu0 }
 0x390   :  { %1720 = vmatmul.bf16.gmra.mxu1 %v3451_v1  ;;  %6841 = vst [vmem:[#allocation19_spill] sm:$0xff] %v6083_v32  ;;  %v2760_v36 = vrot.slane %v2759_v30, 1  ;;  %v2830_v13 = vrot.slane %v2829_v19, 2  ;;  %v2902_v47 = vrot.slane %v2901_v42, 2  ;;  %v2822_v33 = vadd.f32 %v2821_v60, %v6018_v49 }
 0x391   :  { %6842 = vst [vmem:[#allocation23_spill] sm:$0xff] %v6085_v6  ;;  %v2883_v34 = vrot.slane %v2882_v23, 1  ;;  %v2754_v1 = vadd.f32 %v2753_v22, %v2752_v18  ;;  %v2810_v50 = vadd.f32 %v2809_v14, %v2808_v9  ;;  %v2894_v24 = vadd.f32 %v2893_v37, %v5983_v63 }
 0x392   :  { %2762 = vrot.lane.b32.xlu1 %v2740_v20, %s3766_s18  ;;  %v2761_v51 = vadd.f32 %v2760_v36, %v2759_v30  ;;  %v2831_v31 = vadd.f32 %v2830_v13, %v2829_v19  ;;  %v2903_v44 = vadd.f32 %v2902_v47, %v2901_v42  ;;  %v2886_v5 = vrot.slane %v5981_v56, 4 }
 0x393   :  { %2637 = vrot.lane.b32.xlu0 %v2630_v58, %s3748_s11  ;;  %v2884_v45 = vadd.f32 %v2883_v34, %v2882_v23  ;;  %v2811_v49 = vrot.slane %v2810_v50, 1  ;;  %v2823_v35 = vrot.slane %v2822_v33, 2  ;;  %v2895_v62 = vrot.slane %v2894_v24, 2 }
 0x394   :  { %2836 = vrot.lane.b32.xlu2 %v2819_v52, %s3767_s19  ;;  %v6096_v63 = vpop.f32.mrf.mxu1  ;;  %v6098_v25 = vpop.f32.mrf.mxu2  ;;  %v2832_v10 = vrot.slane %v2831_v31, 1  ;;  %v2904_v9 = vrot.slane %v2903_v44, 1  ;;  %v2887_v18 = vadd.f32 %v2886_v5, %v5981_v56 }
 0x395   :  { %6843 = vst [vmem:[#allocation24_spill] sm:$0xff] %v6096_v63  ;;  %v2812_v58 = vadd.f32 %v2811_v49, %v2810_v50  ;;  %v2824_v30 = vadd.f32 %v2823_v35, %v2822_v33  ;;  %v2896_v52 = vadd.f32 %v2895_v62, %v2894_v24  ;;  %v3092_v33 = vld [vmem:[%s6640_s4 + $0x10] sm:$0xff]  ;;  %v3090_v49 = vld [vmem:[%s6640_s4] sm:$0xff] }
 0x396   :  { %6844 = vst [vmem:[#allocation20_spill] sm:$0xff] %v6098_v25  ;;  %v2833_v42 = vadd.f32 %v2832_v10, %v2831_v31  ;;  %v2905_v23 = vadd.f32 %v2904_v9, %v2903_v44  ;;  %v2888_v22 = vrot.slane %v2887_v18, 2  ;;  %v3094_v44 = vld [vmem:[%s6640_s4 + $0x20] sm:$0xff]  ;;  %v3096_v35 = vld [vmem:[%s6640_s4 + $0x30] sm:$0xff]  ;;  %v3097_v10 = vld [vmem:[%s6640_s4 + $0x38] sm:$0xff] }
 0x397   :  { %v6100_v20 = vpop.f32.mrf.mxu3  ;;  %v6103_v19 = vpop.f32.mrf.mxu0  ;;  %v2825_v60 = vrot.slane %v2824_v30, 1  ;;  %v2897_v14 = vrot.slane %v2896_v52, 1 }
 0x398   :  { %6845 = vst [vmem:[#allocation25_spill] sm:$0xff] %v6100_v20  ;;  %v2889_v13 = vadd.f32 %v2888_v22, %v2887_v18 }
 0x399   :  { %6846 = vst [vmem:[#allocation14_spill] sm:$0xff] %v6103_v19  ;;  %v2826_v36 = vadd.f32 %v2825_v60, %v2824_v30  ;;  %v2898_v47 = vadd.f32 %v2897_v14, %v2896_v52  ;;  %v3093_v30 = vld [vmem:[%s6640_s4 + $0x18] sm:$0xff]  ;;  %v3100_v52 = vld [vmem:[%s6640_s4 + $0x50] sm:$0xff]  ;;  %v3095_v14 = vld [vmem:[%s6640_s4 + $0x28] sm:$0xff] }
 0x39a   :  { %2766 = vrot.lane.b32.xlu1 %v2754_v1, %s3766_s18  ;;  %v2890_v50 = vrot.slane %v2889_v13, 1 }
 0x39b   :  { %2768 = vrot.lane.b32.xlu0 %v2761_v51, %s3766_s18  ;;  %v3091_v51 = vld [vmem:[%s6640_s4 + $0x8] sm:$0xff] }
 0x39c   :  { %2906 = vrot.lane.b32.xlu2 %v2884_v45, %s3768_s1  ;;  %v6108_v37 = vpop.f32.mrf.mxu1  ;;  %v6110_v56 = vpop.f32.mrf.mxu2  ;;  %v2891_v24 = vadd.f32 %v2890_v50, %v2889_v13  ;;  %v3102_v13 = vld [vmem:[%s6640_s4 + $0x60] sm:$0xff] }
 0x39d   :  { %6847 = vst [vmem:[#allocation21_spill] sm:$0xff] %v6108_v37 }
 0x39e   :  { %1814 = vmatmul.bf16.gmra.mxu2 %v3452_v43  ;;  %1903 = vmatmul.bf16.gmra.mxu3 %v3452_v43  ;;  %6848 = vst [vmem:[#allocation16_spill] sm:$0xff] %v6110_v56 }
 0x39f   :  { %1636 = vmatmul.bf16.gmra.mxu0 %v3452_v43  ;;  %v6112_v34 = vpop.f32.mrf.mxu3  ;;  %v6117_v1 = vpop.f32.mrf.mxu0 }
 0x3a0   :  { %1725 = vmatmul.bf16.gmra.mxu1 %v3452_v43  ;;  %6849 = vst [vmem:[#allocation15_spill] sm:$0xff] %v6112_v34 }
 0x3a1   :  { %6850 = vst [vmem:[#allocation17_spill] sm:$0xff] %v6117_v1 }
 0x3a2   :  { %2834 = vrot.lane.b32.xlu1 %v2812_v58, %s3767_s19 }
 0x3a3   :  { %2840 = vrot.lane.b32.xlu0 %v2833_v42, %s3767_s19  ;;  %v3099_v42 = vld [vmem:[%s6640_s4 + $0x48] sm:$0xff] }
 0x3a4   :  { %2912 = vrot.lane.b32.xlu2 %v2905_v23, %s3768_s1  ;;  %v6124_v31 = vpop.f32.mrf.mxu1  ;;  %v6126_v45 = vpop.f32.mrf.mxu2 }
 0x3a5   :  { %6851 = vst [vmem:[#allocation37_spill] sm:$0xff] %v6124_v31 }
 0x3a6   :  { %6852 = vst [vmem:[#allocation38_spill] sm:$0xff] %v6126_v45 }
 0x3a7   :  { %v6132_v43 = vpop.f32.mrf.mxu3  ;;  %v6134_v5 = vpop.f32.mrf.mxu0 }
 0x3a8   :  { %6853 = vst [vmem:[#allocation39_spill] sm:$0xff] %v6132_v43 }
 0x3a9   :  { %6854 = vst [vmem:[#allocation40_spill] sm:$0xff] %v6134_v5 }
 0x3aa   :  { %2838 = vrot.lane.b32.xlu1 %v2826_v36, %s3767_s19  ;;  %s3321_s19 = sshll.u32 %s6644_s8, 4  ;;  %s3322_s19 = int_to_ptr.hbm [resolvable:$true] %s3321_s19 }
 0x3ab   :  { %2910 = vrot.lane.b32.xlu0 %v2898_v47, %s3768_s1  ;;  %v3103_v47 = vld [vmem:[%s6640_s4 + $0x68] sm:$0xff] }
 0x3ac   :  { %3118 = vperm.xlu2 %3493, %v3092_v33   ;;  %v6145_v62 = vpop.f32.mrf.mxu1  ;;  %v6147_v9 = vpop.f32.mrf.mxu2 }
 0x3ad   :  { %6855 = vst [vmem:[#allocation41_spill] sm:$0xff] %v6145_v62 }
 0x3ae   :  { %6856 = vst [vmem:[#allocation42_spill] sm:$0xff] %v6147_v9 }
 0x3af   :  { %v6149_v18 = vpop.f32.mrf.mxu3  ;;  %v6151_v58 = vpop.f32.mrf.mxu0 }
 0x3b0   :  { %6857 = vst [vmem:[#allocation43_spill] sm:$0xff] %v6149_v18 }
 0x3b1   :  { %6858 = vst [vmem:[#allocation44_spill] sm:$0xff] %v6151_v58 }
 0x3b2   :  { %2908 = vrot.lane.b32.xlu1 %v2891_v24, %s3768_s1  ;;  %v3098_v24 = vld [vmem:[%s6640_s4 + $0x40] sm:$0xff] }
 0x3b3   :  { %3113 = vperm.xlu0 %3492, %v3091_v51   ;;  %v3105_v51 = vld [vmem:[%s6640_s4 + $0x78] sm:$0xff] }
 0x3b4   :  { %3128 = vperm.xlu2 %3493, %v3094_v44   ;;  %v6162_v23 = vpop.f32.mrf.mxu1  ;;  %v6164_v60 = vpop.f32.mrf.mxu2 }
 0x3b5   :  { %6859 = vst [vmem:[#allocation45_spill] sm:$0xff] %v6162_v23 }
 0x3b6   :  { %6860 = vst [vmem:[#allocation46_spill] sm:$0xff] %v6164_v60 }
 0x3b7   :  { %v6166_v22 = vpop.f32.mrf.mxu3  ;;  %v6171_v36 = vpop.f32.mrf.mxu0 }
 0x3b8   :  { %6861 = vst [vmem:[#allocation47_spill] sm:$0xff] %v6166_v22 }
 0x3b9   :  { %6862 = vst [vmem:[#allocation48_spill] sm:$0xff] %v6171_v36 }
 0x3ba   :  { %3108 = vperm.xlu1 %3491, %v3090_v49  }
 0x3bb   :  { %3138 = vperm.xlu0 %3492, %v3096_v35   ;;  %v3101_v35 = vld [vmem:[%s6640_s4 + $0x58] sm:$0xff] }
 0x3bc   :  { %3143 = vperm.xlu2 %3493, %v3097_v10   ;;  %v6179_v33 = vpop.f32.mrf.mxu1  ;;  %v6181_v50 = vpop.f32.mrf.mxu2 }
 0x3bd   :  { %6863 = vst [vmem:[#allocation49_spill] sm:$0xff] %v6179_v33 }
 0x3be   :  { %6864 = vst [vmem:[#allocation50_spill] sm:$0xff] %v6181_v50 }
 0x3bf   :  { %v6189_v44 = vpop.f32.mrf.mxu3  ;;  %v6191_v49 = vpop.f32.mrf.mxu0 }
 0x3c0   :  { %6865 = vst [vmem:[#allocation51_spill] sm:$0xff] %v6189_v44 }
 0x3c1   :  { %6866 = vst [vmem:[#allocation52_spill] sm:$0xff] %v6191_v49 }
 0x3c2   :  { %3123 = vperm.xlu1 %3491, %v3093_v30  }
 0x3c3   :  { %3153 = vperm.xlu0 %3492, %v3099_v42  }
 0x3c4   :  { %3158 = vperm.xlu2 %3493, %v3100_v52   ;;  %v6196_v10 = vpop.f32.mrf.mxu1  ;;  %v6198_v30 = vpop.f32.mrf.mxu2 }
 0x3c5   :  { %6867 = vst [vmem:[#allocation53_spill] sm:$0xff] %v6196_v10 }
 0x3c6   :  { %6868 = vst [vmem:[#allocation54_spill] sm:$0xff] %v6198_v30 }
 0x3c7   :  { %v6200_v42 = vpop.f32.mrf.mxu3  ;;  %v6202_v52 = vpop.f32.mrf.mxu0 }
 0x3c8   :  { %6869 = vst [vmem:[#allocation55_spill] sm:$0xff] %v6200_v42  ;;  %v2490_v44 = vpop.permute.xlu2 %2489 }
 0x3c9   :  { %6870 = vst [vmem:[#allocation56_spill] sm:$0xff] %v6202_v52 }
 0x3ca   :  { %3133 = vperm.xlu1 %3491, %v3095_v14   ;;  %v3104_v14 = vld [vmem:[%s6640_s4 + $0x70] sm:$0xff] }
 0x3cb   :  { %3168 = vperm.xlu0 %3492, %v3102_v13  }
 0x3cc   :  { %3173 = vperm.xlu2 %3493, %v3103_v47  }
 0x3cf   :  { %v6211_v50 = vpop.f32.mrf.mxu3  ;;  %v6213_v33 = vpop.f32.mrf.mxu0 }
 0x3d0   :  { %6871 = vst [vmem:[#allocation57_spill] sm:$0xff] %v6211_v50  ;;  %v2562_v31 = vpop.permute.xlu2 %2561 }
 0x3d2   :  { %3148 = vperm.xlu1 %3491, %v3098_v24   ;;  %v6207_v24 = vpop.f32.mrf.mxu1 }
 0x3d3   :  { %3183 = vperm.xlu0 %3492, %v3105_v51   ;;  %v6209_v51 = vpop.f32.mrf.mxu2 }
 0x3d7   :  { %v6219_v5 = vpop.f32.mrf.mxu3  ;;  %v6221_v52 = vpop.f32.mrf.mxu0 }
 0x3da   :  { %3163 = vperm.xlu1 %3491, %v3101_v35   ;;  %v6215_v43 = vpop.f32.mrf.mxu1 }
 0x3db   :  { %v6217_v45 = vpop.f32.mrf.mxu2 }
 0x3de   :  { %v2634_v32 = vpop.permute.xlu2 %2633 }
 0x3df   :  { %v2488_v13 = vpop.permute.xlu1 %2487  ;;  %v6227_v16 = vpop.f32.mrf.mxu3 }
 0x3e0   :  { %v6229_v53 = vpop.f32.mrf.mxu0 }
 0x3e1   :  { %v2494_v47 = vpop.permute.xlu0 %2493 }
 0x3e2   :  { %3178 = vperm.xlu1 %3491, %v3104_v14   ;;  %v6223_v30 = vpop.f32.mrf.mxu1 }
 0x3e3   :  { %v6225_v10 = vpop.f32.mrf.mxu2 }
 0x3e6   :  { %v6235_v58 = vpop.permute.xlu2 %2764 }
 0x3e7   :  { %v2492_v35 = vpop.permute.xlu1 %2491  ;;  %v6237_v2 = vpop.f32.mrf.mxu3 }
 0x3e8   :  { %6874 = vst [vmem:[#allocation60_spill] sm:$0xff] %v6237_v2  ;;  %v6239_v38 = vpop.f32.mrf.mxu0  ;;  %v2496_v2 = vsel %vm2495_vm1, %v2492_v35, %v2494_v47  ;;  %v2497_v11 = vsel %vm2495_vm1, %v2490_v44, %v2492_v35 }
 0x3e9   :  { %v2560_v49 = vpop.permute.xlu0 %2559  ;;  %6875 = vst [vmem:[#allocation61_spill] sm:$0xff] %v6239_v38  ;;  %v2498_v38 = vsel %vm2495_vm1, %v2488_v13, %v2490_v44  ;;  %v2506_v8 = vrot.slane %v2497_v11, 6  ;;  %v2507_v35 = vrot.slane %v2496_v2, 5  ;;  %v2499_v11 = vsel %vm2495_vm1, %v2494_v47, %v2488_v13 }
 0x3ea   :  { %v6231_v9 = vpop.f32.mrf.mxu1  ;;  %v2570_v1 = vsel %vm2567_vm2, %v2560_v49, %v2562_v31 }
 0x3eb   :  { %6872 = vst [vmem:[#allocation58_spill] sm:$0xff] %v6231_v9  ;;  %v6233_v62 = vpop.f32.mrf.mxu2  ;;  %v2510_v2 = vsel %vm2509_vm0, %v2506_v8, %v2507_v35  ;;  %v3431_v35 = vld [vmem:[%s6643_s7 + $0x2] ss:$8 sm:$0xf] }
 0x3ec   :  { %6873 = vst [vmem:[#allocation59_spill] sm:$0xff] %v6233_v62 }
 0x3ee   :  { %v6247_v19 = vpop.permute.xlu2 %2836 }
 0x3ef   :  { %v6250_v60 = vpop.f32.mrf.mxu3 }
 0x3f0   :  { %v6257_v62 = vpop.f32.mrf.mxu0 }
 0x3f2   :  { %v6243_v25 = vpop.f32.mrf.mxu1 }
 0x3f3   :  { %v6245_v63 = vpop.f32.mrf.mxu2 }
 0x3f4   :  { %v2564_v14 = vpop.permute.xlu1 %2563 }
 0x3f5   :  { %v2566_v42 = vpop.permute.xlu0 %2565  ;;  %v2569_v61 = vsel %vm2567_vm2, %v2562_v31, %v2564_v14 }
 0x3f6   :  { %v2568_v15 = vsel %vm2567_vm2, %v2564_v14, %v2566_v42  ;;  %v2579_v34 = vrot.slane %v2569_v61, 6  ;;  %v2505_v14 = vrot.slane %v2498_v38, 7  ;;  %v2571_v61 = vsel %vm2567_vm2, %v2566_v42, %v2560_v49  ;;  %v6282_v38 = vpop.permute.xlu2 %2906 }
 0x3f7   :  { %v2580_v56 = vrot.slane %v2568_v15, 5  ;;  %v6292_v13 = vpop.f32.mrf.mxu3 }
 0x3f8   :  { %6878 = vst [vmem:[#allocation64_spill] sm:$0xff] %v6292_v13 }
 0x3fa   :  { %v6278_v15 = vpop.f32.mrf.mxu1 }
 0x3fb   :  { %6876 = vst [vmem:[#allocation62_spill] sm:$0xff] %v6278_v15  ;;  %v6284_v44 = vpop.f32.mrf.mxu2 }
 0x3fc   :  { %v2636_v6 = vpop.permute.xlu1 %2635  ;;  %6877 = vst [vmem:[#allocation63_spill] sm:$0xff] %v6284_v44 }
 0x3fd   :  { %v2632_v18 = vpop.permute.xlu0 %2631  ;;  %v2641_v37 = vsel %vm2639_vm3, %v2634_v32, %v2636_v6 }
 0x3fe   :  { %v2642_v7 = vsel %vm2639_vm3, %v2632_v18, %v2634_v32  ;;  %v2582_v32 = vsel %vm2509_vm0, %v2579_v34, %v2580_v56  ;;  %v2508_v56 = vsel %vm2360_vm6, %v2499_v11, %v2505_v14 }
 0x3ff   :  { %v2650_v47 = vrot.slane %v2642_v7, 7  ;;  %v3430_v7 = vld [vmem:[%s6643_s7 + $0x1] ss:$8 sm:$0xf] }
 0x404   :  { %v6241_v36 = vpop.permute.xlu1 %2762 }
 0x405   :  { %v2638_v20 = vpop.permute.xlu0 %2637 }
 0x406   :  { %v2640_v9 = vsel %vm2639_vm3, %v2636_v6, %v2638_v20  ;;  %v2651_v6 = vrot.slane %v2641_v37, 6  ;;  %v2643_v27 = vsel %vm2639_vm3, %v2638_v20, %v2632_v18  ;;  %v2500_v20 = vld [vmem:[%s6643_s7] ss:$8 sm:$0xf]  ;;  %v6305_v18 = vpop.f32.mrf.mxu0 }
 0x407   :  { %v2652_v0 = vrot.slane %v2640_v9, 5  ;;  %v2578_v9 = vrot.slane %v2570_v1, 7  ;;  %6879 = vst [vmem:[#allocation65_spill] sm:$0xff] %v6305_v18 }
 0x409   :  { %v2654_v37 = vsel %vm2509_vm0, %v2651_v6, %v2652_v0  ;;  %v2581_v34 = vsel %vm2360_vm6, %v2571_v61, %v2578_v9  ;;  %v2511_v0 = vsel %vm2365_vm8, %v2508_v56, %v2510_v2 }
 0x40a   :  { %v2513_v6 = vmul.f32 %v2511_v0, %v2500_v20 }
 0x40c   :  { %v2767_v22 = vpop.permute.xlu1 %2766 }
 0x40d   :  { %v2769_v23 = vpop.permute.xlu0 %2768  ;;  %v2772_v8 = vsel %vm2770_vm4, %v6235_v58, %v2767_v22 }
 0x40e   :  { %v2771_v1 = vsel %vm2770_vm4, %v2767_v22, %v2769_v23  ;;  %v2774_v49 = vsel %vm2770_vm4, %v2769_v23, %v6241_v36  ;;  %v2583_v23 = vsel %vm2365_vm8, %v2581_v34, %v2582_v32  ;;  %v2653_v22 = vsel %vm2360_vm6, %v2643_v27, %v2650_v47 }
 0x40f   :  { %v2781_v42 = vrot.slane %v2772_v8, 7  ;;  %v2655_v14 = vsel %vm2365_vm8, %v2653_v22, %v2654_v37  ;;  %v2782_v11 = vrot.slane %v2771_v1, 6  ;;  %v2783_v61 = vrot.slane %v2774_v49, 5 }
 0x410   :  { %v2585_v9 = vmul.f32 %v3430_v7, %v2583_v23  ;;  %v2773_v32 = vsel %vm2770_vm4, %v6241_v36, %v6235_v58  ;;  %v2657_v8 = vmul.f32 %v3431_v35, %v2655_v14  ;;  %v6331_v7 = vpop.f32.mrf.mxu1  ;;  %v6337_v23 = vpop.f32.mrf.mxu2  ;;  %v3432_v14 = vld [vmem:[%s6643_s7 + $0x3] ss:$8 sm:$0xf] }
 0x411   :  { %v2784_v47 = vsel %vm2360_vm6, %v2773_v32, %v2781_v42  ;;  %v2785_v1 = vsel %vm2509_vm0, %v2782_v11, %v2783_v61  ;;  %v6341_v35 = vpop.f32.mrf.mxu3  ;;  %v6352_v61 = vpop.f32.mrf.mxu0 }
 0x412   :  { %v2586_v36 = vadd.f32 %v2585_v9, %v2513_v6  ;;  %v3434_v9 = vld [vmem:[%s6643_s7 + $0x5] ss:$8 sm:$0xf] }
 0x414   :  { %v2835_v50 = vpop.permute.xlu1 %2834 }
 0x415   :  { %v2841_v31 = vpop.permute.xlu0 %2840  ;;  %v2845_v58 = vsel %vm2842_vm5, %v2835_v50, %v6247_v19 }
 0x416   :  { %v2846_v2 = vsel %vm2842_vm5, %v2841_v31, %v2835_v50  ;;  %v2786_v50 = vsel %vm2365_vm8, %v2784_v47, %v2785_v1 }
 0x417   :  { %v2855_v49 = vrot.slane %v2846_v2, 5  ;;  %v2658_v2 = vadd.f32 %v2657_v8, %v2586_v36 }
 0x41c   :  { %v2839_v27 = vpop.permute.xlu1 %2838 }
 0x41d   :  { %v2843_v56 = vsel %vm2842_vm5, %v2839_v27, %v2841_v31  ;;  %v2844_v37 = vsel %vm2842_vm5, %v6247_v19, %v2839_v27  ;;  %v2911_v0 = vpop.permute.xlu0 %2910  ;;  %v2913_v31 = vpop.permute.xlu2 %2912  ;;  %v3433_v19 = vld [vmem:[%s6643_s7 + $0x4] ss:$8 sm:$0xf]  ;;  %v2716_v27 = vmul.f32 %v3432_v14, %v6069_v28 }
 0x41e   :  { %v2853_v20 = vrot.slane %v2844_v37, 7  ;;  %v2854_v34 = vrot.slane %v2843_v56, 6  ;;  %v2915_v11 = vsel %vm2914_vm7, %v2911_v0, %v2913_v31  ;;  %v2918_v6 = vsel %vm2914_vm7, %v2913_v31, %v6282_v38  ;;  %v6375_v14 = vpop.f32.mrf.mxu2 }
 0x41f   :  { %v2788_v56 = vmul.f32 %v3433_v19, %v2786_v50  ;;  %v2926_v47 = vrot.slane %v2915_v11, 6  ;;  %v2717_v8 = vadd.f32 %v2716_v27, %v2658_v2  ;;  %v6377_v11 = vpop.f32.mrf.mxu3  ;;  %v1619_v2 = vpop.f32.mrf.mxu0 }
 0x420   :  { %v2856_v22 = vsel %vm2360_vm6, %v2845_v58, %v2853_v20  ;;  %v2857_v42 = vsel %vm2509_vm0, %v2854_v34, %v2855_v49  ;;  %v2927_v49 = vrot.slane %v2918_v6, 5  ;;  %v3435_v58 = vld [vmem:[%s6643_s7 + $0x6] ss:$8 sm:$0xf]  ;;  %s3769_s7 = smov [#allocation5]  }
 0x421   :  { %v2858_v32 = vsel %vm2365_vm8, %v2856_v22, %v2857_v42  ;;  %v2789_v31 = vadd.f32 %v2788_v56, %v2717_v8  ;;  %v6372_v42 = vpop.f32.mrf.mxu1  ;;  %s3319_s16 = sshll.u32 %s3769_s7, 4  ;;  %s3320_s16 = int_to_ptr.vmem [resolvable:$true] %s3319_s16 }
 0x422   :  { %v2860_v20 = vmul.f32 %v3434_v9, %v2858_v32  ;;  %v2929_v28 = vsel %vm2509_vm0, %v2926_v47, %v2927_v49 }
 0x424   :  { %v2909_v37 = vpop.permute.xlu1 %2908  ;;  %v2861_v19 = vadd.f32 %v2860_v20, %v2789_v31 }
 0x425   :  { %v2916_v1 = vsel %vm2914_vm7, %v2909_v37, %v2911_v0  ;;  %v2917_v36 = vsel %vm2914_vm7, %v6282_v38, %v2909_v37 }
 0x426   :  { %v2925_v34 = vrot.slane %v2916_v1, 7  ;;  %v6381_v38 = vpop.f32.mrf.mxu2 }
 0x427   :  { %6881 = vst [vmem:[#allocation67_spill] sm:$0xff] %v6381_v38  ;;  %v6383_v32 = vpop.f32.mrf.mxu3  ;;  %v6385_v56 = vpop.f32.mrf.mxu0 }
 0x428   :  { %v2928_v22 = vsel %vm2360_vm6, %v2917_v36, %v2925_v34  ;;  %6882 = vst [vmem:[#allocation68_spill] sm:$0xff] %v6383_v32 }
 0x429   :  { %v2930_v0 = vsel %vm2365_vm8, %v2928_v22, %v2929_v28  ;;  %v6379_v40 = vpop.f32.mrf.mxu1  ;;  %6883 = vst [vmem:[#allocation69_spill] sm:$0xff] %v6385_v56 }
 0x42a   :  { %v2932_v50 = vmul.f32 %v3435_v58, %v2930_v0  ;;  %6880 = vst [vmem:[#allocation66_spill] sm:$0xff] %v6379_v40  ;;  %v3119_v58 = vpop.permute.xlu2 %3118 }
 0x42c   :  { %v2933_v6 = vadd.f32 %v2932_v50, %v2861_v19 }
 0x42e   :  { %v3436_v9 = vmul.f32 -1.442695, %v2933_v6  ;;  %v6389_v1 = vpop.f32.mrf.mxu2 }
 0x42f   :  { %v6391_v8 = vpop.f32.mrf.mxu3  ;;  %v6393_v20 = vpop.f32.mrf.mxu0 }
 0x430   :  { %3626 = vpow2.f32 %v3436_v9  ;;  %6884 = vst [vmem:[#allocation70_spill] sm:$0xff] %v6391_v8 }
 0x431   :  { %v6387_v37 = vpop.f32.mrf.mxu1 }
 0x436   :  { %v3627_v27 = vpop.eup %3626  ;;  %v6397_v6 = vpop.f32.mrf.mxu2 }
 0x437   :  { %v2937_v47 = vadd.f32 1.0, %v3627_v27  ;;  %v6399_v27 = vpop.f32.mrf.mxu3  ;;  %v6401_v38 = vpop.f32.mrf.mxu0 }
 0x439   :  { %3628 = vrcp.f32 %v2937_v47  ;;  %v2949_v31 = vand.u32 2147483648, %v2937_v47  ;;  %v2947_v22 = vand.u32 2147483647, %v2937_v47  ;;  %vm2943_vm8 = vweird.f32 %v2937_v47  ;;  %v6395_v19 = vpop.f32.mrf.mxu1 }
 0x43b   :  { %v2950_v50 = vor.u32 1.1754944e-38, %v2949_v31  ;;  %vm2948_vm10 = vcmp.eq.f32.partialorder %v2947_v22, 8.507059e+37 }
 0x43f   :  { %v3629_v49 = vpop.eup %3628 }
 0x440   :  { %v2939_v34 = vmul.f32 %v3629_v49, %v2937_v47  ;;  %vm2944_vm6 = vweird.f32 %v3629_v49 }
 0x441   :  { %vm2945_vm9 = vmor %vm2943_vm8, %vm2944_vm6 }
 0x442   :  { %v2940_v36 = vsub.f32 1.0, %v2939_v34 }
 0x444   :  { %v2941_v28 = vmul.f32 %v3629_v49, %v2940_v36 }
 0x446   :  { %v2942_v0 = vadd.f32 %v3629_v49, %v2941_v28  ;;  %v3129_v28 = vpop.permute.xlu2 %3128 }
 0x448   :  { %v2946_v9 = vsel %vm2945_vm9, %v3629_v49, %v2942_v0 }
 0x449   :  { %v2951_v32 = vsel %vm2948_vm10, %v2950_v50, %v2946_v9 }
 0x44a   :  { %v6403_v34 = vperm.slane %v2951_v32, 0  ;;  %v6405_v36 = vperm.slane %v2951_v32, 1  ;;  %v6407_v40 = vperm.slane %v2951_v32, 2  ;;  %v6409_v47 = vperm.slane %v2951_v32, 3 }
 0x44c   :  { %v2970_v31 = vmul.f32 %v6403_v34, %v6229_v53  ;;  %v2971_v49 = vmul.f32 %v6405_v36, %v6223_v30  ;;  %v2972_v22 = vmul.f32 %v6407_v40, %v6225_v10  ;;  %v2973_v0 = vmul.f32 %v6409_v47, %v6227_v16 }
 0x44d   :  { %v2978_v50 = vmul.f32 %v6403_v34, %v6257_v62  ;;  %v2979_v32 = vmul.f32 %v6405_v36, %v6243_v25  ;;  %v2980_v9 = vmul.f32 %v6407_v40, %v6245_v63  ;;  %v2981_v53 = vmul.f32 %v6409_v47, %v6250_v60 }
 0x44e   :  { %v3034_v30 = vadd.f32 %v2970_v31, %v5890_v57  ;;  %v3035_v56 = vadd.f32 %v2971_v49, %v5873_v41  ;;  %v3036_v10 = vadd.f32 %v2972_v22, %v5875_v3  ;;  %v3037_v16 = vadd.f32 %v2973_v0, %v5879_v48  ;;  %v6435_v57 = vpop.f32.mrf.mxu1  ;;  %v3144_v31 = vpop.permute.xlu2 %3143 }
 0x44f   :  { %v3042_v13 = vadd.f32 %v2978_v50, %v5960_v12  ;;  %v3043_v62 = vadd.f32 %v2979_v32, %v5948_v26  ;;  %v3044_v25 = vadd.f32 %v2980_v9, %v5950_v54  ;;  %v3045_v63 = vadd.f32 %v2981_v53, %v5953_v17  ;;  %v6444_v54 = vpop.f32.mrf.mxu2  ;;  %v6446_v12 = vpop.f32.mrf.mxu3  ;;  %v6885_v50 = vld [vmem:[#allocation10_spill] sm:$0xff]  ;;  %v6887_v9 = vld [vmem:[#allocation13_spill] sm:$0xff] }
 0x450   :  { %v3194_v44 = vadd.f32 %v3119_v58, %v3034_v30  ;;  %v3195_v15 = vadd.f32 %v3119_v58, %v3035_v56  ;;  %v3196_v18 = vadd.f32 %v3119_v58, %v3036_v10  ;;  %v2990_v41 = vmul.f32 %v6403_v34, %v1619_v2  ;;  %v6453_v56 = vpop.f32.mrf.mxu0  ;;  %v3109_v49 = vpop.permute.xlu1 %3108 }
 0x451   :  { %v3202_v60 = vadd.f32 %v3129_v28, %v3042_v13  ;;  %v3203_v8 = vadd.f32 %v3129_v28, %v3043_v62  ;;  %v2991_v3 = vmul.f32 %v6405_v36, %v6372_v42  ;;  %v2992_v48 = vmul.f32 %v6407_v40, %v6375_v14  ;;  %v6889_v62 = vld [vmem:[#allocation8_spill] sm:$0xff] }
 0x452   :  { %3254 = vst [vmem:[#allocation5 + $0x20] sm:$0xff] %v3194_v44  ;;  %v2993_v26 = vmul.f32 %v6409_v47, %v6377_v11  ;;  %v3197_v17 = vadd.f32 %v3119_v58, %v3037_v16  ;;  %v2967_v44 = vmul.f32 %v6405_v36, %v6215_v43  ;;  %v3204_v13 = vadd.f32 %v3129_v28, %v3044_v25 }
 0x453   :  { %3255 = vst [vmem:[#allocation5 + $0x28] sm:$0xff] %v3195_v15  ;;  %v3054_v2 = vadd.f32 %v2990_v41, %v6061_v46  ;;  %v3055_v42 = vadd.f32 %v2991_v3, %v6049_v21  ;;  %v3056_v14 = vadd.f32 %v2992_v48, %v6051_v4  ;;  %v3205_v11 = vadd.f32 %v3129_v28, %v3045_v63  ;;  %v6890_v3 = vld [vmem:[#allocation9_spill] sm:$0xff] }
 0x454   :  { %3258 = vst [vmem:[#allocation5 + $0x40] sm:$0xff] %v3202_v60  ;;  %v3057_v15 = vadd.f32 %v2993_v26, %v6057_v29  ;;  %v2968_v58 = vmul.f32 %v6407_v40, %v6217_v45  ;;  %v2969_v21 = vmul.f32 %v6409_v47, %v6219_v5  ;;  %v3031_v4 = vadd.f32 %v2967_v44, %v5795_v55  ;;  %v3114_v55 = vpop.permute.xlu0 %3113 }
 0x455   :  { %3259 = vst [vmem:[#allocation5 + $0x48] sm:$0xff] %v3203_v8  ;;  %v3214_v43 = vadd.f32 %v3144_v31, %v3054_v2  ;;  %v3215_v22 = vadd.f32 %v3144_v31, %v3055_v42  ;;  %v3216_v46 = vadd.f32 %v3144_v31, %v3056_v14  ;;  %v2966_v8 = vmul.f32 %v6403_v34, %v6221_v52  ;;  %v6886_v52 = vld [vmem:[#allocation57_spill] sm:$0xff] }
 0x456   :  { %3287 = vst [vmem:[#allocation5 + $0x120] sm:$0xff] %v3196_v18  ;;  %v3032_v29 = vadd.f32 %v2968_v58, %v5797_v59  ;;  %v2962_v45 = vmul.f32 %v6403_v34, %v6213_v33  ;;  %v2963_v18 = vmul.f32 %v6405_v36, %v6207_v24  ;;  %v2964_v28 = vmul.f32 %v6407_v40, %v6209_v51  ;;  %v6888_v24 = vld [vmem:[#allocation12_spill] sm:$0xff]  ;;  %v6478_v16 = vpop.f32.mrf.mxu1  ;;  %v6892_v14 = vld [vmem:[#allocation21_spill] sm:$0xff] }
 0x457   :  { %3288 = vst [vmem:[#allocation5 + $0x128] sm:$0xff] %v3197_v17  ;;  %v3217_v0 = vadd.f32 %v3144_v31, %v3057_v15  ;;  %v3033_v5 = vadd.f32 %v2969_v21, %v5808_v39  ;;  %v3030_v32 = vadd.f32 %v2966_v8, %v6885_v50  ;;  %v2965_v59 = vmul.f32 %v6409_v47, %v6886_v52  ;;  %v6483_v60 = vpop.f32.mrf.mxu2  ;;  %v6490_v17 = vpop.f32.mrf.mxu3 }
 0x458   :  { %3291 = vst [vmem:[#allocation5 + $0x140] sm:$0xff] %v3204_v13  ;;  %v3026_v53 = vadd.f32 %v2962_v45, %v6887_v9  ;;  %v3191_v30 = vadd.f32 %v3114_v55, %v3031_v4  ;;  %v3027_v10 = vadd.f32 %v2963_v18, %v6888_v24  ;;  %v3002_v51 = vmul.f32 %v6403_v34, %v6401_v38  ;;  %v6891_v13 = vld [vmem:[#allocation17_spill] sm:$0xff]  ;;  %v6493_v42 = vpop.f32.mrf.mxu0  ;;  %v6496_v31 = vpop.permute.xlu1 %3123  ;;  %v6900_v9 = vld [vmem:[#allocation59_spill] sm:$0xff]  ;;  %v6902_v24 = vld [vmem:[#allocation60_spill] sm:$0xff] }
 0x459   :  { %3292 = vst [vmem:[#allocation5 + $0x148] sm:$0xff] %v3205_v11  ;;  %v3190_v33 = vadd.f32 %v3114_v55, %v3030_v32  ;;  %v3192_v39 = vadd.f32 %v3114_v55, %v3032_v29  ;;  %v3028_v25 = vadd.f32 %v2964_v28, %v6889_v62  ;;  %v3003_v63 = vmul.f32 %v6405_v36, %v6395_v19  ;;  %v6895_v28 = vld [vmem:[#allocation33_spill] sm:$0xff]  ;;  %v6898_v32 = vld [vmem:[#allocation27_spill] sm:$0xff]  ;;  %v6903_v62 = vld [vmem:[#allocation34_spill] sm:$0xff] }
 0x45a   :  { %3264 = vst [vmem:[#allocation5 + $0x70] sm:$0xff] %v3214_v43  ;;  %v3193_v41 = vadd.f32 %v3114_v55, %v3033_v5  ;;  %v3029_v48 = vadd.f32 %v2965_v59, %v6890_v3  ;;  %v3004_v26 = vmul.f32 %v6407_v40, %v6397_v6  ;;  %v3005_v38 = vmul.f32 %v6409_v47, %v6399_v27  ;;  %v6893_v6 = vld [vmem:[#allocation16_spill] sm:$0xff]  ;;  %v6897_v55 = vld [vmem:[#allocation58_spill] sm:$0xff] }
 0x45b   :  { %3265 = vst [vmem:[#allocation5 + $0x78] sm:$0xff] %v3215_v22  ;;  %v3186_v44 = vadd.f32 %v3109_v49, %v3026_v53  ;;  %v3066_v2 = vadd.f32 %v3002_v51, %v6891_v13  ;;  %v3187_v19 = vadd.f32 %v3109_v49, %v3027_v10  ;;  %v3067_v11 = vadd.f32 %v3003_v63, %v6892_v14  ;;  %v3159_v22 = vpop.permute.xlu2 %3158  ;;  %v6899_v59 = vld [vmem:[#allocation18_spill] sm:$0xff] }
 0x45c   :  { %3297 = vst [vmem:[#allocation5 + $0x170] sm:$0xff] %v3216_v46  ;;  %v3188_v15 = vadd.f32 %v3109_v49, %v3028_v25  ;;  %v3068_v58 = vadd.f32 %v3004_v26, %v6893_v6  ;;  %v2987_v27 = vmul.f32 %v6405_v36, %v6331_v7  ;;  %v3189_v43 = vadd.f32 %v3109_v49, %v3029_v48  ;;  %v6894_v46 = vld [vmem:[#allocation15_spill] sm:$0xff]  ;;  %v6896_v49 = vld [vmem:[#allocation61_spill] sm:$0xff]  ;;  %v6906_v6 = vld [vmem:[#allocation36_spill] sm:$0xff] }
 0x45d   :  { %3298 = vst [vmem:[#allocation5 + $0x178] sm:$0xff] %v3217_v0  ;;  %v3069_v21 = vadd.f32 %v3005_v38, %v6894_v46  ;;  %v2988_v4 = vmul.f32 %v6407_v40, %v6337_v23  ;;  %v3226_v8 = vadd.f32 %v3159_v22, %v3066_v2  ;;  %v2989_v29 = vmul.f32 %v6409_v47, %v6341_v35  ;;  %v3139_v0 = vpop.permute.xlu0 %3138  ;;  %v6904_v48 = vld [vmem:[#allocation11_spill] sm:$0xff]  ;;  %v6905_v2 = vld [vmem:[#allocation30_spill] sm:$0xff] }
 0x45e   :  { %3252 = vst [vmem:[#allocation5 + $0x10] sm:$0xff] %v3190_v33  ;;  %v2986_v45 = vmul.f32 %v6403_v34, %v6352_v61  ;;  %v3227_v18 = vadd.f32 %v3159_v22, %v3067_v11  ;;  %v3051_v7 = vadd.f32 %v2987_v27, %v6895_v28  ;;  %v2974_v5 = vmul.f32 %v6403_v34, %v6896_v49  ;;  %v6901_v33 = vld [vmem:[#allocation28_spill] sm:$0xff]  ;;  %v1723_v51 = vpop.f32.mrf.mxu1  ;;  %v6910_v49 = vld [vmem:[#allocation70_spill] sm:$0xff] }
 0x45f   :  { %3253 = vst [vmem:[#allocation5 + $0x18] sm:$0xff] %v3191_v30  ;;  %v2975_v50 = vmul.f32 %v6405_v36, %v6897_v55  ;;  %v3228_v23 = vadd.f32 %v3159_v22, %v3068_v58  ;;  %v3052_v52 = vadd.f32 %v2988_v4, %v6898_v32  ;;  %v2976_v61 = vmul.f32 %v6407_v40, %v6900_v9  ;;  %v6912_v32 = vld [vmem:[#allocation14_spill] sm:$0xff] }
 0x460   :  { %3285 = vst [vmem:[#allocation5 + $0x110] sm:$0xff] %v3192_v39  ;;  %v3050_v35 = vadd.f32 %v2986_v45, %v6899_v59  ;;  %v3229_v53 = vadd.f32 %v3159_v22, %v3069_v21  ;;  %v3053_v30 = vadd.f32 %v2989_v29, %v6901_v33  ;;  %v2977_v10 = vmul.f32 %v6409_v47, %v6902_v24  ;;  %v1634_v11 = vpop.f32.mrf.mxu0  ;;  %v6527_v27 = vpop.permute.xlu1 %3133  ;;  %v6907_v22 = vld [vmem:[#allocation45_spill] sm:$0xff]  ;;  %v6908_v29 = vld [vmem:[#allocation46_spill] sm:$0xff] }
 0x461   :  { %3286 = vst [vmem:[#allocation5 + $0x118] sm:$0xff] %v3193_v41  ;;  %v3038_v25 = vadd.f32 %v2974_v5, %v6903_v62  ;;  %v3015_v63 = vmul.f32 %v6405_v36, %v1723_v51  ;;  %v1812_v41 = vpop.f32.mrf.mxu2  ;;  %v3211_v3 = vadd.f32 %v3139_v0, %v3051_v7  ;;  %v3039_v26 = vadd.f32 %v2975_v50, %v6904_v48  ;;  %v6909_v7 = vld [vmem:[#allocation47_spill] sm:$0xff]  ;;  %v6916_v51 = vld [vmem:[#allocation25_spill] sm:$0xff] }
 0x462   :  { %3250 = vst [vmem:[#allocation5] sm:$0xff] %v3186_v44  ;;  %v3210_v39 = vadd.f32 %v3139_v0, %v3050_v35  ;;  %v3016_v38 = vmul.f32 %v6407_v40, %v1812_v41  ;;  %v1901_v44 = vpop.f32.mrf.mxu3  ;;  %v3212_v13 = vadd.f32 %v3139_v0, %v3052_v52  ;;  %v3041_v58 = vadd.f32 %v2977_v10, %v6906_v6  ;;  %v6913_v35 = vld [vmem:[#allocation24_spill] sm:$0xff]  ;;  %v6917_v62 = vld [vmem:[#allocation63_spill] sm:$0xff] }
 0x463   :  { %3251 = vst [vmem:[#allocation5 + $0x8] sm:$0xff] %v3187_v19  ;;  %v3040_v19 = vadd.f32 %v2976_v61, %v6905_v2  ;;  %v3017_v14 = vmul.f32 %v6409_v47, %v1901_v44  ;;  %v3079_v46 = vadd.f32 %v3015_v63, %v6907_v22  ;;  %v2999_v21 = vmul.f32 %v6405_v36, %v6387_v37  ;;  %v6911_v37 = vld [vmem:[#allocation65_spill] sm:$0xff]  ;;  %v3174_v50 = vpop.permute.xlu2 %3173 }
 0x464   :  { %3283 = vst [vmem:[#allocation5 + $0x100] sm:$0xff] %v3188_v15  ;;  %v3213_v15 = vadd.f32 %v3139_v0, %v3053_v30  ;;  %v2998_v4 = vmul.f32 %v6403_v34, %v6393_v20  ;;  %v3080_v45 = vadd.f32 %v3016_v38, %v6908_v29  ;;  %v3001_v5 = vmul.f32 %v6409_v47, %v6910_v49  ;;  %v6915_v30 = vld [vmem:[#allocation62_spill] sm:$0xff] }
 0x465   :  { %3284 = vst [vmem:[#allocation5 + $0x108] sm:$0xff] %v3189_v43  ;;  %v3198_v43 = vadd.f32 %v6496_v31, %v3038_v25  ;;  %v3200_v28 = vadd.f32 %v6496_v31, %v3040_v19  ;;  %v3081_v0 = vadd.f32 %v3017_v14, %v6909_v7  ;;  %v2982_v55 = vmul.f32 %v6403_v34, %v6911_v37  ;;  %v6920_v19 = vld [vmem:[#allocation26_spill] sm:$0xff] }
 0x466   :  { %3270 = vst [vmem:[#allocation5 + $0xa0] sm:$0xff] %v3226_v8  ;;  %v3199_v8 = vadd.f32 %v6496_v31, %v3039_v26  ;;  %v3201_v20 = vadd.f32 %v6496_v31, %v3041_v58  ;;  %v3062_v52 = vadd.f32 %v2998_v4, %v6912_v32  ;;  %v3239_v59 = vadd.f32 %v3174_v50, %v3079_v46  ;;  %v6552_v10 = vpop.f32.mrf.mxu1  ;;  %v6919_v26 = vld [vmem:[#allocation64_spill] sm:$0xff]  ;;  %v6921_v58 = vld [vmem:[#allocation35_spill] sm:$0xff] }
 0x467   :  { %3271 = vst [vmem:[#allocation5 + $0xa8] sm:$0xff] %v3227_v18  ;;  %v3000_v18 = vmul.f32 %v6407_v40, %v6389_v1  ;;  %v3014_v1 = vmul.f32 %v6403_v34, %v1634_v11  ;;  %v3063_v9 = vadd.f32 %v2999_v21, %v6913_v35  ;;  %v3240_v61 = vadd.f32 %v3174_v50, %v3080_v45  ;;  %v6923_v45 = vld [vmem:[#allocation31_spill] sm:$0xff] }
 0x468   :  { %3303 = vst [vmem:[#allocation5 + $0x1a0] sm:$0xff] %v3228_v23  ;;  %v3154_v23 = vpop.permute.xlu0 %3153  ;;  %v2983_v24 = vmul.f32 %v6405_v36, %v6915_v30  ;;  %v3241_v31 = vadd.f32 %v3174_v50, %v3081_v0  ;;  %v2984_v25 = vmul.f32 %v6407_v40, %v6917_v62  ;;  %v2985_v38 = vmul.f32 %v6409_v47, %v6919_v26  ;;  %v6567_v11 = vpop.f32.mrf.mxu0  ;;  %v6925_v0 = vld [vmem:[#allocation69_spill] sm:$0xff]  ;;  %v6934_v26 = vld [vmem:[#allocation22_spill] sm:$0xff] }
 0x469   :  { %3304 = vst [vmem:[#allocation5 + $0x1a8] sm:$0xff] %v3229_v53  ;;  %v6914_v53 = vld [vmem:[#allocation20_spill] sm:$0xff]  ;;  %v6557_v63 = vpop.f32.mrf.mxu2  ;;  %v3222_v41 = vadd.f32 %v3154_v23, %v3062_v52  ;;  %v3223_v2 = vadd.f32 %v3154_v23, %v3063_v9  ;;  %v3046_v14 = vadd.f32 %v2982_v55, %v6920_v19  ;;  %v3149_v22 = vpop.permute.xlu1 %3148  ;;  %v3012_v46 = vmul.f32 %v6407_v40, %v6483_v60  ;;  %v6926_v60 = vld [vmem:[#allocation41_spill] sm:$0xff]  ;;  %v6929_v52 = vld [vmem:[#allocation67_spill] sm:$0xff] }
 0x46a   :  { %3262 = vst [vmem:[#allocation5 + $0x60] sm:$0xff] %v3210_v39  ;;  %v3064_v33 = vadd.f32 %v3000_v18, %v6914_v53  ;;  %v3065_v39 = vadd.f32 %v3001_v5, %v6916_v51  ;;  %v6562_v44 = vpop.f32.mrf.mxu3  ;;  %v3049_v18 = vadd.f32 %v2985_v38, %v6923_v45  ;;  %v2994_v49 = vmul.f32 %v6403_v34, %v6925_v0 }
 0x46b   :  { %3263 = vst [vmem:[#allocation5 + $0x68] sm:$0xff] %v3211_v3  ;;  %v6918_v3 = vld [vmem:[#allocation48_spill] sm:$0xff]  ;;  %v3206_v7 = vadd.f32 %v6527_v27, %v3046_v14  ;;  %v6935_v14 = vld [vmem:[#allocation19_spill] sm:$0xff] }
 0x46c   :  { %3295 = vst [vmem:[#allocation5 + $0x160] sm:$0xff] %v3212_v13  ;;  %v3078_v48 = vadd.f32 %v3014_v1, %v6918_v3  ;;  %v3010_v13 = vmul.f32 %v6403_v34, %v6493_v42  ;;  %v3224_v6 = vadd.f32 %v3154_v23, %v3064_v33  ;;  %v3225_v21 = vadd.f32 %v3154_v23, %v3065_v39  ;;  %v6922_v42 = vld [vmem:[#allocation32_spill] sm:$0xff] }
 0x46d   :  { %3296 = vst [vmem:[#allocation5 + $0x168] sm:$0xff] %v3213_v15  ;;  %v3011_v15 = vmul.f32 %v6405_v36, %v6478_v16  ;;  %v3048_v4 = vadd.f32 %v2984_v25, %v6922_v42  ;;  %v6924_v16 = vld [vmem:[#allocation44_spill] sm:$0xff]  ;;  %v2996_v1 = vmul.f32 %v6407_v40, %v6929_v52  ;;  %v3209_v9 = vadd.f32 %v6527_v27, %v3049_v18  ;;  %v6933_v25 = vld [vmem:[#allocation29_spill] sm:$0xff]  ;;  %v6943_v52 = vld [vmem:[#allocation39_spill] sm:$0xff] }
 0x46e   :  { %3256 = vst [vmem:[#allocation5 + $0x30] sm:$0xff] %v3198_v43  ;;  %v3047_v43 = vadd.f32 %v2983_v24, %v6921_v58  ;;  %v3238_v29 = vadd.f32 %v3174_v50, %v3078_v48  ;;  %v6928_v50 = vld [vmem:[#allocation42_spill] sm:$0xff]  ;;  %v1728_v33 = vpop.f32.mrf.mxu1  ;;  %v6932_v24 = vld [vmem:[#allocation23_spill] sm:$0xff]  ;;  %v3008_v18 = vmul.f32 %v6407_v40, %v6444_v54 }
 0x46f   :  { %3257 = vst [vmem:[#allocation5 + $0x38] sm:$0xff] %v3199_v8  ;;  %v3013_v8 = vmul.f32 %v6409_v47, %v6490_v17  ;;  %v3075_v5 = vadd.f32 %v3011_v15, %v6926_v60  ;;  %v3076_v23 = vadd.f32 %v3012_v46, %v6928_v50  ;;  %v3208_v32 = vadd.f32 %v6527_v27, %v3048_v4  ;;  %v6939_v60 = vld [vmem:[#allocation56_spill] sm:$0xff]  ;;  %v6942_v50 = vld [vmem:[#allocation38_spill] sm:$0xff] }
 0x470   :  { %3289 = vst [vmem:[#allocation5 + $0x130] sm:$0xff] %v3200_v28  ;;  %v3074_v28 = vadd.f32 %v3010_v13, %v6924_v16  ;;  %v3207_v37 = vadd.f32 %v6527_v27, %v3047_v43  ;;  %v3169_v55 = vpop.permute.xlu0 %3168  ;;  %v3023_v51 = vmul.f32 %v6405_v36, %v1728_v33  ;;  %v3060_v38 = vadd.f32 %v2996_v1, %v6934_v26 }
 0x471   :  { %3290 = vst [vmem:[#allocation5 + $0x138] sm:$0xff] %v3201_v20  ;;  %v6927_v20 = vld [vmem:[#allocation66_spill] sm:$0xff]  ;;  %v1817_v39 = vpop.f32.mrf.mxu2  ;;  %v3235_v62 = vadd.f32 %v3169_v55, %v3075_v5  ;;  %v3236_v27 = vadd.f32 %v3169_v55, %v3076_v23  ;;  %v3164_v58 = vpop.permute.xlu1 %3163  ;;  %v3006_v43 = vmul.f32 %v6403_v34, %v6453_v56  ;;  %v3007_v4 = vmul.f32 %v6405_v36, %v6435_v57  ;;  %v6940_v57 = vld [vmem:[#allocation40_spill] sm:$0xff] }
 0x472   :  { %3277 = vst [vmem:[#allocation5 + $0xd8] sm:$0xff] %v3239_v59  ;;  %v2995_v17 = vmul.f32 %v6405_v36, %v6927_v20  ;;  %v6930_v59 = vld [vmem:[#allocation43_spill] sm:$0xff]  ;;  %v3234_v30 = vadd.f32 %v3169_v55, %v3074_v28  ;;  %v3024_v3 = vmul.f32 %v6407_v40, %v1817_v39  ;;  %v1906_v48 = vpop.f32.mrf.mxu3  ;;  %v3220_v16 = vadd.f32 %v3149_v22, %v3060_v38  ;;  %v6941_v20 = vld [vmem:[#allocation37_spill] sm:$0xff] }
 0x473   :  { %3309 = vst [vmem:[#allocation5 + $0x1d0] sm:$0xff] %v3240_v61  ;;  %v3077_v35 = vadd.f32 %v3013_v8, %v6930_v59  ;;  %v6931_v61 = vld [vmem:[#allocation68_spill] sm:$0xff]  ;;  %v3025_v13 = vmul.f32 %v6409_v47, %v1906_v48  ;;  %v6938_v28 = vld [vmem:[#allocation55_spill] sm:$0xff]  ;;  %v3009_v56 = vmul.f32 %v6409_v47, %v6446_v12  ;;  %v3072_v23 = vadd.f32 %v3008_v18, %v6942_v50 }
 0x474   :  { %3310 = vst [vmem:[#allocation5 + $0x1d8] sm:$0xff] %v3241_v31  ;;  %v2997_v53 = vmul.f32 %v6409_v47, %v6931_v61  ;;  %v3058_v31 = vadd.f32 %v2994_v49, %v6932_v24  ;;  %v3019_v1 = vmul.f32 %v6405_v36, %v6552_v10  ;;  %v3021_v61 = vmul.f32 %v6409_v47, %v6562_v44  ;;  %v6945_v24 = vld [vmem:[#allocation49_spill] sm:$0xff]  ;;  %v6946_v10 = vld [vmem:[#allocation50_spill] sm:$0xff] }
 0x475   :  { %3268 = vst [vmem:[#allocation5 + $0x90] sm:$0xff] %v3222_v41  ;;  %v3059_v41 = vadd.f32 %v2995_v17, %v6933_v25  ;;  %v3237_v19 = vadd.f32 %v3169_v55, %v3077_v35  ;;  %v3071_v17 = vadd.f32 %v3007_v4, %v6941_v20  ;;  %v3020_v35 = vmul.f32 %v6407_v40, %v6557_v63  ;;  %v6947_v63 = vld [vmem:[#allocation51_spill] sm:$0xff] }
 0x476   :  { %3269 = vst [vmem:[#allocation5 + $0x98] sm:$0xff] %v3223_v2  ;;  %v1639_v2 = vpop.f32.mrf.mxu0  ;;  %v3061_v15 = vadd.f32 %v2997_v53, %v6935_v14  ;;  %v3218_v46 = vadd.f32 %v3149_v22, %v3058_v31  ;;  %v3083_v31 = vadd.f32 %v3019_v1, %v6945_v24  ;;  %v3085_v39 = vadd.f32 %v3021_v61, %v6947_v63 }
 0x477   :  { %3301 = vst [vmem:[#allocation5 + $0x190] sm:$0xff] %v3224_v6  ;;  %v3022_v6 = vmul.f32 %v6403_v34, %v1639_v2  ;;  %v3219_v8 = vadd.f32 %v3149_v22, %v3059_v41  ;;  %v3231_v53 = vadd.f32 %v3164_v58, %v3071_v17 }
 0x478   :  { %3302 = vst [vmem:[#allocation5 + $0x198] sm:$0xff] %v3225_v21  ;;  %v6936_v21 = vld [vmem:[#allocation53_spill] sm:$0xff]  ;;  %v3221_v0 = vadd.f32 %v3149_v22, %v3061_v15  ;;  %v3184_v49 = vpop.permute.xlu0 %3183  ;;  %v3073_v22 = vadd.f32 %v3009_v56, %v6943_v52 }
 0x479   :  { %3276 = vst [vmem:[#allocation5 + $0xd0] sm:$0xff] %v3238_v29  ;;  %v3087_v42 = vadd.f32 %v3023_v51, %v6936_v21  ;;  %v6937_v29 = vld [vmem:[#allocation54_spill] sm:$0xff]  ;;  %v3086_v5 = vadd.f32 %v3022_v6, %v6939_v60  ;;  %v3084_v51 = vadd.f32 %v3020_v35, %v6946_v10 }
 0x47a   :  { %3260 = vst [vmem:[#allocation5 + $0x50] sm:$0xff] %v3206_v7  ;;  %v3088_v45 = vadd.f32 %v3024_v3, %v6937_v29  ;;  %v3089_v7 = vadd.f32 %v3025_v13, %v6938_v28  ;;  %v3233_v36 = vadd.f32 %v3164_v58, %v3073_v22 }
 0x47b   :  { %3261 = vst [vmem:[#allocation5 + $0x58] sm:$0xff] %v3207_v37  ;;  %v3070_v37 = vadd.f32 %v3006_v43, %v6940_v57  ;;  %v3247_v55 = vadd.f32 %v3184_v49, %v3087_v42  ;;  %v3246_v59 = vadd.f32 %v3184_v49, %v3086_v5 }
 0x47c   :  { %3293 = vst [vmem:[#allocation5 + $0x150] sm:$0xff] %v3208_v32  ;;  %v3248_v54 = vadd.f32 %v3184_v49, %v3088_v45  ;;  %v3018_v32 = vmul.f32 %v6403_v34, %v6567_v11  ;;  %v3249_v12 = vadd.f32 %v3184_v49, %v3089_v7  ;;  %v3179_v34 = vpop.permute.xlu1 %3178  ;;  %v6944_v11 = vld [vmem:[#allocation52_spill] sm:$0xff] }
 0x47d   :  { %3294 = vst [vmem:[#allocation5 + $0x158] sm:$0xff] %v3209_v9  ;;  %v3230_v9 = vadd.f32 %v3164_v58, %v3070_v37  ;;  %v3244_v47 = vadd.f32 %v3179_v34, %v3084_v51  ;;  %v3245_v44 = vadd.f32 %v3179_v34, %v3085_v39 }
 0x47e   :  { %3274 = vst [vmem:[#allocation5 + $0xc0] sm:$0xff] %v3234_v30  ;;  %v3082_v33 = vadd.f32 %v3018_v32, %v6944_v11  ;;  %v3232_v30 = vadd.f32 %v3164_v58, %v3072_v23 }
 0x47f   :  { %3275 = vst [vmem:[#allocation5 + $0xc8] sm:$0xff] %v3235_v62  ;;  %v3243_v62 = vadd.f32 %v3179_v34, %v3083_v31 }
 0x480   :  { %3307 = vst [vmem:[#allocation5 + $0x1c0] sm:$0xff] %v3236_v27  ;;  %v3242_v40 = vadd.f32 %v3179_v34, %v3082_v33 }
 0x481   :  { %3308 = vst [vmem:[#allocation5 + $0x1c8] sm:$0xff] %v3237_v19 }
 0x482   :  { %3266 = vst [vmem:[#allocation5 + $0x80] sm:$0xff] %v3218_v46 }
 0x483   :  { %3267 = vst [vmem:[#allocation5 + $0x88] sm:$0xff] %v3219_v8 }
 0x484   :  { %3299 = vst [vmem:[#allocation5 + $0x180] sm:$0xff] %v3220_v16 }
 0x485   :  { %3300 = vst [vmem:[#allocation5 + $0x188] sm:$0xff] %v3221_v0 }
 0x486   :  { %3281 = vst [vmem:[#allocation5 + $0xf8] sm:$0xff] %v3247_v55 }
 0x487   :  { %3313 = vst [vmem:[#allocation5 + $0x1f0] sm:$0xff] %v3248_v54 }
 0x488   :  { %3314 = vst [vmem:[#allocation5 + $0x1f8] sm:$0xff] %v3249_v12 }
 0x489   :  { %3280 = vst [vmem:[#allocation5 + $0xf0] sm:$0xff] %v3246_v59 }
 0x48a   :  { %3272 = vst [vmem:[#allocation5 + $0xb0] sm:$0xff] %v3230_v9 }
 0x48b   :  { %3273 = vst [vmem:[#allocation5 + $0xb8] sm:$0xff] %v3231_v53 }
 0x48c   :  { %3305 = vst [vmem:[#allocation5 + $0x1b0] sm:$0xff] %v3232_v30 }
 0x48d   :  { %3306 = vst [vmem:[#allocation5 + $0x1b8] sm:$0xff] %v3233_v36 }
 0x48e   :  { %3278 = vst [vmem:[#allocation5 + $0xe0] sm:$0xff] %v3242_v40 }
 0x48f   :  { %3279 = vst [vmem:[#allocation5 + $0xe8] sm:$0xff] %v3243_v62 }
 0x490   :  { %3311 = vst [vmem:[#allocation5 + $0x1e0] sm:$0xff] %v3244_v47 }
 0x491   :  { %3312 = vst [vmem:[#allocation5 + $0x1e8] sm:$0xff] %v3245_v44 }
 0x492   :  { %3327 = dma.vmem_to_hbm [thread:$0]  %s3320_s16, 8192, %s3322_s19, [#allocation4], %s3747_s10, %s3747_s10, %s3748_s11  }
 0x493   :  { %3744 = dma.done.wait [#allocation4], 8192  }
 0x494   :  { %3745 = vsyncadd [#allocation4], 4294959104 }
 0x495   :  { %3332 = vsyncpa [#allocation3], 1 }
 0x496   :  { %3333 = vsyncpa [#allocation4], 1 }

</bundles_post_ra>
